<compile_context>
chip_gen: v7x
topology: tpu7x:2x2x1
jax: 0.10.0
libtpu: 0.0.40
codegen_flags: <defaults>
</compile_context>

<pallas_src>
import functools

import jax
import jax.numpy as jnp
from jax.experimental import pallas as pl
from jax.experimental.pallas import tpu as pltpu


# ---------------------------------------------------------------------------
# Tiling / VMEM helpers
# ---------------------------------------------------------------------------
def _round_up(x, m):
    return (x + m - 1) // m * m


def _tile_m(m):
    """Row tile for the (pixels x channels) matmuls.

    Full extent when tiny; otherwise an 8-aligned tile that yields >= 2 grid
    blocks so a v7x dual-TensorCore chip gets work on both cores (the extra
    ~0.35us grid step is negligible on v5e/v6e)."""
    if m <= 128:
        return m
    if m <= 1024:
        return _round_up(pl.cdiv(m, 2), 8)
    return 512


_VMEM_LIMIT_CACHE = None


def _vmem_limit():
    """Generation-aware VMEM cap: <= half the physical VMEM, at most 48 MiB
    (=> 32 MiB on v7x's 64 MiB/TC, 48 MiB on v5e/v6e's 128 MiB)."""
    global _VMEM_LIMIT_CACHE
    if _VMEM_LIMIT_CACHE is None:
        cap = 128 * 1024 * 1024
        try:
            cap = int(getattr(pltpu.get_tpu_info(), "vmem_capacity_bytes", cap))
        except Exception:
            pass
        _VMEM_LIMIT_CACHE = min(48 * 1024 * 1024, cap // 2)
    return _VMEM_LIMIT_CACHE


# ---------------------------------------------------------------------------
# Fused unit-head kernel (one grid step over the full K reduction):
#   y   = x @ W_skip  [+ up @ W_up]  + bias          (BN scale folded into W)
#   out = relu(y)                                    -> bf16
#   res1= relu(out @ W_r1 + b_r1)                    -> bf16
# ---------------------------------------------------------------------------
def _head_kernel(x_ref, w_ref, b_ref, wr_ref, br_ref, out_ref, res_ref):
    y = jnp.dot(x_ref[...], w_ref[...], preferred_element_type=jnp.float32)
    y = jnp.maximum(y + b_ref[...], 0.0)
    yb = y.astype(jnp.bfloat16)              # single f32->bf16 pack, reused
    out_ref[...] = yb
    r = jnp.dot(yb, wr_ref[...], preferred_element_type=jnp.float32)
    res_ref[...] = jnp.maximum(r + br_ref[...], 0.0).astype(res_ref.dtype)


def _head_kernel_up(x_ref, w_ref, b_ref, up_ref, wu_ref, wr_ref, br_ref,
                    out_ref, res_ref):
    y = jnp.dot(x_ref[...], w_ref[...], preferred_element_type=jnp.float32)
    y = y + jnp.dot(up_ref[...], wu_ref[...], preferred_element_type=jnp.float32)
    y = jnp.maximum(y + b_ref[...], 0.0)
    yb = y.astype(jnp.bfloat16)
    out_ref[...] = yb
    r = jnp.dot(yb, wr_ref[...], preferred_element_type=jnp.float32)
    res_ref[...] = jnp.maximum(r + br_ref[...], 0.0).astype(res_ref.dtype)


def fused_head_call(x2d, p_skip, p_up, up2d, p_r1, cp):
    """x2d: (M, K) bf16; up2d: (M, cp) bf16 or None.
    Returns (out2d, res1_2d), each (M, cp) bf16 (padded lanes stay zero)."""
    M, K = x2d.shape
    tm = _tile_m(M)
    grid_m = pl.cdiv(M, tm)
    has_up = up2d is not None

    bias = p_skip["bias"] + p_up["bias"] if has_up else p_skip["bias"]

    in_specs = [
        pl.BlockSpec((tm, K), lambda i: (i, 0)),     # activations (full K)
        pl.BlockSpec((K, cp), lambda i: (0, 0)),     # scale-folded u_skip W
        pl.BlockSpec((1, cp), lambda i: (0, 0)),     # combined bias
    ]
    args = [x2d, p_skip["w"], bias]
    if has_up:
        in_specs += [pl.BlockSpec((tm, cp), lambda i: (i, 0)),
                     pl.BlockSpec((cp, cp), lambda i: (0, 0))]
        args += [up2d, p_up["w"]]
    in_specs += [pl.BlockSpec((cp, cp), lambda i: (0, 0)),   # res_conv1 W
                 pl.BlockSpec((1, cp), lambda i: (0, 0))]    # res_conv1 bias
    args += [p_r1["w"], p_r1["bias"]]

    out, res1 = pl.pallas_call(
        _head_kernel_up if has_up else _head_kernel,
        out_shape=(jax.ShapeDtypeStruct((M, cp), jnp.bfloat16),
                   jax.ShapeDtypeStruct((M, cp), jnp.bfloat16)),
        grid=(grid_m,),
        in_specs=in_specs,
        out_specs=(pl.BlockSpec((tm, cp), lambda i: (i, 0)),
                   pl.BlockSpec((tm, cp), lambda i: (i, 0))),
        compiler_params=pltpu.CompilerParams(
            dimension_semantics=("parallel",),
            vmem_limit_bytes=_vmem_limit()),
    )(*args)
    return out, res1


# ---------------------------------------------------------------------------
# 3x3 conv (res_conv2) without an HBM im2col: one halo-padded image per grid
# step, 9 shifted matmuls accumulated in f32 inside the kernel, bf16 output.
# TODO(synk): for very large spatial sizes, tile rows with an explicit halo
#             (manual DMA) instead of one whole image per grid step.
# ---------------------------------------------------------------------------
def _conv3x3_kernel(x_ref, w_ref, b_ref, o_ref):
    _, ho, wo, op = o_ref.shape
    cp = x_ref.shape[3]
    acc = None
    for t in range(9):
        dy, dx = t // 3, t % 3
        patch = x_ref[0, dy:dy + ho, dx:dx + wo, :].reshape(ho * wo, cp)
        d = jnp.dot(patch, w_ref[t], preferred_element_type=jnp.float32)
        acc = d if acc is None else acc + d
    acc = acc + b_ref[...]
    o_ref[0] = acc.reshape(ho, wo, op).astype(o_ref.dtype)


def conv3x3_call(x_pad_nhwc, p, h, w, op):
    """x_pad_nhwc: (N, h+2, w+2, cp) bf16 (zero halo). Returns (N, h, w, op) bf16."""
    n, hp, wp, cp = x_pad_nhwc.shape
    return pl.pallas_call(
        _conv3x3_kernel,
        out_shape=jax.ShapeDtypeStruct((n, h, w, op), jnp.bfloat16),
        grid=(n,),
        in_specs=[pl.BlockSpec((1, hp, wp, cp), lambda i: (i, 0, 0, 0)),
                  pl.BlockSpec((9, cp, op), lambda i: (0, 0, 0)),
                  pl.BlockSpec((1, op), lambda i: (0, 0))],
        out_specs=pl.BlockSpec((1, h, w, op), lambda i: (i, 0, 0, 0)),
        compiler_params=pltpu.CompilerParams(
            dimension_semantics=("parallel",),
            vmem_limit_bytes=_vmem_limit()),
    )(x_pad_nhwc, p["w"], p["bias"])


# ---------------------------------------------------------------------------
# Bilinear resize (align_corners=True) via small interpolation matrices
# ---------------------------------------------------------------------------
def _interp_matrix(out_size, in_size):
    if in_size == 1:
        return jnp.ones((out_size, 1), jnp.float32)
    o = jnp.arange(out_size, dtype=jnp.float32)
    if out_size == 1:
        src = jnp.zeros((1,), jnp.float32)
    else:
        src = o * (in_size - 1) / (out_size - 1)
    i0 = jnp.clip(jnp.floor(src).astype(jnp.int32), 0, in_size - 1)
    i1 = jnp.minimum(i0 + 1, in_size - 1)
    w1 = src - i0.astype(jnp.float32)
    w0 = 1.0 - w1
    return (w0[:, None] * jax.nn.one_hot(i0, in_size, dtype=jnp.float32)
            + w1[:, None] * jax.nn.one_hot(i1, in_size, dtype=jnp.float32))


# ---------------------------------------------------------------------------
# Parameters: deterministic synthetic init, BN folded (scale into f32 weight
# then bf16 cast; bias kept in f32), output channels padded to lane-dense 128.
# ---------------------------------------------------------------------------
def make_cbr_params(key, cin, cout, ksize, cout_pad, cin_pad=None):
    cin_pad = cin if cin_pad is None else cin_pad
    k1, k2, k3, k4, k5, k6 = jax.random.split(key, 6)
    fan = cin * ksize * ksize
    w = jax.random.normal(k1, (ksize * ksize, cin, cout), jnp.float32) / jnp.sqrt(float(fan))
    conv_b = 0.01 * jax.random.normal(k2, (cout,), jnp.float32)
    gamma = 1.0 + 0.1 * jax.random.normal(k3, (cout,), jnp.float32)
    beta = 0.1 * jax.random.normal(k4, (cout,), jnp.float32)
    mean = 0.1 * jax.random.normal(k5, (cout,), jnp.float32)
    var = 1.0 + 0.1 * jax.random.uniform(k6, (cout,), jnp.float32)
    eps = 1e-5
    scale = gamma / jnp.sqrt(var + eps)
    bias = (conv_b - mean) * scale + beta
    # Fold the BN scale into the conv weight in f32, THEN cast to bf16.
    w = w * scale[None, None, :]
    w = jnp.pad(w, ((0, 0), (0, cin_pad - cin), (0, cout_pad - cout)))
    w = w.reshape(ksize * ksize * cin_pad, cout_pad).astype(jnp.bfloat16)
    bias = jnp.pad(bias, (0, cout_pad - cout)).reshape(1, cout_pad)
    return {"w": w, "bias": bias}


def make_upsample_module_params(key, in_planes, chl_num, output_chl_num):
    cp = _round_up(chl_num, 128)          # lane-dense internal channel count
    op = _round_up(output_chl_num, 128)   # lane-dense output channel count
    params = []
    for i, ip in enumerate(in_planes):
        key, k1, k2, k3, k4 = jax.random.split(key, 5)
        unit = {
            "u_skip": make_cbr_params(k1, ip, chl_num, 1, cp),
            "res_conv1": make_cbr_params(k3, chl_num, chl_num, 1, cp, cin_pad=cp),
            "res_conv2": make_cbr_params(k4, chl_num, output_chl_num, 3, op, cin_pad=cp),
        }
        # (tap, cin, cout) layout for the 3x3 kernel's per-tap weight slices.
        unit["res_conv2"]["w"] = unit["res_conv2"]["w"].reshape(9, cp, op)
        if i > 0:
            unit["up_conv"] = make_cbr_params(k2, chl_num, chl_num, 1, cp, cin_pad=cp)
        params.append(unit)
    return params, cp, op


# ---------------------------------------------------------------------------
# Upsample_unit / Upsample_module forward
# ---------------------------------------------------------------------------
def upsample_unit_fwd(p, ind, x_nchw, prev, up_size, output_shape,
                      cp, op, output_chl_num):
    n, cin, h, w = x_nchw.shape
    # Single NCHW -> NHWC transpose + bf16 cast per pyramid input (fused by XLA).
    x2d = x_nchw.transpose(0, 2, 3, 1).reshape(n * h * w, cin).astype(jnp.bfloat16)

    up2d = None
    if ind > 0:
        prev_out2d, (ph, pw) = prev
        prev_nhwc = prev_out2d.reshape(n, ph, pw, cp)          # bf16
        mh = _interp_matrix(up_size[0], ph)
        mw = _interp_matrix(up_size[1], pw)
        up_nhwc = jnp.einsum("nhwc,Hh,Ww->nHWc", prev_nhwc, mh, mw,
                             preferred_element_type=jnp.float32).astype(jnp.bfloat16)
        up2d = up_nhwc.reshape(n * up_size[0] * up_size[1], cp)

    # Fused: u_skip (+ up_conv add) + ReLU + res_conv1 + ReLU (one pallas_call).
    out2d, res1_2d = fused_head_call(x2d, p["u_skip"], p.get("up_conv"),
                                     up2d, p["res_conv1"], cp)

    # res_conv2 (3x3, no ReLU) directly from the halo-padded NHWC tensor.
    res1_pad = jnp.pad(res1_2d.reshape(n, h, w, cp),
                       ((0, 0), (1, 1), (1, 1), (0, 0)))
    res2 = conv3x3_call(res1_pad, p["res_conv2"], h, w, op)    # (n,h,w,op) bf16
    res2 = res2[..., :output_chl_num]

    # Bilinear resize to output_shape + emit NCHW f32 in a single einsum.
    mh = _interp_matrix(output_shape[0], h)
    mw = _interp_matrix(output_shape[1], w)
    res_nchw = jnp.einsum("nhwc,Hh,Ww->ncHW", res2, mh, mw,
                          preferred_element_type=jnp.float32)

    return (out2d, (h, w)), res_nchw


def upsample_module_fwd(params, x4, x3, x2, x1, output_shape,
                        cp, op, output_chl_num):
    h, w = output_shape
    up_sizes = [(h // 8, w // 8), (h // 4, w // 4), (h // 2, w // 2), (h, w)]
    xs = [x4, x3, x2, x1]
    prev = None
    res = []
    for i in range(4):
        prev, r = upsample_unit_fwd(params[i], i, xs[i], prev, up_sizes[i],
                                    output_shape, cp, op, output_chl_num)
        res.append(r)
    # TODO(synk): gen_skip / gen_cross_conv default to False in Upsample_module,
    # so skip1/skip2/cross_conv are None (matching the reference).
    skip1 = [None, None, None, None]
    skip2 = [None, None, None, None]
    cross_conv = None
    return res, skip1, skip2, cross_conv


# ---------------------------------------------------------------------------
# Demo
# ---------------------------------------------------------------------------
if __name__ == "__main__":
    key = jax.random.PRNGKey(0)
    N = 2
    output_shape = (16, 16)               # (h, w)
    output_chl_num = 8
    chl_num = 128                         # module default is 256; 128 keeps the
                                          # demo small yet exactly lane-dense
    in_planes = [2048, 1024, 512, 256]    # hard-coded in Upsample_module

    h, w = output_shape
    kx4, kx3, kx2, kx1, kp = jax.random.split(key, 5)
    x4 = jax.random.normal(kx4, (N, in_planes[0], h // 8, w // 8), jnp.float32)
    x3 = jax.random.normal(kx3, (N, in_planes[1], h // 4, w // 4), jnp.float32)
    x2 = jax.random.normal(kx2, (N, in_planes[2], h // 2, w // 2), jnp.float32)
    x1 = jax.random.normal(kx1, (N, in_planes[3], h, w), jnp.float32)

    params, cp, op = make_upsample_module_params(kp, in_planes, chl_num,
                                                 output_chl_num)

    fwd = jax.jit(functools.partial(
        upsample_module_fwd, output_shape=output_shape, cp=cp, op=op,
        output_chl_num=output_chl_num))

    res, skip1, skip2, cross_conv = fwd(params, x4, x3, x2, x1)

    for r in res:
        jax.block_until_ready(r)
        assert r.shape == (N, output_chl_num, h, w), r.shape
        assert bool(jnp.all(jnp.isfinite(r)))
    assert all(s is None for s in skip1)
    assert all(s is None for s in skip2)
    assert cross_conv is None

    print("KERNEL_OK")
</pallas_src>

<mosaic_0001>
module attributes {stable_mosaic.version = 11 : i64} {
  func.func @_head_kernel(%arg0: i32, %arg1: memref<8x2048xbf16, #tpu.memory_space<vmem>>, %arg2: memref<2048x128xbf16, #tpu.memory_space<vmem>>, %arg3: memref<1x128xf32, #tpu.memory_space<vmem>>, %arg4: memref<128x128xbf16, #tpu.memory_space<vmem>>, %arg5: memref<1x128xf32, #tpu.memory_space<vmem>>, %arg6: memref<8x128xbf16, #tpu.memory_space<vmem>>, %arg7: memref<8x128xbf16, #tpu.memory_space<vmem>>) attributes {dimension_semantics = [#tpu.dimension_semantics<parallel>], iteration_bounds = array<i64: 1>, scalar_prefetch = 0 : i64, scratch_operands = 0 : i64, tpu.core_type = #tpu.core_type<tc>, window_params = [{transform_indices = @transform_0, window_bounds = array<i64: 8, 2048>}, {pipeline_mode = #tpu.pipeline_mode<synchronous>, transform_indices = @transform_1, window_bounds = array<i64: 2048, 128>}, {pipeline_mode = #tpu.pipeline_mode<synchronous>, transform_indices = @transform_2, window_bounds = array<i64: 1, 128>}, {pipeline_mode = #tpu.pipeline_mode<synchronous>, transform_indices = @transform_3, window_bounds = array<i64: 128, 128>}, {pipeline_mode = #tpu.pipeline_mode<synchronous>, transform_indices = @transform_4, window_bounds = array<i64: 1, 128>}, {transform_indices = @transform_5, window_bounds = array<i64: 8, 128>}, {transform_indices = @transform_6, window_bounds = array<i64: 8, 128>}]} {
    %c0 = arith.constant 0 : index
    %c0_0 = arith.constant 0 : index
    %0 = vector.load %arg1[%c0, %c0_0] : memref<8x2048xbf16, #tpu.memory_space<vmem>>, vector<8x2048xbf16>
    %c0_1 = arith.constant 0 : index
    %c0_2 = arith.constant 0 : index
    %1 = vector.load %arg2[%c0_1, %c0_2] : memref<2048x128xbf16, #tpu.memory_space<vmem>>, vector<2048x128xbf16>
    %cst = arith.constant dense<0.000000e+00> : vector<8x128xf32>
    %2 = tpu.matmul %0, %1, %cst {dimension_numbers = #tpu.dot_dimension_numbers<[1], [0], [0], [1], [0, 0, 1, 1], [], []>} : vector<8x2048xbf16>, vector<2048x128xbf16>, vector<8x128xf32> -> vector<8x128xf32>
    %c0_3 = arith.constant 0 : index
    %c0_4 = arith.constant 0 : index
    %3 = vector.load %arg3[%c0_3, %c0_4] : memref<1x128xf32, #tpu.memory_space<vmem>>, vector<1x128xf32>
    %4 = vector.broadcast %3 : vector<1x128xf32> to vector<8x128xf32>
    %5 = arith.addf %2, %4 : vector<8x128xf32>
    %cst_5 = arith.constant 0.000000e+00 : f32
    %6 = vector.broadcast %cst_5 : f32 to vector<8x128xf32>
    %7 = arith.maximumf %5, %6 : vector<8x128xf32>
    %8 = arith.truncf %7 : vector<8x128xf32> to vector<8x128xbf16>
    %c0_6 = arith.constant 0 : index
    %c0_7 = arith.constant 0 : index
    %9 = vector.load %arg6[%c0_6, %c0_7] : memref<8x128xbf16, #tpu.memory_space<vmem>>, vector<8x128xbf16>
    tpu.vector_store %arg6[%c0_6, %c0_7], %8 {strides = array<i32>} : memref<8x128xbf16, #tpu.memory_space<vmem>>, vector<8x128xbf16>,
    %c0_8 = arith.constant 0 : index
    %c0_9 = arith.constant 0 : index
    %10 = vector.load %arg4[%c0_8, %c0_9] : memref<128x128xbf16, #tpu.memory_space<vmem>>, vector<128x128xbf16>
    %cst_10 = arith.constant dense<0.000000e+00> : vector<8x128xf32>
    %11 = tpu.matmul %8, %10, %cst_10 {dimension_numbers = #tpu.dot_dimension_numbers<[1], [0], [0], [1], [0, 0, 1, 1], [], []>} : vector<8x128xbf16>, vector<128x128xbf16>, vector<8x128xf32> -> vector<8x128xf32>
    %c0_11 = arith.constant 0 : index
    %c0_12 = arith.constant 0 : index
    %12 = vector.load %arg5[%c0_11, %c0_12] : memref<1x128xf32, #tpu.memory_space<vmem>>, vector<1x128xf32>
    %13 = vector.broadcast %12 : vector<1x128xf32> to vector<8x128xf32>
    %14 = arith.addf %11, %13 : vector<8x128xf32>
    %cst_13 = arith.constant 0.000000e+00 : f32
    %15 = vector.broadcast %cst_13 : f32 to vector<8x128xf32>
    %16 = arith.maximumf %14, %15 : vector<8x128xf32>
    %17 = arith.truncf %16 : vector<8x128xf32> to vector<8x128xbf16>
    %c0_14 = arith.constant 0 : index
    %c0_15 = arith.constant 0 : index
    %18 = vector.load %arg7[%c0_14, %c0_15] : memref<8x128xbf16, #tpu.memory_space<vmem>>, vector<8x128xbf16>
    tpu.vector_store %arg7[%c0_14, %c0_15], %17 {strides = array<i32>} : memref<8x128xbf16, #tpu.memory_space<vmem>>, vector<8x128xbf16>,
    return
  }
  func.func @transform_0(%arg0: i32) -> (i32, i32) {
    %c0_i32 = arith.constant 0 : i32
    %c0_i32_0 = arith.constant 0 : i32
    return %arg0, %c0_i32 : i32, i32
  }
  func.func @transform_1(%arg0: i32) -> (i32, i32) {
    %c0_i32 = arith.constant 0 : i32
    %c0_i32_0 = arith.constant 0 : i32
    %c0_i32_1 = arith.constant 0 : i32
    return %c0_i32, %c0_i32_0 : i32, i32
  }
  func.func @transform_2(%arg0: i32) -> (i32, i32) {
    %c0_i32 = arith.constant 0 : i32
    %c0_i32_0 = arith.constant 0 : i32
    %c0_i32_1 = arith.constant 0 : i32
    return %c0_i32, %c0_i32_0 : i32, i32
  }
  func.func @transform_3(%arg0: i32) -> (i32, i32) {
    %c0_i32 = arith.constant 0 : i32
    %c0_i32_0 = arith.constant 0 : i32
    %c0_i32_1 = arith.constant 0 : i32
    return %c0_i32, %c0_i32_0 : i32, i32
  }
  func.func @transform_4(%arg0: i32) -> (i32, i32) {
    %c0_i32 = arith.constant 0 : i32
    %c0_i32_0 = arith.constant 0 : i32
    %c0_i32_1 = arith.constant 0 : i32
    return %c0_i32, %c0_i32_0 : i32, i32
  }
  func.func @transform_5(%arg0: i32) -> (i32, i32) {
    %c0_i32 = arith.constant 0 : i32
    %c0_i32_0 = arith.constant 0 : i32
    return %arg0, %c0_i32 : i32, i32
  }
  func.func @transform_6(%arg0: i32) -> (i32, i32) {
    %c0_i32 = arith.constant 0 : i32
    %c0_i32_0 = arith.constant 0 : i32
    return %arg0, %c0_i32 : i32, i32
  }
}

module attributes {stable_mosaic.version = 11 : i64} {
  func.func @_head_kernel_up(%arg0: i32, %arg1: memref<32x1024xbf16, #tpu.memory_space<vmem>>, %arg2: memref<1024x128xbf16, #tpu.memory_space<vmem>>, %arg3: memref<1x128xf32, #tpu.memory_space<vmem>>, %arg4: memref<32x128xbf16, #tpu.memory_space<vmem>>, %arg5: memref<128x128xbf16, #tpu.memory_space<vmem>>, %arg6: memref<128x128xbf16, #tpu.memory_space<vmem>>, %arg7: memref<1x128xf32, #tpu.memory_space<vmem>>, %arg8: memref<32x128xbf16, #tpu.memory_space<vmem>>, %arg9: memref<32x128xbf16, #tpu.memory_space<vmem>>) attributes {dimension_semantics = [#tpu.dimension_semantics<parallel>], iteration_bounds = array<i64: 1>, scalar_prefetch = 0 : i64, scratch_operands = 0 : i64, tpu.core_type = #tpu.core_type<tc>, window_params = [{transform_indices = @transform_0, window_bounds = array<i64: 32, 1024>}, {pipeline_mode = #tpu.pipeline_mode<synchronous>, transform_indices = @transform_1, window_bounds = array<i64: 1024, 128>}, {pipeline_mode = #tpu.pipeline_mode<synchronous>, transform_indices = @transform_2, window_bounds = array<i64: 1, 128>}, {transform_indices = @transform_3, window_bounds = array<i64: 32, 128>}, {pipeline_mode = #tpu.pipeline_mode<synchronous>, transform_indices = @transform_4, window_bounds = array<i64: 128, 128>}, {pipeline_mode = #tpu.pipeline_mode<synchronous>, transform_indices = @transform_5, window_bounds = array<i64: 128, 128>}, {pipeline_mode = #tpu.pipeline_mode<synchronous>, transform_indices = @transform_6, window_bounds = array<i64: 1, 128>}, {transform_indices = @transform_7, window_bounds = array<i64: 32, 128>}, {transform_indices = @transform_8, window_bounds = array<i64: 32, 128>}]} {
    %c0 = arith.constant 0 : index
    %c0_0 = arith.constant 0 : index
    %0 = vector.load %arg1[%c0, %c0_0] : memref<32x1024xbf16, #tpu.memory_space<vmem>>, vector<32x1024xbf16>
    %c0_1 = arith.constant 0 : index
    %c0_2 = arith.constant 0 : index
    %1 = vector.load %arg2[%c0_1, %c0_2] : memref<1024x128xbf16, #tpu.memory_space<vmem>>, vector<1024x128xbf16>
    %cst = arith.constant dense<0.000000e+00> : vector<32x128xf32>
    %2 = tpu.matmul %0, %1, %cst {dimension_numbers = #tpu.dot_dimension_numbers<[1], [0], [0], [1], [0, 0, 1, 1], [], []>} : vector<32x1024xbf16>, vector<1024x128xbf16>, vector<32x128xf32> -> vector<32x128xf32>
    %c0_3 = arith.constant 0 : index
    %c0_4 = arith.constant 0 : index
    %3 = vector.load %arg4[%c0_3, %c0_4] : memref<32x128xbf16, #tpu.memory_space<vmem>>, vector<32x128xbf16>
    %c0_5 = arith.constant 0 : index
    %c0_6 = arith.constant 0 : index
    %4 = vector.load %arg5[%c0_5, %c0_6] : memref<128x128xbf16, #tpu.memory_space<vmem>>, vector<128x128xbf16>
    %cst_7 = arith.constant dense<0.000000e+00> : vector<32x128xf32>
    %5 = tpu.matmul %3, %4, %cst_7 {dimension_numbers = #tpu.dot_dimension_numbers<[1], [0], [0], [1], [0, 0, 1, 1], [], []>} : vector<32x128xbf16>, vector<128x128xbf16>, vector<32x128xf32> -> vector<32x128xf32>
    %6 = arith.addf %2, %5 : vector<32x128xf32>
    %c0_8 = arith.constant 0 : index
    %c0_9 = arith.constant 0 : index
    %7 = vector.load %arg3[%c0_8, %c0_9] : memref<1x128xf32, #tpu.memory_space<vmem>>, vector<1x128xf32>
    %8 = vector.broadcast %7 : vector<1x128xf32> to vector<32x128xf32>
    %9 = arith.addf %6, %8 : vector<32x128xf32>
    %cst_10 = arith.constant 0.000000e+00 : f32
    %10 = vector.broadcast %cst_10 : f32 to vector<32x128xf32>
    %11 = arith.maximumf %9, %10 : vector<32x128xf32>
    %12 = arith.truncf %11 : vector<32x128xf32> to vector<32x128xbf16>
    %c0_11 = arith.constant 0 : index
    %c0_12 = arith.constant 0 : index
    %13 = vector.load %arg8[%c0_11, %c0_12] : memref<32x128xbf16, #tpu.memory_space<vmem>>, vector<32x128xbf16>
    tpu.vector_store %arg8[%c0_11, %c0_12], %12 {strides = array<i32>} : memref<32x128xbf16, #tpu.memory_space<vmem>>, vector<32x128xbf16>,
    %c0_13 = arith.constant 0 : index
    %c0_14 = arith.constant 0 : index
    %14 = vector.load %arg6[%c0_13, %c0_14] : memref<128x128xbf16, #tpu.memory_space<vmem>>, vector<128x128xbf16>
    %cst_15 = arith.constant dense<0.000000e+00> : vector<32x128xf32>
    %15 = tpu.matmul %12, %14, %cst_15 {dimension_numbers = #tpu.dot_dimension_numbers<[1], [0], [0], [1], [0, 0, 1, 1], [], []>} : vector<32x128xbf16>, vector<128x128xbf16>, vector<32x128xf32> -> vector<32x128xf32>
    %c0_16 = arith.constant 0 : index
    %c0_17 = arith.constant 0 : index
    %16 = vector.load %arg7[%c0_16, %c0_17] : memref<1x128xf32, #tpu.memory_space<vmem>>, vector<1x128xf32>
    %17 = vector.broadcast %16 : vector<1x128xf32> to vector<32x128xf32>
    %18 = arith.addf %15, %17 : vector<32x128xf32>
    %cst_18 = arith.constant 0.000000e+00 : f32
    %19 = vector.broadcast %cst_18 : f32 to vector<32x128xf32>
    %20 = arith.maximumf %18, %19 : vector<32x128xf32>
    %21 = arith.truncf %20 : vector<32x128xf32> to vector<32x128xbf16>
    %c0_19 = arith.constant 0 : index
    %c0_20 = arith.constant 0 : index
    %22 = vector.load %arg9[%c0_19, %c0_20] : memref<32x128xbf16, #tpu.memory_space<vmem>>, vector<32x128xbf16>
    tpu.vector_store %arg9[%c0_19, %c0_20], %21 {strides = array<i32>} : memref<32x128xbf16, #tpu.memory_space<vmem>>, vector<32x128xbf16>,
    return
  }
  func.func @transform_0(%arg0: i32) -> (i32, i32) {
    %c0_i32 = arith.constant 0 : i32
    %c0_i32_0 = arith.constant 0 : i32
    return %arg0, %c0_i32 : i32, i32
  }
  func.func @transform_1(%arg0: i32) -> (i32, i32) {
    %c0_i32 = arith.constant 0 : i32
    %c0_i32_0 = arith.constant 0 : i32
    %c0_i32_1 = arith.constant 0 : i32
    return %c0_i32, %c0_i32_0 : i32, i32
  }
  func.func @transform_2(%arg0: i32) -> (i32, i32) {
    %c0_i32 = arith.constant 0 : i32
    %c0_i32_0 = arith.constant 0 : i32
    %c0_i32_1 = arith.constant 0 : i32
    return %c0_i32, %c0_i32_0 : i32, i32
  }
  func.func @transform_3(%arg0: i32) -> (i32, i32) {
    %c0_i32 = arith.constant 0 : i32
    %c0_i32_0 = arith.constant 0 : i32
    return %arg0, %c0_i32 : i32, i32
  }
  func.func @transform_4(%arg0: i32) -> (i32, i32) {
    %c0_i32 = arith.constant 0 : i32
    %c0_i32_0 = arith.constant 0 : i32
    %c0_i32_1 = arith.constant 0 : i32
    return %c0_i32, %c0_i32_0 : i32, i32
  }
  func.func @transform_5(%arg0: i32) -> (i32, i32) {
    %c0_i32 = arith.constant 0 : i32
    %c0_i32_0 = arith.constant 0 : i32
    %c0_i32_1 = arith.constant 0 : i32
    return %c0_i32, %c0_i32_0 : i32, i32
  }
  func.func @transform_6(%arg0: i32) -> (i32, i32) {
    %c0_i32 = arith.constant 0 : i32
    %c0_i32_0 = arith.constant 0 : i32
    %c0_i32_1 = arith.constant 0 : i32
    return %c0_i32, %c0_i32_0 : i32, i32
  }
  func.func @transform_7(%arg0: i32) -> (i32, i32) {
    %c0_i32 = arith.constant 0 : i32
    %c0_i32_0 = arith.constant 0 : i32
    return %arg0, %c0_i32 : i32, i32
  }
  func.func @transform_8(%arg0: i32) -> (i32, i32) {
    %c0_i32 = arith.constant 0 : i32
    %c0_i32_0 = arith.constant 0 : i32
    return %arg0, %c0_i32 : i32, i32
  }
}

module attributes {stable_mosaic.version = 11 : i64} {
  func.func @_head_kernel_up(%arg0: i32, %arg1: memref<128x512xbf16, #tpu.memory_space<vmem>>, %arg2: memref<512x128xbf16, #tpu.memory_space<vmem>>, %arg3: memref<1x128xf32, #tpu.memory_space<vmem>>, %arg4: memref<128x128xbf16, #tpu.memory_space<vmem>>, %arg5: memref<128x128xbf16, #tpu.memory_space<vmem>>, %arg6: memref<128x128xbf16, #tpu.memory_space<vmem>>, %arg7: memref<1x128xf32, #tpu.memory_space<vmem>>, %arg8: memref<128x128xbf16, #tpu.memory_space<vmem>>, %arg9: memref<128x128xbf16, #tpu.memory_space<vmem>>) attributes {dimension_semantics = [#tpu.dimension_semantics<parallel>], iteration_bounds = array<i64: 1>, scalar_prefetch = 0 : i64, scratch_operands = 0 : i64, tpu.core_type = #tpu.core_type<tc>, window_params = [{transform_indices = @transform_0, window_bounds = array<i64: 128, 512>}, {pipeline_mode = #tpu.pipeline_mode<synchronous>, transform_indices = @transform_1, window_bounds = array<i64: 512, 128>}, {pipeline_mode = #tpu.pipeline_mode<synchronous>, transform_indices = @transform_2, window_bounds = array<i64: 1, 128>}, {transform_indices = @transform_3, window_bounds = array<i64: 128, 128>}, {pipeline_mode = #tpu.pipeline_mode<synchronous>, transform_indices = @transform_4, window_bounds = array<i64: 128, 128>}, {pipeline_mode = #tpu.pipeline_mode<synchronous>, transform_indices = @transform_5, window_bounds = array<i64: 128, 128>}, {pipeline_mode = #tpu.pipeline_mode<synchronous>, transform_indices = @transform_6, window_bounds = array<i64: 1, 128>}, {transform_indices = @transform_7, window_bounds = array<i64: 128, 128>}, {transform_indices = @transform_8, window_bounds = array<i64: 128, 128>}]} {
    %c0 = arith.constant 0 : index
    %c0_0 = arith.constant 0 : index
    %0 = vector.load %arg1[%c0, %c0_0] : memref<128x512xbf16, #tpu.memory_space<vmem>>, vector<128x512xbf16>
    %c0_1 = arith.constant 0 : index
    %c0_2 = arith.constant 0 : index
    %1 = vector.load %arg2[%c0_1, %c0_2] : memref<512x128xbf16, #tpu.memory_space<vmem>>, vector<512x128xbf16>
    %cst = arith.constant dense<0.000000e+00> : vector<128x128xf32>
    %2 = tpu.matmul %0, %1, %cst {dimension_numbers = #tpu.dot_dimension_numbers<[1], [0], [0], [1], [0, 0, 1, 1], [], []>} : vector<128x512xbf16>, vector<512x128xbf16>, vector<128x128xf32> -> vector<128x128xf32>
    %c0_3 = arith.constant 0 : index
    %c0_4 = arith.constant 0 : index
    %3 = vector.load %arg4[%c0_3, %c0_4] : memref<128x128xbf16, #tpu.memory_space<vmem>>, vector<128x128xbf16>
    %c0_5 = arith.constant 0 : index
    %c0_6 = arith.constant 0 : index
    %4 = vector.load %arg5[%c0_5, %c0_6] : memref<128x128xbf16, #tpu.memory_space<vmem>>, vector<128x128xbf16>
    %cst_7 = arith.constant dense<0.000000e+00> : vector<128x128xf32>
    %5 = tpu.matmul %3, %4, %cst_7 {dimension_numbers = #tpu.dot_dimension_numbers<[1], [0], [0], [1], [0, 0, 1, 1], [], []>} : vector<128x128xbf16>, vector<128x128xbf16>, vector<128x128xf32> -> vector<128x128xf32>
    %6 = arith.addf %2, %5 : vector<128x128xf32>
    %c0_8 = arith.constant 0 : index
    %c0_9 = arith.constant 0 : index
    %7 = vector.load %arg3[%c0_8, %c0_9] : memref<1x128xf32, #tpu.memory_space<vmem>>, vector<1x128xf32>
    %8 = vector.broadcast %7 : vector<1x128xf32> to vector<128x128xf32>
    %9 = arith.addf %6, %8 : vector<128x128xf32>
    %cst_10 = arith.constant 0.000000e+00 : f32
    %10 = vector.broadcast %cst_10 : f32 to vector<128x128xf32>
    %11 = arith.maximumf %9, %10 : vector<128x128xf32>
    %12 = arith.truncf %11 : vector<128x128xf32> to vector<128x128xbf16>
    %c0_11 = arith.constant 0 : index
    %c0_12 = arith.constant 0 : index
    %13 = vector.load %arg8[%c0_11, %c0_12] : memref<128x128xbf16, #tpu.memory_space<vmem>>, vector<128x128xbf16>
    tpu.vector_store %arg8[%c0_11, %c0_12], %12 {strides = array<i32>} : memref<128x128xbf16, #tpu.memory_space<vmem>>, vector<128x128xbf16>,
    %c0_13 = arith.constant 0 : index
    %c0_14 = arith.constant 0 : index
    %14 = vector.load %arg6[%c0_13, %c0_14] : memref<128x128xbf16, #tpu.memory_space<vmem>>, vector<128x128xbf16>
    %cst_15 = arith.constant dense<0.000000e+00> : vector<128x128xf32>
    %15 = tpu.matmul %12, %14, %cst_15 {dimension_numbers = #tpu.dot_dimension_numbers<[1], [0], [0], [1], [0, 0, 1, 1], [], []>} : vector<128x128xbf16>, vector<128x128xbf16>, vector<128x128xf32> -> vector<128x128xf32>
    %c0_16 = arith.constant 0 : index
    %c0_17 = arith.constant 0 : index
    %16 = vector.load %arg7[%c0_16, %c0_17] : memref<1x128xf32, #tpu.memory_space<vmem>>, vector<1x128xf32>
    %17 = vector.broadcast %16 : vector<1x128xf32> to vector<128x128xf32>
    %18 = arith.addf %15, %17 : vector<128x128xf32>
    %cst_18 = arith.constant 0.000000e+00 : f32
    %19 = vector.broadcast %cst_18 : f32 to vector<128x128xf32>
    %20 = arith.maximumf %18, %19 : vector<128x128xf32>
    %21 = arith.truncf %20 : vector<128x128xf32> to vector<128x128xbf16>
    %c0_19 = arith.constant 0 : index
    %c0_20 = arith.constant 0 : index
    %22 = vector.load %arg9[%c0_19, %c0_20] : memref<128x128xbf16, #tpu.memory_space<vmem>>, vector<128x128xbf16>
    tpu.vector_store %arg9[%c0_19, %c0_20], %21 {strides = array<i32>} : memref<128x128xbf16, #tpu.memory_space<vmem>>, vector<128x128xbf16>,
    return
  }
  func.func @transform_0(%arg0: i32) -> (i32, i32) {
    %c0_i32 = arith.constant 0 : i32
    %c0_i32_0 = arith.constant 0 : i32
    return %arg0, %c0_i32 : i32, i32
  }
  func.func @transform_1(%arg0: i32) -> (i32, i32) {
    %c0_i32 = arith.constant 0 : i32
    %c0_i32_0 = arith.constant 0 : i32
    %c0_i32_1 = arith.constant 0 : i32
    return %c0_i32, %c0_i32_0 : i32, i32
  }
  func.func @transform_2(%arg0: i32) -> (i32, i32) {
    %c0_i32 = arith.constant 0 : i32
    %c0_i32_0 = arith.constant 0 : i32
    %c0_i32_1 = arith.constant 0 : i32
    return %c0_i32, %c0_i32_0 : i32, i32
  }
  func.func @transform_3(%arg0: i32) -> (i32, i32) {
    %c0_i32 = arith.constant 0 : i32
    %c0_i32_0 = arith.constant 0 : i32
    return %arg0, %c0_i32 : i32, i32
  }
  func.func @transform_4(%arg0: i32) -> (i32, i32) {
    %c0_i32 = arith.constant 0 : i32
    %c0_i32_0 = arith.constant 0 : i32
    %c0_i32_1 = arith.constant 0 : i32
    return %c0_i32, %c0_i32_0 : i32, i32
  }
  func.func @transform_5(%arg0: i32) -> (i32, i32) {
    %c0_i32 = arith.constant 0 : i32
    %c0_i32_0 = arith.constant 0 : i32
    %c0_i32_1 = arith.constant 0 : i32
    return %c0_i32, %c0_i32_0 : i32, i32
  }
  func.func @transform_6(%arg0: i32) -> (i32, i32) {
    %c0_i32 = arith.constant 0 : i32
    %c0_i32_0 = arith.constant 0 : i32
    %c0_i32_1 = arith.constant 0 : i32
    return %c0_i32, %c0_i32_0 : i32, i32
  }
  func.func @transform_7(%arg0: i32) -> (i32, i32) {
    %c0_i32 = arith.constant 0 : i32
    %c0_i32_0 = arith.constant 0 : i32
    return %arg0, %c0_i32 : i32, i32
  }
  func.func @transform_8(%arg0: i32) -> (i32, i32) {
    %c0_i32 = arith.constant 0 : i32
    %c0_i32_0 = arith.constant 0 : i32
    return %arg0, %c0_i32 : i32, i32
  }
}

module attributes {stable_mosaic.version = 11 : i64} {
  func.func @_head_kernel_up(%arg0: i32, %arg1: memref<256x256xbf16, #tpu.memory_space<vmem>>, %arg2: memref<256x128xbf16, #tpu.memory_space<vmem>>, %arg3: memref<1x128xf32, #tpu.memory_space<vmem>>, %arg4: memref<256x128xbf16, #tpu.memory_space<vmem>>, %arg5: memref<128x128xbf16, #tpu.memory_space<vmem>>, %arg6: memref<128x128xbf16, #tpu.memory_space<vmem>>, %arg7: memref<1x128xf32, #tpu.memory_space<vmem>>, %arg8: memref<256x128xbf16, #tpu.memory_space<vmem>>, %arg9: memref<256x128xbf16, #tpu.memory_space<vmem>>) attributes {dimension_semantics = [#tpu.dimension_semantics<parallel>], iteration_bounds = array<i64: 2>, scalar_prefetch = 0 : i64, scratch_operands = 0 : i64, tpu.core_type = #tpu.core_type<tc>, window_params = [{transform_indices = @transform_0, window_bounds = array<i64: 256, 256>}, {pipeline_mode = #tpu.pipeline_mode<synchronous>, transform_indices = @transform_1, window_bounds = array<i64: 256, 128>}, {pipeline_mode = #tpu.pipeline_mode<synchronous>, transform_indices = @transform_2, window_bounds = array<i64: 1, 128>}, {transform_indices = @transform_3, window_bounds = array<i64: 256, 128>}, {pipeline_mode = #tpu.pipeline_mode<synchronous>, transform_indices = @transform_4, window_bounds = array<i64: 128, 128>}, {pipeline_mode = #tpu.pipeline_mode<synchronous>, transform_indices = @transform_5, window_bounds = array<i64: 128, 128>}, {pipeline_mode = #tpu.pipeline_mode<synchronous>, transform_indices = @transform_6, window_bounds = array<i64: 1, 128>}, {transform_indices = @transform_7, window_bounds = array<i64: 256, 128>}, {transform_indices = @transform_8, window_bounds = array<i64: 256, 128>}]} {
    %c0 = arith.constant 0 : index
    %c0_0 = arith.constant 0 : index
    %0 = vector.load %arg1[%c0, %c0_0] : memref<256x256xbf16, #tpu.memory_space<vmem>>, vector<256x256xbf16>
    %c0_1 = arith.constant 0 : index
    %c0_2 = arith.constant 0 : index
    %1 = vector.load %arg2[%c0_1, %c0_2] : memref<256x128xbf16, #tpu.memory_space<vmem>>, vector<256x128xbf16>
    %cst = arith.constant dense<0.000000e+00> : vector<256x128xf32>
    %2 = tpu.matmul %0, %1, %cst {dimension_numbers = #tpu.dot_dimension_numbers<[1], [0], [0], [1], [0, 0, 1, 1], [], []>} : vector<256x256xbf16>, vector<256x128xbf16>, vector<256x128xf32> -> vector<256x128xf32>
    %c0_3 = arith.constant 0 : index
    %c0_4 = arith.constant 0 : index
    %3 = vector.load %arg4[%c0_3, %c0_4] : memref<256x128xbf16, #tpu.memory_space<vmem>>, vector<256x128xbf16>
    %c0_5 = arith.constant 0 : index
    %c0_6 = arith.constant 0 : index
    %4 = vector.load %arg5[%c0_5, %c0_6] : memref<128x128xbf16, #tpu.memory_space<vmem>>, vector<128x128xbf16>
    %cst_7 = arith.constant dense<0.000000e+00> : vector<256x128xf32>
    %5 = tpu.matmul %3, %4, %cst_7 {dimension_numbers = #tpu.dot_dimension_numbers<[1], [0], [0], [1], [0, 0, 1, 1], [], []>} : vector<256x128xbf16>, vector<128x128xbf16>, vector<256x128xf32> -> vector<256x128xf32>
    %6 = arith.addf %2, %5 : vector<256x128xf32>
    %c0_8 = arith.constant 0 : index
    %c0_9 = arith.constant 0 : index
    %7 = vector.load %arg3[%c0_8, %c0_9] : memref<1x128xf32, #tpu.memory_space<vmem>>, vector<1x128xf32>
    %8 = vector.broadcast %7 : vector<1x128xf32> to vector<256x128xf32>
    %9 = arith.addf %6, %8 : vector<256x128xf32>
    %cst_10 = arith.constant 0.000000e+00 : f32
    %10 = vector.broadcast %cst_10 : f32 to vector<256x128xf32>
    %11 = arith.maximumf %9, %10 : vector<256x128xf32>
    %12 = arith.truncf %11 : vector<256x128xf32> to vector<256x128xbf16>
    %c0_11 = arith.constant 0 : index
    %c0_12 = arith.constant 0 : index
    %13 = vector.load %arg8[%c0_11, %c0_12] : memref<256x128xbf16, #tpu.memory_space<vmem>>, vector<256x128xbf16>
    tpu.vector_store %arg8[%c0_11, %c0_12], %12 {strides = array<i32>} : memref<256x128xbf16, #tpu.memory_space<vmem>>, vector<256x128xbf16>,
    %c0_13 = arith.constant 0 : index
    %c0_14 = arith.constant 0 : index
    %14 = vector.load %arg6[%c0_13, %c0_14] : memref<128x128xbf16, #tpu.memory_space<vmem>>, vector<128x128xbf16>
    %cst_15 = arith.constant dense<0.000000e+00> : vector<256x128xf32>
    %15 = tpu.matmul %12, %14, %cst_15 {dimension_numbers = #tpu.dot_dimension_numbers<[1], [0], [0], [1], [0, 0, 1, 1], [], []>} : vector<256x128xbf16>, vector<128x128xbf16>, vector<256x128xf32> -> vector<256x128xf32>
    %c0_16 = arith.constant 0 : index
    %c0_17 = arith.constant 0 : index
    %16 = vector.load %arg7[%c0_16, %c0_17] : memref<1x128xf32, #tpu.memory_space<vmem>>, vector<1x128xf32>
    %17 = vector.broadcast %16 : vector<1x128xf32> to vector<256x128xf32>
    %18 = arith.addf %15, %17 : vector<256x128xf32>
    %cst_18 = arith.constant 0.000000e+00 : f32
    %19 = vector.broadcast %cst_18 : f32 to vector<256x128xf32>
    %20 = arith.maximumf %18, %19 : vector<256x128xf32>
    %21 = arith.truncf %20 : vector<256x128xf32> to vector<256x128xbf16>
    %c0_19 = arith.constant 0 : index
    %c0_20 = arith.constant 0 : index
    %22 = vector.load %arg9[%c0_19, %c0_20] : memref<256x128xbf16, #tpu.memory_space<vmem>>, vector<256x128xbf16>
    tpu.vector_store %arg9[%c0_19, %c0_20], %21 {strides = array<i32>} : memref<256x128xbf16, #tpu.memory_space<vmem>>, vector<256x128xbf16>,
    return
  }
  func.func @transform_0(%arg0: i32) -> (i32, i32) {
    %c0_i32 = arith.constant 0 : i32
    %c0_i32_0 = arith.constant 0 : i32
    return %arg0, %c0_i32 : i32, i32
  }
  func.func @transform_1(%arg0: i32) -> (i32, i32) {
    %c0_i32 = arith.constant 0 : i32
    %c0_i32_0 = arith.constant 0 : i32
    %c0_i32_1 = arith.constant 0 : i32
    return %c0_i32, %c0_i32_0 : i32, i32
  }
  func.func @transform_2(%arg0: i32) -> (i32, i32) {
    %c0_i32 = arith.constant 0 : i32
    %c0_i32_0 = arith.constant 0 : i32
    %c0_i32_1 = arith.constant 0 : i32
    return %c0_i32, %c0_i32_0 : i32, i32
  }
  func.func @transform_3(%arg0: i32) -> (i32, i32) {
    %c0_i32 = arith.constant 0 : i32
    %c0_i32_0 = arith.constant 0 : i32
    return %arg0, %c0_i32 : i32, i32
  }
  func.func @transform_4(%arg0: i32) -> (i32, i32) {
    %c0_i32 = arith.constant 0 : i32
    %c0_i32_0 = arith.constant 0 : i32
    %c0_i32_1 = arith.constant 0 : i32
    return %c0_i32, %c0_i32_0 : i32, i32
  }
  func.func @transform_5(%arg0: i32) -> (i32, i32) {
    %c0_i32 = arith.constant 0 : i32
    %c0_i32_0 = arith.constant 0 : i32
    %c0_i32_1 = arith.constant 0 : i32
    return %c0_i32, %c0_i32_0 : i32, i32
  }
  func.func @transform_6(%arg0: i32) -> (i32, i32) {
    %c0_i32 = arith.constant 0 : i32
    %c0_i32_0 = arith.constant 0 : i32
    %c0_i32_1 = arith.constant 0 : i32
    return %c0_i32, %c0_i32_0 : i32, i32
  }
  func.func @transform_7(%arg0: i32) -> (i32, i32) {
    %c0_i32 = arith.constant 0 : i32
    %c0_i32_0 = arith.constant 0 : i32
    return %arg0, %c0_i32 : i32, i32
  }
  func.func @transform_8(%arg0: i32) -> (i32, i32) {
    %c0_i32 = arith.constant 0 : i32
    %c0_i32_0 = arith.constant 0 : i32
    return %arg0, %c0_i32 : i32, i32
  }
}

module attributes {stable_mosaic.version = 11 : i64} {
  func.func @_conv3x3_kernel(%arg0: i32, %arg1: memref<1x18x18x128xbf16, #tpu.memory_space<vmem>>, %arg2: memref<9x128x128xbf16, #tpu.memory_space<vmem>>, %arg3: memref<1x128xf32, #tpu.memory_space<vmem>>, %arg4: memref<1x16x16x128xbf16, #tpu.memory_space<vmem>>) attributes {dimension_semantics = [#tpu.dimension_semantics<parallel>], iteration_bounds = array<i64: 2>, scalar_prefetch = 0 : i64, scratch_operands = 0 : i64, tpu.core_type = #tpu.core_type<tc>, window_params = [{transform_indices = @transform_0, window_bounds = array<i64: 1, 18, 18, 128>}, {pipeline_mode = #tpu.pipeline_mode<synchronous>, transform_indices = @transform_1, window_bounds = array<i64: 9, 128, 128>}, {pipeline_mode = #tpu.pipeline_mode<synchronous>, transform_indices = @transform_2, window_bounds = array<i64: 1, 128>}, {transform_indices = @transform_3, window_bounds = array<i64: 1, 16, 16, 128>}]} {
    %c0 = arith.constant 0 : index
    %c0_0 = arith.constant 0 : index
    %c0_1 = arith.constant 0 : index
    %c0_2 = arith.constant 0 : index
    %0 = vector.load %arg1[%c0, %c0_0, %c0_1, %c0_2] : memref<1x18x18x128xbf16, #tpu.memory_space<vmem>>, vector<1x16x16x128xbf16>
    %1 = vector.shape_cast %0 : vector<1x16x16x128xbf16> to vector<16x16x128xbf16>
    %2 = vector.shape_cast %1 : vector<16x16x128xbf16> to vector<256x128xbf16>
    %c0_3 = arith.constant 0 : index
    %c0_4 = arith.constant 0 : index
    %c0_5 = arith.constant 0 : index
    %3 = vector.load %arg2[%c0_3, %c0_4, %c0_5] : memref<9x128x128xbf16, #tpu.memory_space<vmem>>, vector<1x128x128xbf16>
    %4 = vector.shape_cast %3 : vector<1x128x128xbf16> to vector<128x128xbf16>
    %cst = arith.constant dense<0.000000e+00> : vector<256x128xf32>
    %5 = tpu.matmul %2, %4, %cst {dimension_numbers = #tpu.dot_dimension_numbers<[1], [0], [0], [1], [0, 0, 1, 1], [], []>} : vector<256x128xbf16>, vector<128x128xbf16>, vector<256x128xf32> -> vector<256x128xf32>
    %c0_6 = arith.constant 0 : index
    %c0_7 = arith.constant 0 : index
    %c1 = arith.constant 1 : index
    %c0_8 = arith.constant 0 : index
    %6 = vector.load %arg1[%c0_6, %c0_7, %c1, %c0_8] : memref<1x18x18x128xbf16, #tpu.memory_space<vmem>>, vector<1x16x16x128xbf16>
    %7 = vector.shape_cast %6 : vector<1x16x16x128xbf16> to vector<16x16x128xbf16>
    %8 = vector.shape_cast %7 : vector<16x16x128xbf16> to vector<256x128xbf16>
    %c1_9 = arith.constant 1 : index
    %c0_10 = arith.constant 0 : index
    %c0_11 = arith.constant 0 : index
    %9 = vector.load %arg2[%c1_9, %c0_10, %c0_11] : memref<9x128x128xbf16, #tpu.memory_space<vmem>>, vector<1x128x128xbf16>
    %10 = vector.shape_cast %9 : vector<1x128x128xbf16> to vector<128x128xbf16>
    %cst_12 = arith.constant dense<0.000000e+00> : vector<256x128xf32>
    %11 = tpu.matmul %8, %10, %cst_12 {dimension_numbers = #tpu.dot_dimension_numbers<[1], [0], [0], [1], [0, 0, 1, 1], [], []>} : vector<256x128xbf16>, vector<128x128xbf16>, vector<256x128xf32> -> vector<256x128xf32>
    %12 = arith.addf %5, %11 : vector<256x128xf32>
    %c0_13 = arith.constant 0 : index
    %c0_14 = arith.constant 0 : index
    %c2 = arith.constant 2 : index
    %c0_15 = arith.constant 0 : index
    %13 = vector.load %arg1[%c0_13, %c0_14, %c2, %c0_15] : memref<1x18x18x128xbf16, #tpu.memory_space<vmem>>, vector<1x16x16x128xbf16>
    %14 = vector.shape_cast %13 : vector<1x16x16x128xbf16> to vector<16x16x128xbf16>
    %15 = vector.shape_cast %14 : vector<16x16x128xbf16> to vector<256x128xbf16>
    %c2_16 = arith.constant 2 : index
    %c0_17 = arith.constant 0 : index
    %c0_18 = arith.constant 0 : index
    %16 = vector.load %arg2[%c2_16, %c0_17, %c0_18] : memref<9x128x128xbf16, #tpu.memory_space<vmem>>, vector<1x128x128xbf16>
    %17 = vector.shape_cast %16 : vector<1x128x128xbf16> to vector<128x128xbf16>
    %cst_19 = arith.constant dense<0.000000e+00> : vector<256x128xf32>
    %18 = tpu.matmul %15, %17, %cst_19 {dimension_numbers = #tpu.dot_dimension_numbers<[1], [0], [0], [1], [0, 0, 1, 1], [], []>} : vector<256x128xbf16>, vector<128x128xbf16>, vector<256x128xf32> -> vector<256x128xf32>
    %19 = arith.addf %12, %18 : vector<256x128xf32>
    %c0_20 = arith.constant 0 : index
    %c1_21 = arith.constant 1 : index
    %c0_22 = arith.constant 0 : index
    %c0_23 = arith.constant 0 : index
    %20 = vector.load %arg1[%c0_20, %c1_21, %c0_22, %c0_23] : memref<1x18x18x128xbf16, #tpu.memory_space<vmem>>, vector<1x16x16x128xbf16>
    %21 = vector.shape_cast %20 : vector<1x16x16x128xbf16> to vector<16x16x128xbf16>
    %22 = vector.shape_cast %21 : vector<16x16x128xbf16> to vector<256x128xbf16>
    %c3 = arith.constant 3 : index
    %c0_24 = arith.constant 0 : index
    %c0_25 = arith.constant 0 : index
    %23 = vector.load %arg2[%c3, %c0_24, %c0_25] : memref<9x128x128xbf16, #tpu.memory_space<vmem>>, vector<1x128x128xbf16>
    %24 = vector.shape_cast %23 : vector<1x128x128xbf16> to vector<128x128xbf16>
    %cst_26 = arith.constant dense<0.000000e+00> : vector<256x128xf32>
    %25 = tpu.matmul %22, %24, %cst_26 {dimension_numbers = #tpu.dot_dimension_numbers<[1], [0], [0], [1], [0, 0, 1, 1], [], []>} : vector<256x128xbf16>, vector<128x128xbf16>, vector<256x128xf32> -> vector<256x128xf32>
    %26 = arith.addf %19, %25 : vector<256x128xf32>
    %c0_27 = arith.constant 0 : index
    %c1_28 = arith.constant 1 : index
    %c1_29 = arith.constant 1 : index
    %c0_30 = arith.constant 0 : index
    %27 = vector.load %arg1[%c0_27, %c1_28, %c1_29, %c0_30] : memref<1x18x18x128xbf16, #tpu.memory_space<vmem>>, vector<1x16x16x128xbf16>
    %28 = vector.shape_cast %27 : vector<1x16x16x128xbf16> to vector<16x16x128xbf16>
    %29 = vector.shape_cast %28 : vector<16x16x128xbf16> to vector<256x128xbf16>
    %c4 = arith.constant 4 : index
    %c0_31 = arith.constant 0 : index
    %c0_32 = arith.constant 0 : index
    %30 = vector.load %arg2[%c4, %c0_31, %c0_32] : memref<9x128x128xbf16, #tpu.memory_space<vmem>>, vector<1x128x128xbf16>
    %31 = vector.shape_cast %30 : vector<1x128x128xbf16> to vector<128x128xbf16>
    %cst_33 = arith.constant dense<0.000000e+00> : vector<256x128xf32>
    %32 = tpu.matmul %29, %31, %cst_33 {dimension_numbers = #tpu.dot_dimension_numbers<[1], [0], [0], [1], [0, 0, 1, 1], [], []>} : vector<256x128xbf16>, vector<128x128xbf16>, vector<256x128xf32> -> vector<256x128xf32>
    %33 = arith.addf %26, %32 : vector<256x128xf32>
    %c0_34 = arith.constant 0 : index
    %c1_35 = arith.constant 1 : index
    %c2_36 = arith.constant 2 : index
    %c0_37 = arith.constant 0 : index
    %34 = vector.load %arg1[%c0_34, %c1_35, %c2_36, %c0_37] : memref<1x18x18x128xbf16, #tpu.memory_space<vmem>>, vector<1x16x16x128xbf16>
    %35 = vector.shape_cast %34 : vector<1x16x16x128xbf16> to vector<16x16x128xbf16>
    %36 = vector.shape_cast %35 : vector<16x16x128xbf16> to vector<256x128xbf16>
    %c5 = arith.constant 5 : index
    %c0_38 = arith.constant 0 : index
    %c0_39 = arith.constant 0 : index
    %37 = vector.load %arg2[%c5, %c0_38, %c0_39] : memref<9x128x128xbf16, #tpu.memory_space<vmem>>, vector<1x128x128xbf16>
    %38 = vector.shape_cast %37 : vector<1x128x128xbf16> to vector<128x128xbf16>
    %cst_40 = arith.constant dense<0.000000e+00> : vector<256x128xf32>
    %39 = tpu.matmul %36, %38, %cst_40 {dimension_numbers = #tpu.dot_dimension_numbers<[1], [0], [0], [1], [0, 0, 1, 1], [], []>} : vector<256x128xbf16>, vector<128x128xbf16>, vector<256x128xf32> -> vector<256x128xf32>
    %40 = arith.addf %33, %39 : vector<256x128xf32>
    %c0_41 = arith.constant 0 : index
    %c2_42 = arith.constant 2 : index
    %c0_43 = arith.constant 0 : index
    %c0_44 = arith.constant 0 : index
    %41 = vector.load %arg1[%c0_41, %c2_42, %c0_43, %c0_44] : memref<1x18x18x128xbf16, #tpu.memory_space<vmem>>, vector<1x16x16x128xbf16>
    %42 = vector.shape_cast %41 : vector<1x16x16x128xbf16> to vector<16x16x128xbf16>
    %43 = vector.shape_cast %42 : vector<16x16x128xbf16> to vector<256x128xbf16>
    %c6 = arith.constant 6 : index
    %c0_45 = arith.constant 0 : index
    %c0_46 = arith.constant 0 : index
    %44 = vector.load %arg2[%c6, %c0_45, %c0_46] : memref<9x128x128xbf16, #tpu.memory_space<vmem>>, vector<1x128x128xbf16>
    %45 = vector.shape_cast %44 : vector<1x128x128xbf16> to vector<128x128xbf16>
    %cst_47 = arith.constant dense<0.000000e+00> : vector<256x128xf32>
    %46 = tpu.matmul %43, %45, %cst_47 {dimension_numbers = #tpu.dot_dimension_numbers<[1], [0], [0], [1], [0, 0, 1, 1], [], []>} : vector<256x128xbf16>, vector<128x128xbf16>, vector<256x128xf32> -> vector<256x128xf32>
    %47 = arith.addf %40, %46 : vector<256x128xf32>
    %c0_48 = arith.constant 0 : index
    %c2_49 = arith.constant 2 : index
    %c1_50 = arith.constant 1 : index
    %c0_51 = arith.constant 0 : index
    %48 = vector.load %arg1[%c0_48, %c2_49, %c1_50, %c0_51] : memref<1x18x18x128xbf16, #tpu.memory_space<vmem>>, vector<1x16x16x128xbf16>
    %49 = vector.shape_cast %48 : vector<1x16x16x128xbf16> to vector<16x16x128xbf16>
    %50 = vector.shape_cast %49 : vector<16x16x128xbf16> to vector<256x128xbf16>
    %c7 = arith.constant 7 : index
    %c0_52 = arith.constant 0 : index
    %c0_53 = arith.constant 0 : index
    %51 = vector.load %arg2[%c7, %c0_52, %c0_53] : memref<9x128x128xbf16, #tpu.memory_space<vmem>>, vector<1x128x128xbf16>
    %52 = vector.shape_cast %51 : vector<1x128x128xbf16> to vector<128x128xbf16>
    %cst_54 = arith.constant dense<0.000000e+00> : vector<256x128xf32>
    %53 = tpu.matmul %50, %52, %cst_54 {dimension_numbers = #tpu.dot_dimension_numbers<[1], [0], [0], [1], [0, 0, 1, 1], [], []>} : vector<256x128xbf16>, vector<128x128xbf16>, vector<256x128xf32> -> vector<256x128xf32>
    %54 = arith.addf %47, %53 : vector<256x128xf32>
    %c0_55 = arith.constant 0 : index
    %c2_56 = arith.constant 2 : index
    %c2_57 = arith.constant 2 : index
    %c0_58 = arith.constant 0 : index
    %55 = vector.load %arg1[%c0_55, %c2_56, %c2_57, %c0_58] : memref<1x18x18x128xbf16, #tpu.memory_space<vmem>>, vector<1x16x16x128xbf16>
    %56 = vector.shape_cast %55 : vector<1x16x16x128xbf16> to vector<16x16x128xbf16>
    %57 = vector.shape_cast %56 : vector<16x16x128xbf16> to vector<256x128xbf16>
    %c8 = arith.constant 8 : index
    %c0_59 = arith.constant 0 : index
    %c0_60 = arith.constant 0 : index
    %58 = vector.load %arg2[%c8, %c0_59, %c0_60] : memref<9x128x128xbf16, #tpu.memory_space<vmem>>, vector<1x128x128xbf16>
    %59 = vector.shape_cast %58 : vector<1x128x128xbf16> to vector<128x128xbf16>
    %cst_61 = arith.constant dense<0.000000e+00> : vector<256x128xf32>
    %60 = tpu.matmul %57, %59, %cst_61 {dimension_numbers = #tpu.dot_dimension_numbers<[1], [0], [0], [1], [0, 0, 1, 1], [], []>} : vector<256x128xbf16>, vector<128x128xbf16>, vector<256x128xf32> -> vector<256x128xf32>
    %61 = arith.addf %54, %60 : vector<256x128xf32>
    %c0_62 = arith.constant 0 : index
    %c0_63 = arith.constant 0 : index
    %62 = vector.load %arg3[%c0_62, %c0_63] : memref<1x128xf32, #tpu.memory_space<vmem>>, vector<1x128xf32>
    %63 = vector.broadcast %62 : vector<1x128xf32> to vector<256x128xf32>
    %64 = arith.addf %61, %63 : vector<256x128xf32>
    %65 = vector.shape_cast %64 : vector<256x128xf32> to vector<16x16x128xf32>
    %66 = arith.truncf %65 : vector<16x16x128xf32> to vector<16x16x128xbf16>
    %c0_64 = arith.constant 0 : index
    %c0_65 = arith.constant 0 : index
    %c0_66 = arith.constant 0 : index
    %c0_67 = arith.constant 0 : index
    %67 = vector.load %arg4[%c0_64, %c0_65, %c0_66, %c0_67] : memref<1x16x16x128xbf16, #tpu.memory_space<vmem>>, vector<1x16x16x128xbf16>
    %68 = vector.shape_cast %67 : vector<1x16x16x128xbf16> to vector<16x16x128xbf16>
    %69 = vector.shape_cast %66 : vector<16x16x128xbf16> to vector<1x16x16x128xbf16>
    tpu.vector_store %arg4[%c0_64, %c0_65, %c0_66, %c0_67], %69 {strides = array<i32>} : memref<1x16x16x128xbf16, #tpu.memory_space<vmem>>, vector<1x16x16x128xbf16>,
    return
  }
  func.func @transform_0(%arg0: i32) -> (i32, i32, i32, i32) {
    %c0_i32 = arith.constant 0 : i32
    %c0_i32_0 = arith.constant 0 : i32
    %c0_i32_1 = arith.constant 0 : i32
    %c0_i32_2 = arith.constant 0 : i32
    return %arg0, %c0_i32, %c0_i32_0, %c0_i32_1 : i32, i32, i32, i32
  }
  func.func @transform_1(%arg0: i32) -> (i32, i32, i32) {
    %c0_i32 = arith.constant 0 : i32
    %c0_i32_0 = arith.constant 0 : i32
    %c0_i32_1 = arith.constant 0 : i32
    %c0_i32_2 = arith.constant 0 : i32
    return %c0_i32, %c0_i32_0, %c0_i32_1 : i32, i32, i32
  }
  func.func @transform_2(%arg0: i32) -> (i32, i32) {
    %c0_i32 = arith.constant 0 : i32
    %c0_i32_0 = arith.constant 0 : i32
    %c0_i32_1 = arith.constant 0 : i32
    return %c0_i32, %c0_i32_0 : i32, i32
  }
  func.func @transform_3(%arg0: i32) -> (i32, i32, i32, i32) {
    %c0_i32 = arith.constant 0 : i32
    %c0_i32_0 = arith.constant 0 : i32
    %c0_i32_1 = arith.constant 0 : i32
    %c0_i32_2 = arith.constant 0 : i32
    return %arg0, %c0_i32, %c0_i32_0, %c0_i32_1 : i32, i32, i32, i32
  }
}

module attributes {stable_mosaic.version = 11 : i64} {
  func.func @_conv3x3_kernel(%arg0: i32, %arg1: memref<1x10x10x128xbf16, #tpu.memory_space<vmem>>, %arg2: memref<9x128x128xbf16, #tpu.memory_space<vmem>>, %arg3: memref<1x128xf32, #tpu.memory_space<vmem>>, %arg4: memref<1x8x8x128xbf16, #tpu.memory_space<vmem>>) attributes {dimension_semantics = [#tpu.dimension_semantics<parallel>], iteration_bounds = array<i64: 2>, scalar_prefetch = 0 : i64, scratch_operands = 0 : i64, tpu.core_type = #tpu.core_type<tc>, window_params = [{transform_indices = @transform_0, window_bounds = array<i64: 1, 10, 10, 128>}, {pipeline_mode = #tpu.pipeline_mode<synchronous>, transform_indices = @transform_1, window_bounds = array<i64: 9, 128, 128>}, {pipeline_mode = #tpu.pipeline_mode<synchronous>, transform_indices = @transform_2, window_bounds = array<i64: 1, 128>}, {transform_indices = @transform_3, window_bounds = array<i64: 1, 8, 8, 128>}]} {
    %c0 = arith.constant 0 : index
    %c0_0 = arith.constant 0 : index
    %c0_1 = arith.constant 0 : index
    %c0_2 = arith.constant 0 : index
    %0 = vector.load %arg1[%c0, %c0_0, %c0_1, %c0_2] : memref<1x10x10x128xbf16, #tpu.memory_space<vmem>>, vector<1x8x8x128xbf16>
    %1 = vector.shape_cast %0 : vector<1x8x8x128xbf16> to vector<8x8x128xbf16>
    %2 = vector.shape_cast %1 : vector<8x8x128xbf16> to vector<64x128xbf16>
    %c0_3 = arith.constant 0 : index
    %c0_4 = arith.constant 0 : index
    %c0_5 = arith.constant 0 : index
    %3 = vector.load %arg2[%c0_3, %c0_4, %c0_5] : memref<9x128x128xbf16, #tpu.memory_space<vmem>>, vector<1x128x128xbf16>
    %4 = vector.shape_cast %3 : vector<1x128x128xbf16> to vector<128x128xbf16>
    %cst = arith.constant dense<0.000000e+00> : vector<64x128xf32>
    %5 = tpu.matmul %2, %4, %cst {dimension_numbers = #tpu.dot_dimension_numbers<[1], [0], [0], [1], [0, 0, 1, 1], [], []>} : vector<64x128xbf16>, vector<128x128xbf16>, vector<64x128xf32> -> vector<64x128xf32>
    %c0_6 = arith.constant 0 : index
    %c0_7 = arith.constant 0 : index
    %c1 = arith.constant 1 : index
    %c0_8 = arith.constant 0 : index
    %6 = vector.load %arg1[%c0_6, %c0_7, %c1, %c0_8] : memref<1x10x10x128xbf16, #tpu.memory_space<vmem>>, vector<1x8x8x128xbf16>
    %7 = vector.shape_cast %6 : vector<1x8x8x128xbf16> to vector<8x8x128xbf16>
    %8 = vector.shape_cast %7 : vector<8x8x128xbf16> to vector<64x128xbf16>
    %c1_9 = arith.constant 1 : index
    %c0_10 = arith.constant 0 : index
    %c0_11 = arith.constant 0 : index
    %9 = vector.load %arg2[%c1_9, %c0_10, %c0_11] : memref<9x128x128xbf16, #tpu.memory_space<vmem>>, vector<1x128x128xbf16>
    %10 = vector.shape_cast %9 : vector<1x128x128xbf16> to vector<128x128xbf16>
    %cst_12 = arith.constant dense<0.000000e+00> : vector<64x128xf32>
    %11 = tpu.matmul %8, %10, %cst_12 {dimension_numbers = #tpu.dot_dimension_numbers<[1], [0], [0], [1], [0, 0, 1, 1], [], []>} : vector<64x128xbf16>, vector<128x128xbf16>, vector<64x128xf32> -> vector<64x128xf32>
    %12 = arith.addf %5, %11 : vector<64x128xf32>
    %c0_13 = arith.constant 0 : index
    %c0_14 = arith.constant 0 : index
    %c2 = arith.constant 2 : index
    %c0_15 = arith.constant 0 : index
    %13 = vector.load %arg1[%c0_13, %c0_14, %c2, %c0_15] : memref<1x10x10x128xbf16, #tpu.memory_space<vmem>>, vector<1x8x8x128xbf16>
    %14 = vector.shape_cast %13 : vector<1x8x8x128xbf16> to vector<8x8x128xbf16>
    %15 = vector.shape_cast %14 : vector<8x8x128xbf16> to vector<64x128xbf16>
    %c2_16 = arith.constant 2 : index
    %c0_17 = arith.constant 0 : index
    %c0_18 = arith.constant 0 : index
    %16 = vector.load %arg2[%c2_16, %c0_17, %c0_18] : memref<9x128x128xbf16, #tpu.memory_space<vmem>>, vector<1x128x128xbf16>
    %17 = vector.shape_cast %16 : vector<1x128x128xbf16> to vector<128x128xbf16>
    %cst_19 = arith.constant dense<0.000000e+00> : vector<64x128xf32>
    %18 = tpu.matmul %15, %17, %cst_19 {dimension_numbers = #tpu.dot_dimension_numbers<[1], [0], [0], [1], [0, 0, 1, 1], [], []>} : vector<64x128xbf16>, vector<128x128xbf16>, vector<64x128xf32> -> vector<64x128xf32>
    %19 = arith.addf %12, %18 : vector<64x128xf32>
    %c0_20 = arith.constant 0 : index
    %c1_21 = arith.constant 1 : index
    %c0_22 = arith.constant 0 : index
    %c0_23 = arith.constant 0 : index
    %20 = vector.load %arg1[%c0_20, %c1_21, %c0_22, %c0_23] : memref<1x10x10x128xbf16, #tpu.memory_space<vmem>>, vector<1x8x8x128xbf16>
    %21 = vector.shape_cast %20 : vector<1x8x8x128xbf16> to vector<8x8x128xbf16>
    %22 = vector.shape_cast %21 : vector<8x8x128xbf16> to vector<64x128xbf16>
    %c3 = arith.constant 3 : index
    %c0_24 = arith.constant 0 : index
    %c0_25 = arith.constant 0 : index
    %23 = vector.load %arg2[%c3, %c0_24, %c0_25] : memref<9x128x128xbf16, #tpu.memory_space<vmem>>, vector<1x128x128xbf16>
    %24 = vector.shape_cast %23 : vector<1x128x128xbf16> to vector<128x128xbf16>
    %cst_26 = arith.constant dense<0.000000e+00> : vector<64x128xf32>
    %25 = tpu.matmul %22, %24, %cst_26 {dimension_numbers = #tpu.dot_dimension_numbers<[1], [0], [0], [1], [0, 0, 1, 1], [], []>} : vector<64x128xbf16>, vector<128x128xbf16>, vector<64x128xf32> -> vector<64x128xf32>
    %26 = arith.addf %19, %25 : vector<64x128xf32>
    %c0_27 = arith.constant 0 : index
    %c1_28 = arith.constant 1 : index
    %c1_29 = arith.constant 1 : index
    %c0_30 = arith.constant 0 : index
    %27 = vector.load %arg1[%c0_27, %c1_28, %c1_29, %c0_30] : memref<1x10x10x128xbf16, #tpu.memory_space<vmem>>, vector<1x8x8x128xbf16>
    %28 = vector.shape_cast %27 : vector<1x8x8x128xbf16> to vector<8x8x128xbf16>
    %29 = vector.shape_cast %28 : vector<8x8x128xbf16> to vector<64x128xbf16>
    %c4 = arith.constant 4 : index
    %c0_31 = arith.constant 0 : index
    %c0_32 = arith.constant 0 : index
    %30 = vector.load %arg2[%c4, %c0_31, %c0_32] : memref<9x128x128xbf16, #tpu.memory_space<vmem>>, vector<1x128x128xbf16>
    %31 = vector.shape_cast %30 : vector<1x128x128xbf16> to vector<128x128xbf16>
    %cst_33 = arith.constant dense<0.000000e+00> : vector<64x128xf32>
    %32 = tpu.matmul %29, %31, %cst_33 {dimension_numbers = #tpu.dot_dimension_numbers<[1], [0], [0], [1], [0, 0, 1, 1], [], []>} : vector<64x128xbf16>, vector<128x128xbf16>, vector<64x128xf32> -> vector<64x128xf32>
    %33 = arith.addf %26, %32 : vector<64x128xf32>
    %c0_34 = arith.constant 0 : index
    %c1_35 = arith.constant 1 : index
    %c2_36 = arith.constant 2 : index
    %c0_37 = arith.constant 0 : index
    %34 = vector.load %arg1[%c0_34, %c1_35, %c2_36, %c0_37] : memref<1x10x10x128xbf16, #tpu.memory_space<vmem>>, vector<1x8x8x128xbf16>
    %35 = vector.shape_cast %34 : vector<1x8x8x128xbf16> to vector<8x8x128xbf16>
    %36 = vector.shape_cast %35 : vector<8x8x128xbf16> to vector<64x128xbf16>
    %c5 = arith.constant 5 : index
    %c0_38 = arith.constant 0 : index
    %c0_39 = arith.constant 0 : index
    %37 = vector.load %arg2[%c5, %c0_38, %c0_39] : memref<9x128x128xbf16, #tpu.memory_space<vmem>>, vector<1x128x128xbf16>
    %38 = vector.shape_cast %37 : vector<1x128x128xbf16> to vector<128x128xbf16>
    %cst_40 = arith.constant dense<0.000000e+00> : vector<64x128xf32>
    %39 = tpu.matmul %36, %38, %cst_40 {dimension_numbers = #tpu.dot_dimension_numbers<[1], [0], [0], [1], [0, 0, 1, 1], [], []>} : vector<64x128xbf16>, vector<128x128xbf16>, vector<64x128xf32> -> vector<64x128xf32>
    %40 = arith.addf %33, %39 : vector<64x128xf32>
    %c0_41 = arith.constant 0 : index
    %c2_42 = arith.constant 2 : index
    %c0_43 = arith.constant 0 : index
    %c0_44 = arith.constant 0 : index
    %41 = vector.load %arg1[%c0_41, %c2_42, %c0_43, %c0_44] : memref<1x10x10x128xbf16, #tpu.memory_space<vmem>>, vector<1x8x8x128xbf16>
    %42 = vector.shape_cast %41 : vector<1x8x8x128xbf16> to vector<8x8x128xbf16>
    %43 = vector.shape_cast %42 : vector<8x8x128xbf16> to vector<64x128xbf16>
    %c6 = arith.constant 6 : index
    %c0_45 = arith.constant 0 : index
    %c0_46 = arith.constant 0 : index
    %44 = vector.load %arg2[%c6, %c0_45, %c0_46] : memref<9x128x128xbf16, #tpu.memory_space<vmem>>, vector<1x128x128xbf16>
    %45 = vector.shape_cast %44 : vector<1x128x128xbf16> to vector<128x128xbf16>
    %cst_47 = arith.constant dense<0.000000e+00> : vector<64x128xf32>
    %46 = tpu.matmul %43, %45, %cst_47 {dimension_numbers = #tpu.dot_dimension_numbers<[1], [0], [0], [1], [0, 0, 1, 1], [], []>} : vector<64x128xbf16>, vector<128x128xbf16>, vector<64x128xf32> -> vector<64x128xf32>
    %47 = arith.addf %40, %46 : vector<64x128xf32>
    %c0_48 = arith.constant 0 : index
    %c2_49 = arith.constant 2 : index
    %c1_50 = arith.constant 1 : index
    %c0_51 = arith.constant 0 : index
    %48 = vector.load %arg1[%c0_48, %c2_49, %c1_50, %c0_51] : memref<1x10x10x128xbf16, #tpu.memory_space<vmem>>, vector<1x8x8x128xbf16>
    %49 = vector.shape_cast %48 : vector<1x8x8x128xbf16> to vector<8x8x128xbf16>
    %50 = vector.shape_cast %49 : vector<8x8x128xbf16> to vector<64x128xbf16>
    %c7 = arith.constant 7 : index
    %c0_52 = arith.constant 0 : index
    %c0_53 = arith.constant 0 : index
    %51 = vector.load %arg2[%c7, %c0_52, %c0_53] : memref<9x128x128xbf16, #tpu.memory_space<vmem>>, vector<1x128x128xbf16>
    %52 = vector.shape_cast %51 : vector<1x128x128xbf16> to vector<128x128xbf16>
    %cst_54 = arith.constant dense<0.000000e+00> : vector<64x128xf32>
    %53 = tpu.matmul %50, %52, %cst_54 {dimension_numbers = #tpu.dot_dimension_numbers<[1], [0], [0], [1], [0, 0, 1, 1], [], []>} : vector<64x128xbf16>, vector<128x128xbf16>, vector<64x128xf32> -> vector<64x128xf32>
    %54 = arith.addf %47, %53 : vector<64x128xf32>
    %c0_55 = arith.constant 0 : index
    %c2_56 = arith.constant 2 : index
    %c2_57 = arith.constant 2 : index
    %c0_58 = arith.constant 0 : index
    %55 = vector.load %arg1[%c0_55, %c2_56, %c2_57, %c0_58] : memref<1x10x10x128xbf16, #tpu.memory_space<vmem>>, vector<1x8x8x128xbf16>
    %56 = vector.shape_cast %55 : vector<1x8x8x128xbf16> to vector<8x8x128xbf16>
    %57 = vector.shape_cast %56 : vector<8x8x128xbf16> to vector<64x128xbf16>
    %c8 = arith.constant 8 : index
    %c0_59 = arith.constant 0 : index
    %c0_60 = arith.constant 0 : index
    %58 = vector.load %arg2[%c8, %c0_59, %c0_60] : memref<9x128x128xbf16, #tpu.memory_space<vmem>>, vector<1x128x128xbf16>
    %59 = vector.shape_cast %58 : vector<1x128x128xbf16> to vector<128x128xbf16>
    %cst_61 = arith.constant dense<0.000000e+00> : vector<64x128xf32>
    %60 = tpu.matmul %57, %59, %cst_61 {dimension_numbers = #tpu.dot_dimension_numbers<[1], [0], [0], [1], [0, 0, 1, 1], [], []>} : vector<64x128xbf16>, vector<128x128xbf16>, vector<64x128xf32> -> vector<64x128xf32>
    %61 = arith.addf %54, %60 : vector<64x128xf32>
    %c0_62 = arith.constant 0 : index
    %c0_63 = arith.constant 0 : index
    %62 = vector.load %arg3[%c0_62, %c0_63] : memref<1x128xf32, #tpu.memory_space<vmem>>, vector<1x128xf32>
    %63 = vector.broadcast %62 : vector<1x128xf32> to vector<64x128xf32>
    %64 = arith.addf %61, %63 : vector<64x128xf32>
    %65 = vector.shape_cast %64 : vector<64x128xf32> to vector<8x8x128xf32>
    %66 = arith.truncf %65 : vector<8x8x128xf32> to vector<8x8x128xbf16>
    %c0_64 = arith.constant 0 : index
    %c0_65 = arith.constant 0 : index
    %c0_66 = arith.constant 0 : index
    %c0_67 = arith.constant 0 : index
    %67 = vector.load %arg4[%c0_64, %c0_65, %c0_66, %c0_67] : memref<1x8x8x128xbf16, #tpu.memory_space<vmem>>, vector<1x8x8x128xbf16>
    %68 = vector.shape_cast %67 : vector<1x8x8x128xbf16> to vector<8x8x128xbf16>
    %69 = vector.shape_cast %66 : vector<8x8x128xbf16> to vector<1x8x8x128xbf16>
    tpu.vector_store %arg4[%c0_64, %c0_65, %c0_66, %c0_67], %69 {strides = array<i32>} : memref<1x8x8x128xbf16, #tpu.memory_space<vmem>>, vector<1x8x8x128xbf16>,
    return
  }
  func.func @transform_0(%arg0: i32) -> (i32, i32, i32, i32) {
    %c0_i32 = arith.constant 0 : i32
    %c0_i32_0 = arith.constant 0 : i32
    %c0_i32_1 = arith.constant 0 : i32
    %c0_i32_2 = arith.constant 0 : i32
    return %arg0, %c0_i32, %c0_i32_0, %c0_i32_1 : i32, i32, i32, i32
  }
  func.func @transform_1(%arg0: i32) -> (i32, i32, i32) {
    %c0_i32 = arith.constant 0 : i32
    %c0_i32_0 = arith.constant 0 : i32
    %c0_i32_1 = arith.constant 0 : i32
    %c0_i32_2 = arith.constant 0 : i32
    return %c0_i32, %c0_i32_0, %c0_i32_1 : i32, i32, i32
  }
  func.func @transform_2(%arg0: i32) -> (i32, i32) {
    %c0_i32 = arith.constant 0 : i32
    %c0_i32_0 = arith.constant 0 : i32
    %c0_i32_1 = arith.constant 0 : i32
    return %c0_i32, %c0_i32_0 : i32, i32
  }
  func.func @transform_3(%arg0: i32) -> (i32, i32, i32, i32) {
    %c0_i32 = arith.constant 0 : i32
    %c0_i32_0 = arith.constant 0 : i32
    %c0_i32_1 = arith.constant 0 : i32
    %c0_i32_2 = arith.constant 0 : i32
    return %arg0, %c0_i32, %c0_i32_0, %c0_i32_1 : i32, i32, i32, i32
  }
}

module attributes {stable_mosaic.version = 11 : i64} {
  func.func @_conv3x3_kernel(%arg0: i32, %arg1: memref<1x6x6x128xbf16, #tpu.memory_space<vmem>>, %arg2: memref<9x128x128xbf16, #tpu.memory_space<vmem>>, %arg3: memref<1x128xf32, #tpu.memory_space<vmem>>, %arg4: memref<1x4x4x128xbf16, #tpu.memory_space<vmem>>) attributes {dimension_semantics = [#tpu.dimension_semantics<parallel>], iteration_bounds = array<i64: 2>, scalar_prefetch = 0 : i64, scratch_operands = 0 : i64, tpu.core_type = #tpu.core_type<tc>, window_params = [{transform_indices = @transform_0, window_bounds = array<i64: 1, 6, 6, 128>}, {pipeline_mode = #tpu.pipeline_mode<synchronous>, transform_indices = @transform_1, window_bounds = array<i64: 9, 128, 128>}, {pipeline_mode = #tpu.pipeline_mode<synchronous>, transform_indices = @transform_2, window_bounds = array<i64: 1, 128>}, {transform_indices = @transform_3, window_bounds = array<i64: 1, 4, 4, 128>}]} {
    %c0 = arith.constant 0 : index
    %c0_0 = arith.constant 0 : index
    %c0_1 = arith.constant 0 : index
    %c0_2 = arith.constant 0 : index
    %0 = vector.load %arg1[%c0, %c0_0, %c0_1, %c0_2] : memref<1x6x6x128xbf16, #tpu.memory_space<vmem>>, vector<1x4x4x128xbf16>
    %1 = vector.shape_cast %0 : vector<1x4x4x128xbf16> to vector<4x4x128xbf16>
    %2 = vector.shape_cast %1 : vector<4x4x128xbf16> to vector<16x128xbf16>
    %c0_3 = arith.constant 0 : index
    %c0_4 = arith.constant 0 : index
    %c0_5 = arith.constant 0 : index
    %3 = vector.load %arg2[%c0_3, %c0_4, %c0_5] : memref<9x128x128xbf16, #tpu.memory_space<vmem>>, vector<1x128x128xbf16>
    %4 = vector.shape_cast %3 : vector<1x128x128xbf16> to vector<128x128xbf16>
    %cst = arith.constant dense<0.000000e+00> : vector<16x128xf32>
    %5 = tpu.matmul %2, %4, %cst {dimension_numbers = #tpu.dot_dimension_numbers<[1], [0], [0], [1], [0, 0, 1, 1], [], []>} : vector<16x128xbf16>, vector<128x128xbf16>, vector<16x128xf32> -> vector<16x128xf32>
    %c0_6 = arith.constant 0 : index
    %c0_7 = arith.constant 0 : index
    %c1 = arith.constant 1 : index
    %c0_8 = arith.constant 0 : index
    %6 = vector.load %arg1[%c0_6, %c0_7, %c1, %c0_8] : memref<1x6x6x128xbf16, #tpu.memory_space<vmem>>, vector<1x4x4x128xbf16>
    %7 = vector.shape_cast %6 : vector<1x4x4x128xbf16> to vector<4x4x128xbf16>
    %8 = vector.shape_cast %7 : vector<4x4x128xbf16> to vector<16x128xbf16>
    %c1_9 = arith.constant 1 : index
    %c0_10 = arith.constant 0 : index
    %c0_11 = arith.constant 0 : index
    %9 = vector.load %arg2[%c1_9, %c0_10, %c0_11] : memref<9x128x128xbf16, #tpu.memory_space<vmem>>, vector<1x128x128xbf16>
    %10 = vector.shape_cast %9 : vector<1x128x128xbf16> to vector<128x128xbf16>
    %cst_12 = arith.constant dense<0.000000e+00> : vector<16x128xf32>
    %11 = tpu.matmul %8, %10, %cst_12 {dimension_numbers = #tpu.dot_dimension_numbers<[1], [0], [0], [1], [0, 0, 1, 1], [], []>} : vector<16x128xbf16>, vector<128x128xbf16>, vector<16x128xf32> -> vector<16x128xf32>
    %12 = arith.addf %5, %11 : vector<16x128xf32>
    %c0_13 = arith.constant 0 : index
    %c0_14 = arith.constant 0 : index
    %c2 = arith.constant 2 : index
    %c0_15 = arith.constant 0 : index
    %13 = vector.load %arg1[%c0_13, %c0_14, %c2, %c0_15] : memref<1x6x6x128xbf16, #tpu.memory_space<vmem>>, vector<1x4x4x128xbf16>
    %14 = vector.shape_cast %13 : vector<1x4x4x128xbf16> to vector<4x4x128xbf16>
    %15 = vector.shape_cast %14 : vector<4x4x128xbf16> to vector<16x128xbf16>
    %c2_16 = arith.constant 2 : index
    %c0_17 = arith.constant 0 : index
    %c0_18 = arith.constant 0 : index
    %16 = vector.load %arg2[%c2_16, %c0_17, %c0_18] : memref<9x128x128xbf16, #tpu.memory_space<vmem>>, vector<1x128x128xbf16>
    %17 = vector.shape_cast %16 : vector<1x128x128xbf16> to vector<128x128xbf16>
    %cst_19 = arith.constant dense<0.000000e+00> : vector<16x128xf32>
    %18 = tpu.matmul %15, %17, %cst_19 {dimension_numbers = #tpu.dot_dimension_numbers<[1], [0], [0], [1], [0, 0, 1, 1], [], []>} : vector<16x128xbf16>, vector<128x128xbf16>, vector<16x128xf32> -> vector<16x128xf32>
    %19 = arith.addf %12, %18 : vector<16x128xf32>
    %c0_20 = arith.constant 0 : index
    %c1_21 = arith.constant 1 : index
    %c0_22 = arith.constant 0 : index
    %c0_23 = arith.constant 0 : index
    %20 = vector.load %arg1[%c0_20, %c1_21, %c0_22, %c0_23] : memref<1x6x6x128xbf16, #tpu.memory_space<vmem>>, vector<1x4x4x128xbf16>
    %21 = vector.shape_cast %20 : vector<1x4x4x128xbf16> to vector<4x4x128xbf16>
    %22 = vector.shape_cast %21 : vector<4x4x128xbf16> to vector<16x128xbf16>
    %c3 = arith.constant 3 : index
    %c0_24 = arith.constant 0 : index
    %c0_25 = arith.constant 0 : index
    %23 = vector.load %arg2[%c3, %c0_24, %c0_25] : memref<9x128x128xbf16, #tpu.memory_space<vmem>>, vector<1x128x128xbf16>
    %24 = vector.shape_cast %23 : vector<1x128x128xbf16> to vector<128x128xbf16>
    %cst_26 = arith.constant dense<0.000000e+00> : vector<16x128xf32>
    %25 = tpu.matmul %22, %24, %cst_26 {dimension_numbers = #tpu.dot_dimension_numbers<[1], [0], [0], [1], [0, 0, 1, 1], [], []>} : vector<16x128xbf16>, vector<128x128xbf16>, vector<16x128xf32> -> vector<16x128xf32>
    %26 = arith.addf %19, %25 : vector<16x128xf32>
    %c0_27 = arith.constant 0 : index
    %c1_28 = arith.constant 1 : index
    %c1_29 = arith.constant 1 : index
    %c0_30 = arith.constant 0 : index
    %27 = vector.load %arg1[%c0_27, %c1_28, %c1_29, %c0_30] : memref<1x6x6x128xbf16, #tpu.memory_space<vmem>>, vector<1x4x4x128xbf16>
    %28 = vector.shape_cast %27 : vector<1x4x4x128xbf16> to vector<4x4x128xbf16>
    %29 = vector.shape_cast %28 : vector<4x4x128xbf16> to vector<16x128xbf16>
    %c4 = arith.constant 4 : index
    %c0_31 = arith.constant 0 : index
    %c0_32 = arith.constant 0 : index
    %30 = vector.load %arg2[%c4, %c0_31, %c0_32] : memref<9x128x128xbf16, #tpu.memory_space<vmem>>, vector<1x128x128xbf16>
    %31 = vector.shape_cast %30 : vector<1x128x128xbf16> to vector<128x128xbf16>
    %cst_33 = arith.constant dense<0.000000e+00> : vector<16x128xf32>
    %32 = tpu.matmul %29, %31, %cst_33 {dimension_numbers = #tpu.dot_dimension_numbers<[1], [0], [0], [1], [0, 0, 1, 1], [], []>} : vector<16x128xbf16>, vector<128x128xbf16>, vector<16x128xf32> -> vector<16x128xf32>
    %33 = arith.addf %26, %32 : vector<16x128xf32>
    %c0_34 = arith.constant 0 : index
    %c1_35 = arith.constant 1 : index
    %c2_36 = arith.constant 2 : index
    %c0_37 = arith.constant 0 : index
    %34 = vector.load %arg1[%c0_34, %c1_35, %c2_36, %c0_37] : memref<1x6x6x128xbf16, #tpu.memory_space<vmem>>, vector<1x4x4x128xbf16>
    %35 = vector.shape_cast %34 : vector<1x4x4x128xbf16> to vector<4x4x128xbf16>
    %36 = vector.shape_cast %35 : vector<4x4x128xbf16> to vector<16x128xbf16>
    %c5 = arith.constant 5 : index
    %c0_38 = arith.constant 0 : index
    %c0_39 = arith.constant 0 : index
    %37 = vector.load %arg2[%c5, %c0_38, %c0_39] : memref<9x128x128xbf16, #tpu.memory_space<vmem>>, vector<1x128x128xbf16>
    %38 = vector.shape_cast %37 : vector<1x128x128xbf16> to vector<128x128xbf16>
    %cst_40 = arith.constant dense<0.000000e+00> : vector<16x128xf32>
    %39 = tpu.matmul %36, %38, %cst_40 {dimension_numbers = #tpu.dot_dimension_numbers<[1], [0], [0], [1], [0, 0, 1, 1], [], []>} : vector<16x128xbf16>, vector<128x128xbf16>, vector<16x128xf32> -> vector<16x128xf32>
    %40 = arith.addf %33, %39 : vector<16x128xf32>
    %c0_41 = arith.constant 0 : index
    %c2_42 = arith.constant 2 : index
    %c0_43 = arith.constant 0 : index
    %c0_44 = arith.constant 0 : index
    %41 = vector.load %arg1[%c0_41, %c2_42, %c0_43, %c0_44] : memref<1x6x6x128xbf16, #tpu.memory_space<vmem>>, vector<1x4x4x128xbf16>
    %42 = vector.shape_cast %41 : vector<1x4x4x128xbf16> to vector<4x4x128xbf16>
    %43 = vector.shape_cast %42 : vector<4x4x128xbf16> to vector<16x128xbf16>
    %c6 = arith.constant 6 : index
    %c0_45 = arith.constant 0 : index
    %c0_46 = arith.constant 0 : index
    %44 = vector.load %arg2[%c6, %c0_45, %c0_46] : memref<9x128x128xbf16, #tpu.memory_space<vmem>>, vector<1x128x128xbf16>
    %45 = vector.shape_cast %44 : vector<1x128x128xbf16> to vector<128x128xbf16>
    %cst_47 = arith.constant dense<0.000000e+00> : vector<16x128xf32>
    %46 = tpu.matmul %43, %45, %cst_47 {dimension_numbers = #tpu.dot_dimension_numbers<[1], [0], [0], [1], [0, 0, 1, 1], [], []>} : vector<16x128xbf16>, vector<128x128xbf16>, vector<16x128xf32> -> vector<16x128xf32>
    %47 = arith.addf %40, %46 : vector<16x128xf32>
    %c0_48 = arith.constant 0 : index
    %c2_49 = arith.constant 2 : index
    %c1_50 = arith.constant 1 : index
    %c0_51 = arith.constant 0 : index
    %48 = vector.load %arg1[%c0_48, %c2_49, %c1_50, %c0_51] : memref<1x6x6x128xbf16, #tpu.memory_space<vmem>>, vector<1x4x4x128xbf16>
    %49 = vector.shape_cast %48 : vector<1x4x4x128xbf16> to vector<4x4x128xbf16>
    %50 = vector.shape_cast %49 : vector<4x4x128xbf16> to vector<16x128xbf16>
    %c7 = arith.constant 7 : index
    %c0_52 = arith.constant 0 : index
    %c0_53 = arith.constant 0 : index
    %51 = vector.load %arg2[%c7, %c0_52, %c0_53] : memref<9x128x128xbf16, #tpu.memory_space<vmem>>, vector<1x128x128xbf16>
    %52 = vector.shape_cast %51 : vector<1x128x128xbf16> to vector<128x128xbf16>
    %cst_54 = arith.constant dense<0.000000e+00> : vector<16x128xf32>
    %53 = tpu.matmul %50, %52, %cst_54 {dimension_numbers = #tpu.dot_dimension_numbers<[1], [0], [0], [1], [0, 0, 1, 1], [], []>} : vector<16x128xbf16>, vector<128x128xbf16>, vector<16x128xf32> -> vector<16x128xf32>
    %54 = arith.addf %47, %53 : vector<16x128xf32>
    %c0_55 = arith.constant 0 : index
    %c2_56 = arith.constant 2 : index
    %c2_57 = arith.constant 2 : index
    %c0_58 = arith.constant 0 : index
    %55 = vector.load %arg1[%c0_55, %c2_56, %c2_57, %c0_58] : memref<1x6x6x128xbf16, #tpu.memory_space<vmem>>, vector<1x4x4x128xbf16>
    %56 = vector.shape_cast %55 : vector<1x4x4x128xbf16> to vector<4x4x128xbf16>
    %57 = vector.shape_cast %56 : vector<4x4x128xbf16> to vector<16x128xbf16>
    %c8 = arith.constant 8 : index
    %c0_59 = arith.constant 0 : index
    %c0_60 = arith.constant 0 : index
    %58 = vector.load %arg2[%c8, %c0_59, %c0_60] : memref<9x128x128xbf16, #tpu.memory_space<vmem>>, vector<1x128x128xbf16>
    %59 = vector.shape_cast %58 : vector<1x128x128xbf16> to vector<128x128xbf16>
    %cst_61 = arith.constant dense<0.000000e+00> : vector<16x128xf32>
    %60 = tpu.matmul %57, %59, %cst_61 {dimension_numbers = #tpu.dot_dimension_numbers<[1], [0], [0], [1], [0, 0, 1, 1], [], []>} : vector<16x128xbf16>, vector<128x128xbf16>, vector<16x128xf32> -> vector<16x128xf32>
    %61 = arith.addf %54, %60 : vector<16x128xf32>
    %c0_62 = arith.constant 0 : index
    %c0_63 = arith.constant 0 : index
    %62 = vector.load %arg3[%c0_62, %c0_63] : memref<1x128xf32, #tpu.memory_space<vmem>>, vector<1x128xf32>
    %63 = vector.broadcast %62 : vector<1x128xf32> to vector<16x128xf32>
    %64 = arith.addf %61, %63 : vector<16x128xf32>
    %65 = vector.shape_cast %64 : vector<16x128xf32> to vector<4x4x128xf32>
    %66 = arith.truncf %65 : vector<4x4x128xf32> to vector<4x4x128xbf16>
    %c0_64 = arith.constant 0 : index
    %c0_65 = arith.constant 0 : index
    %c0_66 = arith.constant 0 : index
    %c0_67 = arith.constant 0 : index
    %67 = vector.load %arg4[%c0_64, %c0_65, %c0_66, %c0_67] : memref<1x4x4x128xbf16, #tpu.memory_space<vmem>>, vector<1x4x4x128xbf16>
    %68 = vector.shape_cast %67 : vector<1x4x4x128xbf16> to vector<4x4x128xbf16>
    %69 = vector.shape_cast %66 : vector<4x4x128xbf16> to vector<1x4x4x128xbf16>
    tpu.vector_store %arg4[%c0_64, %c0_65, %c0_66, %c0_67], %69 {strides = array<i32>} : memref<1x4x4x128xbf16, #tpu.memory_space<vmem>>, vector<1x4x4x128xbf16>,
    return
  }
  func.func @transform_0(%arg0: i32) -> (i32, i32, i32, i32) {
    %c0_i32 = arith.constant 0 : i32
    %c0_i32_0 = arith.constant 0 : i32
    %c0_i32_1 = arith.constant 0 : i32
    %c0_i32_2 = arith.constant 0 : i32
    return %arg0, %c0_i32, %c0_i32_0, %c0_i32_1 : i32, i32, i32, i32
  }
  func.func @transform_1(%arg0: i32) -> (i32, i32, i32) {
    %c0_i32 = arith.constant 0 : i32
    %c0_i32_0 = arith.constant 0 : i32
    %c0_i32_1 = arith.constant 0 : i32
    %c0_i32_2 = arith.constant 0 : i32
    return %c0_i32, %c0_i32_0, %c0_i32_1 : i32, i32, i32
  }
  func.func @transform_2(%arg0: i32) -> (i32, i32) {
    %c0_i32 = arith.constant 0 : i32
    %c0_i32_0 = arith.constant 0 : i32
    %c0_i32_1 = arith.constant 0 : i32
    return %c0_i32, %c0_i32_0 : i32, i32
  }
  func.func @transform_3(%arg0: i32) -> (i32, i32, i32, i32) {
    %c0_i32 = arith.constant 0 : i32
    %c0_i32_0 = arith.constant 0 : i32
    %c0_i32_1 = arith.constant 0 : i32
    %c0_i32_2 = arith.constant 0 : i32
    return %arg0, %c0_i32, %c0_i32_0, %c0_i32_1 : i32, i32, i32, i32
  }
}

module attributes {stable_mosaic.version = 11 : i64} {
  func.func @_conv3x3_kernel(%arg0: i32, %arg1: memref<1x4x4x128xbf16, #tpu.memory_space<vmem>>, %arg2: memref<9x128x128xbf16, #tpu.memory_space<vmem>>, %arg3: memref<1x128xf32, #tpu.memory_space<vmem>>, %arg4: memref<1x2x2x128xbf16, #tpu.memory_space<vmem>>) attributes {dimension_semantics = [#tpu.dimension_semantics<parallel>], iteration_bounds = array<i64: 2>, scalar_prefetch = 0 : i64, scratch_operands = 0 : i64, tpu.core_type = #tpu.core_type<tc>, window_params = [{transform_indices = @transform_0, window_bounds = array<i64: 1, 4, 4, 128>}, {pipeline_mode = #tpu.pipeline_mode<synchronous>, transform_indices = @transform_1, window_bounds = array<i64: 9, 128, 128>}, {pipeline_mode = #tpu.pipeline_mode<synchronous>, transform_indices = @transform_2, window_bounds = array<i64: 1, 128>}, {transform_indices = @transform_3, window_bounds = array<i64: 1, 2, 2, 128>}]} {
    %c0 = arith.constant 0 : index
    %c0_0 = arith.constant 0 : index
    %c0_1 = arith.constant 0 : index
    %c0_2 = arith.constant 0 : index
    %0 = vector.load %arg1[%c0, %c0_0, %c0_1, %c0_2] : memref<1x4x4x128xbf16, #tpu.memory_space<vmem>>, vector<1x2x2x128xbf16>
    %1 = vector.shape_cast %0 : vector<1x2x2x128xbf16> to vector<2x2x128xbf16>
    %2 = vector.shape_cast %1 : vector<2x2x128xbf16> to vector<4x128xbf16>
    %c0_3 = arith.constant 0 : index
    %c0_4 = arith.constant 0 : index
    %c0_5 = arith.constant 0 : index
    %3 = vector.load %arg2[%c0_3, %c0_4, %c0_5] : memref<9x128x128xbf16, #tpu.memory_space<vmem>>, vector<1x128x128xbf16>
    %4 = vector.shape_cast %3 : vector<1x128x128xbf16> to vector<128x128xbf16>
    %cst = arith.constant dense<0.000000e+00> : vector<4x128xf32>
    %5 = tpu.matmul %2, %4, %cst {dimension_numbers = #tpu.dot_dimension_numbers<[1], [0], [0], [1], [0, 0, 1, 1], [], []>} : vector<4x128xbf16>, vector<128x128xbf16>, vector<4x128xf32> -> vector<4x128xf32>
    %c0_6 = arith.constant 0 : index
    %c0_7 = arith.constant 0 : index
    %c1 = arith.constant 1 : index
    %c0_8 = arith.constant 0 : index
    %6 = vector.load %arg1[%c0_6, %c0_7, %c1, %c0_8] : memref<1x4x4x128xbf16, #tpu.memory_space<vmem>>, vector<1x2x2x128xbf16>
    %7 = vector.shape_cast %6 : vector<1x2x2x128xbf16> to vector<2x2x128xbf16>
    %8 = vector.shape_cast %7 : vector<2x2x128xbf16> to vector<4x128xbf16>
    %c1_9 = arith.constant 1 : index
    %c0_10 = arith.constant 0 : index
    %c0_11 = arith.constant 0 : index
    %9 = vector.load %arg2[%c1_9, %c0_10, %c0_11] : memref<9x128x128xbf16, #tpu.memory_space<vmem>>, vector<1x128x128xbf16>
    %10 = vector.shape_cast %9 : vector<1x128x128xbf16> to vector<128x128xbf16>
    %cst_12 = arith.constant dense<0.000000e+00> : vector<4x128xf32>
    %11 = tpu.matmul %8, %10, %cst_12 {dimension_numbers = #tpu.dot_dimension_numbers<[1], [0], [0], [1], [0, 0, 1, 1], [], []>} : vector<4x128xbf16>, vector<128x128xbf16>, vector<4x128xf32> -> vector<4x128xf32>
    %12 = arith.addf %5, %11 : vector<4x128xf32>
    %c0_13 = arith.constant 0 : index
    %c0_14 = arith.constant 0 : index
    %c2 = arith.constant 2 : index
    %c0_15 = arith.constant 0 : index
    %13 = vector.load %arg1[%c0_13, %c0_14, %c2, %c0_15] : memref<1x4x4x128xbf16, #tpu.memory_space<vmem>>, vector<1x2x2x128xbf16>
    %14 = vector.shape_cast %13 : vector<1x2x2x128xbf16> to vector<2x2x128xbf16>
    %15 = vector.shape_cast %14 : vector<2x2x128xbf16> to vector<4x128xbf16>
    %c2_16 = arith.constant 2 : index
    %c0_17 = arith.constant 0 : index
    %c0_18 = arith.constant 0 : index
    %16 = vector.load %arg2[%c2_16, %c0_17, %c0_18] : memref<9x128x128xbf16, #tpu.memory_space<vmem>>, vector<1x128x128xbf16>
    %17 = vector.shape_cast %16 : vector<1x128x128xbf16> to vector<128x128xbf16>
    %cst_19 = arith.constant dense<0.000000e+00> : vector<4x128xf32>
    %18 = tpu.matmul %15, %17, %cst_19 {dimension_numbers = #tpu.dot_dimension_numbers<[1], [0], [0], [1], [0, 0, 1, 1], [], []>} : vector<4x128xbf16>, vector<128x128xbf16>, vector<4x128xf32> -> vector<4x128xf32>
    %19 = arith.addf %12, %18 : vector<4x128xf32>
    %c0_20 = arith.constant 0 : index
    %c1_21 = arith.constant 1 : index
    %c0_22 = arith.constant 0 : index
    %c0_23 = arith.constant 0 : index
    %20 = vector.load %arg1[%c0_20, %c1_21, %c0_22, %c0_23] : memref<1x4x4x128xbf16, #tpu.memory_space<vmem>>, vector<1x2x2x128xbf16>
    %21 = vector.shape_cast %20 : vector<1x2x2x128xbf16> to vector<2x2x128xbf16>
    %22 = vector.shape_cast %21 : vector<2x2x128xbf16> to vector<4x128xbf16>
    %c3 = arith.constant 3 : index
    %c0_24 = arith.constant 0 : index
    %c0_25 = arith.constant 0 : index
    %23 = vector.load %arg2[%c3, %c0_24, %c0_25] : memref<9x128x128xbf16, #tpu.memory_space<vmem>>, vector<1x128x128xbf16>
    %24 = vector.shape_cast %23 : vector<1x128x128xbf16> to vector<128x128xbf16>
    %cst_26 = arith.constant dense<0.000000e+00> : vector<4x128xf32>
    %25 = tpu.matmul %22, %24, %cst_26 {dimension_numbers = #tpu.dot_dimension_numbers<[1], [0], [0], [1], [0, 0, 1, 1], [], []>} : vector<4x128xbf16>, vector<128x128xbf16>, vector<4x128xf32> -> vector<4x128xf32>
    %26 = arith.addf %19, %25 : vector<4x128xf32>
    %c0_27 = arith.constant 0 : index
    %c1_28 = arith.constant 1 : index
    %c1_29 = arith.constant 1 : index
    %c0_30 = arith.constant 0 : index
    %27 = vector.load %arg1[%c0_27, %c1_28, %c1_29, %c0_30] : memref<1x4x4x128xbf16, #tpu.memory_space<vmem>>, vector<1x2x2x128xbf16>
    %28 = vector.shape_cast %27 : vector<1x2x2x128xbf16> to vector<2x2x128xbf16>
    %29 = vector.shape_cast %28 : vector<2x2x128xbf16> to vector<4x128xbf16>
    %c4 = arith.constant 4 : index
    %c0_31 = arith.constant 0 : index
    %c0_32 = arith.constant 0 : index
    %30 = vector.load %arg2[%c4, %c0_31, %c0_32] : memref<9x128x128xbf16, #tpu.memory_space<vmem>>, vector<1x128x128xbf16>
    %31 = vector.shape_cast %30 : vector<1x128x128xbf16> to vector<128x128xbf16>
    %cst_33 = arith.constant dense<0.000000e+00> : vector<4x128xf32>
    %32 = tpu.matmul %29, %31, %cst_33 {dimension_numbers = #tpu.dot_dimension_numbers<[1], [0], [0], [1], [0, 0, 1, 1], [], []>} : vector<4x128xbf16>, vector<128x128xbf16>, vector<4x128xf32> -> vector<4x128xf32>
    %33 = arith.addf %26, %32 : vector<4x128xf32>
    %c0_34 = arith.constant 0 : index
    %c1_35 = arith.constant 1 : index
    %c2_36 = arith.constant 2 : index
    %c0_37 = arith.constant 0 : index
    %34 = vector.load %arg1[%c0_34, %c1_35, %c2_36, %c0_37] : memref<1x4x4x128xbf16, #tpu.memory_space<vmem>>, vector<1x2x2x128xbf16>
    %35 = vector.shape_cast %34 : vector<1x2x2x128xbf16> to vector<2x2x128xbf16>
    %36 = vector.shape_cast %35 : vector<2x2x128xbf16> to vector<4x128xbf16>
    %c5 = arith.constant 5 : index
    %c0_38 = arith.constant 0 : index
    %c0_39 = arith.constant 0 : index
    %37 = vector.load %arg2[%c5, %c0_38, %c0_39] : memref<9x128x128xbf16, #tpu.memory_space<vmem>>, vector<1x128x128xbf16>
    %38 = vector.shape_cast %37 : vector<1x128x128xbf16> to vector<128x128xbf16>
    %cst_40 = arith.constant dense<0.000000e+00> : vector<4x128xf32>
    %39 = tpu.matmul %36, %38, %cst_40 {dimension_numbers = #tpu.dot_dimension_numbers<[1], [0], [0], [1], [0, 0, 1, 1], [], []>} : vector<4x128xbf16>, vector<128x128xbf16>, vector<4x128xf32> -> vector<4x128xf32>
    %40 = arith.addf %33, %39 : vector<4x128xf32>
    %c0_41 = arith.constant 0 : index
    %c2_42 = arith.constant 2 : index
    %c0_43 = arith.constant 0 : index
    %c0_44 = arith.constant 0 : index
    %41 = vector.load %arg1[%c0_41, %c2_42, %c0_43, %c0_44] : memref<1x4x4x128xbf16, #tpu.memory_space<vmem>>, vector<1x2x2x128xbf16>
    %42 = vector.shape_cast %41 : vector<1x2x2x128xbf16> to vector<2x2x128xbf16>
    %43 = vector.shape_cast %42 : vector<2x2x128xbf16> to vector<4x128xbf16>
    %c6 = arith.constant 6 : index
    %c0_45 = arith.constant 0 : index
    %c0_46 = arith.constant 0 : index
    %44 = vector.load %arg2[%c6, %c0_45, %c0_46] : memref<9x128x128xbf16, #tpu.memory_space<vmem>>, vector<1x128x128xbf16>
    %45 = vector.shape_cast %44 : vector<1x128x128xbf16> to vector<128x128xbf16>
    %cst_47 = arith.constant dense<0.000000e+00> : vector<4x128xf32>
    %46 = tpu.matmul %43, %45, %cst_47 {dimension_numbers = #tpu.dot_dimension_numbers<[1], [0], [0], [1], [0, 0, 1, 1], [], []>} : vector<4x128xbf16>, vector<128x128xbf16>, vector<4x128xf32> -> vector<4x128xf32>
    %47 = arith.addf %40, %46 : vector<4x128xf32>
    %c0_48 = arith.constant 0 : index
    %c2_49 = arith.constant 2 : index
    %c1_50 = arith.constant 1 : index
    %c0_51 = arith.constant 0 : index
    %48 = vector.load %arg1[%c0_48, %c2_49, %c1_50, %c0_51] : memref<1x4x4x128xbf16, #tpu.memory_space<vmem>>, vector<1x2x2x128xbf16>
    %49 = vector.shape_cast %48 : vector<1x2x2x128xbf16> to vector<2x2x128xbf16>
    %50 = vector.shape_cast %49 : vector<2x2x128xbf16> to vector<4x128xbf16>
    %c7 = arith.constant 7 : index
    %c0_52 = arith.constant 0 : index
    %c0_53 = arith.constant 0 : index
    %51 = vector.load %arg2[%c7, %c0_52, %c0_53] : memref<9x128x128xbf16, #tpu.memory_space<vmem>>, vector<1x128x128xbf16>
    %52 = vector.shape_cast %51 : vector<1x128x128xbf16> to vector<128x128xbf16>
    %cst_54 = arith.constant dense<0.000000e+00> : vector<4x128xf32>
    %53 = tpu.matmul %50, %52, %cst_54 {dimension_numbers = #tpu.dot_dimension_numbers<[1], [0], [0], [1], [0, 0, 1, 1], [], []>} : vector<4x128xbf16>, vector<128x128xbf16>, vector<4x128xf32> -> vector<4x128xf32>
    %54 = arith.addf %47, %53 : vector<4x128xf32>
    %c0_55 = arith.constant 0 : index
    %c2_56 = arith.constant 2 : index
    %c2_57 = arith.constant 2 : index
    %c0_58 = arith.constant 0 : index
    %55 = vector.load %arg1[%c0_55, %c2_56, %c2_57, %c0_58] : memref<1x4x4x128xbf16, #tpu.memory_space<vmem>>, vector<1x2x2x128xbf16>
    %56 = vector.shape_cast %55 : vector<1x2x2x128xbf16> to vector<2x2x128xbf16>
    %57 = vector.shape_cast %56 : vector<2x2x128xbf16> to vector<4x128xbf16>
    %c8 = arith.constant 8 : index
    %c0_59 = arith.constant 0 : index
    %c0_60 = arith.constant 0 : index
    %58 = vector.load %arg2[%c8, %c0_59, %c0_60] : memref<9x128x128xbf16, #tpu.memory_space<vmem>>, vector<1x128x128xbf16>
    %59 = vector.shape_cast %58 : vector<1x128x128xbf16> to vector<128x128xbf16>
    %cst_61 = arith.constant dense<0.000000e+00> : vector<4x128xf32>
    %60 = tpu.matmul %57, %59, %cst_61 {dimension_numbers = #tpu.dot_dimension_numbers<[1], [0], [0], [1], [0, 0, 1, 1], [], []>} : vector<4x128xbf16>, vector<128x128xbf16>, vector<4x128xf32> -> vector<4x128xf32>
    %61 = arith.addf %54, %60 : vector<4x128xf32>
    %c0_62 = arith.constant 0 : index
    %c0_63 = arith.constant 0 : index
    %62 = vector.load %arg3[%c0_62, %c0_63] : memref<1x128xf32, #tpu.memory_space<vmem>>, vector<1x128xf32>
    %63 = vector.broadcast %62 : vector<1x128xf32> to vector<4x128xf32>
    %64 = arith.addf %61, %63 : vector<4x128xf32>
    %65 = vector.shape_cast %64 : vector<4x128xf32> to vector<2x2x128xf32>
    %66 = arith.truncf %65 : vector<2x2x128xf32> to vector<2x2x128xbf16>
    %c0_64 = arith.constant 0 : index
    %c0_65 = arith.constant 0 : index
    %c0_66 = arith.constant 0 : index
    %c0_67 = arith.constant 0 : index
    %67 = vector.load %arg4[%c0_64, %c0_65, %c0_66, %c0_67] : memref<1x2x2x128xbf16, #tpu.memory_space<vmem>>, vector<1x2x2x128xbf16>
    %68 = vector.shape_cast %67 : vector<1x2x2x128xbf16> to vector<2x2x128xbf16>
    %69 = vector.shape_cast %66 : vector<2x2x128xbf16> to vector<1x2x2x128xbf16>
    tpu.vector_store %arg4[%c0_64, %c0_65, %c0_66, %c0_67], %69 {strides = array<i32>} : memref<1x2x2x128xbf16, #tpu.memory_space<vmem>>, vector<1x2x2x128xbf16>,
    return
  }
  func.func @transform_0(%arg0: i32) -> (i32, i32, i32, i32) {
    %c0_i32 = arith.constant 0 : i32
    %c0_i32_0 = arith.constant 0 : i32
    %c0_i32_1 = arith.constant 0 : i32
    %c0_i32_2 = arith.constant 0 : i32
    return %arg0, %c0_i32, %c0_i32_0, %c0_i32_1 : i32, i32, i32, i32
  }
  func.func @transform_1(%arg0: i32) -> (i32, i32, i32) {
    %c0_i32 = arith.constant 0 : i32
    %c0_i32_0 = arith.constant 0 : i32
    %c0_i32_1 = arith.constant 0 : i32
    %c0_i32_2 = arith.constant 0 : i32
    return %c0_i32, %c0_i32_0, %c0_i32_1 : i32, i32, i32
  }
  func.func @transform_2(%arg0: i32) -> (i32, i32) {
    %c0_i32 = arith.constant 0 : i32
    %c0_i32_0 = arith.constant 0 : i32
    %c0_i32_1 = arith.constant 0 : i32
    return %c0_i32, %c0_i32_0 : i32, i32
  }
  func.func @transform_3(%arg0: i32) -> (i32, i32, i32, i32) {
    %c0_i32 = arith.constant 0 : i32
    %c0_i32_0 = arith.constant 0 : i32
    %c0_i32_1 = arith.constant 0 : i32
    %c0_i32_2 = arith.constant 0 : i32
    return %arg0, %c0_i32, %c0_i32_0, %c0_i32_1 : i32, i32, i32, i32
  }
}

</mosaic_0001>

<bundles_post_ra>
// kernel: upsample_module_fwd.8
= control target key start
LH: loop header
LB: loop body
LE: loop exit
PB: predicated region body
PF: predicated region fallthrough
CT: control target
= control target key end

     0   :  { %12 = vsyncpa [#allocation3], 0  ;;  %s2118_s21 = smov [#allocation2]   ;;  %s2230_s0 = inlined_call_operand.vmem [shape: bf16[8,2048], index: 0, kind: input, shape index: {}]   ;;  %s2231_s1 = inlined_call_operand.hbm [shape: bf16[2048,128], index: 1, kind: input, shape index: {}]   ;;  %s2232_s2 = inlined_call_operand.vmem [shape: f32[1,128], index: 2, kind: input, shape index: {}]   ;;  %s2233_s3 = inlined_call_operand.vmem [shape: bf16[128,128], index: 3, kind: input, shape index: {}]   ;;  %s2234_s4 = inlined_call_operand.vmem [shape: f32[1,128], index: 4, kind: input, shape index: {}]   ;;  %s2235_s5 = inlined_call_operand.vmem [shape: bf16[8,128], index: 5, kind: output, shape index: {0}]   ;;  %s2236_s6 = inlined_call_operand.vmem [shape: bf16[8,128], index: 6, kind: output, shape index: {1}]  }
   0x1   :  { %s20_s22 = sshll.u32 %s2118_s21, 4  ;;  %s2094_s25 = scalar_lea.hbm %s2231_s1, 16384  ;;  %s21_s22 = int_to_ptr.vmem [resolvable:$true] %s20_s22 }
   0x2   :  { %p2095_p0 = scmp.ne.s32.totalorder %s2231_s1, %s2094_s25  ;;  %p2098_p1 = scmp.lt.u32.totalorder %s2094_s25, %s2231_s1 }
   0x4   :  { %p2100_p2 = pnand %p2098_p1, %p2095_p0 }
   0x6   :  { %2103 = shalt.err (!%p2100_p2)
}
   0x7   :  { %s2104_s30 = scalar_lea.vmem %s21_s22, 16384  ;;  %p2109_p4 = scmp.lt.s32.totalorder %s21_s22, %s21_s22 }
   0x8   :  { %p2105_p3 = scmp.ne.s32.totalorder %s21_s22, %s2104_s30  ;;  %p2110_p5 = scmp.lt.s32.totalorder %s2104_s30, %s2104_s30 }
   0xa   :  { %p2111_p6 = por %p2110_p5, %p2109_p4 }
   0xc   :  { %p2112_p7 = pnand %p2111_p6, %p2105_p3 }
   0xe   :  { %2115 = shalt.err (!%p2112_p7)
}
   0xf   :  { %s2119_s7 = smov 64   ;;  %s2120_s8 = smov 4  }
  0x10   :  { %26 = dma.hbm_to_vmem [thread:$0]  %s2231_s1, 16384, %s21_s22, [#allocation3], %s2119_s7, %s2119_s7, %s2120_s8  }
  0x11   :  { %2116 = dma.done.wait [#allocation3], 16384  }
  0x12   :  { %2117 = vsyncadd [#allocation3], 4294950912  ;;  %v1942_v0 = vld [vmem:[#allocation2 + $0x40] sm:$0xff]   ;;  %v1946_v4 = vld [vmem:[#allocation2 + $0x48] sm:$0xff]   ;;  %vm2122_vm0 = vmmov 0  }
  0x13   :  { %v1943_v1 = vld [vmem:[#allocation2 + $0xc0] sm:$0xff]   ;;  %1732 = vmatprep.subr.bf16.mxu0 %v1942_v0  ;;  %v1947_v5 = vld [vmem:[#allocation2 + $0xc8] sm:$0xff]   ;;  %v1950_v8 = vld [vmem:[#allocation2 + $0x50] sm:$0xff]  }
  0x14   :  { %v1944_v2 = vld [vmem:[#allocation2] sm:$0xff]   ;;  %1754 = vmatprep.subr.bf16.mxu1 %v1943_v1  ;;  %v1948_v6 = vld [vmem:[#allocation2 + $0x8] sm:$0xff]   ;;  %v1951_v9 = vld [vmem:[#allocation2 + $0xd0] sm:$0xff]  }
  0x15   :  { %v1945_v3 = vld [vmem:[#allocation2 + $0x80] sm:$0xff]   ;;  %1733 = vmatpush3.bf16.msra.mxu0 %v1944_v2  ;;  %v1949_v7 = vld [vmem:[#allocation2 + $0x88] sm:$0xff]   ;;  %v1952_v10 = vld [vmem:[#allocation2 + $0x10] sm:$0xff]  }
  0x16   :  { %1755 = vmatpush3.bf16.msra.mxu1 %v1945_v3  ;;  %1734 = vmatprep.subr.bf16.mxu0 %v1946_v4  ;;  %v1953_v11 = vld [vmem:[#allocation2 + $0x90] sm:$0xff]   ;;  %v1954_v12 = vld [vmem:[#allocation2 + $0x58] sm:$0xff]   ;;  %v1958_v16 = vld [vmem:[#allocation2 + $0x60] sm:$0xff]  }
  0x17   :  { %1756 = vmatprep.subr.bf16.mxu1 %v1947_v5  ;;  %v1955_v13 = vld [vmem:[#allocation2 + $0xd8] sm:$0xff]   ;;  %v1959_v17 = vld [vmem:[#allocation2 + $0xe0] sm:$0xff]   ;;  %v1962_v20 = vld [vmem:[#allocation2 + $0x68] sm:$0xff]  }
  0x18   :  { %v1956_v14 = vld [vmem:[#allocation2 + $0x18] sm:$0xff]   ;;  %v1960_v18 = vld [vmem:[#allocation2 + $0x20] sm:$0xff]   ;;  %v1963_v21 = vld [vmem:[#allocation2 + $0xe8] sm:$0xff]  }
  0x19   :  { %1735 = vmatpush3.bf16.msra.mxu0 %v1948_v6  ;;  %v1957_v15 = vld [vmem:[#allocation2 + $0x98] sm:$0xff]   ;;  %v1961_v19 = vld [vmem:[#allocation2 + $0xa0] sm:$0xff]   ;;  %v1964_v22 = vld [vmem:[#allocation2 + $0x28] sm:$0xff]  }
  0x1a   :  { %1757 = vmatpush3.bf16.msra.mxu1 %v1949_v7  ;;  %1736 = vmatprep.subr.bf16.mxu0 %v1950_v8  ;;  %v1965_v23 = vld [vmem:[#allocation2 + $0xa8] sm:$0xff]   ;;  %v1966_v24 = vld [vmem:[#allocation2 + $0x70] sm:$0xff]   ;;  %v1970_v28 = vld [vmem:[#allocation2 + $0x78] sm:$0xff]  }
  0x1b   :  { %1758 = vmatprep.subr.bf16.mxu1 %v1951_v9  ;;  %v1967_v25 = vld [vmem:[#allocation2 + $0xf0] sm:$0xff]   ;;  %v1971_v29 = vld [vmem:[#allocation2 + $0xf8] sm:$0xff]   ;;  %v37_v32 = vld [vmem:[%s2230_s0] sm:$0xff] }
  0x1c   :  { %v1968_v26 = vld [vmem:[#allocation2 + $0x30] sm:$0xff]   ;;  %v1972_v30 = vld [vmem:[#allocation2 + $0x38] sm:$0xff]   ;;  %v38_v33 = vld [vmem:[%s2230_s0 + $0x8] sm:$0xff]  ;;  %v1579_v34 = vcombine.low %v37_v32, %v37_v32  ;;  %v1580_v35 = vcombine.high %v37_v32, %v37_v32 }
  0x1d   :  { %1737 = vmatpush3.bf16.msra.mxu0 %v1952_v10  ;;  %v1969_v27 = vld [vmem:[#allocation2 + $0xb0] sm:$0xff]   ;;  %v1973_v31 = vld [vmem:[#allocation2 + $0xb8] sm:$0xff]   ;;  %v1581_v36 = vcombine.low %v38_v33, %v38_v33  ;;  %v1582_v37 = vcombine.high %v38_v33, %v38_v33  ;;  %v1978_v38 = vld [vmem:[#allocation2 + $0x140] sm:$0xff]  }
  0x1e   :  { %1759 = vmatpush3.bf16.msra.mxu1 %v1953_v11  ;;  %1738 = vmatprep.subr.bf16.mxu0 %v1954_v12  ;;  %v1979_v39 = vld [vmem:[#allocation2 + $0x1c0] sm:$0xff]   ;;  %v1982_v42 = vld [vmem:[#allocation2 + $0x148] sm:$0xff]   ;;  %v1986_v46 = vld [vmem:[#allocation2 + $0x150] sm:$0xff]  }
  0x1f   :  { %1760 = vmatprep.subr.bf16.mxu1 %v1955_v13  ;;  %1164 = vmatprep.mubr.bf16.mxu0 %v1580_v35  ;;  %v1980_v40 = vld [vmem:[#allocation2 + $0x100] sm:$0xff]   ;;  %v1983_v43 = vld [vmem:[#allocation2 + $0x1c8] sm:$0xff]   ;;  %v1987_v47 = vld [vmem:[#allocation2 + $0x1d0] sm:$0xff]  }
  0x20   :  { %1204 = vmatprep.mubr.bf16.mxu1 %v1582_v37  ;;  %v1981_v41 = vld [vmem:[#allocation2 + $0x180] sm:$0xff]   ;;  %v1984_v44 = vld [vmem:[#allocation2 + $0x108] sm:$0xff]   ;;  %v1988_v48 = vld [vmem:[#allocation2 + $0x110] sm:$0xff]  }
  0x21   :  { %1739 = vmatpush3.bf16.msra.mxu0 %v1956_v14  ;;  %v1985_v45 = vld [vmem:[#allocation2 + $0x188] sm:$0xff]   ;;  %v1989_v49 = vld [vmem:[#allocation2 + $0x190] sm:$0xff]   ;;  %v1990_v50 = vld [vmem:[#allocation2 + $0x158] sm:$0xff]  }
  0x22   :  { %1761 = vmatpush3.bf16.msra.mxu1 %v1957_v15  ;;  %1740 = vmatprep.subr.bf16.mxu0 %v1958_v16  ;;  %v1991_v51 = vld [vmem:[#allocation2 + $0x1d8] sm:$0xff]   ;;  %v1994_v54 = vld [vmem:[#allocation2 + $0x160] sm:$0xff]   ;;  %v1998_v58 = vld [vmem:[#allocation2 + $0x168] sm:$0xff]  }
  0x23   :  { %1762 = vmatprep.subr.bf16.mxu1 %v1959_v17  ;;  %v1992_v52 = vld [vmem:[#allocation2 + $0x118] sm:$0xff]   ;;  %v1995_v55 = vld [vmem:[#allocation2 + $0x1e0] sm:$0xff]   ;;  %v1999_v59 = vld [vmem:[#allocation2 + $0x1e8] sm:$0xff]  }
  0x24   :  { %v1993_v53 = vld [vmem:[#allocation2 + $0x198] sm:$0xff]   ;;  %v1996_v56 = vld [vmem:[#allocation2 + $0x120] sm:$0xff]   ;;  %v2000_v60 = vld [vmem:[#allocation2 + $0x128] sm:$0xff]  }
  0x25   :  { %1741 = vmatpush3.bf16.msra.mxu0 %v1960_v18  ;;  %v1997_v57 = vld [vmem:[#allocation2 + $0x1a0] sm:$0xff]   ;;  %v2001_v61 = vld [vmem:[#allocation2 + $0x1a8] sm:$0xff]   ;;  %v2002_v62 = vld [vmem:[#allocation2 + $0x170] sm:$0xff]  }
  0x26   :  { %1763 = vmatpush3.bf16.msra.mxu1 %v1961_v19  ;;  %1742 = vmatprep.subr.bf16.mxu0 %v1962_v20  ;;  %v2003_v63 = vld [vmem:[#allocation2 + $0x1f0] sm:$0xff]   ;;  %v2006_v2 = vld [vmem:[#allocation2 + $0x178] sm:$0xff]   ;;  %v2014_v12 = vld [vmem:[#allocation2 + $0x240] sm:$0xff]  }
  0x27   :  { %1764 = vmatprep.subr.bf16.mxu1 %v1963_v21  ;;  %v2004_v0 = vld [vmem:[#allocation2 + $0x130] sm:$0xff]   ;;  %v2007_v3 = vld [vmem:[#allocation2 + $0x1f8] sm:$0xff]   ;;  %v2015_v13 = vld [vmem:[#allocation2 + $0x2c0] sm:$0xff]  }
  0x28   :  { %v2005_v1 = vld [vmem:[#allocation2 + $0x1b0] sm:$0xff]   ;;  %v2008_v4 = vld [vmem:[#allocation2 + $0x138] sm:$0xff]   ;;  %v2016_v14 = vld [vmem:[#allocation2 + $0x200] sm:$0xff]  }
  0x29   :  { %1743 = vmatpush3.bf16.msra.mxu0 %v1964_v22  ;;  %v2009_v5 = vld [vmem:[#allocation2 + $0x1b8] sm:$0xff]   ;;  %v39_v6 = vld [vmem:[%s2230_s0 + $0x10] sm:$0xff]  ;;  %v2017_v15 = vld [vmem:[#allocation2 + $0x280] sm:$0xff]  }
  0x2a   :  { %1765 = vmatpush3.bf16.msra.mxu1 %v1965_v23  ;;  %1744 = vmatprep.subr.bf16.mxu0 %v1966_v24  ;;  %v1583_v7 = vcombine.low %v39_v6, %v39_v6  ;;  %v1584_v8 = vcombine.high %v39_v6, %v39_v6  ;;  %v40_v9 = vld [vmem:[%s2230_s0 + $0x18] sm:$0xff]  ;;  %v2018_v16 = vld [vmem:[#allocation2 + $0x248] sm:$0xff]   ;;  %v2022_v20 = vld [vmem:[#allocation2 + $0x250] sm:$0xff]  }
  0x2b   :  { %1766 = vmatprep.subr.bf16.mxu1 %v1967_v25  ;;  %v1585_v10 = vcombine.low %v40_v9, %v40_v9  ;;  %v1586_v11 = vcombine.high %v40_v9, %v40_v9  ;;  %v2019_v17 = vld [vmem:[#allocation2 + $0x2c8] sm:$0xff]   ;;  %v2023_v21 = vld [vmem:[#allocation2 + $0x2d0] sm:$0xff]   ;;  %v2026_v24 = vld [vmem:[#allocation2 + $0x258] sm:$0xff]  }
  0x2c   :  { %v2020_v18 = vld [vmem:[#allocation2 + $0x208] sm:$0xff]   ;;  %v2024_v22 = vld [vmem:[#allocation2 + $0x210] sm:$0xff]   ;;  %v2027_v25 = vld [vmem:[#allocation2 + $0x2d8] sm:$0xff]  }
  0x2d   :  { %1745 = vmatpush3.bf16.msra.mxu0 %v1968_v26  ;;  %v2021_v19 = vld [vmem:[#allocation2 + $0x288] sm:$0xff]   ;;  %v2025_v23 = vld [vmem:[#allocation2 + $0x290] sm:$0xff]   ;;  %v2028_v26 = vld [vmem:[#allocation2 + $0x218] sm:$0xff]  }
  0x2e   :  { %1767 = vmatpush3.bf16.msra.mxu1 %v1969_v27  ;;  %1746 = vmatprep.subr.bf16.mxu0 %v1970_v28  ;;  %v2029_v27 = vld [vmem:[#allocation2 + $0x298] sm:$0xff]   ;;  %v2030_v28 = vld [vmem:[#allocation2 + $0x260] sm:$0xff]   ;;  %v2034_v32 = vld [vmem:[#allocation2 + $0x268] sm:$0xff]  }
  0x2f   :  { %1768 = vmatprep.subr.bf16.mxu1 %v1971_v29  ;;  %v2031_v29 = vld [vmem:[#allocation2 + $0x2e0] sm:$0xff]   ;;  %v2035_v33 = vld [vmem:[#allocation2 + $0x2e8] sm:$0xff]   ;;  %v2039_v37 = vld [vmem:[#allocation2 + $0x2f0] sm:$0xff]  }
  0x30   :  { %v2037_v35 = vld [vmem:[#allocation2 + $0x2a8] sm:$0xff]  }
  0x31   :  { %1747 = vmatpush3.bf16.msra.mxu0 %v1972_v30  ;;  %v2032_v30 = vld [vmem:[#allocation2 + $0x220] sm:$0xff]   ;;  %v2070_v6 = vld [vmem:[#allocation2 + $0x368] sm:$0xff]  }
  0x32   :  { %1769 = vmatpush3.bf16.msra.mxu1 %v1973_v31  ;;  %1776 = vmatprep.subr.bf16.mxu0 %v1978_v38  ;;  %v2033_v31 = vld [vmem:[#allocation2 + $0x2a0] sm:$0xff]   ;;  %v2040_v38 = vld [vmem:[#allocation2 + $0x230] sm:$0xff]   ;;  %v2073_v9 = vld [vmem:[#allocation2 + $0x3a8] sm:$0xff]  }
  0x33   :  { %1798 = vmatprep.subr.bf16.mxu1 %v1979_v39  ;;  %v2041_v39 = vld [vmem:[#allocation2 + $0x2b0] sm:$0xff]  }
  0x34   :  { %1165 = vmatmul.mubr.bf16.vlgmr.msra.gmra.mrb[0].mxu0 %v1579_v34  ;;  %v2036_v34 = vld [vmem:[#allocation2 + $0x228] sm:$0xff]  }
  0x35   :  { %1205 = vmatmul.mubr.bf16.vlgmr.msra.gmra.mrb[0].mxu1 %v1581_v36  ;;  %1777 = vmatpush3.bf16.msra.mxu0 %v1980_v40  ;;  %v2038_v36 = vld [vmem:[#allocation2 + $0x270] sm:$0xff]   ;;  %v2042_v40 = vld [vmem:[#allocation2 + $0x278] sm:$0xff]  }
  0x36   :  { %1799 = vmatpush3.bf16.msra.mxu1 %v1981_v41  ;;  %1778 = vmatprep.subr.bf16.mxu0 %v1982_v42  ;;  %v2043_v41 = vld [vmem:[#allocation2 + $0x2f8] sm:$0xff]  }
  0x37   :  { %1800 = vmatprep.subr.bf16.mxu1 %v1983_v43  ;;  %1244 = vmatprep.mubr.bf16.mxu0 %v1584_v8  ;;  %v2044_v42 = vld [vmem:[#allocation2 + $0x238] sm:$0xff]   ;;  %v2072_v8 = vld [vmem:[#allocation2 + $0x328] sm:$0xff]  }
  0x38   :  { %1284 = vmatprep.mubr.bf16.mxu1 %v1586_v11  ;;  %v2045_v43 = vld [vmem:[#allocation2 + $0x2b8] sm:$0xff]   ;;  %v2075_v11 = vld [vmem:[#allocation2 + $0x3f0] sm:$0xff]  }
  0x39   :  { %1779 = vmatpush3.bf16.msra.mxu0 %v1984_v44  ;;  %v41_v44 = vld [vmem:[%s2230_s0 + $0x20] sm:$0xff] }
  0x3a   :  { %1801 = vmatpush3.bf16.msra.mxu1 %v1985_v45  ;;  %1780 = vmatprep.subr.bf16.mxu0 %v1986_v46  ;;  %v42_v45 = vld [vmem:[%s2230_s0 + $0x28] sm:$0xff]  ;;  %v1587_v46 = vcombine.low %v41_v44, %v41_v44 }
  0x3b   :  { %1802 = vmatprep.subr.bf16.mxu1 %v1987_v47  ;;  %v1588_v47 = vcombine.high %v41_v44, %v41_v44 }
  0x3d   :  { %1781 = vmatpush3.bf16.msra.mxu0 %v1988_v48  ;;  %v1589_v48 = vcombine.low %v42_v45, %v42_v45 }
  0x3e   :  { %1803 = vmatpush3.bf16.msra.mxu1 %v1989_v49  ;;  %1782 = vmatprep.subr.bf16.mxu0 %v1990_v50  ;;  %v1590_v49 = vcombine.high %v42_v45, %v42_v45  ;;  %v2050_v50 = vld [vmem:[#allocation2 + $0x340] sm:$0xff]  }
  0x3f   :  { %1804 = vmatprep.subr.bf16.mxu1 %v1991_v51  ;;  %v2051_v51 = vld [vmem:[#allocation2 + $0x3c0] sm:$0xff]  }
  0x41   :  { %1783 = vmatpush3.bf16.msra.mxu0 %v1992_v52  ;;  %v2052_v52 = vld [vmem:[#allocation2 + $0x300] sm:$0xff]  }
  0x42   :  { %1805 = vmatpush3.bf16.msra.mxu1 %v1993_v53  ;;  %1784 = vmatprep.subr.bf16.mxu0 %v1994_v54  ;;  %v2053_v53 = vld [vmem:[#allocation2 + $0x380] sm:$0xff]   ;;  %v2054_v54 = vld [vmem:[#allocation2 + $0x348] sm:$0xff]  }
  0x43   :  { %1806 = vmatprep.subr.bf16.mxu1 %v1995_v55  ;;  %v2055_v55 = vld [vmem:[#allocation2 + $0x3c8] sm:$0xff]  }
  0x45   :  { %1785 = vmatpush3.bf16.msra.mxu0 %v1996_v56  ;;  %v2056_v56 = vld [vmem:[#allocation2 + $0x308] sm:$0xff]  }
  0x46   :  { %1807 = vmatpush3.bf16.msra.mxu1 %v1997_v57  ;;  %1786 = vmatprep.subr.bf16.mxu0 %v1998_v58  ;;  %v2057_v57 = vld [vmem:[#allocation2 + $0x388] sm:$0xff]   ;;  %v2058_v58 = vld [vmem:[#allocation2 + $0x350] sm:$0xff]  }
  0x47   :  { %1808 = vmatprep.subr.bf16.mxu1 %v1999_v59  ;;  %v2059_v59 = vld [vmem:[#allocation2 + $0x3d0] sm:$0xff]  }
  0x49   :  { %1787 = vmatpush3.bf16.msra.mxu0 %v2000_v60  ;;  %v2060_v60 = vld [vmem:[#allocation2 + $0x310] sm:$0xff]  }
  0x4a   :  { %1809 = vmatpush3.bf16.msra.mxu1 %v2001_v61  ;;  %1788 = vmatprep.subr.bf16.mxu0 %v2002_v62  ;;  %v2061_v61 = vld [vmem:[#allocation2 + $0x390] sm:$0xff]   ;;  %v2062_v62 = vld [vmem:[#allocation2 + $0x358] sm:$0xff]  }
  0x4b   :  { %1810 = vmatprep.subr.bf16.mxu1 %v2003_v63  ;;  %v2063_v63 = vld [vmem:[#allocation2 + $0x3d8] sm:$0xff]  }
  0x4d   :  { %1789 = vmatpush3.bf16.msra.mxu0 %v2004_v0  ;;  %v2064_v0 = vld [vmem:[#allocation2 + $0x318] sm:$0xff]  }
  0x4e   :  { %1811 = vmatpush3.bf16.msra.mxu1 %v2005_v1  ;;  %1790 = vmatprep.subr.bf16.mxu0 %v2006_v2  ;;  %v2065_v1 = vld [vmem:[#allocation2 + $0x398] sm:$0xff]   ;;  %v2066_v2 = vld [vmem:[#allocation2 + $0x360] sm:$0xff]  }
  0x4f   :  { %1812 = vmatprep.subr.bf16.mxu1 %v2007_v3  ;;  %v2067_v3 = vld [vmem:[#allocation2 + $0x3e0] sm:$0xff]  }
  0x51   :  { %1791 = vmatpush3.bf16.msra.mxu0 %v2008_v4  ;;  %v2068_v4 = vld [vmem:[#allocation2 + $0x320] sm:$0xff]  }
  0x52   :  { %1813 = vmatpush3.bf16.msra.mxu1 %v2009_v5  ;;  %1820 = vmatprep.subr.bf16.mxu0 %v2014_v12  ;;  %v2069_v5 = vld [vmem:[#allocation2 + $0x3a0] sm:$0xff]   ;;  %v2076_v12 = vld [vmem:[#allocation2 + $0x330] sm:$0xff]  }
  0x53   :  { %1842 = vmatprep.subr.bf16.mxu1 %v2015_v13  ;;  %v2077_v13 = vld [vmem:[#allocation2 + $0x3b0] sm:$0xff]  }
  0x54   :  { %1245 = vmatmul.mubr.bf16.vlgmr.msra.gmra.mrb[4].mxu0 %v1583_v7  ;;  %v2071_v7 = vld [vmem:[#allocation2 + $0x3e8] sm:$0xff]  }
  0x55   :  { %1285 = vmatmul.mubr.bf16.vlgmr.msra.gmra.mrb[4].mxu1 %v1585_v10  ;;  %1821 = vmatpush3.bf16.msra.mxu0 %v2016_v14  ;;  %v2074_v10 = vld [vmem:[#allocation2 + $0x370] sm:$0xff]   ;;  %v2078_v14 = vld [vmem:[#allocation2 + $0x378] sm:$0xff]  }
  0x56   :  { %1843 = vmatpush3.bf16.msra.mxu1 %v2017_v15  ;;  %1822 = vmatprep.subr.bf16.mxu0 %v2018_v16  ;;  %v2079_v15 = vld [vmem:[#allocation2 + $0x3f8] sm:$0xff]  }
  0x57   :  { %1844 = vmatprep.subr.bf16.mxu1 %v2019_v17  ;;  %1324 = vmatprep.mubr.bf16.mxu0 %v1588_v47  ;;  %v2080_v16 = vld [vmem:[#allocation2 + $0x338] sm:$0xff]  }
  0x58   :  { %1364 = vmatprep.mubr.bf16.mxu1 %v1590_v49  ;;  %v2081_v17 = vld [vmem:[#allocation2 + $0x3b8] sm:$0xff]  }
  0x59   :  { %1823 = vmatpush3.bf16.msra.mxu0 %v2020_v18  ;;  %v43_v18 = vld [vmem:[%s2230_s0 + $0x30] sm:$0xff] }
  0x5a   :  { %1845 = vmatpush3.bf16.msra.mxu1 %v2021_v19  ;;  %1824 = vmatprep.subr.bf16.mxu0 %v2022_v20  ;;  %v44_v19 = vld [vmem:[%s2230_s0 + $0x38] sm:$0xff]  ;;  %v1591_v20 = vcombine.low %v43_v18, %v43_v18 }
  0x5b   :  { %1846 = vmatprep.subr.bf16.mxu1 %v2023_v21  ;;  %v1592_v21 = vcombine.high %v43_v18, %v43_v18 }
  0x5d   :  { %1825 = vmatpush3.bf16.msra.mxu0 %v2024_v22  ;;  %v1593_v22 = vcombine.low %v44_v19, %v44_v19 }
  0x5e   :  { %1847 = vmatpush3.bf16.msra.mxu1 %v2025_v23  ;;  %1826 = vmatprep.subr.bf16.mxu0 %v2026_v24  ;;  %v1594_v23 = vcombine.high %v44_v19, %v44_v19  ;;  %v2086_v24 = vld [vmem:[%s2233_s3] sm:$0xff]  }
  0x5f   :  { %1848 = vmatprep.subr.bf16.mxu1 %v2027_v25  ;;  %v2121_v25 = vmov 0.0  }
  0x61   :  { %1827 = vmatpush3.bf16.msra.mxu0 %v2028_v26  ;;  %v2087_v26 = vld [vmem:[%s2233_s3 + $0x8] sm:$0xff]  }
  0x62   :  { %1849 = vmatpush3.bf16.msra.mxu1 %v2029_v27  ;;  %1828 = vmatprep.subr.bf16.mxu0 %v2030_v28  ;;  %v2088_v27 = vld [vmem:[%s2233_s3 + $0x10] sm:$0xff]   ;;  %v2089_v28 = vld [vmem:[%s2233_s3 + $0x18] sm:$0xff]  }
  0x63   :  { %1850 = vmatprep.subr.bf16.mxu1 %v2031_v29  ;;  %v2090_v29 = vld [vmem:[%s2233_s3 + $0x20] sm:$0xff]  }
  0x65   :  { %1829 = vmatpush3.bf16.msra.mxu0 %v2032_v30  ;;  %v2091_v30 = vld [vmem:[%s2233_s3 + $0x28] sm:$0xff]  }
  0x66   :  { %1851 = vmatpush3.bf16.msra.mxu1 %v2033_v31  ;;  %1830 = vmatprep.subr.bf16.mxu0 %v2034_v32  ;;  %v2092_v31 = vld [vmem:[%s2233_s3 + $0x30] sm:$0xff]   ;;  %v2093_v32 = vld [vmem:[%s2233_s3 + $0x38] sm:$0xff]  }
  0x67   :  { %1852 = vmatprep.subr.bf16.mxu1 %v2035_v33 }
  0x69   :  { %1831 = vmatpush3.bf16.msra.mxu0 %v2036_v34 }
  0x6a   :  { %1853 = vmatpush3.bf16.msra.mxu1 %v2037_v35  ;;  %1832 = vmatprep.subr.bf16.mxu0 %v2038_v36  ;;  %v1578_v35 = vld [vmem:[%s2232_s2] ss:$0 sm:$0xff] }
  0x6b   :  { %1854 = vmatprep.subr.bf16.mxu1 %v2039_v37 }
  0x6d   :  { %1833 = vmatpush3.bf16.msra.mxu0 %v2040_v38 }
  0x6e   :  { %1855 = vmatpush3.bf16.msra.mxu1 %v2041_v39  ;;  %1834 = vmatprep.subr.bf16.mxu0 %v2042_v40 }
  0x6f   :  { %1856 = vmatprep.subr.bf16.mxu1 %v2043_v41 }
  0x71   :  { %1835 = vmatpush3.bf16.msra.mxu0 %v2044_v42 }
  0x72   :  { %1857 = vmatpush3.bf16.msra.mxu1 %v2045_v43  ;;  %1864 = vmatprep.subr.bf16.mxu0 %v2050_v50 }
  0x73   :  { %1886 = vmatprep.subr.bf16.mxu1 %v2051_v51 }
  0x74   :  { %1325 = vmatmul.mubr.bf16.vlgmr.msra.gmra.mrb[8].mxu0 %v1587_v46 }
  0x75   :  { %1365 = vmatmul.mubr.bf16.vlgmr.msra.gmra.mrb[8].mxu1 %v1589_v48  ;;  %1865 = vmatpush3.bf16.msra.mxu0 %v2052_v52 }
  0x76   :  { %1887 = vmatpush3.bf16.msra.mxu1 %v2053_v53  ;;  %1866 = vmatprep.subr.bf16.mxu0 %v2054_v54 }
  0x77   :  { %1888 = vmatprep.subr.bf16.mxu1 %v2055_v55  ;;  %1404 = vmatprep.mubr.bf16.mxu0 %v1592_v21 }
  0x78   :  { %1444 = vmatprep.mubr.bf16.mxu1 %v1594_v23 }
  0x79   :  { %1867 = vmatpush3.bf16.msra.mxu0 %v2056_v56 }
  0x7a   :  { %1889 = vmatpush3.bf16.msra.mxu1 %v2057_v57  ;;  %1868 = vmatprep.subr.bf16.mxu0 %v2058_v58 }
  0x7b   :  { %1890 = vmatprep.subr.bf16.mxu1 %v2059_v59 }
  0x7d   :  { %1869 = vmatpush3.bf16.msra.mxu0 %v2060_v60 }
  0x7e   :  { %1891 = vmatpush3.bf16.msra.mxu1 %v2061_v61  ;;  %1870 = vmatprep.subr.bf16.mxu0 %v2062_v62 }
  0x7f   :  { %1892 = vmatprep.subr.bf16.mxu1 %v2063_v63 }
  0x81   :  { %1871 = vmatpush3.bf16.msra.mxu0 %v2064_v0 }
  0x82   :  { %1893 = vmatpush3.bf16.msra.mxu1 %v2065_v1  ;;  %1872 = vmatprep.subr.bf16.mxu0 %v2066_v2 }
  0x83   :  { %1894 = vmatprep.subr.bf16.mxu1 %v2067_v3 }
  0x85   :  { %1873 = vmatpush3.bf16.msra.mxu0 %v2068_v4 }
  0x86   :  { %1895 = vmatpush3.bf16.msra.mxu1 %v2069_v5  ;;  %1874 = vmatprep.subr.bf16.mxu0 %v2070_v6 }
  0x87   :  { %1896 = vmatprep.subr.bf16.mxu1 %v2071_v7 }
  0x89   :  { %1875 = vmatpush3.bf16.msra.mxu0 %v2072_v8 }
  0x8a   :  { %1897 = vmatpush3.bf16.msra.mxu1 %v2073_v9  ;;  %1876 = vmatprep.subr.bf16.mxu0 %v2074_v10 }
  0x8b   :  { %1898 = vmatprep.subr.bf16.mxu1 %v2075_v11 }
  0x8d   :  { %1877 = vmatpush3.bf16.msra.mxu0 %v2076_v12 }
  0x8e   :  { %1899 = vmatpush3.bf16.msra.mxu1 %v2077_v13  ;;  %1878 = vmatprep.subr.bf16.mxu0 %v2078_v14 }
  0x8f   :  { %1900 = vmatprep.subr.bf16.mxu1 %v2079_v15 }
  0x91   :  { %1879 = vmatpush3.bf16.msra.mxu0 %v2080_v16 }
  0x92   :  { %1901 = vmatpush3.bf16.msra.mxu1 %v2081_v17  ;;  %1917 = vmatprep.subr.bf16.mxu0 %v2121_v25 }
  0x94   :  { %1405 = vmatmul.mubr.bf16.vlgmr.msra.gmra.mrb[12].mxu0 %v1591_v20  ;;  %v1723_v20 = vld [vmem:[%s2234_s4] ss:$0 sm:$0xff] }
  0x95   :  { %1445 = vmatmul.mubr.bf16.vlgmr.msra.gmra.mrb[12].mxu1 %v1593_v22  ;;  %1918 = vmatpush3.bf16.msra.mxu0 %v2086_v24 }
  0x96   :  { %1919 = vmatprep.subr.bf16.mxu0 %v2121_v25  ;;  %1933 = vmatprep.mubr.msk.bf16.mxu0 %vm2122_vm0, %v2121_v25 }
  0x99   :  { %1920 = vmatpush3.bf16.msra.mxu0 %v2087_v26 }
  0x9a   :  { %1921 = vmatprep.subr.bf16.mxu0 %v2121_v25 }
  0x9d   :  { %1922 = vmatpush3.bf16.msra.mxu0 %v2088_v27 }
  0x9e   :  { %1923 = vmatprep.subr.bf16.mxu0 %v2121_v25 }
  0xa1   :  { %1924 = vmatpush3.bf16.msra.mxu0 %v2089_v28 }
  0xa2   :  { %1925 = vmatprep.subr.bf16.mxu0 %v2121_v25 }
  0xa5   :  { %1926 = vmatpush3.bf16.msra.mxu0 %v2090_v29 }
  0xa6   :  { %1927 = vmatprep.subr.bf16.mxu0 %v2121_v25 }
  0xa9   :  { %1928 = vmatpush3.bf16.msra.mxu0 %v2091_v30 }
  0xaa   :  { %1929 = vmatprep.subr.bf16.mxu0 %v2121_v25 }
  0xad   :  { %1930 = vmatpush3.bf16.msra.mxu0 %v2092_v31 }
  0xae   :  { %1931 = vmatprep.subr.bf16.mxu0 %v2121_v25 }
  0xb1   :  { %1932 = vmatpush3.bf16.msra.mxu0 %v2093_v32 }
 0x107   :  { %v1748_v33 = vpop.f32.mrb[0].mxu0 }
 0x108   :  { %v1770_v34 = vpop.f32.mrb[0].mxu1  ;;  %v1749_v36 = vpop.f32.mrb[1].mxu0 }
 0x109   :  { %v1771_v37 = vpop.f32.mrb[1].mxu1  ;;  %v1750_v38 = vadd.f32 %v1749_v36, %v1748_v33  ;;  %v1751_v40 = vpop.f32.mrb[2].mxu0 }
 0x10a   :  { %v1772_v39 = vadd.f32 %v1771_v37, %v1770_v34  ;;  %v1773_v41 = vpop.f32.mrb[2].mxu1  ;;  %v1752_v42 = vpop.f32.mrb[3].mxu0 }
 0x10b   :  { %v1774_v43 = vpop.f32.mrb[3].mxu1  ;;  %v1167_v44 = vadd.f32 %v1750_v38, %v1578_v35 }
 0x10d   :  { %v1207_v45 = vadd.f32 %v1772_v39, %v1167_v44 }
 0x127   :  { %v1792_v46 = vpop.f32.mrb[4].mxu0 }
 0x128   :  { %v1814_v47 = vpop.f32.mrb[4].mxu1  ;;  %v1793_v48 = vpop.f32.mrb[5].mxu0 }
 0x129   :  { %v1815_v49 = vpop.f32.mrb[5].mxu1  ;;  %v1794_v50 = vadd.f32 %v1793_v48, %v1792_v46  ;;  %v1795_v52 = vpop.f32.mrb[6].mxu0 }
 0x12a   :  { %v1816_v51 = vadd.f32 %v1815_v49, %v1814_v47  ;;  %v1817_v53 = vpop.f32.mrb[6].mxu1  ;;  %v1796_v54 = vpop.f32.mrb[7].mxu0 }
 0x12b   :  { %v1818_v55 = vpop.f32.mrb[7].mxu1  ;;  %v1247_v56 = vadd.f32 %v1794_v50, %v1207_v45 }
 0x12d   :  { %v1287_v57 = vadd.f32 %v1816_v51, %v1247_v56 }
 0x147   :  { %v1836_v58 = vpop.f32.mrb[8].mxu0 }
 0x148   :  { %v1858_v59 = vpop.f32.mrb[8].mxu1  ;;  %v1837_v60 = vpop.f32.mrb[9].mxu0 }
 0x149   :  { %v1838_v61 = vadd.f32 %v1837_v60, %v1836_v58  ;;  %v1859_v62 = vpop.f32.mrb[9].mxu1  ;;  %v1839_v63 = vpop.f32.mrb[10].mxu0 }
 0x14a   :  { %v1860_v0 = vadd.f32 %v1859_v62, %v1858_v59  ;;  %v1861_v1 = vpop.f32.mrb[10].mxu1  ;;  %v1840_v2 = vpop.f32.mrb[11].mxu0 }
 0x14b   :  { %v1327_v3 = vadd.f32 %v1838_v61, %v1287_v57  ;;  %v1862_v4 = vpop.f32.mrb[11].mxu1 }
 0x14d   :  { %v1367_v5 = vadd.f32 %v1860_v0, %v1327_v3 }
 0x167   :  { %v1880_v6 = vpop.f32.mrb[12].mxu0 }
 0x168   :  { %v1902_v7 = vpop.f32.mrb[12].mxu1  ;;  %v1881_v8 = vpop.f32.mrb[13].mxu0 }
 0x169   :  { %v1882_v9 = vadd.f32 %v1881_v8, %v1880_v6  ;;  %v1903_v10 = vpop.f32.mrb[13].mxu1  ;;  %v1883_v11 = vpop.f32.mrb[14].mxu0 }
 0x16a   :  { %v1904_v12 = vadd.f32 %v1903_v10, %v1902_v7  ;;  %v1905_v13 = vpop.f32.mrb[14].mxu1  ;;  %v1884_v14 = vpop.f32.mrb[15].mxu0 }
 0x16b   :  { %v1407_v15 = vadd.f32 %v1882_v9, %v1367_v5  ;;  %v1906_v16 = vpop.f32.mrb[15].mxu1 }
 0x16d   :  { %v1447_v17 = vadd.f32 %v1904_v12, %v1407_v15 }
 0x16f   :  { %v1452_v18 = vmax.f32 %v1447_v17, 0.0 }
 0x171   :  { %v1453_v19 = vpack.c.bf16 %v1452_v18, %v1452_v18 }
 0x173   :  { %1454 = vst [vmem:[%s2235_s5] sm:$0xf] %v1453_v19  ;;  %1934 = vmatmul.mubr.bf16.vlgmr.msra.gmra.mrb[16].mxu0 %v1453_v19 }
 0x246   :  { %v1560_v21 = vpop.f32.mrb[16].mxu0 }
 0x247   :  { %v1561_v22 = vadd.f32 %v1723_v20, %v1560_v21  ;;  %v1935_v23 = vpop.f32.mrb[17].mxu0 }
 0x248   :  { %v1563_v24 = vpop.f32.mrb[18].mxu0 }
 0x249   :  { %v1566_v25 = vmax.f32 %v1561_v22, 0.0  ;;  %v1936_v26 = vpop.f32.mrb[19].mxu0 }
 0x24b   :  { %v1567_v27 = vpack.c.bf16 %v1566_v25, %v1566_v25 }
 0x24d   :  { %1568 = vst [vmem:[%s2236_s6] sm:$0xf] %v1567_v27 }
 0x24e   :  { %1577 = vsyncpa [#allocation3], 1 }

// kernel: upsample_module_fwd.10
= control target key start
LH: loop header
LB: loop body
LE: loop exit
PB: predicated region body
PF: predicated region fallthrough
CT: control target
= control target key end

     0   :  { %s1898_s4 = inlined_call_operand.vmem [shape: bf16[128,128], index: 4, kind: input, shape index: {}]   ;;  %s1899_s1 = inlined_call_operand.vmem [shape: bf16[1024,128], index: 1, kind: input, shape index: {}]   ;;  %s1900_s3 = inlined_call_operand.vmem [shape: bf16[32,128], index: 3, kind: input, shape index: {}]   ;;  %s1901_s0 = inlined_call_operand.vmem [shape: bf16[32,1024], index: 0, kind: input, shape index: {}]   ;;  %s1902_s5 = inlined_call_operand.vmem [shape: bf16[128,128], index: 5, kind: input, shape index: {}]   ;;  %s1903_s2 = inlined_call_operand.vmem [shape: f32[1,128], index: 2, kind: input, shape index: {}]   ;;  %s1904_s7 = inlined_call_operand.vmem [shape: bf16[32,128], index: 7, kind: output, shape index: {0}]   ;;  %s1905_s6 = inlined_call_operand.vmem [shape: f32[1,128], index: 6, kind: input, shape index: {}]   ;;  %s1906_s8 = inlined_call_operand.vmem [shape: bf16[32,128], index: 8, kind: output, shape index: {1}]  }
   0x1   :  { %v1459_v0 = vld [vmem:[%s1898_s4] sm:$0xff]   ;;  %v1462_v3 = vld [vmem:[%s1898_s4 + $0x8] sm:$0xff]   ;;  %v1465_v6 = vld [vmem:[%s1898_s4 + $0x10] sm:$0xff]  }
   0x2   :  { %v1460_v1 = vld [vmem:[%s1899_s1 + $0x40] sm:$0xff]   ;;  %1419 = vmatprep.subr.bf16.mxu0 %v1459_v0  ;;  %v1463_v4 = vld [vmem:[%s1899_s1 + $0x48] sm:$0xff]   ;;  %v1466_v7 = vld [vmem:[%s1899_s1 + $0x50] sm:$0xff]  }
   0x3   :  { %v1461_v2 = vld [vmem:[%s1899_s1] sm:$0xff]   ;;  %1297 = vmatprep.subr.bf16.mxu1 %v1460_v1  ;;  %1420 = vmatpush3.bf16.msra.mxu0 %v1459_v0  ;;  %v1464_v5 = vld [vmem:[%s1899_s1 + $0x8] sm:$0xff]   ;;  %v1467_v8 = vld [vmem:[%s1899_s1 + $0x10] sm:$0xff]  }
   0x4   :  { %1298 = vmatpush3.bf16.msra.mxu1 %v1461_v2  ;;  %1421 = vmatprep.subr.bf16.mxu0 %v1462_v3  ;;  %v1468_v9 = vld [vmem:[%s1898_s4 + $0x18] sm:$0xff]   ;;  %v1471_v12 = vld [vmem:[%s1898_s4 + $0x20] sm:$0xff]   ;;  %v1474_v15 = vld [vmem:[%s1898_s4 + $0x28] sm:$0xff]  }
   0x5   :  { %1299 = vmatprep.subr.bf16.mxu1 %v1463_v4  ;;  %v1469_v10 = vld [vmem:[%s1899_s1 + $0x58] sm:$0xff]   ;;  %v1472_v13 = vld [vmem:[%s1899_s1 + $0x60] sm:$0xff]   ;;  %v1475_v16 = vld [vmem:[%s1899_s1 + $0x68] sm:$0xff]  }
   0x6   :  { %v1470_v11 = vld [vmem:[%s1899_s1 + $0x18] sm:$0xff]   ;;  %v1473_v14 = vld [vmem:[%s1899_s1 + $0x20] sm:$0xff]   ;;  %v1476_v17 = vld [vmem:[%s1899_s1 + $0x28] sm:$0xff]  }
   0x7   :  { %1422 = vmatpush3.bf16.msra.mxu0 %v1462_v3  ;;  %v1477_v18 = vld [vmem:[%s1898_s4 + $0x30] sm:$0xff]   ;;  %v1480_v21 = vld [vmem:[%s1898_s4 + $0x38] sm:$0xff]   ;;  %v1483_v23 = vld [vmem:[%s1900_s3] sm:$0xff]  }
   0x8   :  { %1300 = vmatpush3.bf16.msra.mxu1 %v1464_v5  ;;  %1423 = vmatprep.subr.bf16.mxu0 %v1465_v6  ;;  %v1478_v19 = vld [vmem:[%s1899_s1 + $0x70] sm:$0xff]   ;;  %v1481_v22 = vld [vmem:[%s1899_s1 + $0x78] sm:$0xff]   ;;  %v29_v24 = vld [vmem:[%s1901_s0] sm:$0xff] }
   0x9   :  { %1301 = vmatprep.subr.bf16.mxu1 %v1466_v7  ;;  %v1479_v20 = vld [vmem:[%s1899_s1 + $0x30] sm:$0xff]   ;;  %v33_v25 = vld [vmem:[%s1901_s0 + $0x20] sm:$0xff]  ;;  %1435 = vmatprep.mubr.bf16.mxu0 %v1483_v23  ;;  %v1482_v27 = vld [vmem:[%s1899_s1 + $0x38] sm:$0xff]  }
   0xa   :  { %v1160_v26 = vcombine.high %v29_v24, %v33_v25  ;;  %v1484_v28 = vld [vmem:[%s1900_s3 + $0x8] sm:$0xff]   ;;  %v1485_v29 = vld [vmem:[%s1899_s1 + $0xc0] sm:$0xff]   ;;  %v1159_v32 = vcombine.low %v29_v24, %v33_v25  ;;  %v1493_v41 = vld [vmem:[%s1899_s1 + $0xd0] sm:$0xff]  }
   0xb   :  { %1424 = vmatpush3.bf16.msra.mxu0 %v1465_v6  ;;  %v1487_v30 = vld [vmem:[%s1899_s1 + $0x140] sm:$0xff]   ;;  %v1489_v34 = vld [vmem:[%s1899_s1 + $0xc8] sm:$0xff]   ;;  %v1494_v42 = vld [vmem:[%s1899_s1 + $0x90] sm:$0xff]  }
   0xc   :  { %1302 = vmatpush3.bf16.msra.mxu1 %v1467_v8  ;;  %1425 = vmatprep.subr.bf16.mxu0 %v1468_v9  ;;  %v1486_v31 = vld [vmem:[%s1899_s1 + $0x80] sm:$0xff]   ;;  %v1490_v35 = vld [vmem:[%s1899_s1 + $0x88] sm:$0xff]   ;;  %v1495_v43 = vld [vmem:[%s1899_s1 + $0x150] sm:$0xff]  }
   0xd   :  { %1303 = vmatprep.subr.bf16.mxu1 %v1469_v10  ;;  %798 = vmatprep.mubr.bf16.mxu1 %v1160_v26  ;;  %v1488_v33 = vld [vmem:[%s1899_s1 + $0x100] sm:$0xff]   ;;  %v1491_v36 = vld [vmem:[%s1899_s1 + $0x148] sm:$0xff]   ;;  %v1496_v45 = vld [vmem:[%s1899_s1 + $0x110] sm:$0xff]  }
   0xe   :  { %v37_v37 = vld [vmem:[%s1901_s0 + $0x40] sm:$0xff]  ;;  %v1492_v40 = vld [vmem:[%s1899_s1 + $0x108] sm:$0xff]   ;;  %v1497_v46 = vld [vmem:[%s1899_s1 + $0xd8] sm:$0xff]  }
   0xf   :  { %1426 = vmatpush3.bf16.msra.mxu0 %v1468_v9  ;;  %v41_v38 = vld [vmem:[%s1901_s0 + $0x60] sm:$0xff]  ;;  %v1498_v47 = vld [vmem:[%s1899_s1 + $0x98] sm:$0xff]   ;;  %v1505_v54 = vld [vmem:[%s1899_s1 + $0xe8] sm:$0xff]  }
  0x10   :  { %1304 = vmatpush3.bf16.msra.mxu1 %v1470_v11  ;;  %1427 = vmatprep.subr.bf16.mxu0 %v1471_v12  ;;  %v1168_v39 = vcombine.high %v37_v37, %v41_v38  ;;  %v1167_v44 = vcombine.low %v37_v37, %v41_v38  ;;  %v1499_v48 = vld [vmem:[%s1899_s1 + $0x158] sm:$0xff]   ;;  %v1501_v50 = vld [vmem:[%s1899_s1 + $0xe0] sm:$0xff]   ;;  %v1506_v55 = vld [vmem:[%s1899_s1 + $0xa8] sm:$0xff]  }
  0x11   :  { %1305 = vmatprep.subr.bf16.mxu1 %v1472_v13  ;;  %v1500_v49 = vld [vmem:[%s1899_s1 + $0x118] sm:$0xff]   ;;  %v1502_v51 = vld [vmem:[%s1899_s1 + $0xa0] sm:$0xff]   ;;  %v1507_v56 = vld [vmem:[%s1899_s1 + $0x168] sm:$0xff]  }
  0x12   :  { %v1503_v52 = vld [vmem:[%s1899_s1 + $0x160] sm:$0xff]   ;;  %v1508_v57 = vld [vmem:[%s1899_s1 + $0x128] sm:$0xff]   ;;  %v1509_v58 = vld [vmem:[%s1899_s1 + $0xf0] sm:$0xff]  }
  0x13   :  { %1428 = vmatpush3.bf16.msra.mxu0 %v1471_v12  ;;  %v1504_v53 = vld [vmem:[%s1899_s1 + $0x120] sm:$0xff]   ;;  %v1510_v59 = vld [vmem:[%s1899_s1 + $0xb0] sm:$0xff]   ;;  %v1513_v62 = vld [vmem:[%s1899_s1 + $0xf8] sm:$0xff]  }
  0x14   :  { %1306 = vmatpush3.bf16.msra.mxu1 %v1473_v14  ;;  %1429 = vmatprep.subr.bf16.mxu0 %v1474_v15  ;;  %v1511_v60 = vld [vmem:[%s1899_s1 + $0x170] sm:$0xff]   ;;  %v1514_v63 = vld [vmem:[%s1899_s1 + $0xb8] sm:$0xff]   ;;  %v30_v1 = vld [vmem:[%s1901_s0 + $0x8] sm:$0xff] }
  0x15   :  { %1307 = vmatprep.subr.bf16.mxu1 %v1475_v16  ;;  %v1512_v61 = vld [vmem:[%s1899_s1 + $0x130] sm:$0xff]   ;;  %v1515_v0 = vld [vmem:[%s1899_s1 + $0x178] sm:$0xff]   ;;  %v34_v2 = vld [vmem:[%s1901_s0 + $0x28] sm:$0xff] }
  0x16   :  { %v1162_v3 = vcombine.high %v30_v1, %v34_v2  ;;  %v1516_v4 = vld [vmem:[%s1899_s1 + $0x138] sm:$0xff]   ;;  %v1517_v5 = vld [vmem:[%s1899_s1 + $0x1c0] sm:$0xff]   ;;  %v31_v6 = vld [vmem:[%s1901_s0 + $0x10] sm:$0xff]  ;;  %v1161_v8 = vcombine.low %v30_v1, %v34_v2 }
  0x17   :  { %1430 = vmatpush3.bf16.msra.mxu0 %v1474_v15  ;;  %v35_v7 = vld [vmem:[%s1901_s0 + $0x30] sm:$0xff]  ;;  %v1518_v11 = vld [vmem:[%s1899_s1 + $0x180] sm:$0xff]   ;;  %v1519_v12 = vld [vmem:[%s1899_s1 + $0x1c8] sm:$0xff]  }
  0x18   :  { %1308 = vmatpush3.bf16.msra.mxu1 %v1476_v17  ;;  %1431 = vmatprep.subr.bf16.mxu0 %v1477_v18  ;;  %v1164_v9 = vcombine.high %v31_v6, %v35_v7  ;;  %v1163_v10 = vcombine.low %v31_v6, %v35_v7  ;;  %v38_v13 = vld [vmem:[%s1901_s0 + $0x48] sm:$0xff]  ;;  %v39_v16 = vld [vmem:[%s1901_s0 + $0x50] sm:$0xff]  ;;  %v1523_v24 = vld [vmem:[%s1899_s1 + $0x1d8] sm:$0xff]  }
  0x19   :  { %1309 = vmatprep.subr.bf16.mxu1 %v1478_v19  ;;  %v42_v14 = vld [vmem:[%s1901_s0 + $0x68] sm:$0xff]  ;;  %v43_v17 = vld [vmem:[%s1901_s0 + $0x70] sm:$0xff]  ;;  %v1524_v25 = vld [vmem:[%s1899_s1 + $0x198] sm:$0xff]  }
  0x1a   :  { %v1170_v15 = vcombine.high %v38_v13, %v42_v14  ;;  %v1172_v19 = vcombine.high %v39_v16, %v43_v17  ;;  %v1171_v23 = vcombine.low %v39_v16, %v43_v17  ;;  %v1525_v26 = vld [vmem:[%s1899_s1 + $0x1e0] sm:$0xff]   ;;  %v40_v37 = vld [vmem:[%s1901_s0 + $0x58] sm:$0xff] }
  0x1b   :  { %1432 = vmatpush3.bf16.msra.mxu0 %v1477_v18  ;;  %v1520_v18 = vld [vmem:[%s1899_s1 + $0x188] sm:$0xff]   ;;  %v44_v38 = vld [vmem:[%s1901_s0 + $0x78] sm:$0xff] }
  0x1c   :  { %1310 = vmatpush3.bf16.msra.mxu1 %v1479_v20  ;;  %1433 = vmatprep.subr.bf16.mxu0 %v1480_v21  ;;  %v1521_v20 = vld [vmem:[%s1899_s1 + $0x1d0] sm:$0xff]  }
  0x1d   :  { %1311 = vmatprep.subr.bf16.mxu1 %v1481_v22  ;;  %v1522_v22 = vld [vmem:[%s1899_s1 + $0x190] sm:$0xff]  }
  0x1f   :  { %1434 = vmatpush3.bf16.msra.mxu0 %v1480_v21  ;;  %v1169_v21 = vcombine.low %v38_v13, %v42_v14 }
  0x20   :  { %1312 = vmatpush3.bf16.msra.mxu1 %v1482_v27  ;;  %1325 = vmatprep.subr.bf16.mxu0 %v1485_v29  ;;  %v32_v27 = vld [vmem:[%s1901_s0 + $0x18] sm:$0xff]  ;;  %v1526_v29 = vld [vmem:[%s1899_s1 + $0x1a0] sm:$0xff]  }
  0x21   :  { %1353 = vmatprep.subr.bf16.mxu1 %v1487_v30 }
  0x22   :  { %1436 = vmatmul.mubr.bf16.vlgmr.msra.gmra.mrb[0].mxu0 %v1484_v28  ;;  %v36_v28 = vld [vmem:[%s1901_s0 + $0x38] sm:$0xff] }
  0x23   :  { %799 = vmatmul.mubr.bf16.vlgmr.msra.gmra.mrb[0].mxu1 %v1159_v32  ;;  %1326 = vmatpush3.bf16.msra.mxu0 %v1486_v31  ;;  %v1166_v30 = vcombine.high %v32_v27, %v36_v28  ;;  %v1527_v31 = vld [vmem:[%s1899_s1 + $0x1e8] sm:$0xff]  }
  0x24   :  { %1354 = vmatpush3.bf16.msra.mxu1 %v1488_v33  ;;  %1327 = vmatprep.subr.bf16.mxu0 %v1489_v34  ;;  %v1528_v32 = vld [vmem:[%s1899_s1 + $0x1a8] sm:$0xff]   ;;  %v1529_v33 = vld [vmem:[%s1899_s1 + $0x1f0] sm:$0xff]  }
  0x25   :  { %1355 = vmatprep.subr.bf16.mxu1 %v1491_v36  ;;  %806 = vmatprep.mubr.bf16.mxu1 %v1168_v39  ;;  %v1530_v34 = vld [vmem:[%s1899_s1 + $0x1b0] sm:$0xff]   ;;  %v1532_v36 = vld [vmem:[%s1899_s1 + $0x1b8] sm:$0xff]   ;;  %v1165_v39 = vcombine.low %v32_v27, %v36_v28 }
  0x26   :  { %847 = vmatprep.mubr.bf16.mxu0 %v1162_v3 }
  0x27   :  { %1328 = vmatpush3.bf16.msra.mxu0 %v1490_v35  ;;  %v1531_v35 = vld [vmem:[%s1899_s1 + $0x1f8] sm:$0xff]  }
  0x28   :  { %1356 = vmatpush3.bf16.msra.mxu1 %v1492_v40  ;;  %1329 = vmatprep.subr.bf16.mxu0 %v1493_v41  ;;  %v1174_v40 = vcombine.high %v40_v37, %v44_v38  ;;  %v1173_v41 = vcombine.low %v40_v37, %v44_v38 }
  0x29   :  { %1357 = vmatprep.subr.bf16.mxu1 %v1495_v43  ;;  %v1534_v43 = vld [vmem:[%s1902_s5 + $0x8] sm:$0xff]  }
  0x2b   :  { %807 = vmatmul.mubr.bf16.gmra.mrb[4].mxu1 %v1167_v44  ;;  %1330 = vmatpush3.bf16.msra.mxu0 %v1494_v42  ;;  %v1533_v42 = vld [vmem:[%s1902_s5] sm:$0xff]   ;;  %v1535_v44 = vld [vmem:[%s1902_s5 + $0x10] sm:$0xff]  }
  0x2c   :  { %1358 = vmatpush3.bf16.msra.mxu1 %v1496_v45  ;;  %1331 = vmatprep.subr.bf16.mxu0 %v1497_v46  ;;  %v1536_v45 = vld [vmem:[%s1902_s5 + $0x18] sm:$0xff]   ;;  %v1537_v46 = vld [vmem:[%s1902_s5 + $0x20] sm:$0xff]  }
  0x2d   :  { %1359 = vmatprep.subr.bf16.mxu1 %v1499_v48  ;;  %896 = vmatprep.mubr.bf16.mxu1 %v1164_v9  ;;  %v1539_v48 = vld [vmem:[%s1902_s5 + $0x30] sm:$0xff]  }
  0x2f   :  { %1332 = vmatpush3.bf16.msra.mxu0 %v1498_v47  ;;  %v1538_v47 = vld [vmem:[%s1902_s5 + $0x28] sm:$0xff]  }
  0x30   :  { %1360 = vmatpush3.bf16.msra.mxu1 %v1500_v49  ;;  %1333 = vmatprep.subr.bf16.mxu0 %v1501_v50  ;;  %v1540_v49 = vld [vmem:[%s1902_s5 + $0x38] sm:$0xff]  }
  0x31   :  { %1361 = vmatprep.subr.bf16.mxu1 %v1503_v52 }
  0x33   :  { %1334 = vmatpush3.bf16.msra.mxu0 %v1502_v51 }
  0x34   :  { %1362 = vmatpush3.bf16.msra.mxu1 %v1504_v53  ;;  %1335 = vmatprep.subr.bf16.mxu0 %v1505_v54 }
  0x35   :  { %1363 = vmatprep.subr.bf16.mxu1 %v1507_v56 }
  0x37   :  { %1336 = vmatpush3.bf16.msra.mxu0 %v1506_v55 }
  0x38   :  { %1364 = vmatpush3.bf16.msra.mxu1 %v1508_v57  ;;  %1337 = vmatprep.subr.bf16.mxu0 %v1509_v58 }
  0x39   :  { %1365 = vmatprep.subr.bf16.mxu1 %v1511_v60 }
  0x3b   :  { %1338 = vmatpush3.bf16.msra.mxu0 %v1510_v59 }
  0x3c   :  { %1366 = vmatpush3.bf16.msra.mxu1 %v1512_v61  ;;  %1339 = vmatprep.subr.bf16.mxu0 %v1513_v62 }
  0x3d   :  { %1367 = vmatprep.subr.bf16.mxu1 %v1515_v0 }
  0x3f   :  { %1340 = vmatpush3.bf16.msra.mxu0 %v1514_v63 }
  0x40   :  { %1368 = vmatpush3.bf16.msra.mxu1 %v1516_v4  ;;  %1381 = vmatprep.subr.bf16.mxu0 %v1517_v5 }
  0x41   :  { %1439 = vmatprep.subr.bf16.mxu1 %v1533_v42 }
  0x42   :  { %848 = vmatmul.mubr.bf16.vlgmr.msra.gmra.mrb[4].mxu0 %v1161_v8 }
  0x43   :  { %1382 = vmatpush3.bf16.msra.mxu0 %v1518_v11  ;;  %897 = vmatmul.mubr.bf16.vlgmr.msra.gmra.mrb[8].mxu1 %v1163_v10 }
  0x44   :  { %1383 = vmatprep.subr.bf16.mxu0 %v1519_v12  ;;  %855 = vmatprep.mubr.bf16.mxu0 %v1170_v15 }
  0x45   :  { %904 = vmatprep.mubr.bf16.mxu1 %v1172_v19  ;;  %1440 = vmatpush3.bf16.msra.mxu1 %v1533_v42  ;;  %v1239_v42 = vld [vmem:[%s1903_s2] ss:$0 sm:$0xff] }
  0x46   :  { %1441 = vmatprep.subr.bf16.mxu1 %v1534_v43 }
  0x47   :  { %1384 = vmatpush3.bf16.msra.mxu0 %v1520_v18 }
  0x48   :  { %1385 = vmatprep.subr.bf16.mxu0 %v1521_v20 }
  0x49   :  { %1442 = vmatpush3.bf16.msra.mxu1 %v1534_v43 }
  0x4a   :  { %856 = vmatmul.mubr.bf16.gmra.mrb[8].mxu0 %v1169_v21  ;;  %1443 = vmatprep.subr.bf16.mxu1 %v1535_v44 }
  0x4b   :  { %1386 = vmatpush3.bf16.msra.mxu0 %v1522_v22  ;;  %905 = vmatmul.mubr.bf16.gmra.mrb[12].mxu1 %v1171_v23 }
  0x4c   :  { %1387 = vmatprep.subr.bf16.mxu0 %v1523_v24  ;;  %945 = vmatprep.mubr.bf16.mxu0 %v1166_v30 }
  0x4d   :  { %1444 = vmatpush3.bf16.msra.mxu1 %v1535_v44 }
  0x4e   :  { %1445 = vmatprep.subr.bf16.mxu1 %v1536_v45 }
  0x4f   :  { %1388 = vmatpush3.bf16.msra.mxu0 %v1524_v25 }
  0x50   :  { %1389 = vmatprep.subr.bf16.mxu0 %v1525_v26 }
  0x51   :  { %1446 = vmatpush3.bf16.msra.mxu1 %v1536_v45 }
  0x52   :  { %1447 = vmatprep.subr.bf16.mxu1 %v1537_v46 }
  0x53   :  { %1390 = vmatpush3.bf16.msra.mxu0 %v1526_v29 }
  0x54   :  { %1391 = vmatprep.subr.bf16.mxu0 %v1527_v31 }
  0x55   :  { %1448 = vmatpush3.bf16.msra.mxu1 %v1537_v46 }
  0x56   :  { %1449 = vmatprep.subr.bf16.mxu1 %v1538_v47 }
  0x57   :  { %1392 = vmatpush3.bf16.msra.mxu0 %v1528_v32 }
  0x58   :  { %1393 = vmatprep.subr.bf16.mxu0 %v1529_v33 }
  0x59   :  { %1450 = vmatpush3.bf16.msra.mxu1 %v1538_v47 }
  0x5a   :  { %1451 = vmatprep.subr.bf16.mxu1 %v1539_v48 }
  0x5b   :  { %1394 = vmatpush3.bf16.msra.mxu0 %v1530_v34 }
  0x5c   :  { %1395 = vmatprep.subr.bf16.mxu0 %v1531_v35 }
  0x5d   :  { %1452 = vmatpush3.bf16.msra.mxu1 %v1539_v48 }
  0x5e   :  { %1453 = vmatprep.subr.bf16.mxu1 %v1540_v49 }
  0x5f   :  { %1396 = vmatpush3.bf16.msra.mxu0 %v1532_v36 }
  0x61   :  { %1454 = vmatpush3.bf16.msra.mxu1 %v1540_v49 }
  0x62   :  { %946 = vmatmul.mubr.bf16.vlgmr.msra.gmra.mrb[12].mxu0 %v1165_v39 }
  0x63   :  { %953 = vmatprep.mubr.bf16.mxu0 %v1174_v40 }
  0x6a   :  { %954 = vmatmul.mubr.bf16.gmra.mrb[16].mxu0 %v1173_v41 }
  0xf5   :  { %v1437_v50 = vpop.f32.mrb[0].mxu0 }
  0xf6   :  { %v1313_v51 = vpop.f32.mrb[0].mxu1  ;;  %v287_v52 = vpop.f32.mrb[1].mxu0 }
  0xf7   :  { %v1314_v53 = vpop.f32.mrb[1].mxu1  ;;  %v1438_v54 = vpop.f32.mrb[2].mxu0 }
  0xf8   :  { %v1315_v55 = vadd.f32 %v1314_v53, %v1313_v51  ;;  %v1316_v56 = vpop.f32.mrb[2].mxu1  ;;  %v290_v57 = vpop.f32.mrb[3].mxu0 }
  0xf9   :  { %v1317_v58 = vpop.f32.mrb[3].mxu1 }
  0xfa   :  { %v801_v59 = vadd.f32 %v1315_v55, %v287_v52  ;;  %v1318_v60 = vadd.f32 %v1317_v58, %v1316_v56 }
  0xfc   :  { %v804_v61 = vadd.f32 %v1318_v60, %v290_v57 }
  0xfe   :  { %v1319_v62 = vpop.f32.mrb[4].mxu1 }
  0xff   :  { %v1320_v63 = vpop.f32.mrb[5].mxu1 }
 0x100   :  { %v1321_v0 = vadd.f32 %v1320_v63, %v1319_v62  ;;  %v1322_v1 = vpop.f32.mrb[6].mxu1 }
 0x101   :  { %v1323_v2 = vpop.f32.mrb[7].mxu1 }
 0x102   :  { %v809_v3 = vadd.f32 %v1437_v50, %v1321_v0  ;;  %v1324_v4 = vadd.f32 %v1323_v2, %v1322_v1  ;;  %v1244_v1 = vld [vmem:[%s1905_s6] ss:$0 sm:$0xff] }
 0x104   :  { %v812_v5 = vadd.f32 %v1438_v54, %v1324_v4 }
 0x115   :  { %v1341_v6 = vpop.f32.mrb[4].mxu0 }
 0x116   :  { %v1342_v7 = vpop.f32.mrb[5].mxu0  ;;  %v1369_v8 = vpop.f32.mrb[8].mxu1 }
 0x117   :  { %v1343_v9 = vadd.f32 %v1342_v7, %v1341_v6  ;;  %v1344_v10 = vpop.f32.mrb[6].mxu0  ;;  %v1370_v11 = vpop.f32.mrb[9].mxu1 }
 0x118   :  { %v1345_v12 = vpop.f32.mrb[7].mxu0  ;;  %v1371_v13 = vadd.f32 %v1370_v11, %v1369_v8  ;;  %v1372_v14 = vpop.f32.mrb[10].mxu1 }
 0x119   :  { %v850_v15 = vadd.f32 %v1343_v9, %v801_v59  ;;  %v1346_v16 = vadd.f32 %v1345_v12, %v1344_v10  ;;  %v1373_v17 = vpop.f32.mrb[11].mxu1 }
 0x11a   :  { %v1374_v18 = vadd.f32 %v1373_v17, %v1372_v14 }
 0x11b   :  { %v853_v19 = vadd.f32 %v1346_v16, %v804_v61  ;;  %v899_v20 = vadd.f32 %v1371_v13, %v850_v15 }
 0x11d   :  { %v902_v21 = vadd.f32 %v1374_v18, %v853_v19  ;;  %v1347_v22 = vpop.f32.mrb[8].mxu0 }
 0x11e   :  { %v1348_v23 = vpop.f32.mrb[9].mxu0  ;;  %v1375_v24 = vpop.f32.mrb[12].mxu1 }
 0x11f   :  { %v1349_v25 = vadd.f32 %v1348_v23, %v1347_v22  ;;  %v1350_v26 = vpop.f32.mrb[10].mxu0  ;;  %v1376_v27 = vpop.f32.mrb[13].mxu1 }
 0x120   :  { %v1351_v28 = vpop.f32.mrb[11].mxu0  ;;  %v1377_v29 = vadd.f32 %v1376_v27, %v1375_v24  ;;  %v1378_v30 = vpop.f32.mrb[14].mxu1 }
 0x121   :  { %v858_v31 = vadd.f32 %v1349_v25, %v809_v3  ;;  %v1352_v32 = vadd.f32 %v1351_v28, %v1350_v26  ;;  %v1379_v33 = vpop.f32.mrb[15].mxu1 }
 0x122   :  { %v1380_v34 = vadd.f32 %v1379_v33, %v1378_v30 }
 0x123   :  { %v861_v35 = vadd.f32 %v1352_v32, %v812_v5  ;;  %v907_v36 = vadd.f32 %v1377_v29, %v858_v31 }
 0x125   :  { %v910_v37 = vadd.f32 %v1380_v34, %v861_v35 }
 0x135   :  { %v1397_v38 = vpop.f32.mrb[12].mxu0 }
 0x136   :  { %v1398_v39 = vpop.f32.mrb[13].mxu0 }
 0x137   :  { %v1399_v40 = vadd.f32 %v1398_v39, %v1397_v38  ;;  %v1400_v41 = vpop.f32.mrb[14].mxu0 }
 0x138   :  { %v1401_v43 = vpop.f32.mrb[15].mxu0 }
 0x139   :  { %v948_v44 = vadd.f32 %v1399_v40, %v899_v20  ;;  %v1402_v45 = vadd.f32 %v1401_v43, %v1400_v41 }
 0x13b   :  { %v969_v46 = vadd.f32 %v1239_v42, %v948_v44  ;;  %v951_v47 = vadd.f32 %v1402_v45, %v902_v21 }
 0x13d   :  { %v970_v48 = vadd.f32 %v1239_v42, %v951_v47  ;;  %v1403_v49 = vpop.f32.mrb[16].mxu0  ;;  %v973_v51 = vmax.f32 %v969_v46, 0.0 }
 0x13e   :  { %v1404_v50 = vpop.f32.mrb[17].mxu0 }
 0x13f   :  { %v974_v52 = vmax.f32 %v970_v48, 0.0  ;;  %v1405_v53 = vadd.f32 %v1404_v50, %v1403_v49  ;;  %v1406_v54 = vpop.f32.mrb[18].mxu0 }
 0x140   :  { %v1407_v55 = vpop.f32.mrb[19].mxu0 }
 0x141   :  { %v956_v56 = vadd.f32 %v1405_v53, %v907_v36  ;;  %v1408_v57 = vadd.f32 %v1407_v55, %v1406_v54  ;;  %v977_v58 = vpack.c.bf16 %v974_v52, %v973_v51 }
 0x143   :  { %v971_v59 = vadd.f32 %v1239_v42, %v956_v56  ;;  %v959_v60 = vadd.f32 %v1408_v57, %v910_v37  ;;  %1269 = vst [vmem:[%s1904_s7] sm:$0xff] %v977_v58   ;;  %1455 = vmatprep.mubr.bf16.mxu1 %v977_v58 }
 0x145   :  { %v972_v61 = vadd.f32 %v1239_v42, %v959_v60  ;;  %v975_v62 = vmax.f32 %v971_v59, 0.0 }
 0x147   :  { %v976_v63 = vmax.f32 %v972_v61, 0.0 }
 0x149   :  { %v978_v0 = vpack.c.bf16 %v976_v63, %v975_v62 }
 0x14b   :  { %1285 = vst [vmem:[%s1904_s7 + $0x8] sm:$0xff] %v978_v0   ;;  %1456 = vmatmul.mubr.bf16.vlgmr.msra.gmra.mrb[16].mxu1 %v978_v0 }
 0x21e   :  { %v1457_v2 = vpop.f32.mrb[16].mxu1 }
 0x21f   :  { %v1111_v3 = vadd.f32 %v1457_v2, %v1244_v1  ;;  %v1102_v4 = vpop.f32.mrb[17].mxu1 }
 0x220   :  { %v1103_v5 = vadd.f32 %v1244_v1, %v1102_v4  ;;  %v1458_v6 = vpop.f32.mrb[18].mxu1 }
 0x221   :  { %v1114_v7 = vadd.f32 %v1458_v6, %v1244_v1  ;;  %v1105_v8 = vpop.f32.mrb[19].mxu1  ;;  %v1119_v10 = vmax.f32 %v1111_v3, 0.0 }
 0x222   :  { %v1106_v9 = vadd.f32 %v1244_v1, %v1105_v8  ;;  %v1117_v12 = vmax.f32 %v1103_v5, 0.0 }
 0x223   :  { %v1120_v11 = vmax.f32 %v1114_v7, 0.0 }
 0x224   :  { %v1118_v13 = vmax.f32 %v1106_v9, 0.0 }
 0x225   :  { %v1283_v14 = vpack.c.bf16 %v1120_v11, %v1119_v10 }
 0x226   :  { %v1278_v15 = vpack.c.bf16 %v1118_v13, %v1117_v12 }
 0x227   :  { %1286 = vst [vmem:[%s1906_s8 + $0x8] sm:$0xff] %v1283_v14  }
 0x228   :  { %1279 = vst [vmem:[%s1906_s8] sm:$0xff] %v1278_v15  }

// kernel: upsample_module_fwd.12
= control target key start
LH: loop header
LB: loop body
LE: loop exit
PB: predicated region body
PF: predicated region fallthrough
CT: control target
= control target key end

     0   :  { %s2289_s4 = inlined_call_operand.vmem [shape: bf16[128,128], index: 4, kind: input, shape index: {}]   ;;  %s2290_s1 = inlined_call_operand.vmem [shape: bf16[512,128], index: 1, kind: input, shape index: {}]   ;;  %s2291_s3 = inlined_call_operand.vmem [shape: bf16[128,128], index: 3, kind: input, shape index: {}]   ;;  %s2292_s0 = inlined_call_operand.vmem [shape: bf16[128,512], index: 0, kind: input, shape index: {}]   ;;  %s2293_s5 = inlined_call_operand.vmem [shape: bf16[128,128], index: 5, kind: input, shape index: {}]   ;;  %s2294_s2 = inlined_call_operand.vmem [shape: f32[1,128], index: 2, kind: input, shape index: {}]   ;;  %s2295_s7 = inlined_call_operand.vmem [shape: bf16[128,128], index: 7, kind: output, shape index: {0}]   ;;  %s2296_s6 = inlined_call_operand.vmem [shape: f32[1,128], index: 6, kind: input, shape index: {}]   ;;  %s2297_s8 = inlined_call_operand.vmem [shape: bf16[128,128], index: 8, kind: output, shape index: {1}]  }
   0x1   :  { %v1759_v0 = vld [vmem:[%s2289_s4] sm:$0xff]   ;;  %v1762_v3 = vld [vmem:[%s2289_s4 + $0x8] sm:$0xff]   ;;  %v1765_v6 = vld [vmem:[%s2289_s4 + $0x10] sm:$0xff]  }
   0x2   :  { %v1760_v1 = vld [vmem:[%s2290_s1 + $0x40] sm:$0xff]   ;;  %1695 = vmatprep.subr.bf16.mxu0 %v1759_v0  ;;  %v1763_v4 = vld [vmem:[%s2290_s1 + $0x48] sm:$0xff]   ;;  %v1766_v7 = vld [vmem:[%s2290_s1 + $0x50] sm:$0xff]  }
   0x3   :  { %v1761_v2 = vld [vmem:[%s2290_s1] sm:$0xff]   ;;  %1551 = vmatprep.subr.bf16.mxu1 %v1760_v1  ;;  %1696 = vmatpush3.bf16.msra.mxu0 %v1759_v0  ;;  %v1764_v5 = vld [vmem:[%s2290_s1 + $0x8] sm:$0xff]   ;;  %v1767_v8 = vld [vmem:[%s2290_s1 + $0x10] sm:$0xff]  }
   0x4   :  { %1552 = vmatpush3.bf16.msra.mxu1 %v1761_v2  ;;  %1697 = vmatprep.subr.bf16.mxu0 %v1762_v3  ;;  %v1768_v9 = vld [vmem:[%s2289_s4 + $0x18] sm:$0xff]   ;;  %v1771_v12 = vld [vmem:[%s2289_s4 + $0x20] sm:$0xff]   ;;  %v1774_v15 = vld [vmem:[%s2289_s4 + $0x28] sm:$0xff]  }
   0x5   :  { %1553 = vmatprep.subr.bf16.mxu1 %v1763_v4  ;;  %v1769_v10 = vld [vmem:[%s2290_s1 + $0x58] sm:$0xff]   ;;  %v1772_v13 = vld [vmem:[%s2290_s1 + $0x60] sm:$0xff]   ;;  %v1775_v16 = vld [vmem:[%s2290_s1 + $0x68] sm:$0xff]  }
   0x6   :  { %v1770_v11 = vld [vmem:[%s2290_s1 + $0x18] sm:$0xff]   ;;  %v1773_v14 = vld [vmem:[%s2290_s1 + $0x20] sm:$0xff]   ;;  %v1776_v17 = vld [vmem:[%s2290_s1 + $0x28] sm:$0xff]  }
   0x7   :  { %1698 = vmatpush3.bf16.msra.mxu0 %v1762_v3  ;;  %v1777_v18 = vld [vmem:[%s2289_s4 + $0x30] sm:$0xff]   ;;  %v1780_v21 = vld [vmem:[%s2289_s4 + $0x38] sm:$0xff]   ;;  %v1783_v22 = vld [vmem:[%s2291_s3] sm:$0xff]  }
   0x8   :  { %1554 = vmatpush3.bf16.msra.mxu1 %v1764_v5  ;;  %1699 = vmatprep.subr.bf16.mxu0 %v1765_v6  ;;  %v1778_v19 = vld [vmem:[%s2290_s1 + $0x70] sm:$0xff]   ;;  %v1781_v23 = vld [vmem:[%s2290_s1 + $0x78] sm:$0xff]   ;;  %v1788_v26 = vld [vmem:[%s2290_s1 + $0xc0] sm:$0xff]  }
   0x9   :  { %1555 = vmatprep.subr.bf16.mxu1 %v1766_v7  ;;  %v1779_v20 = vld [vmem:[%s2290_s1 + $0x30] sm:$0xff]   ;;  %1711 = vmatprep.mubr.bf16.mxu0 %v1783_v22  ;;  %v1782_v25 = vld [vmem:[%s2290_s1 + $0x38] sm:$0xff]   ;;  %v1787_v28 = vld [vmem:[%s2291_s3 + $0x8] sm:$0xff]  }
   0xa   :  { %v1786_v24 = vld [vmem:[%s2292_s0 + $0x4] ss:$16 sps:$4 sm:$0xff]   ;;  %v1784_v27 = vld [vmem:[%s2292_s0] ss:$16 sps:$4 sm:$0xff]   ;;  %v1790_v30 = vld [vmem:[%s2290_s1 + $0xc8] sm:$0xff]  }
   0xb   :  { %1700 = vmatpush3.bf16.msra.mxu0 %v1765_v6  ;;  %734 = vmatprep.mubr.bf16.mxu1 %v1786_v24  ;;  %v1789_v29 = vld [vmem:[%s2290_s1 + $0x80] sm:$0xff]   ;;  %v1792_v31 = vld [vmem:[%s2291_s3 + $0x10] sm:$0xff]   ;;  %v1791_v33 = vld [vmem:[%s2290_s1 + $0x88] sm:$0xff]  }
   0xc   :  { %1556 = vmatpush3.bf16.msra.mxu1 %v1767_v8  ;;  %1701 = vmatprep.subr.bf16.mxu0 %v1768_v9  ;;  %v1793_v32 = vld [vmem:[%s2292_s0 + $0x24] ss:$16 sps:$4 sm:$0xff]   ;;  %v1795_v34 = vld [vmem:[%s2291_s3 + $0x18] sm:$0xff]   ;;  %v1796_v36 = vld [vmem:[%s2292_s0 + $0x20] ss:$16 sps:$4 sm:$0xff]  }
   0xd   :  { %1557 = vmatprep.subr.bf16.mxu1 %v1769_v10  ;;  %v1797_v35 = vld [vmem:[%s2290_s1 + $0xd0] sm:$0xff]   ;;  %v1799_v38 = vld [vmem:[%s2290_s1 + $0xd8] sm:$0xff]   ;;  %v1801_v39 = vld [vmem:[%s2291_s3 + $0x20] sm:$0xff]  }
   0xe   :  { %v1798_v37 = vld [vmem:[%s2290_s1 + $0x90] sm:$0xff]   ;;  %v1800_v41 = vld [vmem:[%s2290_s1 + $0x98] sm:$0xff]   ;;  %v1804_v42 = vld [vmem:[%s2291_s3 + $0x28] sm:$0xff]  }
   0xf   :  { %1702 = vmatpush3.bf16.msra.mxu0 %v1768_v9  ;;  %v1802_v40 = vld [vmem:[%s2292_s0 + $0x44] ss:$16 sps:$4 sm:$0xff]   ;;  %v1805_v44 = vld [vmem:[%s2292_s0 + $0x40] ss:$16 sps:$4 sm:$0xff]   ;;  %v1808_v46 = vld [vmem:[%s2290_s1 + $0xe8] sm:$0xff]  }
  0x10   :  { %1558 = vmatpush3.bf16.msra.mxu1 %v1770_v11  ;;  %1703 = vmatprep.subr.bf16.mxu0 %v1771_v12  ;;  %v1806_v43 = vld [vmem:[%s2290_s1 + $0xe0] sm:$0xff]   ;;  %v1810_v47 = vld [vmem:[%s2291_s3 + $0x30] sm:$0xff]   ;;  %v1809_v49 = vld [vmem:[%s2290_s1 + $0xa8] sm:$0xff]  }
  0x11   :  { %1559 = vmatprep.subr.bf16.mxu1 %v1772_v13  ;;  %v1807_v45 = vld [vmem:[%s2290_s1 + $0xa0] sm:$0xff]   ;;  %v1815_v50 = vld [vmem:[%s2290_s1 + $0xf0] sm:$0xff]   ;;  %v1813_v51 = vld [vmem:[%s2291_s3 + $0x38] sm:$0xff]  }
  0x12   :  { %v1811_v48 = vld [vmem:[%s2292_s0 + $0x64] ss:$16 sps:$4 sm:$0xff]   ;;  %v1814_v52 = vld [vmem:[%s2292_s0 + $0x60] ss:$16 sps:$4 sm:$0xff]   ;;  %v1817_v54 = vld [vmem:[%s2290_s1 + $0xf8] sm:$0xff]  }
  0x13   :  { %1704 = vmatpush3.bf16.msra.mxu0 %v1771_v12  ;;  %v1816_v53 = vld [vmem:[%s2290_s1 + $0xb0] sm:$0xff]   ;;  %v1823_v56 = vld [vmem:[%s2292_s0 + $0xc] ss:$16 sps:$4 sm:$0xff]   ;;  %v1821_v58 = vld [vmem:[%s2292_s0 + $0x8] ss:$16 sps:$4 sm:$0xff]  }
  0x14   :  { %1560 = vmatpush3.bf16.msra.mxu1 %v1773_v14  ;;  %1705 = vmatprep.subr.bf16.mxu0 %v1774_v15  ;;  %v1819_v55 = vld [vmem:[%s2292_s0 + $0x84] ss:$16 sps:$4 sm:$0xff]   ;;  %v1818_v57 = vld [vmem:[%s2290_s1 + $0xb8] sm:$0xff]   ;;  %v1824_v59 = vld [vmem:[%s2292_s0 + $0x80] ss:$16 sps:$4 sm:$0xff]  }
  0x15   :  { %1561 = vmatprep.subr.bf16.mxu1 %v1775_v16  ;;  %v1827_v60 = vld [vmem:[%s2292_s0 + $0x2c] ss:$16 sps:$4 sm:$0xff]   ;;  %v1825_v61 = vld [vmem:[%s2292_s0 + $0xa4] ss:$16 sps:$4 sm:$0xff]   ;;  %v1830_v62 = vld [vmem:[%s2292_s0 + $0x28] ss:$16 sps:$4 sm:$0xff]  }
  0x16   :  { %v1829_v63 = vld [vmem:[%s2292_s0 + $0xa0] ss:$16 sps:$4 sm:$0xff]   ;;  %v1833_v0 = vld [vmem:[%s2292_s0 + $0x4c] ss:$16 sps:$4 sm:$0xff]   ;;  %v1831_v1 = vld [vmem:[%s2292_s0 + $0xc4] ss:$16 sps:$4 sm:$0xff]  }
  0x17   :  { %1706 = vmatpush3.bf16.msra.mxu0 %v1774_v15  ;;  %v1836_v2 = vld [vmem:[%s2292_s0 + $0x48] ss:$16 sps:$4 sm:$0xff]   ;;  %v1835_v3 = vld [vmem:[%s2292_s0 + $0xc0] ss:$16 sps:$4 sm:$0xff]   ;;  %v1839_v4 = vld [vmem:[%s2292_s0 + $0x6c] ss:$16 sps:$4 sm:$0xff]  }
  0x18   :  { %1562 = vmatpush3.bf16.msra.mxu1 %v1776_v17  ;;  %1707 = vmatprep.subr.bf16.mxu0 %v1777_v18  ;;  %v1837_v5 = vld [vmem:[%s2292_s0 + $0xe4] ss:$16 sps:$4 sm:$0xff]   ;;  %v1842_v6 = vld [vmem:[%s2292_s0 + $0x68] ss:$16 sps:$4 sm:$0xff]   ;;  %v1841_v7 = vld [vmem:[%s2292_s0 + $0xe0] ss:$16 sps:$4 sm:$0xff]  }
  0x19   :  { %1563 = vmatprep.subr.bf16.mxu1 %v1778_v19  ;;  %v1843_v8 = vld [vmem:[%s2292_s0 + $0x8c] ss:$16 sps:$4 sm:$0xff]   ;;  %v1845_v9 = vld [vmem:[%s2292_s0 + $0x88] ss:$16 sps:$4 sm:$0xff]   ;;  %v1855_v16 = vld [vmem:[%s2293_s5] sm:$0xff]  }
  0x1a   :  { %v1846_v10 = vld [vmem:[%s2292_s0 + $0xac] ss:$16 sps:$4 sm:$0xff]   ;;  %v1848_v11 = vld [vmem:[%s2292_s0 + $0xa8] ss:$16 sps:$4 sm:$0xff]   ;;  %v1861_v22 = vld [vmem:[%s2293_s5 + $0x30] sm:$0xff]  }
  0x1b   :  { %1708 = vmatpush3.bf16.msra.mxu0 %v1777_v18  ;;  %v1849_v12 = vld [vmem:[%s2292_s0 + $0xcc] ss:$16 sps:$4 sm:$0xff]   ;;  %v1851_v13 = vld [vmem:[%s2292_s0 + $0xc8] ss:$16 sps:$4 sm:$0xff]   ;;  %v1857_v18 = vld [vmem:[%s2293_s5 + $0x10] sm:$0xff]  }
  0x1c   :  { %1564 = vmatpush3.bf16.msra.mxu1 %v1779_v20  ;;  %1709 = vmatprep.subr.bf16.mxu0 %v1780_v21  ;;  %v1852_v14 = vld [vmem:[%s2292_s0 + $0xec] ss:$16 sps:$4 sm:$0xff]   ;;  %v1854_v15 = vld [vmem:[%s2292_s0 + $0xe8] ss:$16 sps:$4 sm:$0xff]   ;;  %v1859_v20 = vld [vmem:[%s2293_s5 + $0x20] sm:$0xff]  }
  0x1d   :  { %1565 = vmatprep.subr.bf16.mxu1 %v1781_v23  ;;  %v1856_v17 = vld [vmem:[%s2293_s5 + $0x8] sm:$0xff]   ;;  %v1858_v19 = vld [vmem:[%s2293_s5 + $0x18] sm:$0xff]  }
  0x1e   :  { %v1862_v23 = vld [vmem:[%s2293_s5 + $0x38] sm:$0xff]  }
  0x1f   :  { %1710 = vmatpush3.bf16.msra.mxu0 %v1780_v21  ;;  %v1860_v21 = vld [vmem:[%s2293_s5 + $0x28] sm:$0xff]  }
  0x20   :  { %1566 = vmatpush3.bf16.msra.mxu1 %v1782_v25  ;;  %1615 = vmatprep.subr.bf16.mxu0 %v1788_v26 }
  0x21   :  { %1727 = vmatprep.subr.bf16.mxu1 %v1855_v16 }
  0x22   :  { %1712 = vmatmul.mubr.bf16.vlgmr.msra.gmra.mrb[0].mxu0 %v1787_v28 }
  0x23   :  { %735 = vmatmul.mubr.bf16.vlgmr.msra.gmra.mrb[0].mxu1 %v1784_v27  ;;  %1616 = vmatpush3.bf16.msra.mxu0 %v1789_v29 }
  0x24   :  { %1617 = vmatprep.subr.bf16.mxu0 %v1790_v30  ;;  %1715 = vmatprep.mubr.bf16.mxu0 %v1792_v31 }
  0x25   :  { %742 = vmatprep.mubr.bf16.mxu1 %v1793_v32  ;;  %1728 = vmatpush3.bf16.msra.mxu1 %v1855_v16 }
  0x26   :  { %1729 = vmatprep.subr.bf16.mxu1 %v1856_v17 }
  0x27   :  { %1618 = vmatpush3.bf16.msra.mxu0 %v1791_v33 }
  0x28   :  { %1619 = vmatprep.subr.bf16.mxu0 %v1797_v35 }
  0x29   :  { %1730 = vmatpush3.bf16.msra.mxu1 %v1856_v17 }
  0x2a   :  { %1716 = vmatmul.mubr.bf16.gmra.mrb[4].mxu0 %v1795_v34  ;;  %1731 = vmatprep.subr.bf16.mxu1 %v1857_v18 }
  0x2b   :  { %743 = vmatmul.mubr.bf16.gmra.mrb[4].mxu1 %v1796_v36  ;;  %1620 = vmatpush3.bf16.msra.mxu0 %v1798_v37 }
  0x2c   :  { %1621 = vmatprep.subr.bf16.mxu0 %v1799_v38  ;;  %1719 = vmatprep.mubr.bf16.mxu0 %v1801_v39 }
  0x2d   :  { %750 = vmatprep.mubr.bf16.mxu1 %v1802_v40  ;;  %1732 = vmatpush3.bf16.msra.mxu1 %v1857_v18 }
  0x2e   :  { %1733 = vmatprep.subr.bf16.mxu1 %v1858_v19 }
  0x2f   :  { %1622 = vmatpush3.bf16.msra.mxu0 %v1800_v41 }
  0x30   :  { %1623 = vmatprep.subr.bf16.mxu0 %v1806_v43 }
  0x31   :  { %1734 = vmatpush3.bf16.msra.mxu1 %v1858_v19 }
  0x32   :  { %1720 = vmatmul.mubr.bf16.gmra.mrb[8].mxu0 %v1804_v42  ;;  %1735 = vmatprep.subr.bf16.mxu1 %v1859_v20 }
  0x33   :  { %751 = vmatmul.mubr.bf16.gmra.mrb[8].mxu1 %v1805_v44  ;;  %1624 = vmatpush3.bf16.msra.mxu0 %v1807_v45 }
  0x34   :  { %1625 = vmatprep.subr.bf16.mxu0 %v1808_v46  ;;  %1723 = vmatprep.mubr.bf16.mxu0 %v1810_v47 }
  0x35   :  { %758 = vmatprep.mubr.bf16.mxu1 %v1811_v48  ;;  %1736 = vmatpush3.bf16.msra.mxu1 %v1859_v20 }
  0x36   :  { %1737 = vmatprep.subr.bf16.mxu1 %v1860_v21 }
  0x37   :  { %1626 = vmatpush3.bf16.msra.mxu0 %v1809_v49 }
  0x38   :  { %1627 = vmatprep.subr.bf16.mxu0 %v1815_v50 }
  0x39   :  { %1738 = vmatpush3.bf16.msra.mxu1 %v1860_v21 }
  0x3a   :  { %1724 = vmatmul.mubr.bf16.gmra.mrb[12].mxu0 %v1813_v51  ;;  %1739 = vmatprep.subr.bf16.mxu1 %v1861_v22 }
  0x3b   :  { %759 = vmatmul.mubr.bf16.gmra.mrb[12].mxu1 %v1814_v52  ;;  %1628 = vmatpush3.bf16.msra.mxu0 %v1816_v53 }
  0x3c   :  { %1629 = vmatprep.subr.bf16.mxu0 %v1817_v54  ;;  %766 = vmatprep.mubr.bf16.mxu1 %v1819_v55 }
  0x3d   :  { %831 = vmatprep.mubr.bf16.mxu0 %v1823_v56  ;;  %1740 = vmatpush3.bf16.msra.mxu1 %v1861_v22 }
  0x3e   :  { %1741 = vmatprep.subr.bf16.mxu1 %v1862_v23 }
  0x3f   :  { %1630 = vmatpush3.bf16.msra.mxu0 %v1818_v57 }
  0x41   :  { %1742 = vmatpush3.bf16.msra.mxu1 %v1862_v23 }
  0x42   :  { %832 = vmatmul.mubr.bf16.vlgmr.msra.gmra.mrb[16].mxu0 %v1821_v58 }
  0x43   :  { %767 = vmatmul.mubr.bf16.gmra.mrb[16].mxu1 %v1824_v59  ;;  %839 = vmatprep.mubr.bf16.mxu0 %v1827_v60 }
  0x44   :  { %774 = vmatprep.mubr.bf16.mxu1 %v1825_v61 }
  0x4a   :  { %840 = vmatmul.mubr.bf16.gmra.mrb[20].mxu0 %v1830_v62 }
  0x4b   :  { %775 = vmatmul.mubr.bf16.gmra.mrb[20].mxu1 %v1829_v63  ;;  %847 = vmatprep.mubr.bf16.mxu0 %v1833_v0 }
  0x4c   :  { %782 = vmatprep.mubr.bf16.mxu1 %v1831_v1 }
  0x52   :  { %848 = vmatmul.mubr.bf16.gmra.mrb[24].mxu0 %v1836_v2 }
  0x53   :  { %783 = vmatmul.mubr.bf16.gmra.mrb[24].mxu1 %v1835_v3  ;;  %855 = vmatprep.mubr.bf16.mxu0 %v1839_v4 }
  0x54   :  { %790 = vmatprep.mubr.bf16.mxu1 %v1837_v5 }
  0x5a   :  { %856 = vmatmul.mubr.bf16.gmra.mrb[28].mxu0 %v1842_v6 }
  0x5b   :  { %791 = vmatmul.mubr.bf16.gmra.mrb[28].mxu1 %v1841_v7  ;;  %863 = vmatprep.mubr.bf16.mxu0 %v1843_v8 }
  0x62   :  { %864 = vmatmul.mubr.bf16.gmra.mrb[32].mxu0 %v1845_v9 }
  0x63   :  { %871 = vmatprep.mubr.bf16.mxu0 %v1846_v10 }
  0x6a   :  { %872 = vmatmul.mubr.bf16.gmra.mrb[36].mxu0 %v1848_v11 }
  0x6b   :  { %879 = vmatprep.mubr.bf16.mxu0 %v1849_v12 }
  0x72   :  { %880 = vmatmul.mubr.bf16.gmra.mrb[40].mxu0 %v1851_v13 }
  0x73   :  { %887 = vmatprep.mubr.bf16.mxu0 %v1852_v14 }
  0x7a   :  { %888 = vmatmul.mubr.bf16.gmra.mrb[44].mxu0 %v1854_v15  ;;  %v2193_v15 = vld [vmem:[%s2294_s2] ss:$0 sm:$0xff] }
  0xf5   :  { %v1713_v24 = vpop.f32.mrb[0].mxu0 }
  0xf6   :  { %v1567_v25 = vpop.f32.mrb[0].mxu1  ;;  %v287_v26 = vpop.f32.mrb[1].mxu0 }
  0xf7   :  { %v1568_v27 = vpop.f32.mrb[1].mxu1  ;;  %v1714_v28 = vpop.f32.mrb[2].mxu0 }
  0xf8   :  { %v1569_v29 = vadd.f32 %v1568_v27, %v1567_v25  ;;  %v1570_v30 = vpop.f32.mrb[2].mxu1  ;;  %v290_v31 = vpop.f32.mrb[3].mxu0 }
  0xf9   :  { %v1571_v32 = vpop.f32.mrb[3].mxu1 }
  0xfa   :  { %v737_v33 = vadd.f32 %v1569_v29, %v287_v26  ;;  %v1572_v34 = vadd.f32 %v1571_v32, %v1570_v30 }
  0xfc   :  { %v740_v35 = vadd.f32 %v1572_v34, %v290_v31 }
  0xfd   :  { %v1717_v36 = vpop.f32.mrb[4].mxu0 }
  0xfe   :  { %v1573_v37 = vpop.f32.mrb[4].mxu1  ;;  %v303_v38 = vpop.f32.mrb[5].mxu0 }
  0xff   :  { %v1574_v39 = vpop.f32.mrb[5].mxu1  ;;  %v1718_v40 = vpop.f32.mrb[6].mxu0 }
 0x100   :  { %v1575_v41 = vadd.f32 %v1574_v39, %v1573_v37  ;;  %v1576_v42 = vpop.f32.mrb[6].mxu1  ;;  %v306_v43 = vpop.f32.mrb[7].mxu0 }
 0x101   :  { %v1577_v44 = vpop.f32.mrb[7].mxu1 }
 0x102   :  { %v745_v45 = vadd.f32 %v1713_v24, %v1575_v41  ;;  %v1578_v46 = vadd.f32 %v1577_v44, %v1576_v42 }
 0x104   :  { %v2172_v47 = vadd.f32 %v1714_v28, %v1578_v46 }
 0x105   :  { %v1721_v48 = vpop.f32.mrb[8].mxu0 }
 0x106   :  { %v1579_v49 = vpop.f32.mrb[8].mxu1  ;;  %v319_v50 = vpop.f32.mrb[9].mxu0 }
 0x107   :  { %v1580_v51 = vpop.f32.mrb[9].mxu1  ;;  %v1722_v52 = vpop.f32.mrb[10].mxu0 }
 0x108   :  { %v1581_v53 = vadd.f32 %v1580_v51, %v1579_v49  ;;  %v1582_v54 = vpop.f32.mrb[10].mxu1  ;;  %v322_v55 = vpop.f32.mrb[11].mxu0 }
 0x109   :  { %v1583_v56 = vpop.f32.mrb[11].mxu1 }
 0x10a   :  { %v2174_v57 = vadd.f32 %v1581_v53, %v303_v38  ;;  %v1584_v58 = vadd.f32 %v1583_v56, %v1582_v54 }
 0x10c   :  { %v2176_v59 = vadd.f32 %v1584_v58, %v306_v43 }
 0x10d   :  { %v2178_v60 = vpop.f32.mrb[12].mxu0 }
 0x10e   :  { %v1585_v61 = vpop.f32.mrb[12].mxu1  ;;  %v2180_v62 = vpop.f32.mrb[13].mxu0 }
 0x10f   :  { %v1586_v63 = vpop.f32.mrb[13].mxu1  ;;  %v2182_v0 = vpop.f32.mrb[14].mxu0 }
 0x110   :  { %v1587_v1 = vadd.f32 %v1586_v63, %v1585_v61  ;;  %v1588_v2 = vpop.f32.mrb[14].mxu1  ;;  %v2184_v3 = vpop.f32.mrb[15].mxu0 }
 0x111   :  { %v1589_v4 = vpop.f32.mrb[15].mxu1 }
 0x112   :  { %v2186_v5 = vadd.f32 %v1717_v36, %v1587_v1  ;;  %v1590_v6 = vadd.f32 %v1589_v4, %v1588_v2 }
 0x114   :  { %v2188_v7 = vadd.f32 %v1718_v40, %v1590_v6 }
 0x115   :  { %v1631_v8 = vpop.f32.mrb[16].mxu0 }
 0x116   :  { %v1591_v9 = vpop.f32.mrb[16].mxu1  ;;  %v1632_v10 = vpop.f32.mrb[17].mxu0 }
 0x117   :  { %v1592_v11 = vpop.f32.mrb[17].mxu1  ;;  %v1633_v12 = vadd.f32 %v1632_v10, %v1631_v8  ;;  %v1634_v13 = vpop.f32.mrb[18].mxu0 }
 0x118   :  { %v1593_v14 = vadd.f32 %v1592_v11, %v1591_v9  ;;  %v1594_v16 = vpop.f32.mrb[18].mxu1  ;;  %v1635_v17 = vpop.f32.mrb[19].mxu0 }
 0x119   :  { %v834_v18 = vadd.f32 %v1633_v12, %v737_v33  ;;  %v1595_v19 = vpop.f32.mrb[19].mxu1  ;;  %v1636_v20 = vadd.f32 %v1635_v17, %v1634_v13 }
 0x11a   :  { %v2195_v21 = vadd.f32 %v1593_v14, %v319_v50  ;;  %v1596_v22 = vadd.f32 %v1595_v19, %v1594_v16 }
 0x11b   :  { %v903_v23 = vadd.f32 %v2193_v15, %v834_v18  ;;  %v837_v24 = vadd.f32 %v1636_v20, %v740_v35 }
 0x11c   :  { %v2198_v25 = vadd.f32 %v1596_v22, %v322_v55 }
 0x11d   :  { %v904_v26 = vadd.f32 %v2193_v15, %v837_v24  ;;  %v1637_v27 = vpop.f32.mrb[20].mxu0  ;;  %v919_v30 = vmax.f32 %v903_v23, 0.0 }
 0x11e   :  { %v1597_v28 = vpop.f32.mrb[20].mxu1  ;;  %v1638_v29 = vpop.f32.mrb[21].mxu0 }
 0x11f   :  { %v920_v31 = vmax.f32 %v904_v26, 0.0  ;;  %v1598_v32 = vpop.f32.mrb[21].mxu1  ;;  %v1639_v34 = vadd.f32 %v1638_v29, %v1637_v27  ;;  %v1640_v33 = vpop.f32.mrb[22].mxu0 }
 0x120   :  { %v1599_v36 = vadd.f32 %v1598_v32, %v1597_v28  ;;  %v1600_v37 = vpop.f32.mrb[22].mxu1  ;;  %v1641_v38 = vpop.f32.mrb[23].mxu0 }
 0x121   :  { %v842_v39 = vadd.f32 %v1639_v34, %v745_v45  ;;  %v1601_v40 = vpop.f32.mrb[23].mxu1  ;;  %v1642_v41 = vadd.f32 %v1641_v38, %v1640_v33  ;;  %v935_v42 = vpack.c.bf16 %v920_v31, %v919_v30 }
 0x122   :  { %v2201_v35 = vadd.f32 %v1721_v48, %v1599_v36  ;;  %v1602_v43 = vadd.f32 %v1601_v40, %v1600_v37 }
 0x123   :  { %v905_v44 = vadd.f32 %v2193_v15, %v842_v39  ;;  %v845_v46 = vadd.f32 %v1642_v41, %v2172_v47  ;;  %1445 = vst [vmem:[%s2295_s7] sm:$0xff] %v935_v42   ;;  %1743 = vmatprep.mubr.bf16.mxu1 %v935_v42 }
 0x124   :  { %v2208_v49 = vadd.f32 %v1722_v52, %v1602_v43 }
 0x125   :  { %v906_v50 = vadd.f32 %v2193_v15, %v845_v46  ;;  %v1643_v45 = vpop.f32.mrb[24].mxu0  ;;  %v921_v54 = vmax.f32 %v905_v44, 0.0 }
 0x126   :  { %v1603_v51 = vpop.f32.mrb[24].mxu1  ;;  %v1644_v53 = vpop.f32.mrb[25].mxu0 }
 0x127   :  { %v922_v48 = vmax.f32 %v906_v50, 0.0  ;;  %v1604_v55 = vpop.f32.mrb[25].mxu1  ;;  %v1645_v56 = vadd.f32 %v1644_v53, %v1643_v45  ;;  %v1646_v58 = vpop.f32.mrb[26].mxu0 }
 0x128   :  { %v1605_v61 = vadd.f32 %v1604_v55, %v1603_v51  ;;  %v1606_v63 = vpop.f32.mrb[26].mxu1  ;;  %v1647_v47 = vpop.f32.mrb[27].mxu0 }
 0x129   :  { %v936_v1 = vpack.c.bf16 %v922_v48, %v921_v54  ;;  %v850_v2 = vadd.f32 %v1645_v56, %v2174_v57  ;;  %v1607_v4 = vpop.f32.mrb[27].mxu1  ;;  %v1648_v6 = vadd.f32 %v1647_v47, %v1646_v58 }
 0x12a   :  { %v2213_v52 = vadd.f32 %v1605_v61, %v2180_v62  ;;  %v1608_v8 = vadd.f32 %v1607_v4, %v1606_v63 }
 0x12b   :  { %1521 = vst [vmem:[%s2295_s7 + $0x8] sm:$0xff] %v936_v1   ;;  %v907_v9 = vadd.f32 %v2193_v15, %v850_v2  ;;  %v853_v10 = vadd.f32 %v1648_v6, %v2176_v59  ;;  %1744 = vmatmul.mubr.bf16.vlgmr.msra.gmra.mrb[32].mxu1 %v936_v1 }
 0x12c   :  { %v2221_v11 = vadd.f32 %v1608_v8, %v2184_v3 }
 0x12d   :  { %v908_v57 = vadd.f32 %v2193_v15, %v853_v10  ;;  %v1649_v12 = vpop.f32.mrb[28].mxu0  ;;  %v923_v62 = vmax.f32 %v907_v9, 0.0 }
 0x12e   :  { %v1609_v13 = vpop.f32.mrb[28].mxu1  ;;  %v1650_v14 = vpop.f32.mrb[29].mxu0 }
 0x12f   :  { %v924_v16 = vmax.f32 %v908_v57, 0.0  ;;  %v1610_v17 = vpop.f32.mrb[29].mxu1  ;;  %v1651_v18 = vadd.f32 %v1650_v14, %v1649_v12  ;;  %v1652_v19 = vpop.f32.mrb[30].mxu0 }
 0x130   :  { %v1611_v20 = vadd.f32 %v1610_v17, %v1609_v13  ;;  %v1612_v22 = vpop.f32.mrb[30].mxu1  ;;  %v1653_v23 = vpop.f32.mrb[31].mxu0 }
 0x131   :  { %v858_v24 = vadd.f32 %v1651_v18, %v2186_v5  ;;  %v1613_v59 = vpop.f32.mrb[31].mxu1  ;;  %v1654_v26 = vadd.f32 %v1653_v23, %v1652_v19  ;;  %v937_v27 = vpack.c.bf16 %v924_v16, %v923_v62 }
 0x132   :  { %v793_v3 = vadd.f32 %v2178_v60, %v1611_v20  ;;  %v1614_v28 = vadd.f32 %v1613_v59, %v1612_v22 }
 0x133   :  { %v909_v29 = vadd.f32 %v2193_v15, %v858_v24  ;;  %v861_v30 = vadd.f32 %v1654_v26, %v2188_v7  ;;  %1522 = vst [vmem:[%s2295_s7 + $0x10] sm:$0xff] %v937_v27   ;;  %1747 = vmatprep.mubr.bf16.mxu1 %v937_v27  ;;  %v1384_v26 = vld [vmem:[%s2296_s6] ss:$0 sm:$0xff] }
 0x134   :  { %v796_v31 = vadd.f32 %v2182_v0, %v1614_v28 }
 0x135   :  { %v910_v32 = vadd.f32 %v2193_v15, %v861_v30  ;;  %v1655_v5 = vpop.f32.mrb[32].mxu0  ;;  %v925_v33 = vmax.f32 %v909_v29, 0.0 }
 0x136   :  { %v1656_v34 = vpop.f32.mrb[33].mxu0 }
 0x137   :  { %v926_v36 = vmax.f32 %v910_v32, 0.0  ;;  %v1657_v37 = vadd.f32 %v1656_v34, %v1655_v5  ;;  %v1658_v60 = vpop.f32.mrb[34].mxu0 }
 0x138   :  { %v1659_v38 = vpop.f32.mrb[35].mxu0 }
 0x139   :  { %v866_v39 = vadd.f32 %v1657_v37, %v2195_v21  ;;  %v1660_v40 = vadd.f32 %v1659_v38, %v1658_v60  ;;  %v938_v7 = vpack.c.bf16 %v926_v36, %v925_v33 }
 0x13b   :  { %v911_v41 = vadd.f32 %v2193_v15, %v866_v39  ;;  %v869_v42 = vadd.f32 %v1660_v40, %v2198_v25  ;;  %1523 = vst [vmem:[%s2295_s7 + $0x18] sm:$0xff] %v938_v7   ;;  %1748 = vmatmul.mubr.bf16.gmra.mrb[36].mxu1 %v938_v7 }
 0x13d   :  { %v912_v0 = vadd.f32 %v2193_v15, %v869_v42  ;;  %v1661_v43 = vpop.f32.mrb[36].mxu0  ;;  %v927_v46 = vmax.f32 %v911_v41, 0.0 }
 0x13e   :  { %v1662_v44 = vpop.f32.mrb[37].mxu0 }
 0x13f   :  { %v928_v50 = vmax.f32 %v912_v0, 0.0  ;;  %v1663_v45 = vadd.f32 %v1662_v44, %v1661_v43  ;;  %v1664_v51 = vpop.f32.mrb[38].mxu0 }
 0x140   :  { %v1665_v21 = vpop.f32.mrb[39].mxu0 }
 0x141   :  { %v874_v53 = vadd.f32 %v1663_v45, %v2201_v35  ;;  %v1666_v54 = vadd.f32 %v1665_v21, %v1664_v51  ;;  %v939_v48 = vpack.c.bf16 %v928_v50, %v927_v46 }
 0x143   :  { %v913_v25 = vadd.f32 %v2193_v15, %v874_v53  ;;  %v877_v55 = vadd.f32 %v1666_v54, %v2208_v49  ;;  %1524 = vst [vmem:[%s2295_s7 + $0x20] sm:$0xff] %v939_v48   ;;  %1751 = vmatprep.mubr.bf16.mxu1 %v939_v48 }
 0x145   :  { %v914_v56 = vadd.f32 %v2193_v15, %v877_v55  ;;  %v1667_v58 = vpop.f32.mrb[40].mxu0  ;;  %v929_v63 = vmax.f32 %v913_v25, 0.0 }
 0x146   :  { %v1668_v61 = vpop.f32.mrb[41].mxu0 }
 0x147   :  { %v930_v47 = vmax.f32 %v914_v56, 0.0  ;;  %v1669_v1 = vadd.f32 %v1668_v61, %v1667_v58  ;;  %v1670_v2 = vpop.f32.mrb[42].mxu0 }
 0x148   :  { %v1671_v35 = vpop.f32.mrb[43].mxu0 }
 0x149   :  { %v882_v4 = vadd.f32 %v1669_v1, %v2213_v52  ;;  %v1672_v6 = vadd.f32 %v1671_v35, %v1670_v2  ;;  %v940_v8 = vpack.c.bf16 %v930_v47, %v929_v63 }
 0x14b   :  { %v915_v49 = vadd.f32 %v2193_v15, %v882_v4  ;;  %v885_v9 = vadd.f32 %v1672_v6, %v2221_v11  ;;  %1525 = vst [vmem:[%s2295_s7 + $0x28] sm:$0xff] %v940_v8   ;;  %1752 = vmatmul.mubr.bf16.gmra.mrb[40].mxu1 %v940_v8 }
 0x14d   :  { %v916_v10 = vadd.f32 %v2193_v15, %v885_v9  ;;  %v1673_v57 = vpop.f32.mrb[44].mxu0  ;;  %v931_v13 = vmax.f32 %v915_v49, 0.0 }
 0x14e   :  { %v1674_v12 = vpop.f32.mrb[45].mxu0 }
 0x14f   :  { %v932_v14 = vmax.f32 %v916_v10, 0.0  ;;  %v1675_v62 = vadd.f32 %v1674_v12, %v1673_v57  ;;  %v1676_v16 = vpop.f32.mrb[46].mxu0 }
 0x150   :  { %v1677_v52 = vpop.f32.mrb[47].mxu0 }
 0x151   :  { %v890_v17 = vadd.f32 %v1675_v62, %v793_v3  ;;  %v1678_v18 = vadd.f32 %v1677_v52, %v1676_v16  ;;  %v941_v19 = vpack.c.bf16 %v932_v14, %v931_v13 }
 0x153   :  { %v917_v20 = vadd.f32 %v2193_v15, %v890_v17  ;;  %v893_v11 = vadd.f32 %v1678_v18, %v796_v31  ;;  %1526 = vst [vmem:[%s2295_s7 + $0x30] sm:$0xff] %v941_v19   ;;  %1755 = vmatprep.mubr.bf16.mxu1 %v941_v19 }
 0x155   :  { %v918_v22 = vadd.f32 %v2193_v15, %v893_v11  ;;  %v933_v23 = vmax.f32 %v917_v20, 0.0 }
 0x157   :  { %v934_v24 = vmax.f32 %v918_v22, 0.0 }
 0x159   :  { %v942_v59 = vpack.c.bf16 %v934_v24, %v933_v23 }
 0x15b   :  { %1527 = vst [vmem:[%s2295_s7 + $0x38] sm:$0xff] %v942_v59   ;;  %1756 = vmatmul.mubr.bf16.gmra.mrb[44].mxu1 %v942_v59 }
 0x1fe   :  { %v1745_v27 = vpop.f32.mrb[32].mxu1 }
 0x1ff   :  { %v1129_v3 = vadd.f32 %v1745_v27, %v1384_v26  ;;  %v1120_v28 = vpop.f32.mrb[33].mxu1 }
 0x200   :  { %v1121_v29 = vadd.f32 %v1384_v26, %v1120_v28  ;;  %v1746_v30 = vpop.f32.mrb[34].mxu1 }
 0x201   :  { %v1132_v31 = vadd.f32 %v1746_v30, %v1384_v26  ;;  %v1123_v32 = vpop.f32.mrb[35].mxu1  ;;  %v1185_v5 = vmax.f32 %v1129_v3, 0.0 }
 0x202   :  { %v1124_v15 = vadd.f32 %v1384_v26, %v1123_v32  ;;  %v1183_v33 = vmax.f32 %v1121_v29, 0.0 }
 0x203   :  { %v1186_v34 = vmax.f32 %v1132_v31, 0.0 }
 0x204   :  { %v1184_v36 = vmax.f32 %v1124_v15, 0.0 }
 0x205   :  { %v1489_v37 = vpack.c.bf16 %v1186_v34, %v1185_v5 }
 0x206   :  { %v1484_v60 = vpack.c.bf16 %v1184_v36, %v1183_v33 }
 0x207   :  { %1528 = vst [vmem:[%s2297_s8 + $0x8] sm:$0xff] %v1489_v37  }
 0x208   :  { %1485 = vst [vmem:[%s2297_s8] sm:$0xff] %v1484_v60  }
 0x20e   :  { %v1749_v38 = vpop.f32.mrb[36].mxu1 }
 0x20f   :  { %v1145_v39 = vadd.f32 %v1749_v38, %v1384_v26  ;;  %v1136_v40 = vpop.f32.mrb[37].mxu1 }
 0x210   :  { %v1137_v7 = vadd.f32 %v1384_v26, %v1136_v40  ;;  %v1750_v41 = vpop.f32.mrb[38].mxu1 }
 0x211   :  { %v1148_v42 = vadd.f32 %v1750_v41, %v1384_v26  ;;  %v1139_v0 = vpop.f32.mrb[39].mxu1  ;;  %v1189_v44 = vmax.f32 %v1145_v39, 0.0 }
 0x212   :  { %v1140_v43 = vadd.f32 %v1384_v26, %v1139_v0  ;;  %v1187_v50 = vmax.f32 %v1137_v7, 0.0 }
 0x213   :  { %v1190_v46 = vmax.f32 %v1148_v42, 0.0 }
 0x214   :  { %v1188_v45 = vmax.f32 %v1140_v43, 0.0 }
 0x215   :  { %v1499_v51 = vpack.c.bf16 %v1190_v46, %v1189_v44 }
 0x216   :  { %v1494_v21 = vpack.c.bf16 %v1188_v45, %v1187_v50 }
 0x217   :  { %1530 = vst [vmem:[%s2297_s8 + $0x18] sm:$0xff] %v1499_v51  }
 0x218   :  { %1529 = vst [vmem:[%s2297_s8 + $0x10] sm:$0xff] %v1494_v21  }
 0x21e   :  { %v1753_v53 = vpop.f32.mrb[40].mxu1 }
 0x21f   :  { %v1161_v54 = vadd.f32 %v1753_v53, %v1384_v26  ;;  %v1152_v48 = vpop.f32.mrb[41].mxu1 }
 0x220   :  { %v1153_v25 = vadd.f32 %v1384_v26, %v1152_v48  ;;  %v1754_v55 = vpop.f32.mrb[42].mxu1 }
 0x221   :  { %v1164_v56 = vadd.f32 %v1754_v55, %v1384_v26  ;;  %v1155_v58 = vpop.f32.mrb[43].mxu1  ;;  %v1193_v63 = vmax.f32 %v1161_v54, 0.0 }
 0x222   :  { %v1156_v61 = vadd.f32 %v1384_v26, %v1155_v58  ;;  %v1191_v1 = vmax.f32 %v1153_v25, 0.0 }
 0x223   :  { %v1194_v47 = vmax.f32 %v1164_v56, 0.0 }
 0x224   :  { %v1192_v2 = vmax.f32 %v1156_v61, 0.0 }
 0x225   :  { %v1509_v35 = vpack.c.bf16 %v1194_v47, %v1193_v63 }
 0x226   :  { %v1504_v4 = vpack.c.bf16 %v1192_v2, %v1191_v1 }
 0x227   :  { %1532 = vst [vmem:[%s2297_s8 + $0x28] sm:$0xff] %v1509_v35  }
 0x228   :  { %1531 = vst [vmem:[%s2297_s8 + $0x20] sm:$0xff] %v1504_v4  }
 0x22e   :  { %v1757_v6 = vpop.f32.mrb[44].mxu1 }
 0x22f   :  { %v1177_v8 = vadd.f32 %v1757_v6, %v1384_v26  ;;  %v1168_v49 = vpop.f32.mrb[45].mxu1 }
 0x230   :  { %v1169_v9 = vadd.f32 %v1384_v26, %v1168_v49  ;;  %v1758_v10 = vpop.f32.mrb[46].mxu1 }
 0x231   :  { %v1180_v57 = vadd.f32 %v1758_v10, %v1384_v26  ;;  %v1171_v12 = vpop.f32.mrb[47].mxu1  ;;  %v1197_v14 = vmax.f32 %v1177_v8, 0.0 }
 0x232   :  { %v1172_v13 = vadd.f32 %v1384_v26, %v1171_v12  ;;  %v1195_v16 = vmax.f32 %v1169_v9, 0.0 }
 0x233   :  { %v1198_v62 = vmax.f32 %v1180_v57, 0.0 }
 0x234   :  { %v1196_v52 = vmax.f32 %v1172_v13, 0.0 }
 0x235   :  { %v1519_v17 = vpack.c.bf16 %v1198_v62, %v1197_v14 }
 0x236   :  { %v1514_v18 = vpack.c.bf16 %v1196_v52, %v1195_v16 }
 0x237   :  { %1534 = vst [vmem:[%s2297_s8 + $0x38] sm:$0xff] %v1519_v17  }
 0x238   :  { %1533 = vst [vmem:[%s2297_s8 + $0x30] sm:$0xff] %v1514_v18  }

// kernel: upsample_module_fwd.14
= control target key start
LH: loop header
LB: loop body
LE: loop exit
PB: predicated region body
PF: predicated region fallthrough
CT: control target
= control target key end

     0   :  { %14 = vsyncpa [#allocation3], 0  ;;  %s3315_s0 = inlined_call_operand.vmem [shape: bf16[512,256], index: 0, kind: input, shape index: {}]   ;;  %s3316_s1 = inlined_call_operand.vmem [shape: bf16[256,128], index: 1, kind: input, shape index: {}]   ;;  %s3317_s2 = inlined_call_operand.vmem [shape: f32[1,128], index: 2, kind: input, shape index: {}]   ;;  %s3318_s3 = inlined_call_operand.vmem [shape: bf16[512,128], index: 3, kind: input, shape index: {}]   ;;  %s3319_s4 = inlined_call_operand.vmem [shape: bf16[128,128], index: 4, kind: input, shape index: {}]   ;;  %s3320_s5 = inlined_call_operand.vmem [shape: bf16[128,128], index: 5, kind: input, shape index: {}]   ;;  %s3321_s6 = inlined_call_operand.vmem [shape: f32[1,128], index: 6, kind: input, shape index: {}]   ;;  %s3322_s7 = inlined_call_operand.hbm [shape: bf16[512,128], index: 7, kind: output, shape index: {0}]   ;;  %s3323_s8 = inlined_call_operand.vmem [shape: bf16[512,128], index: 8, kind: output, shape index: {1}]  }
   0x1   :  { %16 = vsyncpa [#allocation3 + $0x1], 0  ;;  %s2882_s27 = smov 0   ;;  %s2884_s28 = smov 0  }
   0x2   :  { %s2886_s29 = smov 0   ;;  %s2888_s30 = smov 0  }
   0x3 LB: > { %s2903_s9 = sadd.s32 4294967295, %s2832_s30   ;;  %s1958_s10 = sadd.s32 4294967294, %s2832_s30   ;;  %s2832_s30 = sphi %s2888_s30, %s3329_s30   ;;  %s2828_s29 = sphi %s2886_s29, %s3328_s29   ;;  %s2824_s28 = sphi %s2884_s28, %s3327_s28   ;;  %s2820_s27 = sphi %s2882_s27, %s3326_s27  }
   0x4   : > { %s2907_s11 = sadd.s32 1, %s2832_s30   ;;  %s186_s12 = sadd.s32 1, %s2828_s29 }
   0x5   : > { %s183_s13 = ssub.s32 %s2832_s30, %s2907_s11  ;;  %p196_p0 = scmp.ne.s32.totalorder %s2828_s29, %s2824_s28 }
   0x6   : > { %p184_p1 = scmp.eq.s32.totalorder %s183_s13, 0  ;;  %p197_p2 = scmp.eq.s32.totalorder %s2903_s9, 1 }
   0x7   : > { %p202_p3 = scmp.ne.s32.totalorder %s2824_s28, %s2820_s27  ;;  %p203_p4 = scmp.eq.s32.totalorder %s1958_s10, 1 }
   0x8   : > { %s2918_s14 = scalar_select %p184_p1, %s2828_s29, %s186_s12  }
   0x9   : > { %p2920_p5 = por %p197_p2, %p196_p0  ;;  %p2924_p6 = por %p203_p4, %p202_p3 }
   0xa   : > { %p1961_p7 = scmp.ge.s32.totalorder %s2832_s30, 1  ;;  %p281_p8 = scmp.lt.s32.totalorder %s2832_s30, 3 }
   0xc   : > { %p282_p9 = pnand %p1961_p7, %p281_p8 }
   0xd   : > { %v2674_v0 = vld [vmem:[%s3316_s1 + $0x40] sm:$0xff] (!%p282_p9)   ;;  %v2677_v3 = vld [vmem:[%s3316_s1 + $0x48] sm:$0xff] (!%p282_p9)   ;;  %v2680_v6 = vld [vmem:[%s3316_s1 + $0x50] sm:$0xff] (!%p282_p9)   ;;  %s1963_s22 = sshll.u32 (!%p282_p9), %s2903_s9, 5  ;;  %s2186_s26 = sshll.u32 (!%p282_p9), %s2903_s9, 11 }
   0xe   : > { %285 = sbr.rel (%p282_p9) target bundleno = 613 (0x265), region = 48  ;;  %v2675_v1 = vld [vmem:[%s3316_s1] sm:$0xff] (!%p282_p9)   ;;  %2401 = vmatprep.subr.bf16.mxu1 (!%p282_p9), %v2674_v0  ;;  %v2678_v4 = vld [vmem:[%s3316_s1 + $0x8] sm:$0xff] (!%p282_p9)   ;;  %v2681_v7 = vld [vmem:[%s3316_s1 + $0x10] sm:$0xff] (!%p282_p9)   ;;  %p327_p10 = scmp.lt.s32.totalorder (!%p282_p9), %s1963_s22, 63 }
   0xf   : > { %v2676_v2 = vld [vmem:[%s3319_s4] sm:$0xff] (!%p282_p9)   ;;  %2402 = vmatpush3.bf16.msra.mxu1 (!%p282_p9), %v2675_v1  ;;  %v2679_v5 = vld [vmem:[%s3319_s4 + $0x8] sm:$0xff] (!%p282_p9)   ;;  %v2682_v8 = vld [vmem:[%s3319_s4 + $0x10] sm:$0xff] (!%p282_p9)   ;;  %s3208_s20 = scalar_lea.hbm (!%p282_p9), %s3322_s7, %s2186_s26  ;;  %s2834_s9 = smov (!%p282_p9), [#allocation2]  }
  0x10   : > { %2537 = vmatprep.subr.bf16.mxu0 (!%p282_p9), %v2676_v2  ;;  %2403 = vmatprep.subr.bf16.mxu1 (!%p282_p9), %v2677_v3  ;;  %v2683_v9 = vld [vmem:[%s3316_s1 + $0x58] sm:$0xff] (!%p282_p9)   ;;  %v2686_v12 = vld [vmem:[%s3316_s1 + $0x60] sm:$0xff] (!%p282_p9)   ;;  %v2689_v15 = vld [vmem:[%s3316_s1 + $0x68] sm:$0xff] (!%p282_p9)   ;;  %s2774_s24 = sshll.u32 (!%p282_p9), %s2834_s9, 4  ;;  %s2775_s24 = int_to_ptr.vmem [resolvable:$false] %s2774_s24 }
  0x11   : > { %2538 = vmatpush3.bf16.msra.mxu0 (!%p282_p9), %v2676_v2  ;;  %v2684_v10 = vld [vmem:[%s3316_s1 + $0x18] sm:$0xff] (!%p282_p9)   ;;  %v2688_v13 = vld [vmem:[%s3319_s4 + $0x20] sm:$0xff] (!%p282_p9)   ;;  %v2691_v16 = vld [vmem:[%s3319_s4 + $0x28] sm:$0xff] (!%p282_p9)  }
  0x12   : > { %2539 = vmatprep.subr.bf16.mxu0 (!%p282_p9), %v2679_v5  ;;  %v2685_v11 = vld [vmem:[%s3319_s4 + $0x18] sm:$0xff] (!%p282_p9)   ;;  %v2687_v14 = vld [vmem:[%s3316_s1 + $0x20] sm:$0xff] (!%p282_p9)   ;;  %v2690_v17 = vld [vmem:[%s3316_s1 + $0x28] sm:$0xff] (!%p282_p9)  }
  0x13   : > { %2404 = vmatpush3.bf16.msra.mxu1 (!%p282_p9), %v2678_v4  ;;  %v2692_v18 = vld [vmem:[%s3316_s1 + $0x70] sm:$0xff] (!%p282_p9)   ;;  %v2695_v21 = vld [vmem:[%s3316_s1 + $0x78] sm:$0xff] (!%p282_p9)   ;;  %v2762_v45 = vld [vmem:[%s3320_s5] sm:$0xff] (!%p282_p9)  }
  0x14   : > { %2405 = vmatprep.subr.bf16.mxu1 (!%p282_p9), %v2680_v6  ;;  %v2693_v19 = vld [vmem:[%s3316_s1 + $0x30] sm:$0xff] (!%p282_p9)   ;;  %v2697_v22 = vld [vmem:[%s3319_s4 + $0x38] sm:$0xff] (!%p282_p9)   ;;  %v2763_v47 = vld [vmem:[%s3320_s5 + $0x8] sm:$0xff] (!%p282_p9)  }
  0x15   : > { %2540 = vmatpush3.bf16.msra.mxu0 %v2679_v5  ;;  %s3331_s22 = smov (!%p327_p10, %s1963_s22), 63  ;;  %v2694_v20 = vld [vmem:[%s3319_s4 + $0x30] sm:$0xff]   ;;  %v2696_v25 = vld [vmem:[%s3316_s1 + $0x38] sm:$0xff]   ;;  %v2766_v5 = vld [vmem:[%s3320_s5 + $0x20] sm:$0xff]  }
  0x16   : > { %2541 = vmatprep.subr.bf16.mxu0 %v2682_v8  ;;  %s2121_s13 = sshll.u32 %s3331_s22, 3  ;;  %s1967_s19 = sshll.u32 %s3331_s22, 2  ;;  %v2764_v48 = vld [vmem:[%s3320_s5 + $0x10] sm:$0xff]   ;;  %v2765_v2 = vld [vmem:[%s3320_s5 + $0x18] sm:$0xff]   ;;  %v2767_v6 = vld [vmem:[%s3320_s5 + $0x28] sm:$0xff]  }
  0x17   : > { %2406 = vmatpush3.bf16.msra.mxu1 %v2681_v7  ;;  %s3001_s10 = scalar_lea.vmem %s3315_s0, %s2121_s13  ;;  %s3011_s21 = scalar_lea.vmem %s3318_s3, %s1967_s19 }
  0x18   : > { %2407 = vmatprep.subr.bf16.mxu1 %v2683_v9  ;;  %v2700_v23 = vld [vmem:[%s3001_s10 + $0x4] ss:$8 sps:$4 sm:$0xff]   ;;  %v2698_v26 = vld [vmem:[%s3001_s10] ss:$8 sps:$4 sm:$0xff]   ;;  %v2703_v27 = vld [vmem:[%s3001_s10 + $0x14] ss:$8 sps:$4 sm:$0xff]  }
  0x19   : > { %2542 = vmatpush3.bf16.msra.mxu0 %v2682_v8  ;;  %v2701_v24 = vld [vmem:[%s3011_s21] sm:$0xff]   ;;  %1052 = vmatprep.mubr.bf16.mxu1 %v2700_v23  ;;  %v2702_v28 = vld [vmem:[%s3011_s21 + $0x8] sm:$0xff]   ;;  %v2709_v29 = vld [vmem:[%s3011_s21 + $0x10] sm:$0xff]   ;;  %s316_s13 = sand.u32 1, %s2824_s28  }
  0x1a   : > { %2543 = vmatprep.subr.bf16.mxu0 %v2685_v11  ;;  %2553 = vmatprep.mubr.bf16.mxu0 %v2701_v24  ;;  %v2705_v30 = vld [vmem:[%s3001_s10 + $0x10] ss:$8 sps:$4 sm:$0xff]   ;;  %v2706_v31 = vld [vmem:[%s3001_s10 + $0x24] ss:$8 sps:$4 sm:$0xff]   ;;  %v2708_v34 = vld [vmem:[%s3001_s10 + $0x20] ss:$8 sps:$4 sm:$0xff]  }
  0x1b   : > { %2408 = vmatpush3.bf16.msra.mxu1 %v2684_v10  ;;  %v2710_v32 = vld [vmem:[%s3011_s21 + $0x18] sm:$0xff]   ;;  %v2717_v33 = vld [vmem:[%s3011_s21 + $0x20] sm:$0xff]   ;;  %v2718_v36 = vld [vmem:[%s3011_s21 + $0x28] sm:$0xff]   ;;  %s3214_s23 = scalar_lea.sflag [#allocation3], %s316_s13 }
  0x1c   : > { %2409 = vmatprep.subr.bf16.mxu1 %v2686_v12  ;;  %v2711_v35 = vld [vmem:[%s3001_s10 + $0x34] ss:$8 sps:$4 sm:$0xff]   ;;  %v2713_v38 = vld [vmem:[%s3001_s10 + $0x30] ss:$8 sps:$4 sm:$0xff]   ;;  %v2714_v39 = vld [vmem:[%s3001_s10 + $0x44] ss:$8 sps:$4 sm:$0xff]  }
  0x1d   : > { %2544 = vmatpush3.bf16.msra.mxu0 %v2685_v11  ;;  %v2725_v37 = vld [vmem:[%s3011_s21 + $0x30] sm:$0xff]   ;;  %v2726_v40 = vld [vmem:[%s3011_s21 + $0x38] sm:$0xff]   ;;  %v2733_v41 = vld [vmem:[%s3011_s21 + $0x40] sm:$0xff]  }
  0x1e   : > { %2545 = vmatprep.subr.bf16.mxu0 %v2688_v13  ;;  %v2716_v42 = vld [vmem:[%s3001_s10 + $0x40] ss:$8 sps:$4 sm:$0xff]   ;;  %v2719_v43 = vld [vmem:[%s3001_s10 + $0x54] ss:$8 sps:$4 sm:$0xff]   ;;  %v2721_v49 = vld [vmem:[%s3001_s10 + $0x50] ss:$8 sps:$4 sm:$0xff]  }
  0x1f   : > { %2410 = vmatpush3.bf16.msra.mxu1 %v2687_v14  ;;  %v2734_v44 = vld [vmem:[%s3011_s21 + $0x48] sm:$0xff]   ;;  %v2741_v46 = vld [vmem:[%s3011_s21 + $0x50] sm:$0xff]   ;;  %v2742_v51 = vld [vmem:[%s3011_s21 + $0x58] sm:$0xff]  }
  0x20   : > { %2411 = vmatprep.subr.bf16.mxu1 %v2689_v15  ;;  %v2722_v50 = vld [vmem:[%s3001_s10 + $0x64] ss:$8 sps:$4 sm:$0xff]   ;;  %v2724_v53 = vld [vmem:[%s3001_s10 + $0x60] ss:$8 sps:$4 sm:$0xff]   ;;  %v2727_v54 = vld [vmem:[%s3001_s10 + $0x74] ss:$8 sps:$4 sm:$0xff]  }
  0x21   : > { %2546 = vmatpush3.bf16.msra.mxu0 %v2688_v13  ;;  %v2749_v52 = vld [vmem:[%s3011_s21 + $0x60] sm:$0xff]   ;;  %v2750_v55 = vld [vmem:[%s3011_s21 + $0x68] sm:$0xff]   ;;  %v2757_v56 = vld [vmem:[%s3011_s21 + $0x70] sm:$0xff]  }
  0x22   : > { %2547 = vmatprep.subr.bf16.mxu0 %v2691_v16  ;;  %v2729_v57 = vld [vmem:[%s3001_s10 + $0x70] ss:$8 sps:$4 sm:$0xff]   ;;  %v2730_v58 = vld [vmem:[%s3001_s10 + $0x84] ss:$8 sps:$4 sm:$0xff]   ;;  %v2732_v60 = vld [vmem:[%s3001_s10 + $0x80] ss:$8 sps:$4 sm:$0xff]  }
  0x23   : > { %2412 = vmatpush3.bf16.msra.mxu1 %v2690_v17  ;;  %v2758_v59 = vld [vmem:[%s3011_s21 + $0x78] sm:$0xff]   ;;  %v2738_v63 = vld [vmem:[%s3001_s10 + $0xa4] ss:$8 sps:$4 sm:$0xff]   ;;  %v2740_v0 = vld [vmem:[%s3001_s10 + $0xa0] ss:$8 sps:$4 sm:$0xff]  }
  0x24   : > { %2413 = vmatprep.subr.bf16.mxu1 %v2692_v18  ;;  %v2735_v61 = vld [vmem:[%s3001_s10 + $0x94] ss:$8 sps:$4 sm:$0xff]   ;;  %v2737_v62 = vld [vmem:[%s3001_s10 + $0x90] ss:$8 sps:$4 sm:$0xff]   ;;  %v2746_v4 = vld [vmem:[%s3001_s10 + $0xc4] ss:$8 sps:$4 sm:$0xff]  }
  0x25   : > { %2548 = vmatpush3.bf16.msra.mxu0 %v2691_v16  ;;  %v2743_v1 = vld [vmem:[%s3001_s10 + $0xb4] ss:$8 sps:$4 sm:$0xff]   ;;  %v2745_v3 = vld [vmem:[%s3001_s10 + $0xb0] ss:$8 sps:$4 sm:$0xff]   ;;  %v2748_v7 = vld [vmem:[%s3001_s10 + $0xc0] ss:$8 sps:$4 sm:$0xff]  }
  0x26   : > { %2549 = vmatprep.subr.bf16.mxu0 %v2694_v20  ;;  %v2751_v8 = vld [vmem:[%s3001_s10 + $0xd4] ss:$8 sps:$4 sm:$0xff]   ;;  %v2753_v11 = vld [vmem:[%s3001_s10 + $0xd0] ss:$8 sps:$4 sm:$0xff]   ;;  %v2754_v12 = vld [vmem:[%s3001_s10 + $0xe4] ss:$8 sps:$4 sm:$0xff]  }
  0x27   : > { %2414 = vmatpush3.bf16.msra.mxu1 %v2693_v19  ;;  %v2768_v9 = vld [vmem:[%s3320_s5 + $0x30] sm:$0xff]   ;;  %v2769_v10 = vld [vmem:[%s3320_s5 + $0x38] sm:$0xff]   ;;  %v2756_v13 = vld [vmem:[%s3001_s10 + $0xe0] ss:$8 sps:$4 sm:$0xff]  }
  0x28   : > { %2415 = vmatprep.subr.bf16.mxu1 %v2695_v21  ;;  %v2759_v14 = vld [vmem:[%s3001_s10 + $0xf4] ss:$8 sps:$4 sm:$0xff]   ;;  %v2761_v15 = vld [vmem:[%s3001_s10 + $0xf0] ss:$8 sps:$4 sm:$0xff]   ;;  %s1962_s10 = sshll.u32 %s316_s13, 7 }
  0x29   : > { %2550 = vmatpush3.bf16.msra.mxu0 %v2694_v20  ;;  %s3102_s25 = scalar_lea.vmem [#allocation2], %s1962_s10  ;;  %s2776_s10 = scalar_lea.vmem %s2775_s24, 4096 }
  0x2a   : > { %2551 = vmatprep.subr.bf16.mxu0 %v2697_v22  ;;  %s1855_s12 = sshll.u32 %s3102_s25, 4  ;;  %s3210_s12 = int_to_ptr.vmem [resolvable:$true] %s1855_s12 }
  0x2b   : > { %2416 = vmatpush3.bf16.msra.mxu1 %v2696_v25  ;;  %s2770_s21 = scalar_lea.vmem %s3210_s12, 2048  ;;  %p2777_p0 = scmp.lt.s32.totalorder %s3210_s12, %s2775_s24 }
  0x2c   : > { %p2771_p11 = scmp.ne.s32.totalorder %s3210_s12, %s2770_s21  ;;  %p2778_p1 = scmp.lt.s32.totalorder %s2776_s10, %s2770_s21 }
  0x2d   : > { %2552 = vmatpush3.bf16.msra.mxu0 %v2697_v22  ;;  %v3094_v22 = vld [vmem:[%s3317_s2] ss:$0 sm:$0xff] }
  0x2e   : > { %1053 = vmatmul.mubr.bf16.vlgmr.msra.gmra.mrb[0].mxu1 %v2698_v26  ;;  %2585 = vmatprep.subr.bf16.mxu0 %v2762_v45  ;;  %p2772_p12 = pnand %p2771_p11, %p2920_p5  ;;  %p2779_p2 = por %p2778_p1, %p2777_p0 }
  0x2f   : > { %1060 = vmatprep.mubr.bf16.mxu1 %v2703_v27 }
  0x30   : > { %2554 = vmatmul.mubr.bf16.vlgmr.msra.gmra.mrb[0].mxu0 %v2702_v28  ;;  %p2773_p13 = pneg %p2772_p12 }
  0x31   : > { %2557 = vmatprep.mubr.bf16.mxu0 %v2709_v29  ;;  %2586 = vmatpush3.bf16.msra.mxu0 %v2762_v45 }
  0x32   : > { %2587 = vmatprep.subr.bf16.mxu0 %v2763_v47  ;;  %p2780_p3 = pnand %p2779_p2, %p2773_p13 }
  0x35   : > { %2588 = vmatpush3.bf16.msra.mxu0 %v2763_v47 }
  0x36   : > { %1061 = vmatmul.mubr.bf16.gmra.mrb[4].mxu1 %v2705_v30  ;;  %2589 = vmatprep.subr.bf16.mxu0 %v2764_v48 }
  0x37   : > { %1068 = vmatprep.mubr.bf16.mxu1 %v2706_v31 }
  0x38   : > { %2558 = vmatmul.mubr.bf16.gmra.mrb[4].mxu0 %v2710_v32 }
  0x39   : > { %2561 = vmatprep.mubr.bf16.mxu0 %v2717_v33  ;;  %2590 = vmatpush3.bf16.msra.mxu0 %v2764_v48 }
  0x3a   : > { %2591 = vmatprep.subr.bf16.mxu0 %v2765_v2 }
  0x3d   : > { %2592 = vmatpush3.bf16.msra.mxu0 %v2765_v2 }
  0x3e   : > { %1069 = vmatmul.mubr.bf16.gmra.mrb[8].mxu1 %v2708_v34  ;;  %2593 = vmatprep.subr.bf16.mxu0 %v2766_v5 }
  0x3f   : > { %1076 = vmatprep.mubr.bf16.mxu1 %v2711_v35 }
  0x40   : > { %2562 = vmatmul.mubr.bf16.gmra.mrb[8].mxu0 %v2718_v36 }
  0x41   : > { %2565 = vmatprep.mubr.bf16.mxu0 %v2725_v37  ;;  %2594 = vmatpush3.bf16.msra.mxu0 %v2766_v5 }
  0x42   : > { %2595 = vmatprep.subr.bf16.mxu0 %v2767_v6 }
  0x45   : > { %2596 = vmatpush3.bf16.msra.mxu0 %v2767_v6 }
  0x46   : > { %1077 = vmatmul.mubr.bf16.gmra.mrb[12].mxu1 %v2713_v38  ;;  %2597 = vmatprep.subr.bf16.mxu0 %v2768_v9 }
  0x47   : > { %1084 = vmatprep.mubr.bf16.mxu1 %v2714_v39 }
  0x48   : > { %2566 = vmatmul.mubr.bf16.gmra.mrb[12].mxu0 %v2726_v40 }
  0x49   : > { %2569 = vmatprep.mubr.bf16.mxu0 %v2733_v41  ;;  %2598 = vmatpush3.bf16.msra.mxu0 %v2768_v9 }
  0x4a   : > { %2599 = vmatprep.subr.bf16.mxu0 %v2769_v10 }
  0x4d   : > { %2600 = vmatpush3.bf16.msra.mxu0 %v2769_v10 }
  0x4e   : > { %1085 = vmatmul.mubr.bf16.gmra.mrb[16].mxu1 %v2716_v42 }
  0x4f   : > { %1092 = vmatprep.mubr.bf16.mxu1 %v2719_v43 }
  0x50   : > { %2570 = vmatmul.mubr.bf16.gmra.mrb[16].mxu0 %v2734_v44 }
  0x51   : > { %2573 = vmatprep.mubr.bf16.mxu0 %v2741_v46 }
  0x56   : > { %1093 = vmatmul.mubr.bf16.gmra.mrb[20].mxu1 %v2721_v49 }
  0x57   : > { %1100 = vmatprep.mubr.bf16.mxu1 %v2722_v50 }
  0x58   : > { %2574 = vmatmul.mubr.bf16.gmra.mrb[20].mxu0 %v2742_v51 }
  0x59   : > { %2577 = vmatprep.mubr.bf16.mxu0 %v2749_v52 }
  0x5e   : > { %1101 = vmatmul.mubr.bf16.gmra.mrb[24].mxu1 %v2724_v53 }
  0x5f   : > { %1108 = vmatprep.mubr.bf16.mxu1 %v2727_v54 }
  0x60   : > { %2578 = vmatmul.mubr.bf16.gmra.mrb[24].mxu0 %v2750_v55 }
  0x61   : > { %2581 = vmatprep.mubr.bf16.mxu0 %v2757_v56 }
  0x66   : > { %1109 = vmatmul.mubr.bf16.gmra.mrb[28].mxu1 %v2729_v57 }
  0x67   : > { %1116 = vmatprep.mubr.bf16.mxu1 %v2730_v58 }
  0x68   : > { %2582 = vmatmul.mubr.bf16.gmra.mrb[28].mxu0 %v2758_v59 }
  0x6e   : > { %1117 = vmatmul.mubr.bf16.gmra.mrb[32].mxu1 %v2732_v60 }
  0x6f   : > { %1124 = vmatprep.mubr.bf16.mxu1 %v2735_v61 }
  0x76   : > { %1125 = vmatmul.mubr.bf16.gmra.mrb[36].mxu1 %v2737_v62 }
  0x77   : > { %1132 = vmatprep.mubr.bf16.mxu1 %v2738_v63 }
  0x7e   : > { %1133 = vmatmul.mubr.bf16.gmra.mrb[40].mxu1 %v2740_v0 }
  0x7f   : > { %1140 = vmatprep.mubr.bf16.mxu1 %v2743_v1 }
  0x86   : > { %1141 = vmatmul.mubr.bf16.gmra.mrb[44].mxu1 %v2745_v3 }
  0x87   : > { %1148 = vmatprep.mubr.bf16.mxu1 %v2746_v4 }
  0x8e   : > { %1149 = vmatmul.mubr.bf16.gmra.mrb[48].mxu1 %v2748_v7 }
  0x8f   : > { %1156 = vmatprep.mubr.bf16.mxu1 %v2751_v8 }
  0x96   : > { %1157 = vmatmul.mubr.bf16.gmra.mrb[52].mxu1 %v2753_v11 }
  0x97   : > { %1164 = vmatprep.mubr.bf16.mxu1 %v2754_v12 }
  0x9e   : > { %1165 = vmatmul.mubr.bf16.gmra.mrb[56].mxu1 %v2756_v13 }
  0x9f   : > { %1172 = vmatprep.mubr.bf16.mxu1 %v2759_v14 }
  0xa6   : > { %1173 = vmatmul.mubr.bf16.gmra.mrb[60].mxu1 %v2761_v15 }
 0x101   : > { %v2417_v16 = vpop.f32.mrb[0].mxu1 }
 0x102   : > { %v2418_v17 = vpop.f32.mrb[1].mxu1 }
 0x103   : > { %v2419_v18 = vadd.f32 %v2418_v17, %v2417_v16  ;;  %v2555_v19 = vpop.f32.mrb[0].mxu0  ;;  %v2420_v20 = vpop.f32.mrb[2].mxu1 }
 0x104   : > { %v637_v21 = vpop.f32.mrb[1].mxu0  ;;  %v2421_v23 = vpop.f32.mrb[3].mxu1 }
 0x105   : > { %v1055_v24 = vadd.f32 %v2419_v18, %v637_v21  ;;  %v2422_v25 = vadd.f32 %v2421_v23, %v2420_v20  ;;  %v2556_v26 = vpop.f32.mrb[2].mxu0 }
 0x106   : > { %v640_v27 = vpop.f32.mrb[3].mxu0 }
 0x107   : > { %v1188_v28 = vadd.f32 %v3094_v22, %v1055_v24  ;;  %v1058_v29 = vadd.f32 %v2422_v25, %v640_v27 }
 0x109   : > { %v1189_v30 = vadd.f32 %v3094_v22, %v1058_v29  ;;  %v2423_v31 = vpop.f32.mrb[4].mxu1  ;;  %v1220_v33 = vmax.f32 %v1188_v28, 0.0 }
 0x10a   : > { %v2424_v32 = vpop.f32.mrb[5].mxu1 }
 0x10b   : > { %v1221_v34 = vmax.f32 %v1189_v30, 0.0  ;;  %v2425_v35 = vadd.f32 %v2424_v32, %v2423_v31  ;;  %v2426_v36 = vpop.f32.mrb[6].mxu1  ;;  %v2559_v37 = vpop.f32.mrb[4].mxu0 }
 0x10c   : > { %v2427_v38 = vpop.f32.mrb[7].mxu1  ;;  %v653_v39 = vpop.f32.mrb[5].mxu0 }
 0x10d   : > { %v1063_v40 = vadd.f32 %v2555_v19, %v2425_v35  ;;  %v2428_v41 = vadd.f32 %v2427_v38, %v2426_v36  ;;  %v1252_v42 = vpack.c.bf16 %v1221_v34, %v1220_v33  ;;  %v2560_v43 = vpop.f32.mrb[6].mxu0 }
 0x10e   : > { %v656_v44 = vpop.f32.mrb[7].mxu0 }
 0x10f   : > { %v1190_v45 = vadd.f32 %v3094_v22, %v1063_v40  ;;  %v1066_v46 = vadd.f32 %v2556_v26, %v2428_v41  ;;  %2191 = vst [vmem:[%s3102_s25] sm:$0xff] %v1252_v42   ;;  %2601 = vmatprep.mubr.bf16.mxu0 %v1252_v42 }
 0x111   : > { %v1191_v47 = vadd.f32 %v3094_v22, %v1066_v46  ;;  %v2429_v48 = vpop.f32.mrb[8].mxu1  ;;  %v1222_v50 = vmax.f32 %v1190_v45, 0.0 }
 0x112   : > { %v2430_v49 = vpop.f32.mrb[9].mxu1 }
 0x113   : > { %v1223_v51 = vmax.f32 %v1191_v47, 0.0  ;;  %v2431_v52 = vadd.f32 %v2430_v49, %v2429_v48  ;;  %v2432_v53 = vpop.f32.mrb[10].mxu1  ;;  %v2563_v54 = vpop.f32.mrb[8].mxu0 }
 0x114   : > { %v2433_v55 = vpop.f32.mrb[11].mxu1  ;;  %v669_v56 = vpop.f32.mrb[9].mxu0 }
 0x115   : > { %v1253_v57 = vpack.c.bf16 %v1223_v51, %v1222_v50  ;;  %v1071_v58 = vadd.f32 %v2431_v52, %v653_v39  ;;  %v2434_v59 = vadd.f32 %v2433_v55, %v2432_v53  ;;  %v2564_v60 = vpop.f32.mrb[10].mxu0 }
 0x116   : > { %v672_v61 = vpop.f32.mrb[11].mxu0 }
 0x117   : > { %2347 = vst [vmem:[%s3102_s25 + $0x8] sm:$0xff] %v1253_v57   ;;  %v1192_v62 = vadd.f32 %v3094_v22, %v1071_v58  ;;  %v1074_v63 = vadd.f32 %v2434_v59, %v656_v44  ;;  %2602 = vmatmul.mubr.bf16.vlgmr.msra.gmra.mrb[32].mxu0 %v1253_v57 }
 0x119   : > { %v1193_v0 = vadd.f32 %v3094_v22, %v1074_v63  ;;  %v2435_v1 = vpop.f32.mrb[12].mxu1  ;;  %v1224_v3 = vmax.f32 %v1192_v62, 0.0 }
 0x11a   : > { %v2436_v2 = vpop.f32.mrb[13].mxu1 }
 0x11b   : > { %v1225_v4 = vmax.f32 %v1193_v0, 0.0  ;;  %v2437_v5 = vadd.f32 %v2436_v2, %v2435_v1  ;;  %v2438_v6 = vpop.f32.mrb[14].mxu1  ;;  %v3109_v7 = vpop.f32.mrb[12].mxu0 }
 0x11c   : > { %v2439_v8 = vpop.f32.mrb[15].mxu1  ;;  %v685_v9 = vpop.f32.mrb[13].mxu0 }
 0x11d   : > { %v1079_v10 = vadd.f32 %v2559_v37, %v2437_v5  ;;  %v2440_v11 = vadd.f32 %v2439_v8, %v2438_v6  ;;  %v1254_v12 = vpack.c.bf16 %v1225_v4, %v1224_v3  ;;  %v3111_v13 = vpop.f32.mrb[14].mxu0 }
 0x11e   : > { %v688_v14 = vpop.f32.mrb[15].mxu0 }
 0x11f   : > { %v1194_v15 = vadd.f32 %v3094_v22, %v1079_v10  ;;  %v1082_v16 = vadd.f32 %v2560_v43, %v2440_v11  ;;  %2348 = vst [vmem:[%s3102_s25 + $0x10] sm:$0xff] %v1254_v12   ;;  %2605 = vmatprep.mubr.bf16.mxu0 %v1254_v12 }
 0x121   : > { %v1195_v17 = vadd.f32 %v3094_v22, %v1082_v16  ;;  %v2441_v18 = vpop.f32.mrb[16].mxu1  ;;  %v1226_v20 = vmax.f32 %v1194_v15, 0.0 }
 0x122   : > { %v2442_v19 = vpop.f32.mrb[17].mxu1 }
 0x123   : > { %v1227_v21 = vmax.f32 %v1195_v17, 0.0  ;;  %v2443_v23 = vadd.f32 %v2442_v19, %v2441_v18  ;;  %v2444_v24 = vpop.f32.mrb[18].mxu1  ;;  %v3116_v25 = vpop.f32.mrb[16].mxu0 }
 0x124   : > { %v2445_v26 = vpop.f32.mrb[19].mxu1  ;;  %v3118_v27 = vpop.f32.mrb[17].mxu0 }
 0x125   : > { %v1087_v28 = vadd.f32 %v2443_v23, %v669_v56  ;;  %v2446_v29 = vadd.f32 %v2445_v26, %v2444_v24  ;;  %v1255_v30 = vpack.c.bf16 %v1227_v21, %v1226_v20  ;;  %v3120_v31 = vpop.f32.mrb[18].mxu0 }
 0x126   : > { %v3122_v32 = vpop.f32.mrb[19].mxu0 }
 0x127   : > { %v1196_v33 = vadd.f32 %v3094_v22, %v1087_v28  ;;  %v1090_v34 = vadd.f32 %v2446_v29, %v672_v61  ;;  %2349 = vst [vmem:[%s3102_s25 + $0x18] sm:$0xff] %v1255_v30   ;;  %2606 = vmatmul.mubr.bf16.gmra.mrb[36].mxu0 %v1255_v30 }
 0x129   : > { %v1197_v35 = vadd.f32 %v3094_v22, %v1090_v34  ;;  %v2447_v36 = vpop.f32.mrb[20].mxu1  ;;  %v1228_v38 = vmax.f32 %v1196_v33, 0.0 }
 0x12a   : > { %v2448_v37 = vpop.f32.mrb[21].mxu1 }
 0x12b   : > { %v1229_v39 = vmax.f32 %v1197_v35, 0.0  ;;  %v2449_v40 = vadd.f32 %v2448_v37, %v2447_v36  ;;  %v2450_v41 = vpop.f32.mrb[22].mxu1  ;;  %v3127_v42 = vpop.f32.mrb[20].mxu0 }
 0x12c   : > { %v2451_v43 = vpop.f32.mrb[23].mxu1  ;;  %v3129_v44 = vpop.f32.mrb[21].mxu0 }
 0x12d   : > { %v1095_v45 = vadd.f32 %v2563_v54, %v2449_v40  ;;  %v2452_v46 = vadd.f32 %v2451_v43, %v2450_v41  ;;  %v1256_v47 = vpack.c.bf16 %v1229_v39, %v1228_v38  ;;  %v3131_v48 = vpop.f32.mrb[22].mxu0 }
 0x12e   : > { %v3133_v49 = vpop.f32.mrb[23].mxu0 }
 0x12f   : > { %v1198_v50 = vadd.f32 %v3094_v22, %v1095_v45  ;;  %v1098_v51 = vadd.f32 %v2564_v60, %v2452_v46  ;;  %2350 = vst [vmem:[%s3102_s25 + $0x20] sm:$0xff] %v1256_v47   ;;  %2609 = vmatprep.mubr.bf16.mxu0 %v1256_v47 }
 0x131   : > { %v1199_v52 = vadd.f32 %v3094_v22, %v1098_v51  ;;  %v2453_v53 = vpop.f32.mrb[24].mxu1  ;;  %v1230_v56 = vmax.f32 %v1198_v50, 0.0 }
 0x132   : > { %v2454_v55 = vpop.f32.mrb[25].mxu1 }
 0x133   : > { %v1231_v57 = vmax.f32 %v1199_v52, 0.0  ;;  %v2455_v58 = vadd.f32 %v2454_v55, %v2453_v53  ;;  %v2456_v54 = vpop.f32.mrb[26].mxu1  ;;  %v3138_v59 = vpop.f32.mrb[24].mxu0 }
 0x134   : > { %v2457_v61 = vpop.f32.mrb[27].mxu1  ;;  %v3140_v62 = vpop.f32.mrb[25].mxu0 }
 0x135   : > { %v1103_v63 = vadd.f32 %v2455_v58, %v685_v9  ;;  %v2458_v0 = vadd.f32 %v2457_v61, %v2456_v54  ;;  %v1257_v1 = vpack.c.bf16 %v1231_v57, %v1230_v56  ;;  %v3142_v60 = vpop.f32.mrb[26].mxu0 }
 0x136   : > { %v3144_v2 = vpop.f32.mrb[27].mxu0 }
 0x137   : > { %v1200_v3 = vadd.f32 %v3094_v22, %v1103_v63  ;;  %v1106_v4 = vadd.f32 %v2458_v0, %v688_v14  ;;  %2351 = vst [vmem:[%s3102_s25 + $0x28] sm:$0xff] %v1257_v1   ;;  %2610 = vmatmul.mubr.bf16.gmra.mrb[40].mxu0 %v1257_v1 }
 0x139   : > { %v1201_v5 = vadd.f32 %v3094_v22, %v1106_v4  ;;  %v2459_v6 = vpop.f32.mrb[28].mxu1  ;;  %v1232_v10 = vmax.f32 %v1200_v3, 0.0 }
 0x13a   : > { %v2460_v8 = vpop.f32.mrb[29].mxu1 }
 0x13b   : > { %v1233_v11 = vmax.f32 %v1201_v5, 0.0  ;;  %v2461_v12 = vadd.f32 %v2460_v8, %v2459_v6  ;;  %v2462_v9 = vpop.f32.mrb[30].mxu1  ;;  %v3149_v15 = vpop.f32.mrb[28].mxu0 }
 0x13c   : > { %v2463_v16 = vpop.f32.mrb[31].mxu1  ;;  %v3151_v17 = vpop.f32.mrb[29].mxu0 }
 0x13d   : > { %v1111_v18 = vadd.f32 %v3109_v7, %v2461_v12  ;;  %v2464_v19 = vadd.f32 %v2463_v16, %v2462_v9  ;;  %v1258_v14 = vpack.c.bf16 %v1233_v11, %v1232_v10  ;;  %v3154_v20 = vpop.f32.mrb[30].mxu0 }
 0x13e   : > { %v3156_v21 = vpop.f32.mrb[31].mxu0 }
 0x13f   : > { %v1202_v23 = vadd.f32 %v3094_v22, %v1111_v18  ;;  %v1114_v24 = vadd.f32 %v3111_v13, %v2464_v19  ;;  %2352 = vst [vmem:[%s3102_s25 + $0x30] sm:$0xff] %v1258_v14   ;;  %2613 = vmatprep.mubr.bf16.mxu0 %v1258_v14 }
 0x141   : > { %v1203_v26 = vadd.f32 %v3094_v22, %v1114_v24  ;;  %v2465_v28 = vpop.f32.mrb[32].mxu1  ;;  %v1234_v30 = vmax.f32 %v1202_v23, 0.0 }
 0x142   : > { %v2466_v29 = vpop.f32.mrb[33].mxu1 }
 0x143   : > { %v1235_v33 = vmax.f32 %v1203_v26, 0.0  ;;  %v2467_v7 = vadd.f32 %v2466_v29, %v2465_v28  ;;  %v2468_v34 = vpop.f32.mrb[34].mxu1 }
 0x144   : > { %v2469_v35 = vpop.f32.mrb[35].mxu1 }
 0x145   : > { %v1119_v36 = vadd.f32 %v2467_v7, %v3118_v27  ;;  %v2470_v37 = vadd.f32 %v2469_v35, %v2468_v34  ;;  %v1259_v38 = vpack.c.bf16 %v1235_v33, %v1234_v30 }
 0x147   : > { %v1204_v39 = vadd.f32 %v3094_v22, %v1119_v36  ;;  %v1122_v13 = vadd.f32 %v2470_v37, %v3122_v32  ;;  %2353 = vst [vmem:[%s3102_s25 + $0x38] sm:$0xff] %v1259_v38   ;;  %2614 = vmatmul.mubr.bf16.gmra.mrb[44].mxu0 %v1259_v38 }
 0x149   : > { %v1205_v40 = vadd.f32 %v3094_v22, %v1122_v13  ;;  %v2471_v41 = vpop.f32.mrb[36].mxu1  ;;  %v1236_v45 = vmax.f32 %v1204_v39, 0.0 }
 0x14a   : > { %v2472_v43 = vpop.f32.mrb[37].mxu1 }
 0x14b   : > { %v1237_v46 = vmax.f32 %v1205_v40, 0.0  ;;  %v2473_v47 = vadd.f32 %v2472_v43, %v2471_v41  ;;  %v2474_v50 = vpop.f32.mrb[38].mxu1 }
 0x14c   : > { %v2475_v51 = vpop.f32.mrb[39].mxu1 }
 0x14d   : > { %v1127_v27 = vadd.f32 %v3116_v25, %v2473_v47  ;;  %v2476_v52 = vadd.f32 %v2475_v51, %v2474_v50  ;;  %v1260_v53 = vpack.c.bf16 %v1237_v46, %v1236_v45 }
 0x14f   : > { %v1206_v55 = vadd.f32 %v3094_v22, %v1127_v27  ;;  %v1130_v32 = vadd.f32 %v3120_v31, %v2476_v52  ;;  %2354 = vst [vmem:[%s3102_s25 + $0x40] sm:$0xff] %v1260_v53   ;;  %2617 = vmatprep.mubr.bf16.mxu0 %v1260_v53 }
 0x151   : > { %v1207_v56 = vadd.f32 %v3094_v22, %v1130_v32  ;;  %v2477_v57 = vpop.f32.mrb[40].mxu1  ;;  %v1238_v54 = vmax.f32 %v1206_v55, 0.0 }
 0x152   : > { %v2478_v58 = vpop.f32.mrb[41].mxu1 }
 0x153   : > { %v1239_v61 = vmax.f32 %v1207_v56, 0.0  ;;  %v2479_v63 = vadd.f32 %v2478_v58, %v2477_v57  ;;  %v2480_v0 = vpop.f32.mrb[42].mxu1 }
 0x154   : > { %v2481_v1 = vpop.f32.mrb[43].mxu1 }
 0x155   : > { %v1135_v25 = vadd.f32 %v2479_v63, %v3129_v44  ;;  %v2482_v3 = vadd.f32 %v2481_v1, %v2480_v0  ;;  %v1261_v4 = vpack.c.bf16 %v1239_v61, %v1238_v54 }
 0x157   : > { %v1208_v5 = vadd.f32 %v3094_v22, %v1135_v25  ;;  %v1138_v31 = vadd.f32 %v2482_v3, %v3133_v49  ;;  %2355 = vst [vmem:[%s3102_s25 + $0x48] sm:$0xff] %v1261_v4   ;;  %2618 = vmatmul.mubr.bf16.gmra.mrb[48].mxu0 %v1261_v4 }
 0x159   : > { %v1209_v6 = vadd.f32 %v3094_v22, %v1138_v31  ;;  %v2483_v8 = vpop.f32.mrb[44].mxu1  ;;  %v1240_v11 = vmax.f32 %v1208_v5, 0.0 }
 0x15a   : > { %v2484_v10 = vpop.f32.mrb[45].mxu1 }
 0x15b   : > { %v1241_v12 = vmax.f32 %v1209_v6, 0.0  ;;  %v2485_v9 = vadd.f32 %v2484_v10, %v2483_v8  ;;  %v2486_v16 = vpop.f32.mrb[46].mxu1 }
 0x15c   : > { %v2487_v18 = vpop.f32.mrb[47].mxu1 }
 0x15d   : > { %v1143_v44 = vadd.f32 %v3127_v42, %v2485_v9  ;;  %v2488_v19 = vadd.f32 %v2487_v18, %v2486_v16  ;;  %v1262_v14 = vpack.c.bf16 %v1241_v12, %v1240_v11 }
 0x15f   : > { %v1210_v23 = vadd.f32 %v3094_v22, %v1143_v44  ;;  %v1146_v49 = vadd.f32 %v3131_v48, %v2488_v19  ;;  %2356 = vst [vmem:[%s3102_s25 + $0x50] sm:$0xff] %v1262_v14   ;;  %2621 = vmatprep.mubr.bf16.mxu0 %v1262_v14 }
 0x161   : > { %v1211_v24 = vadd.f32 %v3094_v22, %v1146_v49  ;;  %v2489_v26 = vpop.f32.mrb[48].mxu1  ;;  %v1242_v29 = vmax.f32 %v1210_v23, 0.0 }
 0x162   : > { %v2490_v28 = vpop.f32.mrb[49].mxu1 }
 0x163   : > { %v1243_v30 = vmax.f32 %v1211_v24, 0.0  ;;  %v2491_v33 = vadd.f32 %v2490_v28, %v2489_v26  ;;  %v2492_v7 = vpop.f32.mrb[50].mxu1 }
 0x164   : > { %v2493_v34 = vpop.f32.mrb[51].mxu1 }
 0x165   : > { %v1151_v42 = vadd.f32 %v2491_v33, %v3140_v62  ;;  %v2494_v35 = vadd.f32 %v2493_v34, %v2492_v7  ;;  %v1263_v36 = vpack.c.bf16 %v1243_v30, %v1242_v29 }
 0x167   : > { %v1212_v37 = vadd.f32 %v3094_v22, %v1151_v42  ;;  %v1154_v48 = vadd.f32 %v2494_v35, %v3144_v2  ;;  %2357 = vst [vmem:[%s3102_s25 + $0x58] sm:$0xff] %v1263_v36   ;;  %2622 = vmatmul.mubr.bf16.gmra.mrb[52].mxu0 %v1263_v36 }
 0x169   : > { %v1213_v38 = vadd.f32 %v3094_v22, %v1154_v48  ;;  %v2495_v39 = vpop.f32.mrb[52].mxu1  ;;  %v1244_v40 = vmax.f32 %v1212_v37, 0.0 }
 0x16a   : > { %v2496_v13 = vpop.f32.mrb[53].mxu1 }
 0x16b   : > { %v1245_v41 = vmax.f32 %v1213_v38, 0.0  ;;  %v2497_v43 = vadd.f32 %v2496_v13, %v2495_v39  ;;  %v2498_v45 = vpop.f32.mrb[54].mxu1 }
 0x16c   : > { %v2499_v46 = vpop.f32.mrb[55].mxu1 }
 0x16d   : > { %v1159_v62 = vadd.f32 %v3138_v59, %v2497_v43  ;;  %v2500_v47 = vadd.f32 %v2499_v46, %v2498_v45  ;;  %v1264_v50 = vpack.c.bf16 %v1245_v41, %v1244_v40 }
 0x16f   : > { %v1214_v51 = vadd.f32 %v3094_v22, %v1159_v62  ;;  %v1162_v2 = vadd.f32 %v3142_v60, %v2500_v47  ;;  %2358 = vst [vmem:[%s3102_s25 + $0x60] sm:$0xff] %v1264_v50   ;;  %2625 = vmatprep.mubr.bf16.mxu0 %v1264_v50 }
 0x171   : > { %v1215_v27 = vadd.f32 %v3094_v22, %v1162_v2  ;;  %v2501_v52 = vpop.f32.mrb[56].mxu1  ;;  %v1246_v55 = vmax.f32 %v1214_v51, 0.0 }
 0x172   : > { %v2502_v53 = vpop.f32.mrb[57].mxu1 }
 0x173   : > { %v1247_v32 = vmax.f32 %v1215_v27, 0.0  ;;  %v2503_v56 = vadd.f32 %v2502_v53, %v2501_v52  ;;  %v2504_v57 = vpop.f32.mrb[58].mxu1 }
 0x174   : > { %v2505_v58 = vpop.f32.mrb[59].mxu1 }
 0x175   : > { %v1167_v59 = vadd.f32 %v2503_v56, %v3151_v17  ;;  %v2506_v54 = vadd.f32 %v2505_v58, %v2504_v57  ;;  %v1265_v61 = vpack.c.bf16 %v1247_v32, %v1246_v55 }
 0x177   : > { %v1216_v63 = vadd.f32 %v3094_v22, %v1167_v59  ;;  %v1170_v60 = vadd.f32 %v2506_v54, %v3156_v21  ;;  %2359 = vst [vmem:[%s3102_s25 + $0x68] sm:$0xff] %v1265_v61   ;;  %2626 = vmatmul.mubr.bf16.gmra.mrb[56].mxu0 %v1265_v61 }
 0x179   : > { %v1217_v0 = vadd.f32 %v3094_v22, %v1170_v60  ;;  %v2507_v1 = vpop.f32.mrb[60].mxu1  ;;  %v1248_v3 = vmax.f32 %v1216_v63, 0.0 }
 0x17a   : > { %v2508_v25 = vpop.f32.mrb[61].mxu1 }
 0x17b   : > { %v1249_v4 = vmax.f32 %v1217_v0, 0.0  ;;  %v2509_v5 = vadd.f32 %v2508_v25, %v2507_v1  ;;  %v2510_v31 = vpop.f32.mrb[62].mxu1 }
 0x17c   : > { %v2511_v17 = vpop.f32.mrb[63].mxu1 }
 0x17d   : > { %v1175_v6 = vadd.f32 %v3149_v15, %v2509_v5  ;;  %v2512_v8 = vadd.f32 %v2511_v17, %v2510_v31  ;;  %v1266_v21 = vpack.c.bf16 %v1249_v4, %v1248_v3 }
 0x17f   : > { %v1218_v10 = vadd.f32 %v3094_v22, %v1175_v6  ;;  %v1178_v11 = vadd.f32 %v3154_v20, %v2512_v8  ;;  %2360 = vst [vmem:[%s3102_s25 + $0x70] sm:$0xff] %v1266_v21   ;;  %2629 = vmatprep.mubr.bf16.mxu0 %v1266_v21 }
 0x181   : > { %v1219_v12 = vadd.f32 %v3094_v22, %v1178_v11  ;;  %v1250_v9 = vmax.f32 %v1218_v10, 0.0 }
 0x183   : > { %v1251_v16 = vmax.f32 %v1219_v12, 0.0 }
 0x185   : > { %v1267_v18 = vpack.c.bf16 %v1251_v16, %v1250_v9 }
 0x187   : > { %2361 = vst [vmem:[%s3102_s25 + $0x78] sm:$0xff] %v1267_v18   ;;  %2630 = vmatmul.mubr.bf16.gmra.mrb[60].mxu0 %v1267_v18 }
 0x188   : > { %2783 = shalt.err (!%p2780_p3)
}
 0x189   : > { %s2784_s13 = scalar_lea.hbm %s3208_s20, 2048  ;;  %s2788_s17 = scalar_lea.hbm %s3322_s7, 4096 }
 0x18a   : > { %p2785_p4 = scmp.ne.s32.totalorder %s3208_s20, %s2784_s13  ;;  %p2789_p9 = scmp.lt.u32.totalorder %s3208_s20, %s3322_s7 }
 0x18b   : > { %p2790_p10 = scmp.lt.u32.totalorder %s2788_s17, %s2784_s13  ;;  %p2792_p12 = scmp.lt.u32.totalorder %s2784_s13, %s3208_s20 }
 0x18c   : > { %p2786_p7 = pnand %p2785_p4, %p2920_p5 }
 0x18d   : > { %p2791_p11 = por %p2790_p10, %p2789_p9 }
 0x18e   : > { %p2787_p8 = pneg %p2786_p7 }
 0x18f   : > { %p2793_p13 = por %p2792_p12, %p2791_p11 }
 0x191   : > { %p2794_p0 = pnand %p2793_p13, %p2787_p8 }
 0x193   : > { %2797 = shalt.err (!%p2794_p0)
}
 0x194   : > { %s2835_s21 = smov 64   ;;  %s2836_s24 = smov 4   ;;  %v3241_v22 = vld [vmem:[%s3321_s6] ss:$0 sm:$0xff] }
 0x195   : > { %2633 = dma.vmem_to_hbm [thread:$0]  (%p2920_p5), %s3210_s12, 2048, %s3208_s20, %s3214_s23, %s2835_s21, %s2835_s21, %s2836_s24  }
 0x196   : > { %s3252_s20 = scalar_lea.vmem %s3323_s8, %s1967_s19 }
 0x1ea   : > { %v2603_v15 = vpop.f32.mrb[32].mxu0 }
 0x1eb   : > { %v1526_v20 = vadd.f32 %v2603_v15, %v3241_v22  ;;  %v1517_v44 = vpop.f32.mrb[33].mxu0 }
 0x1ec   : > { %v1518_v19 = vadd.f32 %v3241_v22, %v1517_v44  ;;  %v2604_v14 = vpop.f32.mrb[34].mxu0 }
 0x1ed   : > { %v1529_v23 = vadd.f32 %v2604_v14, %v3241_v22  ;;  %v1520_v49 = vpop.f32.mrb[35].mxu0  ;;  %v1646_v26 = vmax.f32 %v1526_v20, 0.0 }
 0x1ee   : > { %v1521_v24 = vadd.f32 %v3241_v22, %v1520_v49  ;;  %v1644_v29 = vmax.f32 %v1518_v19, 0.0 }
 0x1ef   : > { %v1647_v28 = vmax.f32 %v1529_v23, 0.0 }
 0x1f0   : > { %v1645_v30 = vmax.f32 %v1521_v24, 0.0 }
 0x1f1   : > { %v2275_v33 = vpack.c.bf16 %v1647_v28, %v1646_v26 }
 0x1f2   : > { %v2270_v7 = vpack.c.bf16 %v1645_v30, %v1644_v29 }
 0x1f3   : > { %2362 = vst [vmem:[%s3252_s20 + $0x8] sm:$0xff] %v2275_v33  }
 0x1f4   : > { %2271 = vst [vmem:[%s3252_s20] sm:$0xff] %v2270_v7  }
 0x1fa   : > { %v2607_v34 = vpop.f32.mrb[36].mxu0 }
 0x1fb   : > { %v1542_v42 = vadd.f32 %v2607_v34, %v3241_v22  ;;  %v1533_v35 = vpop.f32.mrb[37].mxu0 }
 0x1fc   : > { %v1534_v36 = vadd.f32 %v3241_v22, %v1533_v35  ;;  %v2608_v37 = vpop.f32.mrb[38].mxu0 }
 0x1fd   : > { %v1545_v48 = vadd.f32 %v2608_v37, %v3241_v22  ;;  %v1536_v38 = vpop.f32.mrb[39].mxu0  ;;  %v1650_v13 = vmax.f32 %v1542_v42, 0.0 }
 0x1fe   : > { %v1537_v39 = vadd.f32 %v3241_v22, %v1536_v38  ;;  %v1648_v41 = vmax.f32 %v1534_v36, 0.0 }
 0x1ff   : > { %v1651_v40 = vmax.f32 %v1545_v48, 0.0 }
 0x200   : > { %v1649_v43 = vmax.f32 %v1537_v39, 0.0 }
 0x201   : > { %v2285_v45 = vpack.c.bf16 %v1651_v40, %v1650_v13 }
 0x202   : > { %v2280_v46 = vpack.c.bf16 %v1649_v43, %v1648_v41 }
 0x203   : > { %2364 = vst [vmem:[%s3252_s20 + $0x18] sm:$0xff] %v2285_v45  }
 0x204   : > { %2363 = vst [vmem:[%s3252_s20 + $0x10] sm:$0xff] %v2280_v46  }
 0x20a   : > { %v2611_v62 = vpop.f32.mrb[40].mxu0 }
 0x20b   : > { %v1558_v47 = vadd.f32 %v2611_v62, %v3241_v22  ;;  %v1549_v50 = vpop.f32.mrb[41].mxu0 }
 0x20c   : > { %v1550_v51 = vadd.f32 %v3241_v22, %v1549_v50  ;;  %v2612_v2 = vpop.f32.mrb[42].mxu0 }
 0x20d   : > { %v1561_v27 = vadd.f32 %v2612_v2, %v3241_v22  ;;  %v1552_v52 = vpop.f32.mrb[43].mxu0  ;;  %v1654_v55 = vmax.f32 %v1558_v47, 0.0 }
 0x20e   : > { %v1553_v53 = vadd.f32 %v3241_v22, %v1552_v52  ;;  %v1652_v56 = vmax.f32 %v1550_v51, 0.0 }
 0x20f   : > { %v1655_v32 = vmax.f32 %v1561_v27, 0.0 }
 0x210   : > { %v1653_v57 = vmax.f32 %v1553_v53, 0.0 }
 0x211   : > { %v2295_v58 = vpack.c.bf16 %v1655_v32, %v1654_v55 }
 0x212   : > { %v2290_v59 = vpack.c.bf16 %v1653_v57, %v1652_v56 }
 0x213   : > { %2366 = vst [vmem:[%s3252_s20 + $0x28] sm:$0xff] %v2295_v58  }
 0x214   : > { %2365 = vst [vmem:[%s3252_s20 + $0x20] sm:$0xff] %v2290_v59  }
 0x21a   : > { %v2615_v54 = vpop.f32.mrb[44].mxu0 }
 0x21b   : > { %v1574_v61 = vadd.f32 %v2615_v54, %v3241_v22  ;;  %v1565_v63 = vpop.f32.mrb[45].mxu0 }
 0x21c   : > { %v1566_v60 = vadd.f32 %v3241_v22, %v1565_v63  ;;  %v2616_v0 = vpop.f32.mrb[46].mxu0 }
 0x21d   : > { %v1577_v1 = vadd.f32 %v2616_v0, %v3241_v22  ;;  %v1568_v25 = vpop.f32.mrb[47].mxu0  ;;  %v1658_v4 = vmax.f32 %v1574_v61, 0.0 }
 0x21e   : > { %v1569_v3 = vadd.f32 %v3241_v22, %v1568_v25  ;;  %v1656_v31 = vmax.f32 %v1566_v60, 0.0 }
 0x21f   : > { %v1659_v5 = vmax.f32 %v1577_v1, 0.0 }
 0x220   : > { %v1657_v17 = vmax.f32 %v1569_v3, 0.0 }
 0x221   : > { %v2305_v6 = vpack.c.bf16 %v1659_v5, %v1658_v4 }
 0x222   : > { %v2300_v8 = vpack.c.bf16 %v1657_v17, %v1656_v31 }
 0x223   : > { %2368 = vst [vmem:[%s3252_s20 + $0x38] sm:$0xff] %v2305_v6  }
 0x224   : > { %2367 = vst [vmem:[%s3252_s20 + $0x30] sm:$0xff] %v2300_v8  }
 0x22a   : > { %v2619_v21 = vpop.f32.mrb[48].mxu0 }
 0x22b   : > { %v1590_v10 = vadd.f32 %v2619_v21, %v3241_v22  ;;  %v1581_v11 = vpop.f32.mrb[49].mxu0 }
 0x22c   : > { %v1582_v12 = vadd.f32 %v3241_v22, %v1581_v11  ;;  %v2620_v9 = vpop.f32.mrb[50].mxu0 }
 0x22d   : > { %v1593_v16 = vadd.f32 %v2620_v9, %v3241_v22  ;;  %v1584_v18 = vpop.f32.mrb[51].mxu0  ;;  %v1662_v20 = vmax.f32 %v1590_v10, 0.0 }
 0x22e   : > { %v1585_v15 = vadd.f32 %v3241_v22, %v1584_v18  ;;  %v1660_v19 = vmax.f32 %v1582_v12, 0.0 }
 0x22f   : > { %v1663_v44 = vmax.f32 %v1593_v16, 0.0 }
 0x230   : > { %v1661_v14 = vmax.f32 %v1585_v15, 0.0 }
 0x231   : > { %v2315_v23 = vpack.c.bf16 %v1663_v44, %v1662_v20 }
 0x232   : > { %v2310_v49 = vpack.c.bf16 %v1661_v14, %v1660_v19 }
 0x233   : > { %2370 = vst [vmem:[%s3252_s20 + $0x48] sm:$0xff] %v2315_v23  }
 0x234   : > { %2369 = vst [vmem:[%s3252_s20 + $0x40] sm:$0xff] %v2310_v49  }
 0x23a   : > { %v2623_v24 = vpop.f32.mrb[52].mxu0 }
 0x23b   : > { %v1606_v26 = vadd.f32 %v2623_v24, %v3241_v22  ;;  %v1597_v28 = vpop.f32.mrb[53].mxu0 }
 0x23c   : > { %v1598_v29 = vadd.f32 %v3241_v22, %v1597_v28  ;;  %v2624_v30 = vpop.f32.mrb[54].mxu0 }
 0x23d   : > { %v1609_v33 = vadd.f32 %v2624_v30, %v3241_v22  ;;  %v1600_v7 = vpop.f32.mrb[55].mxu0  ;;  %v1666_v42 = vmax.f32 %v1606_v26, 0.0 }
 0x23e   : > { %v1601_v34 = vadd.f32 %v3241_v22, %v1600_v7  ;;  %v1664_v36 = vmax.f32 %v1598_v29, 0.0 }
 0x23f   : > { %v1667_v35 = vmax.f32 %v1609_v33, 0.0 }
 0x240   : > { %v1665_v37 = vmax.f32 %v1601_v34, 0.0 }
 0x241   : > { %v2325_v48 = vpack.c.bf16 %v1667_v35, %v1666_v42 }
 0x242   : > { %v2320_v38 = vpack.c.bf16 %v1665_v37, %v1664_v36 }
 0x243   : > { %2372 = vst [vmem:[%s3252_s20 + $0x58] sm:$0xff] %v2325_v48  }
 0x244   : > { %2371 = vst [vmem:[%s3252_s20 + $0x50] sm:$0xff] %v2320_v38  }
 0x24a   : > { %v2627_v39 = vpop.f32.mrb[56].mxu0 }
 0x24b   : > { %v1622_v13 = vadd.f32 %v2627_v39, %v3241_v22  ;;  %v1613_v40 = vpop.f32.mrb[57].mxu0 }
 0x24c   : > { %v1614_v41 = vadd.f32 %v3241_v22, %v1613_v40  ;;  %v2628_v43 = vpop.f32.mrb[58].mxu0 }
 0x24d   : > { %v1625_v45 = vadd.f32 %v2628_v43, %v3241_v22  ;;  %v1616_v46 = vpop.f32.mrb[59].mxu0  ;;  %v1670_v47 = vmax.f32 %v1622_v13, 0.0 }
 0x24e   : > { %v1617_v62 = vadd.f32 %v3241_v22, %v1616_v46  ;;  %v1668_v51 = vmax.f32 %v1614_v41, 0.0 }
 0x24f   : > { %v1671_v50 = vmax.f32 %v1625_v45, 0.0 }
 0x250   : > { %v1669_v2 = vmax.f32 %v1617_v62, 0.0 }
 0x251   : > { %v2335_v27 = vpack.c.bf16 %v1671_v50, %v1670_v47 }
 0x252   : > { %v2330_v52 = vpack.c.bf16 %v1669_v2, %v1668_v51 }
 0x253   : > { %2374 = vst [vmem:[%s3252_s20 + $0x68] sm:$0xff] %v2335_v27  }
 0x254   : > { %2373 = vst [vmem:[%s3252_s20 + $0x60] sm:$0xff] %v2330_v52  }
 0x25a   : > { %v2631_v53 = vpop.f32.mrb[60].mxu0 }
 0x25b   : > { %v1638_v55 = vadd.f32 %v2631_v53, %v3241_v22  ;;  %v1629_v32 = vpop.f32.mrb[61].mxu0 }
 0x25c   : > { %v1630_v56 = vadd.f32 %v3241_v22, %v1629_v32  ;;  %v2632_v57 = vpop.f32.mrb[62].mxu0 }
 0x25d   : > { %v1641_v58 = vadd.f32 %v2632_v57, %v3241_v22  ;;  %v1632_v59 = vpop.f32.mrb[63].mxu0  ;;  %v1674_v61 = vmax.f32 %v1638_v55, 0.0 }
 0x25e   : > { %v1633_v54 = vadd.f32 %v3241_v22, %v1632_v59  ;;  %v1672_v60 = vmax.f32 %v1630_v56, 0.0 }
 0x25f   : > { %v1675_v63 = vmax.f32 %v1641_v58, 0.0 }
 0x260   : > { %v1673_v0 = vmax.f32 %v1633_v54, 0.0 }
 0x261   : > { %v2345_v1 = vpack.c.bf16 %v1675_v63, %v1674_v61 }
 0x262   : > { %v2340_v25 = vpack.c.bf16 %v1673_v0, %v1672_v60 }
 0x263   : > { %2376 = vst [vmem:[%s3252_s20 + $0x78] sm:$0xff] %v2345_v1  }
 0x264   : > { %2375 = vst [vmem:[%s3252_s20 + $0x70] sm:$0xff] %v2340_v25  }
 0x265 PF: > { %p2639_p5 = scmp.ge.s32.totalorder %s2832_s30, 2  ;;  %s1874_s22 = sand.u32 1, %s2820_s27  }
 0x266   : > { %s1875_s19 = scalar_lea.sflag [#allocation3], %s1874_s22 }
 0x267   : > { %p2636_p1 = pnand %p2639_p5, %p2924_p6 }
 0x269   : > { %2815 = dma.done.wait (!%p2636_p1), %s1875_s19, 2048  }
 0x26a   : > { %2817 = vsyncadd (!%p2636_p1), %s1875_s19, 4294965248  ;;  %p19_p2 = scmp.ge.s32.totalorder %s2907_s11, 4   ;;  %s3326_s27 = smov %s2824_s28 }
 0x26b   : > { %s3327_s28 = smov %s2828_s29  ;;  %s3328_s29 = smov %s2918_s14 }
 0x26c   : > { %s3329_s30 = smov %s2907_s11  ;;  %21 = sbr.rel (!%p19_p2) target bundleno = 3 (0x3), region = 98 }
 0x273   :  { %1888 = vsyncpa [#allocation3], 1 }
 0x274   :  { %1890 = vsyncpa [#allocation3 + $0x1], 1 }

// kernel: upsample_module_fwd.13
= control target key start
LH: loop header
LB: loop body
LE: loop exit
PB: predicated region body
PF: predicated region fallthrough
CT: control target
= control target key end

     0   :  { %s3111_s12 = smov 0   ;;  %s3683_s0 = inlined_call_operand.vmem [shape: bf16[2,10,10,128], index: 0, kind: input, shape index: {}]   ;;  %s3684_s1 = inlined_call_operand.vmem [shape: bf16[9,128,128], index: 1, kind: input, shape index: {}]   ;;  %s3685_s2 = inlined_call_operand.vmem [shape: f32[1,128], index: 2, kind: input, shape index: {}]   ;;  %s3686_s3 = inlined_call_operand.vmem [shape: bf16[2,8,8,128], index: 3, kind: output, shape index: {}]  }
   0x1 LB: > { %s2227_s13 = sadd.s32 4294967295, %s3089_s12   ;;  %p2231_p0 = scmp.ge.s32.totalorder %s3089_s12, 1  ;;  %s3089_s12 = sphi %s3111_s12, %s13_s12  }
   0x2   : > { %p137_p1 = scmp.lt.s32.totalorder %s3089_s12, 3 }
   0x4   : > { %p138_p2 = pnand %p2231_p0, %p137_p1 }
   0x5   : > { %v2999_v0 = vld [vmem:[%s3684_s1 + $0x40] sm:$0xff] (!%p138_p2)   ;;  %p161_p3 = scmp.lt.s32.totalorder (!%p138_p2), %s2227_s13, 1  ;;  %v3001_v2 = vld [vmem:[%s3684_s1 + $0x48] sm:$0xff] (!%p138_p2)   ;;  %v3003_v4 = vld [vmem:[%s3684_s1 + $0x50] sm:$0xff] (!%p138_p2)   ;;  %vm204_vm0 = vsmask.f32 (!%p138_p2), 3328 }
   0x6   : > { %141 = sbr.rel (%p138_p2) target bundleno = 394 (0x18a), region = 32  ;;  %v3000_v1 = vld [vmem:[%s3684_s1 + $0x100] sm:$0xff] (!%p138_p2)   ;;  %2694 = vmatprep.subr.bf16.mxu1 (!%p138_p2), %v2999_v0  ;;  %v3002_v3 = vld [vmem:[%s3684_s1 + $0x108] sm:$0xff] (!%p138_p2)   ;;  %v3004_v5 = vld [vmem:[%s3684_s1 + $0x110] sm:$0xff] (!%p138_p2)   ;;  %vm205_vm1 = vsmask.f32 (!%p138_p2), 7440 }
   0x7   : > { %2790 = vmatprep.subr.bf16.mxu0 (!%p138_p2), %v3000_v1  ;;  %2695 = vmatpush3.bf16.msra.mxu1 (!%p138_p2), %v2999_v0  ;;  %v3005_v6 = vld [vmem:[%s3684_s1 + $0x58] sm:$0xff] (!%p138_p2)   ;;  %v3007_v8 = vld [vmem:[%s3684_s1 + $0x60] sm:$0xff] (!%p138_p2)   ;;  %v3009_v10 = vld [vmem:[%s3684_s1 + $0x68] sm:$0xff] (!%p138_p2)   ;;  %vm626_vm3 = vcmask (!%p138_p2), 1042432   ;;  %vm627_vm4 = vcmask (!%p138_p2), 1046532  }
   0x8   : > { %2791 = vmatpush3.bf16.msra.mxu0 (!%p138_p2), %v3000_v1  ;;  %2696 = vmatprep.subr.bf16.mxu1 (!%p138_p2), %v3001_v2  ;;  %v3006_v7 = vld [vmem:[%s3684_s1 + $0x118] sm:$0xff] (!%p138_p2)   ;;  %v3008_v9 = vld [vmem:[%s3684_s1 + $0x120] sm:$0xff] (!%p138_p2)   ;;  %v3010_v14 = vld [vmem:[%s3684_s1 + $0x128] sm:$0xff] (!%p138_p2)  }
   0x9   : > { %2792 = vmatprep.subr.bf16.mxu0 (!%p138_p2), %v3002_v3  ;;  %v3011_v22 = vld [vmem:[%s3684_s1 + $0x70] sm:$0xff] (!%p138_p2)   ;;  %v3013_v37 = vld [vmem:[%s3684_s1 + $0x78] sm:$0xff] (!%p138_p2)   ;;  %vm3200_vm2 = vmor (!%p138_p2), %vm204_vm0, %vm205_vm1 }
   0xa   : > { %v3012_v23 = vld [vmem:[%s3684_s1 + $0x130] sm:$0xff] (!%p138_p2)   ;;  %v3014_v47 = vld [vmem:[%s3684_s1 + $0x138] sm:$0xff] (!%p138_p2)   ;;  %v3015_v63 = vld [vmem:[%s3684_s1] sm:$0xff] (!%p138_p2)  }
   0xb   : > { %2697 = vmatpush3.bf16.msra.mxu1 (!%p138_p2), %v3001_v2  ;;  %v3232_v1 = vld [vmem:[%s3684_s1 + $0x140] sm:$0xff] (!%p138_p2)   ;;  %vm3374_vm5 = vmor (!%p138_p2), %vm626_vm3, %vm627_vm4 }
   0xc   : > { %2793 = vmatpush3.bf16.msra.mxu0 (!%p138_p2), %v3002_v3  ;;  %2698 = vmatprep.subr.bf16.mxu1 (!%p138_p2), %v3003_v4  ;;  %v3079_v38 = vld [vmem:[%s3684_s1 + $0x220] sm:$0xff] (!%p138_p2)  }
   0xd   : > { %s3692_s13 = smov (!%p161_p3, %s2227_s13), 1  ;;  %2794 = vmatprep.subr.bf16.mxu0 %v3004_v5 }
   0xe   : > { %s2990_s30 = smul.u32 80, %s3692_s13  ;;  %s2562_s18 = sshll.u32 %s3692_s13, 5 }
   0xf   : > { %2699 = vmatpush3.bf16.msra.mxu1 %v3003_v4  ;;  %s170_s21 = scalar_lea.vmem %s3686_s3, %s2562_s18 }
  0x10   : > { %2795 = vmatpush3.bf16.msra.mxu0 %v3004_v5  ;;  %2700 = vmatprep.subr.bf16.mxu1 %v3005_v6  ;;  %s3155_s10 = scalar_lea.vmem %s3683_s0, %s2990_s30 }
  0x11   : > { %2796 = vmatprep.subr.bf16.mxu0 %v3006_v7  ;;  %v3161_v11 = vld [vmem:[%s3155_s10] sm:$0xf]  ;;  %v3164_v12 = vld [vmem:[%s3155_s10 + $0x8] sm:$0xf]  ;;  %v3167_v13 = vld [vmem:[%s3155_s10 + $0x4] sm:$0x1] }
  0x12   : > { %v3173_v15 = vld [vmem:[%s3155_s10 + $0xc] sm:$0x1]  ;;  %v208_v16 = vshrl.u32 %v3161_v11, 16  ;;  %v211_v17 = vshll.u32 %v3161_v11, 16  ;;  %v217_v18 = vshll.u32 %v3167_v13, 16  ;;  %v222_v19 = vshrl.u32 %v3164_v12, 16 }
  0x13   : > { %2701 = vmatpush3.bf16.msra.mxu1 %v3005_v6  ;;  %v225_v20 = vshll.u32 %v3164_v12, 16  ;;  %v231_v21 = vshll.u32 %v3173_v15, 16  ;;  %v2347_v30 = vld [vmem:[%s3155_s10 + $0x8] sm:$0xf]  ;;  %v3189_v31 = vld [vmem:[%s3155_s10 + $0xc] sm:$0x1] }
  0x14   : > { %2797 = vmatpush3.bf16.msra.mxu0 %v3006_v7  ;;  %2702 = vmatprep.subr.bf16.mxu1 %v3007_v8  ;;  %v210_v24 = vrot.slane %v208_v16, 4  ;;  %v213_v25 = vrot.slane %v211_v17, 5  ;;  %v219_v26 = vrot.slane %v217_v18, 5  ;;  %v224_v27 = vrot.slane %v222_v19, 4  ;;  %v2349_v33 = vld [vmem:[%s3155_s10 + $0x10] sm:$0xf] }
  0x15   : > { %2798 = vmatprep.subr.bf16.mxu0 %v3008_v9  ;;  %v227_v28 = vrot.slane %v225_v20, 5  ;;  %v233_v29 = vrot.slane %v231_v21, 5  ;;  %v3193_v34 = vld [vmem:[%s3155_s10 + $0x14] sm:$0x1]  ;;  %v1003_v35 = vshrl.u32 %v2347_v30, 16  ;;  %v1006_v36 = vshll.u32 %v2347_v30, 16 }
  0x16   : > { %v214_v32 = vor.u32 %v213_v25, %v210_v24  ;;  %v1012_v40 = vshll.u32 %v3189_v31, 16  ;;  %v1017_v41 = vshrl.u32 %v2349_v33, 16  ;;  %v1020_v42 = vshll.u32 %v2349_v33, 16  ;;  %v3210_v51 = vld [vmem:[%s3155_s10 + $0x10] sm:$0xf] }
  0x17   : > { %2703 = vmatpush3.bf16.msra.mxu1 %v3007_v8  ;;  %v228_v39 = vor.u32 %v227_v28, %v224_v27  ;;  %v1005_v44 = vrot.slane %v1003_v35, 4  ;;  %v1008_v45 = vrot.slane %v1006_v36, 5  ;;  %v1026_v46 = vshll.u32 %v3193_v34, 16  ;;  %v3215_v55 = vld [vmem:[%s3155_s10 + $0x18] sm:$0xf] }
  0x18   : > { %2799 = vmatpush3.bf16.msra.mxu0 %v3008_v9  ;;  %2704 = vmatprep.subr.bf16.mxu1 %v3009_v10  ;;  %v215_v43 = vrot.slane %v214_v32, 4  ;;  %v1019_v49 = vrot.slane %v1017_v41, 4  ;;  %v1022_v50 = vrot.slane %v1020_v42, 5  ;;  %v1014_v54 = vrot.slane %v1012_v40, 5  ;;  %v3218_v56 = vld [vmem:[%s3155_s10 + $0x14] sm:$0x1] }
  0x19   : > { %2800 = vmatprep.subr.bf16.mxu0 %v3010_v14  ;;  %v229_v48 = vrot.slane %v228_v39, 4  ;;  %v1009_v53 = vor.u32 %v1008_v45, %v1005_v44  ;;  %v1028_v59 = vrot.slane %v1026_v46, 5  ;;  %v3223_v60 = vld [vmem:[%s3155_s10 + $0x1c] sm:$0x1]  ;;  %v236_v61 = vshrl.u32 %v3210_v51, 16 }
  0x1a   : > { %v220_v52 = vsel %vm3200_vm2, %v215_v43, %v219_v26  ;;  %v1023_v58 = vor.u32 %v1022_v50, %v1019_v49  ;;  %v239_v2 = vshll.u32 %v3210_v51, 16  ;;  %v245_v3 = vshll.u32 %v3218_v56, 16  ;;  %v2351_v8 = vld [vmem:[%s3155_s10 + $0x18] sm:$0xf]  ;;  %v3243_v16 = vld [vmem:[%s3155_s10 + $0x1c] sm:$0x1] }
  0x1b   : > { %2705 = vmatpush3.bf16.msra.mxu1 %v3009_v10  ;;  %v234_v57 = vsel %vm3200_vm2, %v229_v48, %v233_v29  ;;  %v1010_v0 = vrot.slane %v1009_v53, 4  ;;  %v238_v5 = vrot.slane %v236_v61, 4  ;;  %v250_v6 = vshrl.u32 %v3215_v55, 16  ;;  %v2353_v17 = vld [vmem:[%s3155_s10 + $0x20] sm:$0xf]  ;;  %v3017_v43 = vld [vmem:[%s3684_s1 + $0x8] sm:$0xff]  }
  0x1c   : > { %2801 = vmatpush3.bf16.msra.mxu0 %v3010_v14  ;;  %2706 = vmatprep.subr.bf16.mxu1 %v3011_v22  ;;  %v2251_v62 = vcombine.low %v220_v52, %v234_v57  ;;  %v1024_v4 = vrot.slane %v1023_v58, 4  ;;  %v253_v7 = vshll.u32 %v3215_v55, 16  ;;  %v241_v10 = vrot.slane %v239_v2, 5  ;;  %v3249_v21 = vld [vmem:[%s3155_s10 + $0x24] sm:$0x1] }
  0x1d   : > { %2802 = vmatprep.subr.bf16.mxu0 %v3012_v23  ;;  %v1015_v9 = vsel %vm3200_vm2, %v1010_v0, %v1014_v54  ;;  %v259_v14 = vshll.u32 %v3223_v60, 16  ;;  %v252_v19 = vrot.slane %v250_v6, 4  ;;  %v247_v24 = vrot.slane %v245_v3, 5  ;;  %v3018_v54 = vld [vmem:[%s3684_s1 + $0x148] sm:$0xff]   ;;  %v3279_v0 = vld [vmem:[%s3155_s10 + $0x24] sm:$0x1] }
  0x1e   : > { %2710 = vmatprep.mubr.bf16.mxu1 %v2251_v62  ;;  %v1029_v18 = vsel %vm3200_vm2, %v1024_v4, %v1028_v59  ;;  %v255_v20 = vrot.slane %v253_v7, 5  ;;  %v1031_v27 = vshrl.u32 %v2351_v8, 16  ;;  %v1034_v28 = vshll.u32 %v2351_v8, 16  ;;  %v3019_v59 = vld [vmem:[%s3684_s1 + $0x10] sm:$0xff]   ;;  %v3273_v62 = vld [vmem:[%s3155_s10 + $0x20] sm:$0xf] }
  0x1f   : > { %2707 = vmatpush3.bf16.msra.mxu1 %v3011_v22  ;;  %v2379_v22 = vcombine.low %v1015_v9, %v1029_v18  ;;  %v261_v25 = vrot.slane %v259_v14, 5  ;;  %v1040_v29 = vshll.u32 %v3243_v16, 16  ;;  %v1045_v32 = vshrl.u32 %v2353_v17, 16  ;;  %v3282_v2 = vld [vmem:[%s3155_s10 + $0x2c] sm:$0x1]  ;;  %v3020_v9 = vld [vmem:[%s3684_s1 + $0x150] sm:$0xff]  }
  0x20   : > { %2803 = vmatpush3.bf16.msra.mxu0 %v3012_v23  ;;  %2708 = vmatprep.subr.bf16.mxu1 %v3013_v37  ;;  %v242_v23 = vor.u32 %v241_v10, %v238_v5  ;;  %v256_v26 = vor.u32 %v255_v20, %v252_v19  ;;  %v1048_v33 = vshll.u32 %v2353_v17, 16  ;;  %v1054_v35 = vshll.u32 %v3249_v21, 16  ;;  %v3021_v10 = vld [vmem:[%s3684_s1 + $0x18] sm:$0xff]  }
  0x21   : > { %2804 = vmatprep.subr.bf16.mxu0 %v3014_v47  ;;  %2806 = vmatprep.mubr.bf16.mxu0 %v2379_v22  ;;  %v1036_v39 = vrot.slane %v1034_v28, 5  ;;  %v1047_v41 = vrot.slane %v1045_v32, 4  ;;  %v1042_v46 = vrot.slane %v1040_v29, 5  ;;  %v1294_v57 = vrot.slane %v3189_v31, 5  ;;  %v3022_v29 = vld [vmem:[%s3684_s1 + $0x158] sm:$0xff]  }
  0x22   : > { %v243_v30 = vrot.slane %v242_v23, 4  ;;  %v257_v36 = vrot.slane %v256_v26, 4  ;;  %v1050_v42 = vrot.slane %v1048_v33, 5  ;;  %v264_v3 = vshrl.u32 %v3273_v62, 16  ;;  %v2355_v23 = vld [vmem:[%s3155_s10 + $0x28] sm:$0xf] }
  0x23   : > { %2709 = vmatpush3.bf16.msra.mxu1 %v3013_v37  ;;  %v1033_v37 = vrot.slane %v1031_v27, 4  ;;  %v267_v4 = vshll.u32 %v3273_v62, 16  ;;  %v273_v5 = vshll.u32 %v3279_v0, 16  ;;  %v287_v8 = vshll.u32 %v3282_v2, 16  ;;  %v3303_v26 = vld [vmem:[%s3155_s10 + $0x34] sm:$0x1] }
  0x24   : > { %2805 = vmatpush3.bf16.msra.mxu0 %v3014_v47  ;;  %2718 = vmatprep.subr.bf16.mxu1 %v3015_v63  ;;  %v248_v40 = vsel %vm3200_vm2, %v243_v30, %v247_v24  ;;  %v262_v44 = vsel %vm3200_vm2, %v257_v36, %v261_v25  ;;  %v1056_v47 = vrot.slane %v1054_v35, 5  ;;  %v1051_v49 = vor.u32 %v1050_v42, %v1047_v41  ;;  %v3299_v24 = vld [vmem:[%s3155_s10 + $0x2c] sm:$0x1]  ;;  %v2357_v25 = vld [vmem:[%s3155_s10 + $0x30] sm:$0xf]  ;;  %v3023_v30 = vld [vmem:[%s3684_s1 + $0x20] sm:$0xff]  }
  0x25   : > { %2814 = vmatprep.subr.bf16.mxu0 %v3232_v1  ;;  %v1037_v45 = vor.u32 %v1036_v39, %v1033_v37  ;;  %v2252_v48 = vcombine.low %v248_v40, %v262_v44  ;;  %v266_v14 = vrot.slane %v264_v3, 4  ;;  %v269_v17 = vrot.slane %v267_v4, 5 }
  0x26   : > { %v1052_v52 = vrot.slane %v1051_v49, 4  ;;  %v275_v18 = vrot.slane %v273_v5, 5  ;;  %v289_v22 = vrot.slane %v287_v8, 5  ;;  %v1059_v27 = vshrl.u32 %v2355_v23, 16  ;;  %v2359_v5 = vld [vmem:[%s3155_s10 + $0x38] sm:$0xf] }
  0x27   : > { %v1038_v50 = vrot.slane %v1037_v45, 4  ;;  %2711 = vmatmul.mubr.bf16.vlgmr.msra.gmra.mrb[0].mxu1 %v2252_v48  ;;  %v1062_v28 = vshll.u32 %v2355_v23, 16  ;;  %v1068_v33 = vshll.u32 %v3299_v24, 16  ;;  %v1073_v35 = vshrl.u32 %v2357_v25, 16 }
  0x28   : > { %2719 = vmatpush3.bf16.msra.mxu1 %v3015_v63  ;;  %v1057_v58 = vsel %vm3200_vm2, %v1052_v52, %v1056_v47  ;;  %v3276_v63 = vld [vmem:[%s3155_s10 + $0x28] sm:$0xf]  ;;  %v1076_v36 = vshll.u32 %v2357_v25, 16  ;;  %v1061_v39 = vrot.slane %v1059_v27, 4  ;;  %v1082_v41 = vshll.u32 %v3303_v26, 16 }
  0x29   : > { %v1043_v53 = vsel %vm3200_vm2, %v1038_v50, %v1042_v46  ;;  %2720 = vmatprep.subr.bf16.mxu1 %v3017_v43  ;;  %v278_v6 = vshrl.u32 %v3276_v63, 16  ;;  %v281_v7 = vshll.u32 %v3276_v63, 16  ;;  %v1064_v40 = vrot.slane %v1062_v28, 5  ;;  %v3314_v46 = vld [vmem:[%s3155_s10 + $0x30] sm:$0xf] }
  0x2a   : > { %v2380_v61 = vcombine.low %v1043_v53, %v1057_v58  ;;  %v1075_v44 = vrot.slane %v1073_v35, 4  ;;  %v1078_v45 = vrot.slane %v1076_v36, 5  ;;  %v1084_v49 = vrot.slane %v1082_v41, 5  ;;  %v3319_v50 = vld [vmem:[%s3155_s10 + $0x38] sm:$0xf] }
  0x2b   : > { %v280_v19 = vrot.slane %v278_v6, 4  ;;  %v283_v20 = vrot.slane %v281_v7, 5  ;;  %v1065_v48 = vor.u32 %v1064_v40, %v1061_v39  ;;  %v3322_v52 = vld [vmem:[%s3155_s10 + $0x34] sm:$0x1]  ;;  %v292_v53 = vshrl.u32 %v3314_v46, 16  ;;  %v3025_v6 = vld [vmem:[%s3684_s1 + $0x28] sm:$0xff]  }
  0x2c   : > { %2807 = vmatmul.mubr.bf16.vlgmr.msra.gmra.mrb[0].mxu0 %v2380_v61  ;;  %2721 = vmatpush3.bf16.msra.mxu1 %v3017_v43  ;;  %v1070_v43 = vrot.slane %v1068_v33, 5  ;;  %v3331_v61 = vld [vmem:[%s3155_s10 + $0x3c] sm:$0x1]  ;;  %v295_v3 = vshll.u32 %v3314_v46, 16  ;;  %v301_v4 = vshll.u32 %v3322_v52, 16  ;;  %v1087_v28 = vshrl.u32 %v2359_v5, 16 }
  0x2d   : > { %2815 = vmatpush3.bf16.msra.mxu0 %v3232_v1  ;;  %2722 = vmatprep.subr.bf16.mxu1 %v3019_v59  ;;  %v270_v1 = vor.u32 %v269_v17, %v266_v14  ;;  %v284_v32 = vor.u32 %v283_v20, %v280_v19  ;;  %v1066_v8 = vrot.slane %v1065_v48, 4  ;;  %v306_v14 = vshrl.u32 %v3319_v50, 16  ;;  %v3341_v17 = vld [vmem:[%s3155_s10 + $0x3c] sm:$0x1]  ;;  %v3349_v27 = vld [vmem:[%s3155_s10 + $0x44] sm:$0x1] }
  0x2e   : > { %2816 = vmatprep.subr.bf16.mxu0 %v3018_v54  ;;  %v297_v19 = vrot.slane %v295_v3, 5  ;;  %v303_v20 = vrot.slane %v301_v4, 5  ;;  %v315_v25 = vshll.u32 %v3331_v61, 16  ;;  %v1090_v36 = vshll.u32 %v2359_v5, 16 }
  0x2f   : > { %v271_v37 = vrot.slane %v270_v1, 4  ;;  %v285_v42 = vrot.slane %v284_v32, 4  ;;  %v1071_v23 = vsel %vm3200_vm2, %v1066_v8, %v1070_v43  ;;  %v308_v1 = vrot.slane %v306_v14, 4 }
  0x30   : > { %2723 = vmatpush3.bf16.msra.mxu1 %v3019_v59  ;;  %v1079_v59 = vor.u32 %v1078_v45, %v1075_v44  ;;  %v317_v40 = vrot.slane %v315_v25, 5  ;;  %v1089_v41 = vrot.slane %v1087_v28, 4  ;;  %v1092_v45 = vrot.slane %v1090_v36, 5  ;;  %v2393_v25 = vld [vmem:[%s3155_s10 + $0x18] sm:$0xe] }
  0x31   : > { %2817 = vmatpush3.bf16.msra.mxu0 %v3018_v54  ;;  %2724 = vmatprep.subr.bf16.mxu1 %v3021_v10  ;;  %v276_v47 = vsel %vm3200_vm2, %v271_v37, %v275_v18  ;;  %v3024_v54 = vld [vmem:[%s3684_s1 + $0x160] sm:$0xff]   ;;  %v290_v58 = vsel %vm3200_vm2, %v285_v42, %v289_v22  ;;  %v309_v22 = vshll.u32 %v3319_v50, 16  ;;  %v3027_v37 = vld [vmem:[%s3684_s1 + $0x30] sm:$0xff]   ;;  %v1096_v42 = vshll.u32 %v3341_v17, 16  ;;  %v3030_v28 = vld [vmem:[%s3684_s1 + $0x178] sm:$0xff]  }
  0x32   : > { %2818 = vmatprep.subr.bf16.mxu0 %v3020_v9  ;;  %v2253_v7 = vcombine.low %v276_v47, %v290_v58  ;;  %v1080_v18 = vrot.slane %v1079_v59, 4  ;;  %v1298_v47 = vrot.slane %v3193_v34, 5  ;;  %v1302_v48 = vrot.slane %v3243_v16, 5  ;;  %v3028_v58 = vld [vmem:[%s3684_s1 + $0x170] sm:$0xff]  }
  0x33   : > { %v311_v35 = vrot.slane %v309_v22, 5  ;;  %v1093_v4 = vor.u32 %v1092_v45, %v1089_v41  ;;  %v1098_v34 = vrot.slane %v1096_v42, 5  ;;  %v1306_v22 = vrot.slane %v3249_v21, 5  ;;  %v3033_v41 = vld [vmem:[%s3684_s1 + $0x180] sm:$0xff]  }
  0x34   : > { %2725 = vmatpush3.bf16.msra.mxu1 %v3021_v10  ;;  %v294_v10 = vrot.slane %v292_v53, 4  ;;  %2714 = vmatprep.mubr.bf16.mxu1 %v2253_v7  ;;  %v1085_v32 = vsel %vm3200_vm2, %v1080_v18, %v1084_v49  ;;  %v1110_v53 = vshll.u32 %v3349_v27, 16  ;;  %v2391_v7 = vld [vmem:[%s3155_s10 + $0x8] sm:$0xe]  ;;  %v2401_v36 = vrot.slane %v2393_v25, 9 }
  0x35   : > { %2819 = vmatpush3.bf16.msra.mxu0 %v3020_v9  ;;  %2726 = vmatprep.subr.bf16.mxu1 %v3023_v30  ;;  %v2361_v9 = vld [vmem:[%s3155_s10 + $0x40] sm:$0xf]  ;;  %v2381_v39 = vcombine.low %v1071_v23, %v1085_v32  ;;  %v312_v44 = vor.u32 %v311_v35, %v308_v1  ;;  %v2399_v14 = vrot.slane %v2391_v7, 9  ;;  %v1094_v18 = vrot.slane %v1093_v4, 4 }
  0x36   : > { %2820 = vmatprep.subr.bf16.mxu0 %v3022_v29  ;;  %v298_v33 = vor.u32 %v297_v19, %v294_v10  ;;  %v1104_v49 = vshll.u32 %v2361_v9, 16  ;;  %v2392_v10 = vld [vmem:[%s3155_s10 + $0x10] sm:$0xe]  ;;  %v2263_v19 = vcombine.low %v3161_v11, %v3164_v12  ;;  %v1112_v1 = vrot.slane %v1110_v53, 5  ;;  %v2394_v12 = vld [vmem:[%s3155_s10 + $0x20] sm:$0xe] }
  0x37   : > { %2810 = vmatprep.mubr.bf16.mxu0 %v2381_v39  ;;  %v313_v3 = vrot.slane %v312_v44, 4  ;;  %v1295_v32 = vsel %vm3374_vm5, %v2399_v14, %v1294_v57  ;;  %v1099_v21 = vsel %vm3200_vm2, %v1094_v18, %v1098_v34  ;;  %v3032_v35 = vld [vmem:[%s3684_s1 + $0x80] sm:$0xff]   ;;  %v1303_v42 = vsel %vm3374_vm5, %v2401_v36, %v1302_v48  ;;  %v3037_v44 = vld [vmem:[%s3684_s1 + $0x90] sm:$0xff]  }
  0x38   : > { %2727 = vmatpush3.bf16.msra.mxu1 %v3023_v30  ;;  %v3026_v30 = vld [vmem:[%s3684_s1 + $0x168] sm:$0xff]   ;;  %v299_v43 = vrot.slane %v298_v33, 4  ;;  %v1106_v16 = vrot.slane %v1104_v49, 5  ;;  %v1310_v45 = vrot.slane %v3299_v24, 5  ;;  %v1318_v53 = vrot.slane %v3341_v17, 5  ;;  %v3041_v18 = vld [vmem:[%s3684_s1 + $0xa0] sm:$0xff]  }
  0x39   : > { %2821 = vmatpush3.bf16.msra.mxu0 %v3022_v29  ;;  %2728 = vmatprep.subr.bf16.mxu1 %v3025_v6  ;;  %v1101_v29 = vshrl.u32 %v2361_v9, 16  ;;  %v1322_v24 = vrot.slane %v3349_v27, 5  ;;  %v635_v34 = vrot.slane %v3173_v15, 5  ;;  %v639_v17 = vrot.slane %v3218_v56, 5  ;;  %v603_v15 = vld [vmem:[%s3155_s10 + $0x8] sm:$0xe] }
  0x3a   : > { %2822 = vmatprep.subr.bf16.mxu0 %v3024_v54  ;;  %v304_v59 = vsel %vm3200_vm2, %v299_v43, %v303_v20  ;;  %v2400_v20 = vrot.slane %v2392_v10, 9  ;;  %v3035_v43 = vld [vmem:[%s3684_s1 + $0x88] sm:$0xff]   ;;  %v3038_v10 = vld [vmem:[%s3684_s1 + $0x190] sm:$0xff]   ;;  %v2276_v14 = vrot.slane %v603_v15, 9  ;;  %v647_v36 = vrot.slane %v3279_v0, 5  ;;  %v3051_v0 = vld [vmem:[%s3684_s1 + $0xc0] sm:$0xff]  }
  0x3b   : > { %v1103_v5 = vrot.slane %v1101_v29, 4  ;;  %v1314_v29 = vrot.slane %v3303_v26, 5  ;;  %v2266_v26 = vcombine.low %v3314_v46, %v3319_v50  ;;  %v3039_v46 = vld [vmem:[%s3684_s1 + $0x98] sm:$0xff]   ;;  %v3056_v15 = vld [vmem:[%s3684_s1 + $0x1c8] sm:$0xff]  }
  0x3c   : > { %2729 = vmatpush3.bf16.msra.mxu1 %v3025_v6  ;;  %v3029_v6 = vld [vmem:[%s3684_s1 + $0x38] sm:$0xff]   ;;  %v1299_v11 = vsel %vm3374_vm5, %v2400_v20, %v1298_v47 }
  0x3d   : > { %2823 = vmatpush3.bf16.msra.mxu0 %v3024_v54  ;;  %2730 = vmatprep.subr.bf16.mxu1 %v3027_v37  ;;  %v318_v54 = vsel %vm3200_vm2, %v313_v3, %v317_v40  ;;  %v1107_v23 = vor.u32 %v1106_v16, %v1103_v5  ;;  %v2423_v57 = vcombine.low %v1295_v32, %v1299_v11  ;;  %v602_v16 = vld [vmem:[%s3155_s10] sm:$0xe]  ;;  %v3040_v20 = vld [vmem:[%s3684_s1 + $0x198] sm:$0xff]  }
  0x3e   : > { %2824 = vmatprep.subr.bf16.mxu0 %v3026_v30  ;;  %v2254_v9 = vcombine.low %v304_v59, %v318_v54  ;;  %v2264_v40 = vcombine.low %v3210_v51, %v3215_v55  ;;  %v2265_v51 = vcombine.low %v3273_v62, %v3276_v63  ;;  %v631_v55 = vrot.slane %v3167_v13, 5  ;;  %v3036_v62 = vld [vmem:[%s3684_s1 + $0x188] sm:$0xff]   ;;  %v2396_v63 = vld [vmem:[%s3155_s10 + $0x30] sm:$0xe]  ;;  %v2398_v59 = vld [vmem:[%s3155_s10 + $0x40] sm:$0xe] }
  0x3f   : > { %v1108_v33 = vrot.slane %v1107_v23, 4  ;;  %v2395_v13 = vld [vmem:[%s3155_s10 + $0x28] sm:$0xe]  ;;  %v2404_v49 = vrot.slane %v2396_v63, 9  ;;  %v2406_v7 = vrot.slane %v2398_v59, 9  ;;  %v2275_v56 = vrot.slane %v602_v16, 9 }
  0x40   : > { %2731 = vmatpush3.bf16.msra.mxu1 %v3027_v37  ;;  %v2402_v37 = vrot.slane %v2394_v12, 9  ;;  %v2403_v48 = vrot.slane %v2395_v13, 9  ;;  %v643_v54 = vrot.slane %v3223_v60, 5  ;;  %v604_v23 = vld [vmem:[%s3155_s10 + $0x10] sm:$0xe] }
  0x41   : > { %2825 = vmatpush3.bf16.msra.mxu0 %v3026_v30  ;;  %2715 = vmatmul.mubr.bf16.gmra.mrb[4].mxu1 %v2254_v9  ;;  %v1113_v31 = vsel %vm3200_vm2, %v1108_v33, %v1112_v1  ;;  %v1315_v4 = vsel %vm3374_vm5, %v2404_v49, %v1314_v29  ;;  %v636_v9 = vsel %vm3374_vm5, %v2276_v14, %v635_v34  ;;  %v605_v60 = vld [vmem:[%s3155_s10 + $0x18] sm:$0xe]  ;;  %v2277_v25 = vrot.slane %v604_v23, 9  ;;  %v3043_v33 = vld [vmem:[%s3684_s1 + $0xa8] sm:$0xff]  }
  0x42   : > { %2826 = vmatprep.subr.bf16.mxu0 %v3028_v58  ;;  %2732 = vmatprep.subr.bf16.mxu1 %v3029_v6  ;;  %v2382_v39 = vcombine.low %v1099_v21, %v1113_v31  ;;  %v1307_v30 = vsel %vm3374_vm5, %v2402_v37, %v1306_v22  ;;  %v1311_v3 = vsel %vm3374_vm5, %v2403_v48, %v1310_v45  ;;  %v3052_v32 = vld [vmem:[%s3155_s10 + $0x10] ss:$8 sps:$4 sm:$0xff]   ;;  %v655_v29 = vrot.slane %v3322_v52, 5  ;;  %v3055_v49 = vld [vmem:[%s3684_s1 + $0xc8] sm:$0xff]  }
  0x43   : > { %2734 = vmatprep.mubr.bf16.mxu1 %v2263_v19  ;;  %v2424_v47 = vcombine.low %v1303_v42, %v1307_v30  ;;  %v2425_v27 = vcombine.low %v1311_v3, %v1315_v4  ;;  %v632_v19 = vsel %vm3374_vm5, %v2275_v56, %v631_v55  ;;  %v640_v11 = vsel %vm3374_vm5, %v2277_v25, %v639_v17  ;;  %v3046_v31 = vld [vmem:[%s3684_s1 + $0xb0] sm:$0xff]   ;;  %v3049_v37 = vld [vmem:[%s3684_s1 + $0xb8] sm:$0xff]   ;;  %v2477_v25 = vld [vmem:[%s3155_s10 + $0x28] sm:$0xf] }
  0x44   : > { %2733 = vmatpush3.bf16.msra.mxu1 %v3029_v6  ;;  %2811 = vmatmul.mubr.bf16.gmra.mrb[4].mxu0 %v2382_v39  ;;  %v1323_v6 = vsel %vm3374_vm5, %v2406_v7, %v1322_v24  ;;  %v2299_v1 = vcombine.low %v632_v19, %v636_v9  ;;  %v606_v39 = vld [vmem:[%s3155_s10 + $0x20] sm:$0xe]  ;;  %v3050_v45 = vld [vmem:[%s3684_s1 + $0x1b8] sm:$0xff]   ;;  %v3513_v24 = vld [vmem:[%s3155_s10 + $0x14] sm:$0x1] }
  0x45   : > { %2827 = vmatpush3.bf16.msra.mxu0 %v3028_v58  ;;  %2742 = vmatprep.subr.bf16.mxu1 %v3032_v35  ;;  %v2397_v58 = vld [vmem:[%s3155_s10 + $0x38] sm:$0xe]  ;;  %v2279_v42 = vrot.slane %v606_v39, 9  ;;  %v1675_v59 = vshll.u32 %v3513_v24, 16  ;;  %v3054_v7 = vld [vmem:[%s3155_s10 + $0x20] ss:$8 sps:$4 sm:$0xff]  }
  0x46   : > { %2828 = vmatprep.subr.bf16.mxu0 %v3030_v28  ;;  %2830 = vmatprep.mubr.bf16.mxu0 %v2423_v57  ;;  %v2405_v5 = vrot.slane %v2397_v58, 9  ;;  %v3044_v57 = vld [vmem:[%s3684_s1 + $0x1a8] sm:$0xff]   ;;  %v2473_v52 = vld [vmem:[%s3155_s10 + $0x18] sm:$0xf]  ;;  %v3058_v9 = vld [vmem:[%s3684_s1 + $0x1d0] sm:$0xff]  }
  0x47   : > { %v1680_v3 = vshrl.u32 %v2473_v52, 16  ;;  %v1683_v4 = vshll.u32 %v2473_v52, 16  ;;  %v3065_v56 = vld [vmem:[%s3155_s10 + $0x30] ss:$8 sps:$4 sm:$0xff]   ;;  %v3064_v52 = vld [vmem:[%s3684_s1 + $0x1e8] sm:$0xff]  }
  0x48   : > { %v1319_v50 = vsel %vm3374_vm5, %v2405_v5, %v1318_v53  ;;  %v2471_v53 = vld [vmem:[%s3155_s10 + $0x10] sm:$0xf]  ;;  %v3059_v23 = vld [vmem:[%s3684_s1 + $0xd8] sm:$0xff]  }
  0x49   : > { %2829 = vmatpush3.bf16.msra.mxu0 %v3030_v28  ;;  %2735 = vmatmul.mubr.bf16.vlgmr.msra.gmra.mrb[0].mxu1 %v2264_v40  ;;  %v2426_v22 = vcombine.low %v1319_v50, %v1323_v6  ;;  %v2278_v28 = vrot.slane %v605_v60, 9  ;;  %v607_v40 = vld [vmem:[%s3155_s10 + $0x28] sm:$0xe]  ;;  %v1669_v58 = vshll.u32 %v2471_v53, 16  ;;  %v1682_v50 = vrot.slane %v1680_v3, 4 }
  0x4a   : > { %2838 = vmatprep.subr.bf16.mxu0 %v3033_v41  ;;  %2743 = vmatpush3.bf16.msra.mxu1 %v3032_v35  ;;  %v3042_v35 = vld [vmem:[%s3684_s1 + $0x1a0] sm:$0xff]   ;;  %v2280_v30 = vrot.slane %v607_v40, 9  ;;  %v1685_v6 = vrot.slane %v1683_v4, 5 }
  0x4b   : > { %2744 = vmatprep.subr.bf16.mxu1 %v3035_v43  ;;  %2738 = vmatprep.mubr.bf16.mxu1 %v2265_v51  ;;  %v644_v12 = vsel %vm3374_vm5, %v2278_v28, %v643_v54  ;;  %v608_v51 = vld [vmem:[%s3155_s10 + $0x30] sm:$0xe]  ;;  %v1671_v16 = vrot.slane %v1669_v58, 5  ;;  %v1677_v54 = vrot.slane %v1675_v59, 5 }
  0x4c   : > { %2831 = vmatmul.mubr.bf16.vlgmr.msra.gmra.mrb[0].mxu0 %v2424_v47  ;;  %v2300_v21 = vcombine.low %v640_v11, %v644_v12  ;;  %v659_v47 = vrot.slane %v3331_v61, 5  ;;  %v2281_v63 = vrot.slane %v608_v51, 9  ;;  %v3517_v61 = vld [vmem:[%s3155_s10 + $0x1c] sm:$0x1]  ;;  %v3067_v11 = vld [vmem:[%s3155_s10 + $0x40] ss:$8 sps:$4 sm:$0xff]  }
  0x4d   : > { %2839 = vmatpush3.bf16.msra.mxu0 %v3033_v41  ;;  %2834 = vmatprep.mubr.bf16.mxu0 %v2425_v27  ;;  %v651_v41 = vrot.slane %v3282_v2, 5  ;;  %v648_v2 = vsel %vm3374_vm5, %v2279_v42, %v647_v36  ;;  %v1689_v5 = vshll.u32 %v3517_v61, 16  ;;  %v2479_v12 = vld [vmem:[%s3155_s10 + $0x30] sm:$0xf]  ;;  %v1711_v36 = vshll.u32 %v2477_v25, 16 }
  0x4e   : > { %2745 = vmatpush3.bf16.msra.mxu1 %v3035_v43  ;;  %2840 = vmatprep.subr.bf16.mxu0 %v3036_v62  ;;  %v3047_v43 = vld [vmem:[%s3684_s1 + $0x1b0] sm:$0xff]   ;;  %v656_v34 = vsel %vm3374_vm5, %v2281_v63, %v655_v29  ;;  %v1722_v40 = vshrl.u32 %v2479_v12, 16  ;;  %v3562_v51 = vld [vmem:[%s3155_s10 + $0x24] sm:$0x1] }
  0x4f   : > { %2746 = vmatprep.subr.bf16.mxu1 %v3037_v44  ;;  %v652_v55 = vsel %vm3374_vm5, %v2280_v30, %v651_v41  ;;  %v1691_v19 = vrot.slane %v1689_v5, 5  ;;  %v1725_v41 = vshll.u32 %v2479_v12, 16  ;;  %v1713_v29 = vrot.slane %v1711_v36, 5  ;;  %v2485_v5 = vld [vmem:[%s3155_s10 + $0x48] sm:$0xf]  ;;  %v3070_v12 = vld [vmem:[%s3684_s1 + $0x1f8] sm:$0xff]  }
  0x50   : > { %v2301_v13 = vcombine.low %v648_v2, %v652_v55  ;;  %v3565_v2 = vld [vmem:[%s3155_s10 + $0x2c] sm:$0x1]  ;;  %v1703_v58 = vshll.u32 %v3562_v51, 16 }
  0x51   : > { %2739 = vmatmul.mubr.bf16.gmra.mrb[4].mxu1 %v2266_v26  ;;  %2841 = vmatpush3.bf16.msra.mxu0 %v3036_v62  ;;  %v3053_v62 = vld [vmem:[%s3684_s1 + $0x1c0] sm:$0xff]   ;;  %v1666_v26 = vshrl.u32 %v2471_v53, 16  ;;  %v1727_v63 = vrot.slane %v1725_v41, 5  ;;  %v1717_v59 = vshll.u32 %v3565_v2, 16 }
  0x52   : > { %2747 = vmatpush3.bf16.msra.mxu1 %v3037_v44  ;;  %2842 = vmatprep.subr.bf16.mxu0 %v3038_v10  ;;  %v609_v44 = vld [vmem:[%s3155_s10 + $0x38] sm:$0xe]  ;;  %v2483_v53 = vld [vmem:[%s3155_s10 + $0x40] sm:$0xf] }
  0x53   : > { %2748 = vmatprep.subr.bf16.mxu1 %v3039_v46  ;;  %2758 = vmatprep.mubr.bf16.mxu1 %v2299_v1  ;;  %v2282_v48 = vrot.slane %v609_v44, 9  ;;  %v1668_v27 = vrot.slane %v1666_v26, 4  ;;  %v2475_v1 = vld [vmem:[%s3155_s10 + $0x20] sm:$0xf]  ;;  %v3066_v26 = vld [vmem:[%s3684_s1 + $0xf0] sm:$0xff]  }
  0x54   : > { %2835 = vmatmul.mubr.bf16.gmra.mrb[4].mxu0 %v2426_v22 }
  0x55   : > { %2843 = vmatpush3.bf16.msra.mxu0 %v3038_v10  ;;  %2854 = vmatprep.mubr.bf16.mxu0 %v3052_v32  ;;  %v660_v17 = vsel %vm3374_vm5, %v2282_v48, %v659_v47  ;;  %v1672_v10 = vor.u32 %v1671_v16, %v1668_v27  ;;  %v3568_v47 = vld [vmem:[%s3155_s10 + $0x34] sm:$0x1]  ;;  %v1753_v27 = vshll.u32 %v2483_v53, 16 }
  0x56   : > { %2749 = vmatpush3.bf16.msra.mxu1 %v3039_v46  ;;  %2844 = vmatprep.subr.bf16.mxu0 %v3040_v20  ;;  %v3057_v46 = vld [vmem:[%s3684_s1 + $0xd0] sm:$0xff]   ;;  %v2302_v14 = vcombine.low %v656_v34, %v660_v17  ;;  %v1731_v3 = vshll.u32 %v3568_v47, 16  ;;  %v1750_v17 = vshrl.u32 %v2483_v53, 16  ;;  %v2516_v53 = vld [vmem:[%s3155_s10 + $0x18] sm:$0xe] }
  0x57   : > { %2750 = vmatprep.subr.bf16.mxu1 %v3041_v18  ;;  %v1673_v22 = vrot.slane %v1672_v10, 4 }
  0x59   : > { %2845 = vmatpush3.bf16.msra.mxu0 %v3040_v20  ;;  %v3071_v20 = vld [vmem:[%s3155_s10 + $0x8] ss:$8 sps:$4 sm:$0xff]   ;;  %v1678_v28 = vsel %vm3200_vm2, %v1673_v22, %v1677_v54 }
  0x5a   : > { %2751 = vmatpush3.bf16.msra.mxu1 %v3041_v18  ;;  %2846 = vmatprep.subr.bf16.mxu0 %v3042_v35  ;;  %v1686_v18 = vor.u32 %v1685_v6, %v1682_v50  ;;  %v1764_v50 = vshrl.u32 %v2485_v5, 16  ;;  %v1767_v6 = vshll.u32 %v2485_v5, 16  ;;  %v2524_v5 = vrot.slane %v2516_v53, 9 }
  0x5b   : > { %2752 = vmatprep.subr.bf16.mxu1 %v3043_v33 }
  0x5c   : > { %v1687_v60 = vrot.slane %v1686_v18, 4  ;;  %v1719_v18 = vrot.slane %v1717_v59, 5  ;;  %v3076_v59 = vld [vmem:[%s3155_s10 + $0x38] ss:$8 sps:$4 sm:$0xff]  }
  0x5d   : > { %2847 = vmatpush3.bf16.msra.mxu0 %v3042_v35  ;;  %v1694_v35 = vshrl.u32 %v2475_v1, 16 }
  0x5e   : > { %2753 = vmatpush3.bf16.msra.mxu1 %v3043_v33  ;;  %2848 = vmatprep.subr.bf16.mxu0 %v3044_v57  ;;  %v1692_v32 = vsel %vm3200_vm2, %v1687_v60, %v1691_v19  ;;  %v3061_v33 = vld [vmem:[%s3684_s1 + $0xe0] sm:$0xff]   ;;  %v3595_v60 = vld [vmem:[%s3155_s10 + $0x4c] sm:$0x1] }
  0x5f   : > { %2754 = vmatprep.subr.bf16.mxu1 %v3046_v31  ;;  %v2503_v39 = vcombine.low %v1678_v28, %v1692_v32  ;;  %v1696_v55 = vrot.slane %v1694_v35, 4  ;;  %v1766_v28 = vrot.slane %v1764_v50, 4  ;;  %v1769_v32 = vrot.slane %v1767_v6, 5  ;;  %v3072_v35 = vld [vmem:[%s3155_s10 + $0x18] ss:$8 sps:$4 sm:$0xff]   ;;  %v3080_v6 = vld [vmem:[%s3684_s1 + $0x228] sm:$0xff]  }
  0x61   : > { %2849 = vmatpush3.bf16.msra.mxu0 %v3044_v57  ;;  %v1708_v57 = vshrl.u32 %v2477_v25, 16  ;;  %v1755_v25 = vrot.slane %v1753_v27, 5 }
  0x62   : > { %2755 = vmatpush3.bf16.msra.mxu1 %v3046_v31  ;;  %2850 = vmatprep.subr.bf16.mxu0 %v3047_v43  ;;  %v1697_v31 = vshll.u32 %v2475_v1, 16  ;;  %v1752_v1 = vrot.slane %v1750_v17, 4 }
  0x63   : > { %2756 = vmatprep.subr.bf16.mxu1 %v3049_v37 }
  0x64   : > { %v1699_v44 = vrot.slane %v1697_v31, 5 }
  0x65   : > { %2851 = vmatpush3.bf16.msra.mxu0 %v3047_v43  ;;  %v3062_v43 = vld [vmem:[%s3684_s1 + $0x1e0] sm:$0xff]  }
  0x66   : > { %2757 = vmatpush3.bf16.msra.mxu1 %v3049_v37  ;;  %2852 = vmatprep.subr.bf16.mxu0 %v3050_v45  ;;  %v3060_v37 = vld [vmem:[%s3684_s1 + $0x1d8] sm:$0xff]  }
  0x67   : > { %2766 = vmatprep.subr.bf16.mxu1 %v3051_v0 }
  0x69   : > { %2759 = vmatmul.mubr.bf16.vlgmr.msra.gmra.mrb[0].mxu1 %v2300_v21  ;;  %2853 = vmatpush3.bf16.msra.mxu0 %v3050_v45  ;;  %v2481_v21 = vld [vmem:[%s3155_s10 + $0x38] sm:$0xf]  ;;  %v1710_v45 = vrot.slane %v1708_v57, 4 }
  0x6a   : > { %2767 = vmatpush3.bf16.msra.mxu1 %v3051_v0  ;;  %2762 = vmatprep.mubr.bf16.mxu1 %v2301_v13  ;;  %v1736_v42 = vshrl.u32 %v2481_v21, 16  ;;  %v1739_v30 = vshll.u32 %v2481_v21, 16  ;;  %v3063_v0 = vld [vmem:[%s3684_s1 + $0xe8] sm:$0xff]   ;;  %v1724_v13 = vrot.slane %v1722_v40, 4  ;;  %v2519_v21 = vld [vmem:[%s3155_s10 + $0x30] sm:$0xe] }
  0x6b   : > { %2768 = vmatprep.subr.bf16.mxu1 %v3055_v49  ;;  %2862 = vmatprep.subr.bf16.mxu0 %v3053_v62  ;;  %v1714_v34 = vor.u32 %v1713_v29, %v1710_v45 }
  0x6c   : > { %2855 = vmatmul.mubr.bf16.vlgmr.msra.gmra.mrb[0].mxu0 %v3054_v7  ;;  %v1738_v48 = vrot.slane %v1736_v42, 4  ;;  %v1700_v7 = vor.u32 %v1699_v44, %v1696_v55  ;;  %v1728_v16 = vor.u32 %v1727_v63, %v1724_v13  ;;  %v1756_v42 = vor.u32 %v1755_v25, %v1752_v1 }
  0x6d   : > { %2863 = vmatpush3.bf16.msra.mxu0 %v3053_v62  ;;  %2858 = vmatprep.mubr.bf16.mxu0 %v3065_v56  ;;  %v3571_v62 = vld [vmem:[%s3155_s10 + $0x3c] sm:$0x1]  ;;  %v3068_v56 = vld [vmem:[%s3684_s1 + $0x1f0] sm:$0xff]   ;;  %v1715_v54 = vrot.slane %v1714_v34, 4  ;;  %v1973_v55 = vrot.slane %v3568_v47, 5  ;;  %v1965_v25 = vrot.slane %v3562_v51, 5 }
  0x6e   : > { %2769 = vmatpush3.bf16.msra.mxu1 %v3055_v49  ;;  %2864 = vmatprep.subr.bf16.mxu0 %v3056_v15  ;;  %v1741_v49 = vrot.slane %v1739_v30, 5  ;;  %v1745_v4 = vshll.u32 %v3571_v62, 16  ;;  %v1701_v10 = vrot.slane %v1700_v7, 4  ;;  %v1729_v19 = vrot.slane %v1728_v16, 4  ;;  %v3078_v16 = vld [vmem:[%s3684_s1 + $0x218] sm:$0xff]  }
  0x6f   : > { %2770 = vmatprep.subr.bf16.mxu1 %v3057_v46  ;;  %v1720_v57 = vsel %vm3200_vm2, %v1715_v54, %v1719_v18  ;;  %v1770_v30 = vor.u32 %v1769_v32, %v1766_v28  ;;  %v1977_v45 = vrot.slane %v3571_v62, 5  ;;  %v1961_v7 = vrot.slane %v3517_v61, 5 }
  0x70   : > { %v1985_v54 = vrot.slane %v3595_v60, 5  ;;  %v1969_v32 = vrot.slane %v3565_v2, 5 }
  0x71   : > { %2763 = vmatmul.mubr.bf16.gmra.mrb[4].mxu1 %v2302_v14  ;;  %2865 = vmatpush3.bf16.msra.mxu0 %v3056_v15  ;;  %v3069_v15 = vld [vmem:[%s3684_s1 + $0xf8] sm:$0xff]   ;;  %v1705_v14 = vrot.slane %v1703_v58, 5  ;;  %v3077_v58 = vld [vmem:[%s3684_s1 + $0x210] sm:$0xff]   ;;  %v1962_v61 = vsel %vm3374_vm5, %v2524_v5, %v1961_v7 }
  0x72   : > { %2771 = vmatpush3.bf16.msra.mxu1 %v3057_v46  ;;  %2782 = vmatprep.mubr.bf16.mxu1 %v3071_v20  ;;  %v1742_v46 = vor.u32 %v1741_v49, %v1738_v48  ;;  %v1733_v20 = vrot.slane %v1731_v3, 5  ;;  %v2515_v49 = vld [vmem:[%s3155_s10 + $0x10] sm:$0xe] }
  0x73   : > { %2772 = vmatprep.subr.bf16.mxu1 %v3059_v23  ;;  %2866 = vmatprep.subr.bf16.mxu0 %v3058_v9  ;;  %v1706_v31 = vsel %vm3200_vm2, %v1701_v10, %v1705_v14  ;;  %v2523_v3 = vrot.slane %v2515_v49, 9  ;;  %v2522_v10 = vld [vmem:[%s3155_s10 + $0x48] sm:$0xe] }
  0x74   : > { %2859 = vmatmul.mubr.bf16.gmra.mrb[4].mxu0 %v3067_v11  ;;  %v1743_v22 = vrot.slane %v1742_v46, 4  ;;  %v3073_v11 = vld [vmem:[%s3684_s1 + $0x200] sm:$0xff]   ;;  %v1734_v40 = vsel %vm3200_vm2, %v1729_v19, %v1733_v20  ;;  %v2504_v29 = vcombine.low %v1706_v31, %v1720_v57  ;;  %v2530_v19 = vrot.slane %v2522_v10, 9  ;;  %v3082_v20 = vld [vmem:[%s3684_s1 + $0x238] sm:$0xff]  }
  0x75   : > { %2867 = vmatpush3.bf16.msra.mxu0 %v3058_v9  ;;  %2878 = vmatprep.mubr.bf16.mxu0 %v2503_v39  ;;  %v1747_v9 = vrot.slane %v1745_v4, 5  ;;  %v3075_v39 = vld [vmem:[%s3155_s10 + $0x28] ss:$8 sps:$4 sm:$0xff]   ;;  %v1957_v4 = vrot.slane %v3513_v24, 5 }
  0x76   : > { %2773 = vmatpush3.bf16.msra.mxu1 %v3059_v23  ;;  %2868 = vmatprep.subr.bf16.mxu0 %v3060_v37  ;;  %v3592_v23 = vld [vmem:[%s3155_s10 + $0x44] sm:$0x1] }
  0x77   : > { %2774 = vmatprep.subr.bf16.mxu1 %v3061_v33  ;;  %v1759_v36 = vshll.u32 %v3592_v23, 16  ;;  %v1748_v41 = vsel %vm3200_vm2, %v1743_v22, %v1747_v9  ;;  %v1958_v24 = vsel %vm3374_vm5, %v2523_v3, %v1957_v4  ;;  %v1981_v14 = vrot.slane %v3592_v23, 5  ;;  %v2517_v22 = vld [vmem:[%s3155_s10 + $0x20] sm:$0xe]  ;;  %v2518_v9 = vld [vmem:[%s3155_s10 + $0x28] sm:$0xe] }
  0x78   : > { %v2505_v13 = vcombine.low %v1734_v40, %v1748_v41  ;;  %v2547_v50 = vcombine.low %v1958_v24, %v1962_v61  ;;  %v1986_v23 = vsel %vm3374_vm5, %v2530_v19, %v1985_v54  ;;  %v2526_v28 = vrot.slane %v2518_v9, 9 }
  0x79   : > { %2869 = vmatpush3.bf16.msra.mxu0 %v3060_v37  ;;  %v1773_v37 = vshll.u32 %v3595_v60, 16  ;;  %v1761_v63 = vrot.slane %v1759_v36, 5  ;;  %v2525_v60 = vrot.slane %v2517_v22, 9 }
  0x7a   : > { %2775 = vmatpush3.bf16.msra.mxu1 %v3061_v33  ;;  %2870 = vmatprep.subr.bf16.mxu0 %v3062_v43  ;;  %v2520_v33 = vld [vmem:[%s3155_s10 + $0x38] sm:$0xe] }
  0x7b   : > { %2776 = vmatprep.subr.bf16.mxu1 %v3063_v0  ;;  %v2528_v44 = vrot.slane %v2520_v33, 9  ;;  %v1775_v48 = vrot.slane %v1773_v37, 5 }
  0x7d   : > { %2871 = vmatpush3.bf16.msra.mxu0 %v3062_v43  ;;  %v3074_v43 = vld [vmem:[%s3684_s1 + $0x208] sm:$0xff]   ;;  %v1978_v62 = vsel %vm3374_vm5, %v2528_v44, %v1977_v45 }
  0x7e   : > { %2777 = vmatpush3.bf16.msra.mxu1 %v3063_v0  ;;  %2872 = vmatprep.subr.bf16.mxu0 %v3064_v52  ;;  %v2527_v0 = vrot.slane %v2519_v21, 9  ;;  %v1970_v21 = vsel %vm3374_vm5, %v2526_v28, %v1969_v32 }
  0x7f   : > { %2778 = vmatprep.subr.bf16.mxu1 %v3066_v26 }
  0x80   : > { %v1974_v47 = vsel %vm3374_vm5, %v2527_v0, %v1973_v55 }
  0x81   : > { %2873 = vmatpush3.bf16.msra.mxu0 %v3064_v52  ;;  %v1757_v52 = vrot.slane %v1756_v42, 4  ;;  %v2549_v34 = vcombine.low %v1974_v47, %v1978_v62 }
  0x82   : > { %2779 = vmatpush3.bf16.msra.mxu1 %v3066_v26  ;;  %2874 = vmatprep.subr.bf16.mxu0 %v3068_v56  ;;  %v1771_v26 = vrot.slane %v1770_v30, 4 }
  0x83   : > { %2780 = vmatprep.subr.bf16.mxu1 %v3069_v15  ;;  %v1762_v17 = vsel %vm3200_vm2, %v1757_v52, %v1761_v63 }
  0x84   : > { %v1776_v27 = vsel %vm3200_vm2, %v1771_v26, %v1775_v48 }
  0x85   : > { %2875 = vmatpush3.bf16.msra.mxu0 %v3068_v56  ;;  %v2506_v46 = vcombine.low %v1762_v17, %v1776_v27  ;;  %v2521_v56 = vld [vmem:[%s3155_s10 + $0x40] sm:$0xe] }
  0x86   : > { %2781 = vmatpush3.bf16.msra.mxu1 %v3069_v15  ;;  %2876 = vmatprep.subr.bf16.mxu0 %v3070_v12  ;;  %v3081_v15 = vld [vmem:[%s3684_s1 + $0x230] sm:$0xff]   ;;  %v2529_v18 = vrot.slane %v2521_v56, 9 }
  0x87   : > { %2910 = vmatprep.subr.bf16.mxu1 %v3073_v11 }
  0x88   : > { %v1982_v1 = vsel %vm3374_vm5, %v2529_v18, %v1981_v14 }
  0x89   : > { %2783 = vmatmul.mubr.bf16.vlgmr.msra.gmra.mrb[0].mxu1 %v3072_v35  ;;  %2877 = vmatpush3.bf16.msra.mxu0 %v3070_v12  ;;  %v1966_v12 = vsel %vm3374_vm5, %v2525_v60, %v1965_v25 }
  0x8a   : > { %2918 = vmatpush3.bf16.msra.mxu1 %v3073_v11  ;;  %2786 = vmatprep.mubr.bf16.mxu1 %v3075_v39  ;;  %v2548_v33 = vcombine.low %v1966_v12, %v1970_v21 }
  0x8b   : > { %2911 = vmatprep.subr.bf16.mxu1 %v3074_v43  ;;  %2886 = vmatprep.subr.bf16.mxu0 %v3073_v11 }
  0x8c   : > { %2879 = vmatmul.mubr.bf16.vlgmr.msra.gmra.mrb[0].mxu0 %v2504_v29 }
  0x8d   : > { %2887 = vmatpush3.bf16.msra.mxu0 %v3073_v11  ;;  %2882 = vmatprep.mubr.bf16.mxu0 %v2505_v13  ;;  %v2550_v11 = vcombine.low %v1982_v1, %v1986_v23  ;;  %v2559_v13 = vld [vmem:[%s3685_s2] ss:$0 sm:$0xff] }
  0x8e   : > { %2919 = vmatpush3.bf16.msra.mxu1 %v3074_v43  ;;  %2888 = vmatprep.subr.bf16.mxu0 %v3074_v43 }
  0x8f   : > { %2912 = vmatprep.subr.bf16.mxu1 %v3077_v58 }
  0x91   : > { %2787 = vmatmul.mubr.bf16.gmra.mrb[4].mxu1 %v3076_v59  ;;  %2889 = vmatpush3.bf16.msra.mxu0 %v3074_v43 }
  0x92   : > { %2920 = vmatpush3.bf16.msra.mxu1 %v3077_v58  ;;  %2906 = vmatprep.mubr.bf16.mxu1 %v2549_v34 }
  0x93   : > { %2913 = vmatprep.subr.bf16.mxu1 %v3078_v16  ;;  %2890 = vmatprep.subr.bf16.mxu0 %v3077_v58 }
  0x94   : > { %2883 = vmatmul.mubr.bf16.gmra.mrb[4].mxu0 %v2506_v46 }
  0x95   : > { %2891 = vmatpush3.bf16.msra.mxu0 %v3077_v58  ;;  %2902 = vmatprep.mubr.bf16.mxu0 %v2547_v50 }
  0x96   : > { %2921 = vmatpush3.bf16.msra.mxu1 %v3078_v16  ;;  %2892 = vmatprep.subr.bf16.mxu0 %v3078_v16 }
  0x97   : > { %2914 = vmatprep.subr.bf16.mxu1 %v3079_v38 }
  0x99   : > { %2893 = vmatpush3.bf16.msra.mxu0 %v3078_v16 }
  0x9a   : > { %2922 = vmatpush3.bf16.msra.mxu1 %v3079_v38  ;;  %2894 = vmatprep.subr.bf16.mxu0 %v3079_v38 }
  0x9b   : > { %2915 = vmatprep.subr.bf16.mxu1 %v3080_v6 }
  0x9d   : > { %2895 = vmatpush3.bf16.msra.mxu0 %v3079_v38 }
  0x9e   : > { %2923 = vmatpush3.bf16.msra.mxu1 %v3080_v6  ;;  %2896 = vmatprep.subr.bf16.mxu0 %v3080_v6 }
  0x9f   : > { %2916 = vmatprep.subr.bf16.mxu1 %v3081_v15 }
  0xa1   : > { %2897 = vmatpush3.bf16.msra.mxu0 %v3080_v6 }
  0xa2   : > { %2924 = vmatpush3.bf16.msra.mxu1 %v3081_v15  ;;  %2898 = vmatprep.subr.bf16.mxu0 %v3081_v15 }
  0xa3   : > { %2917 = vmatprep.subr.bf16.mxu1 %v3082_v20 }
  0xa5   : > { %2899 = vmatpush3.bf16.msra.mxu0 %v3081_v15 }
  0xa6   : > { %2925 = vmatpush3.bf16.msra.mxu1 %v3082_v20  ;;  %2900 = vmatprep.subr.bf16.mxu0 %v3082_v20 }
  0xa9   : > { %2907 = vmatmul.mubr.bf16.vlgmr.msra.gmra.mrb[8].mxu1 %v2550_v11  ;;  %2901 = vmatpush3.bf16.msra.mxu0 %v3082_v20 }
  0xac   : > { %2903 = vmatmul.mubr.bf16.vlgmr.msra.gmra.mrb[0].mxu0 %v2548_v33 }
 0x15c   : > { %v2784_v35 = vpop.f32.mrb[0].mxu1 }
 0x15d   : > { %v947_v51 = vpop.f32.mrb[1].mxu1 }
 0x15e   : > { %v2785_v31 = vpop.f32.mrb[2].mxu1 }
 0x15f   : > { %v950_v57 = vpop.f32.mrb[3].mxu1 }
 0x164   : > { %v2788_v2 = vpop.f32.mrb[4].mxu1 }
 0x165   : > { %v963_v36 = vpop.f32.mrb[5].mxu1 }
 0x166   : > { %v2789_v37 = vpop.f32.mrb[6].mxu1 }
 0x167   : > { %v966_v39 = vpop.f32.mrb[7].mxu1  ;;  %v2884_v40 = vpop.f32.mrb[4].mxu0 }
 0x168   : > { %v2930_v41 = vadd.f32 %v2884_v40, %v2788_v2  ;;  %v1908_v42 = vpop.f32.mrb[5].mxu0 }
 0x169   : > { %v2932_v30 = vadd.f32 %v1908_v42, %v963_v36  ;;  %v2885_v8 = vpop.f32.mrb[6].mxu0 }
 0x16a   : > { %v2934_v43 = vadd.f32 %v2885_v8, %v2789_v37  ;;  %v1911_v0 = vpop.f32.mrb[7].mxu0 }
 0x16b   : > { %v2936_v55 = vadd.f32 %v1911_v0, %v966_v39 }
 0x17c   : > { %v2908_v44 = vpop.f32.mrb[8].mxu1 }
 0x17d   : > { %v2931_v45 = vadd.f32 %v2930_v41, %v2908_v44  ;;  %v2118_v29 = vpop.f32.mrb[9].mxu1 }
 0x17e   : > { %v2933_v63 = vadd.f32 %v2932_v30, %v2118_v29  ;;  %v2909_v48 = vpop.f32.mrb[10].mxu1 }
 0x17f   : > { %v2935_v49 = vadd.f32 %v2934_v43, %v2909_v48  ;;  %v2121_v53 = vpop.f32.mrb[11].mxu1  ;;  %v2904_v26 = vpop.f32.mrb[0].mxu0  ;;  %v2154_v47 = vadd.f32 %v2931_v45, %v2559_v13 }
 0x180   : > { %v2937_v52 = vadd.f32 %v2936_v55, %v2121_v53  ;;  %v2926_v58 = vadd.f32 %v2904_v26, %v2784_v35  ;;  %v2102_v59 = vpop.f32.mrb[1].mxu0  ;;  %v2152_v3 = vadd.f32 %v2933_v63, %v2559_v13 }
 0x181   : > { %v2155_v62 = vadd.f32 %v2935_v49, %v2559_v13  ;;  %v2927_v5 = vadd.f32 %v2102_v59, %v947_v51  ;;  %v2905_v7 = vpop.f32.mrb[2].mxu0 }
 0x182   : > { %v2153_v4 = vadd.f32 %v2937_v52, %v2559_v13  ;;  %v2928_v17 = vadd.f32 %v2905_v7, %v2785_v31  ;;  %v2105_v27 = vpop.f32.mrb[3].mxu0  ;;  %v2150_v61 = vadd.f32 %v2926_v58, %v2559_v13 }
 0x183   : > { %v2581_v34 = vpack.c.bf16 %v2155_v62, %v2154_v47  ;;  %v2929_v24 = vadd.f32 %v2105_v27, %v950_v57  ;;  %v2148_v38 = vadd.f32 %v2927_v5, %v2559_v13 }
 0x184   : > { %v2576_v16 = vpack.c.bf16 %v2153_v4, %v2152_v3  ;;  %v2151_v46 = vadd.f32 %v2928_v17, %v2559_v13 }
 0x185   : > { %2585 = vst [vmem:[%s170_s21 + $0x18] sm:$0xff] %v2581_v34   ;;  %v2149_v50 = vadd.f32 %v2929_v24, %v2559_v13 }
 0x186   : > { %2584 = vst [vmem:[%s170_s21 + $0x10] sm:$0xff] %v2576_v16   ;;  %v2571_v6 = vpack.c.bf16 %v2151_v46, %v2150_v61 }
 0x187   : > { %v2566_v15 = vpack.c.bf16 %v2149_v50, %v2148_v38 }
 0x188   : > { %2583 = vst [vmem:[%s170_s21 + $0x8] sm:$0xff] %v2571_v6  }
 0x189   : > { %2567 = vst [vmem:[%s170_s21] sm:$0xff] %v2566_v15  }
 0x18a PF: > { %s13_s12 = sadd.s32 1, %s3089_s12  }
 0x18b   : > { %p10_p4 = scmp.ge.s32.totalorder %s13_s12, 4  }
 0x18d   :  { %12 = sbr.rel (!%p10_p4) target bundleno = 1 (0x1), region = 72 }

// kernel: upsample_module_fwd.11
= control target key start
LH: loop header
LB: loop body
LE: loop exit
PB: predicated region body
PF: predicated region fallthrough
CT: control target
= control target key end

     0   :  { %s2535_s12 = smov 0   ;;  %s3002_s0 = inlined_call_operand.vmem [shape: bf16[2,6,6,128], index: 0, kind: input, shape index: {}]   ;;  %s3003_s1 = inlined_call_operand.vmem [shape: bf16[9,128,128], index: 1, kind: input, shape index: {}]   ;;  %s3004_s2 = inlined_call_operand.vmem [shape: f32[1,128], index: 2, kind: input, shape index: {}]   ;;  %s3005_s3 = inlined_call_operand.vmem [shape: bf16[2,4,4,128], index: 3, kind: output, shape index: {}]  }
   0x1 LB: > { %s1875_s13 = sadd.s32 4294967295, %s2510_s12   ;;  %p1879_p0 = scmp.ge.s32.totalorder %s2510_s12, 1  ;;  %s2510_s12 = sphi %s2535_s12, %s13_s12  }
   0x2   : > { %p137_p1 = scmp.lt.s32.totalorder %s2510_s12, 3 }
   0x4   : > { %p138_p2 = pnand %p1879_p0, %p137_p1 }
   0x5   : > { %v2420_v0 = vld [vmem:[%s3003_s1 + $0x40] sm:$0xff] (!%p138_p2)   ;;  %v2512_v1 = vmov (!%p138_p2), 0.0   ;;  %v2422_v3 = vld [vmem:[%s3003_s1 + $0x48] sm:$0xff] (!%p138_p2)   ;;  %vm2513_vm0 = vmmov (!%p138_p2), 0   ;;  %p161_p3 = scmp.lt.s32.totalorder (!%p138_p2), %s1875_s13, 1  ;;  %v2424_v5 = vld [vmem:[%s3003_s1 + $0x50] sm:$0xff] (!%p138_p2)   ;;  %v317_v9 = vlaneseq (!%p138_p2) }
   0x6   : > { %141 = sbr.rel (%p138_p2) target bundleno = 392 (0x188), region = 32  ;;  %2228 = vmatprep.subr.bf16.mxu0 (!%p138_p2), %v2512_v1  ;;  %2248 = vmatprep.subr.bf16.mxu1 (!%p138_p2), %v2512_v1  ;;  %v2421_v2 = vld [vmem:[%s3003_s1] sm:$0xff] (!%p138_p2)   ;;  %v2423_v4 = vld [vmem:[%s3003_s1 + $0x8] sm:$0xff] (!%p138_p2)   ;;  %v2425_v6 = vld [vmem:[%s3003_s1 + $0x10] sm:$0xff] (!%p138_p2)   ;;  %vm232_vm1 = vsmask.f32 (!%p138_p2), 1280 }
   0x7   : > { %2229 = vmatpush3.bf16.msra.mxu0 (!%p138_p2), %v2420_v0  ;;  %2244 = vmatprep.mubr.msk.bf16.mxu0 (!%p138_p2), %vm2513_vm0, %v2512_v1  ;;  %v2426_v7 = vld [vmem:[%s3003_s1 + $0x58] sm:$0xff] (!%p138_p2)   ;;  %v2428_v10 = vld [vmem:[%s3003_s1 + $0x60] sm:$0xff] (!%p138_p2)   ;;  %v2594_v12 = vshrl.u32 (!%p138_p2), %v317_v9, 7  ;;  %v2430_v13 = vld [vmem:[%s3003_s1 + $0x68] sm:$0xff] (!%p138_p2)   ;;  %vm233_vm2 = vsmask.f32 (!%p138_p2), 3336 }
   0x8   : > { %2249 = vmatpush3.bf16.msra.mxu1 (!%p138_p2), %v2421_v2  ;;  %2230 = vmatprep.subr.bf16.mxu0 (!%p138_p2), %v2512_v1  ;;  %v2427_v8 = vld [vmem:[%s3003_s1 + $0x18] sm:$0xff] (!%p138_p2)   ;;  %v2429_v11 = vld [vmem:[%s3003_s1 + $0x20] sm:$0xff] (!%p138_p2)   ;;  %v2431_v15 = vld [vmem:[%s3003_s1 + $0x28] sm:$0xff] (!%p138_p2)   ;;  %vm235_vm3 = vsmask.f32 (!%p138_p2), 5392  ;;  %vm570_vm8 = vcmask (!%p138_p2), 1040384  }
   0x9   : > { %2250 = vmatprep.subr.bf16.mxu1 (!%p138_p2), %v2512_v1  ;;  %2264 = vmatprep.mubr.msk.bf16.mxu1 (!%p138_p2), %vm2513_vm0, %v2512_v1  ;;  %vm234_vm4 = vmor (!%p138_p2), %vm232_vm1, %vm233_vm2  ;;  %vm237_vm5 = vsmask.f32 (!%p138_p2), 7448  ;;  %v2432_v22 = vld [vmem:[%s3003_s1 + $0x70] sm:$0xff] (!%p138_p2)   ;;  %v2434_v45 = vld [vmem:[%s3003_s1 + $0x78] sm:$0xff] (!%p138_p2)   ;;  %v2514_v57 = vmov (!%p138_p2), 1983009808  }
   0xa   : > { %v2433_v27 = vld [vmem:[%s3003_s1 + $0x30] sm:$0xff] (!%p138_p2)   ;;  %vm2616_vm6 = vmor (!%p138_p2), %vm234_vm4, %vm235_vm3  ;;  %v2435_v50 = vld [vmem:[%s3003_s1 + $0x38] sm:$0xff] (!%p138_p2)   ;;  %v315_v58 = vunpack.c.l.s4 (!%p138_p2), %v2514_v57  ;;  %vm571_vm9 = vcmask (!%p138_p2), 1042434   ;;  %vm573_vm11 = vcmask (!%p138_p2), 1044484   ;;  %vm575_vm12 = vcmask (!%p138_p2), 1046534  }
   0xb   : > { %2231 = vmatpush3.bf16.msra.mxu0 (!%p138_p2), %v2422_v3  ;;  %vm2628_vm7 = vmor (!%p138_p2), %vm2616_vm6, %vm237_vm5 }
   0xc   : > { %2251 = vmatpush3.bf16.msra.mxu1 (!%p138_p2), %v2423_v4  ;;  %2232 = vmatprep.subr.bf16.mxu0 (!%p138_p2), %v2512_v1  ;;  %v316_v3 = vunpack.c.0.s8 (!%p138_p2), %v315_v58  ;;  %vm2698_vm10 = vmor (!%p138_p2), %vm570_vm8, %vm571_vm9 }
   0xd   : > { %s3015_s13 = smov (!%p161_p3, %s1875_s13), 1  ;;  %2252 = vmatprep.subr.bf16.mxu1 %v2512_v1  ;;  %vm574_vm13 = vmor %vm2698_vm10, %vm573_vm11 }
   0xe   : > { %s2408_s26 = smul.u32 24, %s3015_s13  ;;  %vm2721_vm14 = vmor %vm574_vm13, %vm575_vm12  ;;  %s2146_s18 = sshll.u32 %s3015_s13, 3 }
   0xf   : > { %2233 = vmatpush3.bf16.msra.mxu0 %v2424_v5  ;;  %s170_s21 = scalar_lea.vmem %s3005_s3, %s2146_s18 }
  0x10   : > { %2253 = vmatpush3.bf16.msra.mxu1 %v2425_v6  ;;  %2234 = vmatprep.subr.bf16.mxu0 %v2512_v1  ;;  %s2585_s6 = scalar_lea.vmem %s3002_s0, %s2408_s26 }
  0x11   : > { %2254 = vmatprep.subr.bf16.mxu1 %v2512_v1  ;;  %v1883_v14 = vld.sshfl [vmem:[%s2585_s6] sm:$0x13 pattern:$0x76325410] }
  0x12   : > { %v1884_v16 = vld.sshfl [vmem:[%s2585_s6 + $0x4] sm:$0x13 pattern:$0x76325410]  ;;  %v207_v17 = vcombine.high %v1883_v14, %v1883_v14  ;;  %v240_v24 = vshrl.u32 %v1883_v14, 16  ;;  %v243_v25 = vshll.u32 %v1883_v14, 16 }
  0x13   : > { %2235 = vmatpush3.bf16.msra.mxu0 %v2426_v7  ;;  %v1885_v18 = vld.sshfl [vmem:[%s2585_s6 + $0x8] sm:$0x13 pattern:$0x76325410]  ;;  %v215_v19 = vcombine.high %v1884_v16, %v1884_v16  ;;  %v254_v28 = vshrl.u32 %v1884_v16, 16  ;;  %v257_v29 = vshll.u32 %v1884_v16, 16  ;;  %v2651_v7 = vsub.s32 %v316_v3, %v2594_v12 }
  0x14   : > { %2255 = vmatpush3.bf16.msra.mxu1 %v2427_v8  ;;  %2236 = vmatprep.subr.bf16.mxu0 %v2512_v1  ;;  %v1886_v20 = vld.sshfl [vmem:[%s2585_s6 + $0xc] sm:$0x13 pattern:$0x76325410]  ;;  %v223_v21 = vcombine.high %v1885_v18, %v1885_v18  ;;  %v249_v26 = vshll.u32 %v207_v17, 16  ;;  %v268_v31 = vshrl.u32 %v1885_v18, 16 }
  0x15   : > { %2256 = vmatprep.subr.bf16.mxu1 %v2512_v1  ;;  %v231_v23 = vcombine.high %v1886_v20, %v1886_v20  ;;  %v263_v30 = vshll.u32 %v215_v19, 16  ;;  %v242_v33 = vrot.slane %v240_v24, 6  ;;  %v245_v34 = vrot.slane %v243_v25, 7  ;;  %v2439_v12 = vld [vmem:[%s3003_s1 + $0xc0] sm:$0xff]   ;;  %v2441_v17 = vld [vmem:[%s3003_s1 + $0xc8] sm:$0xff]   ;;  %v2443_v19 = vld [vmem:[%s3003_s1 + $0xd0] sm:$0xff]  }
  0x16   : > { %v251_v35 = vrot.slane %v249_v26, 7  ;;  %v271_v36 = vshll.u32 %v1885_v18, 16  ;;  %v256_v37 = vrot.slane %v254_v28, 6  ;;  %v259_v38 = vrot.slane %v257_v29, 7  ;;  %v2440_v18 = vld [vmem:[%s3003_s1 + $0x88] sm:$0xff]   ;;  %v2444_v28 = vld [vmem:[%s3003_s1 + $0x98] sm:$0xff]  }
  0x17   : > { %2237 = vmatpush3.bf16.msra.mxu0 %v2428_v10  ;;  %v265_v39 = vrot.slane %v263_v30, 7  ;;  %v270_v40 = vrot.slane %v268_v31, 6  ;;  %v246_v41 = vor.u32 %v245_v34, %v242_v33  ;;  %v277_v43 = vshll.u32 %v223_v21, 16  ;;  %v2447_v29 = vld [vmem:[%s3003_s1 + $0xe0] sm:$0xff]  }
  0x18   : > { %2257 = vmatpush3.bf16.msra.mxu1 %v2429_v11  ;;  %2238 = vmatprep.subr.bf16.mxu0 %v2512_v1  ;;  %v273_v42 = vrot.slane %v271_v36, 7  ;;  %v282_v44 = vshrl.u32 %v1886_v20, 16  ;;  %v260_v47 = vor.u32 %v259_v38, %v256_v37  ;;  %v285_v48 = vshll.u32 %v1886_v20, 16  ;;  %v2446_v37 = vld [vmem:[%s3003_s1 + $0xa0] sm:$0xff]  }
  0x19   : > { %2258 = vmatprep.subr.bf16.mxu1 %v2512_v1  ;;  %v291_v49 = vshll.u32 %v231_v23, 16  ;;  %v247_v51 = vrot.slane %v246_v41, 2  ;;  %v279_v53 = vrot.slane %v277_v43, 7  ;;  %v2442_v23 = vld [vmem:[%s3003_s1 + $0x90] sm:$0xff]   ;;  %v2449_v43 = vld [vmem:[%s3003_s1 + $0xe8] sm:$0xff]   ;;  %v2457_v3 = vld [vmem:[%s3003_s1 + $0x140] sm:$0xff]  }
  0x1a   : > { %v274_v52 = vor.u32 %v273_v42, %v270_v40  ;;  %v284_v54 = vrot.slane %v282_v44, 6  ;;  %v261_v55 = vrot.slane %v260_v47, 2  ;;  %v287_v56 = vrot.slane %v285_v48, 7  ;;  %v2448_v44 = vld [vmem:[%s3003_s1 + $0xa8] sm:$0xff]   ;;  %v2465_v26 = vld [vmem:[%s3003_s1 + $0x160] sm:$0xff]  }
  0x1b   : > { %2239 = vmatpush3.bf16.msra.mxu0 %v2430_v13  ;;  %v2498_v59 = vld.sshfl [vmem:[%s2585_s6] sm:$0xf pattern:$0x76325410]  ;;  %v252_v61 = vsel %vm2628_vm7, %v247_v51, %v251_v35  ;;  %v293_v63 = vrot.slane %v291_v49, 7 }
  0x1c   : > { %2259 = vmatpush3.bf16.msra.mxu1 %v2431_v15  ;;  %2240 = vmatprep.subr.bf16.mxu0 %v2512_v1  ;;  %v2499_v60 = vld.sshfl [vmem:[%s2585_s6 + $0x8] sm:$0xf pattern:$0x76325410]  ;;  %v275_v62 = vrot.slane %v274_v52, 2  ;;  %v2643_v0 = vsel %vm2628_vm7, %v261_v55, %v265_v39  ;;  %v288_v2 = vor.u32 %v287_v56, %v284_v54  ;;  %v2438_v15 = vld [vmem:[%s3003_s1 + $0x80] sm:$0xff]  }
  0x1d   : > { %2260 = vmatprep.subr.bf16.mxu1 %v2512_v1  ;;  %v312_v5 = vcombine.low %v252_v61, %v2643_v0  ;;  %v439_v13 = vcombine.low %v2498_v59, %v2499_v60  ;;  %v1919_v20 = vld.sshfl [vmem:[%s2585_s6] sm:$0x12 pattern:$0x76325410]  ;;  %v2451_v52 = vld [vmem:[%s3003_s1 + $0xf0] sm:$0xff]   ;;  %v2453_v56 = vld [vmem:[%s3003_s1 + $0xf8] sm:$0xff]  }
  0x1e   : > { %v2647_v4 = vsel %vm2628_vm7, %v275_v62, %v279_v53  ;;  %v289_v6 = vrot.slane %v288_v2, 2  ;;  %v1920_v21 = vld.sshfl [vmem:[%s2585_s6 + $0x4] sm:$0x12 pattern:$0x76325410]  ;;  %v545_v25 = vcombine.high %v1919_v20, %v1919_v20  ;;  %v1923_v31 = vrot.slane %v1919_v20, 9 }
  0x1f   : > { %2241 = vmatpush3.bf16.msra.mxu0 %v2432_v22  ;;  %v967_v8 = vcombine.low %v2643_v0, %v2647_v4  ;;  %v320_v11 = vrot.slane %v312_v5, %v2651_v7  ;;  %v1921_v22 = vld.sshfl [vmem:[%s2585_s6 + $0x8] sm:$0x12 pattern:$0x76325410]  ;;  %v553_v30 = vcombine.high %v1920_v21, %v1920_v21  ;;  %v1924_v32 = vrot.slane %v1920_v21, 9  ;;  %v2450_v55 = vld [vmem:[%s3003_s1 + $0xb0] sm:$0xff]  }
  0x20   : > { %2261 = vmatpush3.bf16.msra.mxu1 %v2433_v27  ;;  %2242 = vmatprep.subr.bf16.mxu0 %v2512_v1  ;;  %v2659_v9 = vsel %vm2628_vm7, %v289_v6, %v293_v63  ;;  %v1922_v24 = vld.sshfl [vmem:[%s2585_s6 + $0xc] sm:$0x12 pattern:$0x76325410]  ;;  %v2445_v27 = vld [vmem:[%s3003_s1 + $0xd8] sm:$0xff]   ;;  %v561_v33 = vcombine.high %v1921_v22, %v1921_v22  ;;  %v579_v35 = vrot.slane %v545_v25, 7 }
  0x21   : > { %2262 = vmatprep.subr.bf16.mxu1 %v2512_v1  ;;  %v313_v10 = vcombine.low %v2647_v4, %v2659_v9  ;;  %v569_v34 = vcombine.high %v1922_v24, %v1922_v24  ;;  %v1925_v36 = vrot.slane %v1921_v22, 9  ;;  %v583_v38 = vrot.slane %v553_v30, 7  ;;  %v2500_v48 = vld.sshfl [vmem:[%s2585_s6 + $0x4] sm:$0xf pattern:$0x76325410] }
  0x22   : > { %v1926_v39 = vrot.slane %v1922_v24, 9  ;;  %v587_v41 = vrot.slane %v561_v33, 7  ;;  %v2501_v51 = vld.sshfl [vmem:[%s2585_s6 + $0xc] sm:$0xf pattern:$0x76325410]  ;;  %v2804_v21 = vrot.slane %v967_v8, %v2651_v7 }
  0x23   : > { %2243 = vmatpush3.bf16.msra.mxu0 %v2434_v45  ;;  %v2668_v14 = vrot.slane %v313_v10, %v2651_v7  ;;  %v591_v42 = vrot.slane %v569_v34, 7  ;;  %v580_v45 = vsel %vm2721_vm14, %v1923_v31, %v579_v35  ;;  %v2737_v47 = vsel %vm2721_vm14, %v1924_v32, %v583_v38  ;;  %v1986_v58 = vld.sshfl [vmem:[%s2585_s6 + $0x10] sm:$0x13 pattern:$0x76325410]  ;;  %v2452_v63 = vld [vmem:[%s3003_s1 + $0xb8] sm:$0xff]  }
  0x24   : > { %2263 = vmatpush3.bf16.msra.mxu1 %v2435_v50  ;;  %2268 = vmatprep.subr.bf16.mxu0 %v2512_v1  ;;  %v2742_v49 = vsel %vm2721_vm14, %v1925_v36, %v587_v41  ;;  %v610_v53 = vcombine.low %v580_v45, %v2737_v47  ;;  %v893_v60 = vcombine.high %v1986_v58, %v1986_v58  ;;  %v937_v61 = vshrl.u32 %v1986_v58, 16  ;;  %v2018_v22 = vld.sshfl [vmem:[%s2585_s6 + $0x10] sm:$0x12 pattern:$0x76325410]  ;;  %v2463_v8 = vld [vmem:[%s3003_s1 + $0x158] sm:$0xff]  }
  0x25   : > { %2288 = vmatprep.subr.bf16.mxu1 %v2512_v1  ;;  %v328_v16 = vcombine.low %v320_v11, %v2668_v14  ;;  %v2746_v50 = vsel %vm2721_vm14, %v1926_v39, %v591_v42  ;;  %v940_v62 = vshll.u32 %v1986_v58, 16  ;;  %v761_v2 = vcombine.low %v2500_v48, %v2501_v51  ;;  %v2460_v0 = vld [vmem:[%s3003_s1 + $0x110] sm:$0xff]   ;;  %v2462_v25 = vld [vmem:[%s3003_s1 + $0x118] sm:$0xff]   ;;  %v2467_v30 = vld [vmem:[%s3003_s1 + $0x168] sm:$0xff]  }
  0x26   : > { %v611_v54 = vcombine.low %v2742_v49, %v2746_v50  ;;  %v618_v57 = vrot.slane %v610_v53, %v2651_v7  ;;  %v939_v5 = vrot.slane %v937_v61, 6  ;;  %v946_v10 = vshll.u32 %v893_v60, 16  ;;  %v2466_v32 = vld [vmem:[%s3003_s1 + $0x128] sm:$0xff]   ;;  %v2469_v35 = vld [vmem:[%s3003_s1 + $0x170] sm:$0xff]   ;;  %v2470_v45 = vld [vmem:[%s3003_s1 + $0x138] sm:$0xff]  }
  0x27   : > { %2265 = vmatmul.mubr.bf16.vlgmr.msra.gmra.mrb[0].mxu1 %v439_v13  ;;  %2245 = vmatmul.mubr.bf16.vlgmr.msra.gmra.mrb[0].mxu0 %v328_v16  ;;  %v942_v6 = vrot.slane %v940_v62, 7  ;;  %v2459_v16 = vld [vmem:[%s3003_s1 + $0x148] sm:$0xff]   ;;  %v1149_v33 = vcombine.low %v2737_v47, %v2742_v49  ;;  %v2114_v36 = vld.sshfl [vmem:[%s2585_s6 + $0x14] sm:$0x12 pattern:$0x76325410] }
  0x28   : > { %2289 = vmatpush3.bf16.msra.mxu1 %v2439_v12  ;;  %2304 = vmatprep.mubr.msk.bf16.mxu1 %vm2513_vm0, %v2512_v1  ;;  %v2768_v59 = vrot.slane %v611_v54, %v2651_v7  ;;  %v948_v13 = vrot.slane %v946_v10, 7  ;;  %v1654_v41 = vcombine.high %v2114_v36, %v2114_v36  ;;  %v2118_v42 = vrot.slane %v2114_v36, 9  ;;  %v2473_v49 = vld [vmem:[%s3003_s1 + $0x1c0] sm:$0xff]   ;;  %v2475_v53 = vld [vmem:[%s3003_s1 + $0x1c8] sm:$0xff]   ;;  %v2477_v58 = vld [vmem:[%s3003_s1 + $0x1d0] sm:$0xff]  }
  0x29   : > { %2290 = vmatprep.subr.bf16.mxu1 %v2512_v1  ;;  %2269 = vmatpush3.bf16.msra.mxu0 %v2438_v15  ;;  %v943_v12 = vor.u32 %v942_v6, %v939_v5  ;;  %v2454_v15 = vld [vmem:[%s3003_s1 + $0x100] sm:$0xff]   ;;  %v1157_v38 = vrot.slane %v1149_v33, %v2651_v7  ;;  %v2082_v51 = vld.sshfl [vmem:[%s2585_s6 + $0x14] sm:$0x13 pattern:$0x76325410]  ;;  %v2478_v6 = vld [vmem:[%s3003_s1 + $0x198] sm:$0xff]  }
  0x2a   : > { %2284 = vmatprep.mubr.msk.bf16.mxu0 %vm2513_vm0, %v2512_v1  ;;  %2270 = vmatprep.subr.bf16.mxu0 %v2512_v1  ;;  %v626_v11 = vcombine.low %v618_v57, %v2768_v59  ;;  %v2472_v40 = vld [vmem:[%s3003_s1 + $0x180] sm:$0xff]   ;;  %v1476_v54 = vshrl.u32 %v2082_v51, 16  ;;  %v2474_v57 = vld [vmem:[%s3003_s1 + $0x188] sm:$0xff]   ;;  %v1432_v60 = vcombine.high %v2082_v51, %v2082_v51 }
  0x2b   : > { %v2481_v10 = vld [vmem:[%s3003_s1 + $0x1e0] sm:$0xff]   ;;  %v2502_v46 = vld.sshfl [vmem:[%s2585_s6 + $0x8] sm:$0xf pattern:$0x76325410] }
  0x2c   : > { %2291 = vmatpush3.bf16.msra.mxu1 %v2441_v17  ;;  %v944_v17 = vrot.slane %v943_v12, 2  ;;  %v1478_v61 = vrot.slane %v1476_v54, 6  ;;  %v1485_v5 = vshll.u32 %v1432_v60, 16 }
  0x2d   : > { %2292 = vmatprep.subr.bf16.mxu1 %v2512_v1  ;;  %2271 = vmatpush3.bf16.msra.mxu0 %v2440_v18 }
  0x2e   : > { %2272 = vmatprep.subr.bf16.mxu0 %v2512_v1  ;;  %v2791_v18 = vsel %vm2628_vm7, %v944_v17, %v948_v13  ;;  %v1487_v12 = vrot.slane %v1485_v5, 7  ;;  %v2480_v13 = vld [vmem:[%s3003_s1 + $0x1a0] sm:$0xff]   ;;  %v2482_v17 = vld [vmem:[%s3003_s1 + $0x1a8] sm:$0xff]  }
  0x2f   : > { %v968_v20 = vcombine.low %v2659_v9, %v2791_v18  ;;  %v1115_v9 = vcombine.high %v2018_v22, %v2018_v22 }
  0x30   : > { %2293 = vmatpush3.bf16.msra.mxu1 %v2443_v19  ;;  %v2458_v19 = vld [vmem:[%s3003_s1 + $0x108] sm:$0xff]  }
  0x31   : > { %2294 = vmatprep.subr.bf16.mxu1 %v2512_v1  ;;  %2273 = vmatpush3.bf16.msra.mxu0 %v2442_v23  ;;  %v2461_v23 = vld [vmem:[%s3003_s1 + $0x150] sm:$0xff]   ;;  %v2813_v24 = vrot.slane %v968_v20, %v2651_v7 }
  0x32   : > { %2274 = vmatprep.subr.bf16.mxu0 %v2512_v1  ;;  %v2485_v20 = vld [vmem:[%s3003_s1 + $0x1f0] sm:$0xff]  }
  0x33   : > { %v983_v4 = vcombine.low %v2804_v21, %v2813_v24  ;;  %v2503_v21 = vld.sshfl [vmem:[%s2585_s6 + $0x10] sm:$0xf pattern:$0x76325410]  ;;  %v2486_v24 = vld [vmem:[%s3003_s1 + $0x1b8] sm:$0xff]  }
  0x34   : > { %2295 = vmatpush3.bf16.msra.mxu1 %v2445_v27  ;;  %v2022_v27 = vrot.slane %v2018_v22, 9  ;;  %v2484_v22 = vld [vmem:[%s3003_s1 + $0x1b0] sm:$0xff]  }
  0x35   : > { %2296 = vmatprep.subr.bf16.mxu1 %v2512_v1  ;;  %2275 = vmatpush3.bf16.msra.mxu0 %v2444_v28  ;;  %v1130_v28 = vrot.slane %v1115_v9, 7  ;;  %v2493_v9 = vld [vmem:[%s3003_s1 + $0x218] sm:$0xff]  }
  0x36   : > { %2276 = vmatprep.subr.bf16.mxu0 %v2512_v1 }
  0x37   : > { %v1131_v31 = vsel %vm2721_vm14, %v2022_v27, %v1130_v28  ;;  %v2496_v27 = vld [vmem:[%s3003_s1 + $0x230] sm:$0xff]   ;;  %v2497_v28 = vld [vmem:[%s3003_s1 + $0x238] sm:$0xff]  }
  0x38   : > { %2297 = vmatpush3.bf16.msra.mxu1 %v2447_v29  ;;  %v2464_v29 = vld [vmem:[%s3003_s1 + $0x120] sm:$0xff]   ;;  %v1150_v34 = vcombine.low %v2746_v50, %v1131_v31 }
  0x39   : > { %2298 = vmatprep.subr.bf16.mxu1 %v2512_v1  ;;  %2277 = vmatpush3.bf16.msra.mxu0 %v2446_v37  ;;  %v2468_v37 = vld [vmem:[%s3003_s1 + $0x130] sm:$0xff]  }
  0x3a   : > { %2278 = vmatprep.subr.bf16.mxu0 %v2512_v1  ;;  %v1164_v39 = vrot.slane %v1150_v34, %v2651_v7 }
  0x3c   : > { %2299 = vmatpush3.bf16.msra.mxu1 %v2449_v43  ;;  %v2471_v43 = vld [vmem:[%s3003_s1 + $0x178] sm:$0xff]   ;;  %v1165_v47 = vcombine.low %v1157_v38, %v1164_v39 }
  0x3d   : > { %2300 = vmatprep.subr.bf16.mxu1 %v2512_v1  ;;  %2279 = vmatpush3.bf16.msra.mxu0 %v2448_v44  ;;  %v1669_v44 = vrot.slane %v1654_v41, 7 }
  0x3e   : > { %2280 = vmatprep.subr.bf16.mxu0 %v2512_v1 }
  0x3f   : > { %v1670_v48 = vsel %vm2721_vm14, %v2118_v42, %v1669_v44 }
  0x40   : > { %2301 = vmatpush3.bf16.msra.mxu1 %v2451_v52  ;;  %v1689_v50 = vcombine.low %v1131_v31, %v1670_v48 }
  0x41   : > { %2302 = vmatprep.subr.bf16.mxu1 %v2512_v1  ;;  %2281 = vmatpush3.bf16.msra.mxu0 %v2450_v55  ;;  %v1479_v55 = vshll.u32 %v2082_v51, 16 }
  0x42   : > { %2282 = vmatprep.subr.bf16.mxu0 %v2512_v1  ;;  %v2877_v52 = vrot.slane %v1689_v50, %v2651_v7 }
  0x43   : > { %v1481_v62 = vrot.slane %v1479_v55, 7 }
  0x44   : > { %2303 = vmatpush3.bf16.msra.mxu1 %v2453_v56  ;;  %v1704_v56 = vcombine.low %v2768_v59, %v2877_v52 }
  0x45   : > { %2328 = vmatprep.subr.bf16.mxu1 %v2512_v1  ;;  %2283 = vmatpush3.bf16.msra.mxu0 %v2452_v63  ;;  %v2476_v63 = vld [vmem:[%s3003_s1 + $0x190] sm:$0xff]  }
  0x46   : > { %2308 = vmatprep.subr.bf16.mxu0 %v2512_v1 }
  0x47   : > { %2305 = vmatmul.mubr.bf16.vlgmr.msra.gmra.mrb[4].mxu1 %v761_v2  ;;  %v2479_v2 = vld [vmem:[%s3003_s1 + $0x1d8] sm:$0xff]  }
  0x48   : > { %2329 = vmatpush3.bf16.msra.mxu1 %v2457_v3  ;;  %2344 = vmatprep.mubr.msk.bf16.mxu1 %vm2513_vm0, %v2512_v1  ;;  %v1482_v3 = vor.u32 %v1481_v62, %v1478_v61 }
  0x49   : > { %2330 = vmatprep.subr.bf16.mxu1 %v2512_v1  ;;  %2285 = vmatmul.mubr.bf16.vlgmr.msra.gmra.mrb[4].mxu0 %v626_v11 }
  0x4a   : > { %2309 = vmatpush3.bf16.msra.mxu0 %v2454_v15  ;;  %2324 = vmatprep.mubr.msk.bf16.mxu0 %vm2513_vm0, %v2512_v1  ;;  %v1483_v11 = vrot.slane %v1482_v3, 2  ;;  %v2483_v15 = vld [vmem:[%s3003_s1 + $0x1e8] sm:$0xff]  }
  0x4b   : > { %2310 = vmatprep.subr.bf16.mxu0 %v2512_v1 }
  0x4c   : > { %2331 = vmatpush3.bf16.msra.mxu1 %v2459_v16  ;;  %v1488_v16 = vsel %vm2628_vm7, %v1483_v11, %v1487_v12 }
  0x4d   : > { %2332 = vmatprep.subr.bf16.mxu1 %v2512_v1 }
  0x4e   : > { %2311 = vmatpush3.bf16.msra.mxu0 %v2458_v19  ;;  %v1507_v19 = vcombine.low %v2791_v18, %v1488_v16  ;;  %v2487_v18 = vld [vmem:[%s3003_s1 + $0x1f8] sm:$0xff]  }
  0x4f   : > { %2312 = vmatprep.subr.bf16.mxu0 %v2512_v1 }
  0x50   : > { %2333 = vmatpush3.bf16.msra.mxu1 %v2461_v23  ;;  %v1521_v23 = vrot.slane %v1507_v19, %v2651_v7  ;;  %v1300_v7 = vcombine.low %v2502_v46, %v2503_v21 }
  0x51   : > { %2334 = vmatprep.subr.bf16.mxu1 %v2512_v1 }
  0x52   : > { %2313 = vmatpush3.bf16.msra.mxu0 %v2460_v0  ;;  %v1522_v0 = vcombine.low %v2668_v14, %v1521_v23  ;;  %v2492_v14 = vld [vmem:[%s3003_s1 + $0x210] sm:$0xff]  }
  0x53   : > { %2314 = vmatprep.subr.bf16.mxu0 %v2512_v1 }
  0x54   : > { %2335 = vmatpush3.bf16.msra.mxu1 %v2463_v8  ;;  %v2491_v8 = vld [vmem:[%s3003_s1 + $0x208] sm:$0xff]  }
  0x55   : > { %2336 = vmatprep.subr.bf16.mxu1 %v2512_v1 }
  0x56   : > { %2315 = vmatpush3.bf16.msra.mxu0 %v2462_v25  ;;  %v2494_v25 = vld [vmem:[%s3003_s1 + $0x220] sm:$0xff]  }
  0x57   : > { %2316 = vmatprep.subr.bf16.mxu0 %v2512_v1 }
  0x58   : > { %2337 = vmatpush3.bf16.msra.mxu1 %v2465_v26  ;;  %v2495_v26 = vld [vmem:[%s3003_s1 + $0x228] sm:$0xff]  }
  0x59   : > { %2338 = vmatprep.subr.bf16.mxu1 %v2512_v1 }
  0x5a   : > { %2317 = vmatpush3.bf16.msra.mxu0 %v2464_v29 }
  0x5b   : > { %2318 = vmatprep.subr.bf16.mxu0 %v2512_v1 }
  0x5c   : > { %2339 = vmatpush3.bf16.msra.mxu1 %v2467_v30 }
  0x5d   : > { %2340 = vmatprep.subr.bf16.mxu1 %v2512_v1 }
  0x5e   : > { %2319 = vmatpush3.bf16.msra.mxu0 %v2466_v32 }
  0x5f   : > { %2320 = vmatprep.subr.bf16.mxu0 %v2512_v1 }
  0x60   : > { %2341 = vmatpush3.bf16.msra.mxu1 %v2469_v35 }
  0x61   : > { %2342 = vmatprep.subr.bf16.mxu1 %v2512_v1 }
  0x62   : > { %2321 = vmatpush3.bf16.msra.mxu0 %v2468_v37 }
  0x63   : > { %2322 = vmatprep.subr.bf16.mxu0 %v2512_v1 }
  0x64   : > { %2343 = vmatpush3.bf16.msra.mxu1 %v2471_v43 }
  0x65   : > { %2368 = vmatprep.subr.bf16.mxu1 %v2512_v1 }
  0x66   : > { %2323 = vmatpush3.bf16.msra.mxu0 %v2470_v45 }
  0x67   : > { %2345 = vmatmul.mubr.bf16.vlgmr.msra.gmra.mrb[8].mxu1 %v1165_v47  ;;  %2348 = vmatprep.subr.bf16.mxu0 %v2512_v1 }
  0x68   : > { %2369 = vmatpush3.bf16.msra.mxu1 %v2473_v49  ;;  %2384 = vmatprep.mubr.msk.bf16.mxu1 %vm2513_vm0, %v2512_v1 }
  0x69   : > { %2370 = vmatprep.subr.bf16.mxu1 %v2512_v1  ;;  %2325 = vmatmul.mubr.bf16.vlgmr.msra.gmra.mrb[8].mxu0 %v983_v4  ;;  %v2490_v4 = vld [vmem:[%s3003_s1 + $0x200] sm:$0xff]  }
  0x6a   : > { %2349 = vmatpush3.bf16.msra.mxu0 %v2472_v40  ;;  %2364 = vmatprep.mubr.msk.bf16.mxu0 %vm2513_vm0, %v2512_v1 }
  0x6b   : > { %2350 = vmatprep.subr.bf16.mxu0 %v2512_v1 }
  0x6c   : > { %2371 = vmatpush3.bf16.msra.mxu1 %v2475_v53 }
  0x6d   : > { %2372 = vmatprep.subr.bf16.mxu1 %v2512_v1 }
  0x6e   : > { %2351 = vmatpush3.bf16.msra.mxu0 %v2474_v57 }
  0x6f   : > { %2352 = vmatprep.subr.bf16.mxu0 %v2512_v1 }
  0x70   : > { %2373 = vmatpush3.bf16.msra.mxu1 %v2477_v58 }
  0x71   : > { %2374 = vmatprep.subr.bf16.mxu1 %v2512_v1 }
  0x72   : > { %2353 = vmatpush3.bf16.msra.mxu0 %v2476_v63 }
  0x73   : > { %2354 = vmatprep.subr.bf16.mxu0 %v2512_v1 }
  0x74   : > { %2375 = vmatpush3.bf16.msra.mxu1 %v2479_v2 }
  0x75   : > { %2376 = vmatprep.subr.bf16.mxu1 %v2512_v1 }
  0x76   : > { %2355 = vmatpush3.bf16.msra.mxu0 %v2478_v6 }
  0x77   : > { %2356 = vmatprep.subr.bf16.mxu0 %v2512_v1 }
  0x78   : > { %2377 = vmatpush3.bf16.msra.mxu1 %v2481_v10 }
  0x79   : > { %2378 = vmatprep.subr.bf16.mxu1 %v2512_v1 }
  0x7a   : > { %2357 = vmatpush3.bf16.msra.mxu0 %v2480_v13 }
  0x7b   : > { %2358 = vmatprep.subr.bf16.mxu0 %v2512_v1 }
  0x7c   : > { %2379 = vmatpush3.bf16.msra.mxu1 %v2483_v15 }
  0x7d   : > { %2380 = vmatprep.subr.bf16.mxu1 %v2512_v1 }
  0x7e   : > { %2359 = vmatpush3.bf16.msra.mxu0 %v2482_v17 }
  0x7f   : > { %2360 = vmatprep.subr.bf16.mxu0 %v2512_v1 }
  0x80   : > { %2381 = vmatpush3.bf16.msra.mxu1 %v2485_v20  ;;  %v2143_v20 = vld [vmem:[%s3004_s2] ss:$0 sm:$0xff] }
  0x81   : > { %2382 = vmatprep.subr.bf16.mxu1 %v2512_v1 }
  0x82   : > { %2361 = vmatpush3.bf16.msra.mxu0 %v2484_v22 }
  0x83   : > { %2362 = vmatprep.subr.bf16.mxu0 %v2512_v1 }
  0x84   : > { %2383 = vmatpush3.bf16.msra.mxu1 %v2487_v18 }
  0x86   : > { %2363 = vmatpush3.bf16.msra.mxu0 %v2486_v24 }
  0x87   : > { %2385 = vmatmul.mubr.bf16.vlgmr.msra.gmra.mrb[12].mxu1 %v1522_v0  ;;  %2388 = vmatprep.subr.bf16.mxu0 %v2512_v1 }
  0x89   : > { %2365 = vmatmul.mubr.bf16.vlgmr.msra.gmra.mrb[12].mxu0 %v1300_v7 }
  0x8a   : > { %2389 = vmatpush3.bf16.msra.mxu0 %v2490_v4  ;;  %2404 = vmatprep.mubr.msk.bf16.mxu0 %vm2513_vm0, %v2512_v1 }
  0x8b   : > { %2390 = vmatprep.subr.bf16.mxu0 %v2512_v1 }
  0x8e   : > { %2391 = vmatpush3.bf16.msra.mxu0 %v2491_v8 }
  0x8f   : > { %2392 = vmatprep.subr.bf16.mxu0 %v2512_v1 }
  0x92   : > { %2393 = vmatpush3.bf16.msra.mxu0 %v2492_v14 }
  0x93   : > { %2394 = vmatprep.subr.bf16.mxu0 %v2512_v1 }
  0x96   : > { %2395 = vmatpush3.bf16.msra.mxu0 %v2493_v9 }
  0x97   : > { %2396 = vmatprep.subr.bf16.mxu0 %v2512_v1 }
  0x9a   : > { %2397 = vmatpush3.bf16.msra.mxu0 %v2494_v25 }
  0x9b   : > { %2398 = vmatprep.subr.bf16.mxu0 %v2512_v1 }
  0x9e   : > { %2399 = vmatpush3.bf16.msra.mxu0 %v2495_v26 }
  0x9f   : > { %2400 = vmatprep.subr.bf16.mxu0 %v2512_v1 }
  0xa2   : > { %2401 = vmatpush3.bf16.msra.mxu0 %v2496_v27 }
  0xa3   : > { %2402 = vmatprep.subr.bf16.mxu0 %v2512_v1 }
  0xa6   : > { %2403 = vmatpush3.bf16.msra.mxu0 %v2497_v28 }
  0xa9   : > { %2405 = vmatmul.mubr.bf16.vlgmr.msra.gmra.mrb[16].mxu0 %v1704_v56 }
  0xfa   : > { %v523_v29 = vpop.f32.mrb[0].mxu1  ;;  %v412_v32 = vpop.f32.mrb[0].mxu0 }
  0xfb   : > { %v2266_v30 = vpop.f32.mrb[1].mxu1  ;;  %v524_v34 = vadd.f32 %v523_v29, %v412_v32  ;;  %v2246_v35 = vpop.f32.mrb[1].mxu0 }
  0xfc   : > { %v526_v31 = vpop.f32.mrb[2].mxu1  ;;  %v415_v36 = vpop.f32.mrb[2].mxu0 }
  0xfd   : > { %v2267_v33 = vpop.f32.mrb[3].mxu1  ;;  %v527_v37 = vadd.f32 %v526_v31, %v415_v36  ;;  %v2247_v38 = vpop.f32.mrb[3].mxu0 }
 0x11a   : > { %v845_v39 = vpop.f32.mrb[4].mxu1 }
 0x11b   : > { %v2306_v41 = vpop.f32.mrb[5].mxu1 }
 0x11c   : > { %v848_v42 = vpop.f32.mrb[6].mxu1  ;;  %v710_v43 = vpop.f32.mrb[4].mxu0 }
 0x11d   : > { %v2307_v1 = vpop.f32.mrb[7].mxu1  ;;  %v717_v44 = vadd.f32 %v710_v43, %v524_v34  ;;  %v2286_v45 = vpop.f32.mrb[5].mxu0 }
 0x11e   : > { %v713_v47 = vpop.f32.mrb[6].mxu0 }
 0x11f   : > { %v718_v59 = vadd.f32 %v713_v47, %v527_v37  ;;  %v852_v48 = vadd.f32 %v845_v39, %v717_v44  ;;  %v2287_v49 = vpop.f32.mrb[7].mxu0 }
 0x121   : > { %v853_v50 = vadd.f32 %v848_v42, %v718_v59 }
 0x13a   : > { %v1249_v51 = vpop.f32.mrb[8].mxu1 }
 0x13b   : > { %v2346_v52 = vpop.f32.mrb[9].mxu1 }
 0x13c   : > { %v1252_v40 = vpop.f32.mrb[10].mxu1  ;;  %v1067_v53 = vpop.f32.mrb[8].mxu0 }
 0x13d   : > { %v2347_v54 = vpop.f32.mrb[11].mxu1  ;;  %v1074_v55 = vadd.f32 %v1067_v53, %v852_v48  ;;  %v2326_v56 = vpop.f32.mrb[9].mxu0 }
 0x13e   : > { %v1070_v57 = vpop.f32.mrb[10].mxu0 }
 0x13f   : > { %v1075_v58 = vadd.f32 %v1070_v57, %v853_v50  ;;  %v1256_v60 = vadd.f32 %v1249_v51, %v1074_v55  ;;  %v2327_v61 = vpop.f32.mrb[11].mxu0 }
 0x141   : > { %v1257_v62 = vadd.f32 %v1252_v40, %v1075_v58 }
 0x15a   : > { %v1606_v63 = vpop.f32.mrb[12].mxu1 }
 0x15b   : > { %v2386_v2 = vpop.f32.mrb[13].mxu1 }
 0x15c   : > { %v1609_v3 = vpop.f32.mrb[14].mxu1  ;;  %v1384_v5 = vpop.f32.mrb[12].mxu0 }
 0x15d   : > { %v2387_v6 = vpop.f32.mrb[15].mxu1  ;;  %v1391_v10 = vadd.f32 %v1384_v5, %v1256_v60  ;;  %v2366_v11 = vpop.f32.mrb[13].mxu0 }
 0x15e   : > { %v1387_v12 = vpop.f32.mrb[14].mxu0 }
 0x15f   : > { %v1392_v13 = vadd.f32 %v1387_v12, %v1257_v62  ;;  %v1613_v15 = vadd.f32 %v1606_v63, %v1391_v10  ;;  %v2367_v16 = vpop.f32.mrb[15].mxu0 }
 0x161   : > { %v1614_v17 = vadd.f32 %v1609_v3, %v1392_v13 }
 0x17c   : > { %v1788_v19 = vpop.f32.mrb[16].mxu0 }
 0x17d   : > { %v1795_v46 = vadd.f32 %v1788_v19, %v1613_v15  ;;  %v2406_v21 = vpop.f32.mrb[17].mxu0 }
 0x17e   : > { %v1791_v22 = vpop.f32.mrb[18].mxu0 }
 0x17f   : > { %v1804_v23 = vadd.f32 %v2143_v20, %v1795_v46  ;;  %v1796_v18 = vadd.f32 %v1791_v22, %v1614_v17  ;;  %v2407_v24 = vpop.f32.mrb[19].mxu0 }
 0x181   : > { %v1808_v0 = vcombine.high %v1804_v23, %v1804_v23  ;;  %v1812_v7 = vpack.c.bf16 %v1804_v23, %v1804_v23  ;;  %v1805_v4 = vadd.f32 %v2143_v20, %v1796_v18 }
 0x183   : > { %v1813_v8 = vpack.c.bf16 %v1808_v0, %v1808_v0  ;;  %1816 = vst [vmem:[%s170_s21] sm:$0x3] %v1812_v7  ;;  %v1809_v14 = vcombine.high %v1805_v4, %v1805_v4  ;;  %v1814_v9 = vpack.c.bf16 %v1805_v4, %v1805_v4 }
 0x185   : > { %1817 = vst [vmem:[%s170_s21 + $0x2] sm:$0x3] %v1813_v8  ;;  %v1815_v25 = vpack.c.bf16 %v1809_v14, %v1809_v14  ;;  %1818 = vst [vmem:[%s170_s21 + $0x4] sm:$0x3] %v1814_v9 }
 0x187   : > { %1819 = vst [vmem:[%s170_s21 + $0x6] sm:$0x3] %v1815_v25 }
 0x188 PF: > { %s13_s12 = sadd.s32 1, %s2510_s12  }
 0x189   : > { %p10_p4 = scmp.ge.s32.totalorder %s13_s12, 4  }
 0x18b   :  { %12 = sbr.rel (!%p10_p4) target bundleno = 1 (0x1), region = 72 }

// kernel: upsample_module_fwd.15
= control target key start
LH: loop header
LB: loop body
LE: loop exit
PB: predicated region body
PF: predicated region fallthrough
CT: control target
= control target key end

     0   :  { %s6850_s12 = smov 0   ;;  %s8684_s0 = inlined_call_operand.vmem [shape: bf16[2,18,18,128], index: 0, kind: input, shape index: {}]   ;;  %s8685_s1 = inlined_call_operand.vmem [shape: bf16[9,128,128], index: 1, kind: input, shape index: {}]   ;;  %s8686_s2 = inlined_call_operand.vmem [shape: f32[1,128], index: 2, kind: input, shape index: {}]   ;;  %s8687_s3 = inlined_call_operand.vmem [shape: bf16[2,16,16,128], index: 3, kind: output, shape index: {}]  }
   0x1 LB: > { %s5107_s13 = sadd.s32 4294967295, %s6828_s12   ;;  %p5111_p0 = scmp.ge.s32.totalorder %s6828_s12, 1  ;;  %s6828_s12 = sphi %s6850_s12, %s13_s12  }
   0x2   : > { %p137_p1 = scmp.lt.s32.totalorder %s6828_s12, 3 }
   0x4   : > { %p138_p2 = pnand %p5111_p0, %p137_p1 }
   0x6   : > { %141 = sbr.rel (%p138_p2) target bundleno = 587 (0x24b), region = 32 }
   0xd   : > { %v6632_v0 = vld [vmem:[%s8685_s1 + $0x40] sm:$0xff]   ;;  %p161_p3 = scmp.lt.s32.totalorder %s5107_s13, 1  ;;  %v6634_v2 = vld [vmem:[%s8685_s1 + $0x48] sm:$0xff]   ;;  %v6636_v4 = vld [vmem:[%s8685_s1 + $0x50] sm:$0xff]   ;;  %vm236_vm0 = vsmask.f32 3328 }
   0xe   : > { %v6633_v1 = vld [vmem:[%s8685_s1 + $0x100] sm:$0xff]   ;;  %5919 = vmatprep.subr.bf16.mxu1 %v6632_v0  ;;  %v6635_v3 = vld [vmem:[%s8685_s1 + $0x108] sm:$0xff]   ;;  %v6637_v5 = vld [vmem:[%s8685_s1 + $0x110] sm:$0xff]   ;;  %vm237_vm1 = vsmask.f32 7440  ;;  %vm1266_vm3 = vcmask 1042432  }
   0xf   : > { %6111 = vmatprep.subr.bf16.mxu0 %v6633_v1  ;;  %5920 = vmatpush3.bf16.msra.mxu1 %v6632_v0  ;;  %s8755_s13 = smov (!%p161_p3, %s5107_s13), 1  ;;  %v6638_v6 = vld [vmem:[%s8685_s1 + $0x58] sm:$0xff]   ;;  %v6640_v8 = vld [vmem:[%s8685_s1 + $0x60] sm:$0xff]   ;;  %v6642_v10 = vld [vmem:[%s8685_s1 + $0x68] sm:$0xff]   ;;  %vm1267_vm4 = vcmask 1046532  }
  0x10   : > { %6112 = vmatpush3.bf16.msra.mxu0 %v6633_v1  ;;  %5921 = vmatprep.subr.bf16.mxu1 %v6634_v2  ;;  %v6639_v7 = vld [vmem:[%s8685_s1 + $0x118] sm:$0xff]   ;;  %s6623_s30 = smul.u32 216, %s8755_s13  ;;  %v6641_v9 = vld [vmem:[%s8685_s1 + $0x120] sm:$0xff]   ;;  %v6643_v11 = vld [vmem:[%s8685_s1 + $0x128] sm:$0xff]   ;;  %s5702_s7 = sshll.u32 %s8755_s13, 7 }
  0x11   : > { %6113 = vmatprep.subr.bf16.mxu0 %v6635_v3  ;;  %v6644_v25 = vld [vmem:[%s8685_s1 + $0x70] sm:$0xff]   ;;  %v6646_v36 = vld [vmem:[%s8685_s1 + $0x78] sm:$0xff]   ;;  %vm6926_vm2 = vmor %vm236_vm0, %vm237_vm1  ;;  %s8634_s11 = scalar_lea.vmem %s8687_s3, %s5702_s7 }
  0x12   : > { %s6894_s10 = scalar_lea.vmem %s8684_s0, %s6623_s30  ;;  %v6645_v30 = vld [vmem:[%s8685_s1 + $0x130] sm:$0xff]   ;;  %v6647_v51 = vld [vmem:[%s8685_s1 + $0x138] sm:$0xff]   ;;  %vm7172_vm5 = vmor %vm1266_vm3, %vm1267_vm4 }
  0x13   : > { %5922 = vmatpush3.bf16.msra.mxu1 %v6634_v2  ;;  %v172_v12 = vld [vmem:[%s6894_s10] sm:$0xf]  ;;  %v173_v13 = vld [vmem:[%s6894_s10 + $0x4] sm:$0xf]  ;;  %v220_v14 = vld [vmem:[%s6894_s10 + $0x8] sm:$0x1] }
  0x14   : > { %6114 = vmatpush3.bf16.msra.mxu0 %v6635_v3  ;;  %5923 = vmatprep.subr.bf16.mxu1 %v6636_v4  ;;  %v240_v15 = vshrl.u32 %v172_v12, 16  ;;  %v243_v16 = vshll.u32 %v172_v12, 16  ;;  %v249_v17 = vshll.u32 %v173_v13, 16  ;;  %v253_v18 = vshrl.u32 %v173_v13, 16  ;;  %v5307_v20 = vld [vmem:[%s6894_s10 + $0xc] sm:$0xf] }
  0x15   : > { %6115 = vmatprep.subr.bf16.mxu0 %v6637_v5  ;;  %v259_v19 = vshll.u32 %v220_v14, 16  ;;  %v6907_v23 = vld [vmem:[%s6894_s10 + $0x10] sm:$0xf]  ;;  %v6910_v24 = vld [vmem:[%s6894_s10 + $0x14] sm:$0x1]  ;;  %v2139_v29 = vshrl.u32 %v5307_v20, 16 }
  0x16   : > { %v242_v21 = vrot.slane %v240_v15, 4  ;;  %v245_v22 = vrot.slane %v243_v16, 5  ;;  %v251_v26 = vrot.slane %v249_v17, 5  ;;  %v255_v27 = vrot.slane %v253_v18, 4  ;;  %v174_v35 = vld [vmem:[%s6894_s10 + $0xc] sm:$0xf] }
  0x17   : > { %5924 = vmatpush3.bf16.msra.mxu1 %v6636_v4  ;;  %v261_v28 = vrot.slane %v259_v19, 5  ;;  %v2142_v32 = vshll.u32 %v5307_v20, 16  ;;  %v2148_v33 = vshll.u32 %v6907_v23, 16  ;;  %v2152_v34 = vshrl.u32 %v6907_v23, 16  ;;  %v175_v42 = vld [vmem:[%s6894_s10 + $0x10] sm:$0xf] }
  0x18   : > { %6116 = vmatpush3.bf16.msra.mxu0 %v6637_v5  ;;  %5925 = vmatprep.subr.bf16.mxu1 %v6638_v6  ;;  %v246_v31 = vor.u32 %v245_v22, %v242_v21  ;;  %v256_v38 = vor.u32 %v255_v27, %v251_v26  ;;  %v2141_v39 = vrot.slane %v2139_v29, 4  ;;  %v2158_v40 = vshll.u32 %v6910_v24, 16  ;;  %v221_v55 = vld [vmem:[%s6894_s10 + $0x14] sm:$0x1]  ;;  %v5310_v57 = vld [vmem:[%s6894_s10 + $0x18] sm:$0xf] }
  0x19   : > { %6117 = vmatprep.subr.bf16.mxu0 %v6639_v7  ;;  %v2913_v41 = vrot.slane %v6910_v24, 5  ;;  %v2144_v44 = vrot.slane %v2142_v32, 5  ;;  %v2150_v45 = vrot.slane %v2148_v33, 5  ;;  %v2154_v46 = vrot.slane %v2152_v34, 4  ;;  %v6943_v62 = vld [vmem:[%s6894_s10 + $0x1c] sm:$0xf] }
  0x1a   : > { %v247_v43 = vrot.slane %v246_v31, 4  ;;  %v257_v47 = vrot.slane %v256_v38, 4  ;;  %v2160_v48 = vrot.slane %v2158_v40, 5  ;;  %v264_v49 = vshrl.u32 %v174_v35, 16  ;;  %v6648_v3 = vld [vmem:[%s8685_s1] sm:$0xff]  }
  0x1b   : > { %5926 = vmatpush3.bf16.msra.mxu1 %v6638_v6  ;;  %v267_v50 = vshll.u32 %v174_v35, 16  ;;  %v2145_v53 = vor.u32 %v2144_v44, %v2141_v39  ;;  %v2155_v54 = vor.u32 %v2154_v46, %v2150_v45  ;;  %v273_v56 = vshll.u32 %v175_v42, 16  ;;  %v6951_v4 = vld [vmem:[%s8685_s1 + $0x140] sm:$0xff]   ;;  %v176_v21 = vld [vmem:[%s6894_s10 + $0x18] sm:$0xf]  ;;  %v6651_v46 = vld [vmem:[%s8685_s1 + $0x8] sm:$0xff]  }
  0x1c   : > { %6118 = vmatpush3.bf16.msra.mxu0 %v6639_v7  ;;  %5927 = vmatprep.subr.bf16.mxu1 %v6640_v8  ;;  %v252_v52 = vsel %vm6926_vm2, %v247_v43, %v251_v26  ;;  %v262_v58 = vsel %vm6926_vm2, %v257_v47, %v261_v28  ;;  %v266_v59 = vrot.slane %v264_v49, 4  ;;  %v277_v61 = vshrl.u32 %v175_v42, 16  ;;  %v177_v28 = vld [vmem:[%s6894_s10 + $0x1c] sm:$0xf]  ;;  %v222_v33 = vld [vmem:[%s6894_s10 + $0x20] sm:$0x1] }
  0x1d   : > { %6119 = vmatprep.subr.bf16.mxu0 %v6641_v9  ;;  %v269_v60 = vrot.slane %v267_v50, 5  ;;  %v5131_v63 = vcombine.low %v252_v52, %v262_v58  ;;  %v2146_v0 = vrot.slane %v2145_v53, 4  ;;  %v2156_v1 = vrot.slane %v2155_v54, 4  ;;  %v5313_v39 = vld [vmem:[%s6894_s10 + $0x24] sm:$0xf] }
  0x1e   : > { %v275_v2 = vrot.slane %v273_v56, 5  ;;  %v279_v6 = vrot.slane %v277_v61, 4  ;;  %v283_v7 = vshll.u32 %v221_v55, 16  ;;  %v2166_v12 = vshll.u32 %v5310_v57, 16  ;;  %v178_v52 = vld [vmem:[%s6894_s10 + $0x24] sm:$0xf] }
  0x1f   : > { %5928 = vmatpush3.bf16.msra.mxu1 %v6640_v8  ;;  %v270_v5 = vor.u32 %v269_v60, %v266_v59  ;;  %v6954_v8 = vld [vmem:[%s6894_s10 + $0x20] sm:$0x1]  ;;  %5935 = vmatprep.mubr.bf16.mxu1 %v5131_v63  ;;  %v2172_v19 = vshll.u32 %v6943_v62, 16  ;;  %v2176_v20 = vshrl.u32 %v6943_v62, 16  ;;  %v2917_v27 = vrot.slane %v6943_v62, 5  ;;  %v6650_v63 = vld [vmem:[%s8685_s1 + $0x148] sm:$0xff]  }
  0x20   : > { %6120 = vmatpush3.bf16.msra.mxu0 %v6641_v9  ;;  %5929 = vmatprep.subr.bf16.mxu1 %v6642_v10  ;;  %v2151_v9 = vsel %vm6926_vm2, %v2146_v0, %v2150_v45  ;;  %v280_v15 = vor.u32 %v279_v6, %v275_v2  ;;  %v285_v16 = vrot.slane %v283_v7, 5  ;;  %v2168_v18 = vrot.slane %v2166_v12, 5  ;;  %v6979_v45 = vld [vmem:[%s6894_s10 + $0x28] sm:$0xf] }
  0x21   : > { %6121 = vmatprep.subr.bf16.mxu0 %v6643_v11  ;;  %v271_v14 = vrot.slane %v270_v5, 4  ;;  %v2182_v26 = vshll.u32 %v6954_v8, 16  ;;  %v2178_v31 = vrot.slane %v2176_v20, 4  ;;  %v2920_v32 = vrot.slane %v6954_v8, 5  ;;  %v179_v5 = vld [vmem:[%s6894_s10 + $0x28] sm:$0xf] }
  0x22   : > { %v288_v38 = vshrl.u32 %v176_v21, 16  ;;  %v291_v44 = vshll.u32 %v176_v21, 16  ;;  %v301_v49 = vshrl.u32 %v177_v28, 16  ;;  %v307_v50 = vshll.u32 %v222_v33, 16  ;;  %v7010_v33 = vld [vmem:[%s6894_s10 + $0x34] sm:$0xf] }
  0x23   : > { %5930 = vmatpush3.bf16.msra.mxu1 %v6642_v10  ;;  %v2161_v10 = vsel %vm6926_vm2, %v2156_v1, %v2160_v48  ;;  %v276_v22 = vsel %vm6926_vm2, %v271_v14, %v275_v2  ;;  %v2184_v35 = vrot.slane %v2182_v26, 5  ;;  %v297_v48 = vshll.u32 %v177_v28, 16 }
  0x24   : > { %6122 = vmatpush3.bf16.msra.mxu0 %v6643_v11  ;;  %5931 = vmatprep.subr.bf16.mxu1 %v6644_v25  ;;  %v2163_v11 = vshrl.u32 %v5310_v57, 16  ;;  %v5371_v13 = vcombine.low %v2151_v9, %v2161_v10  ;;  %v290_v47 = vrot.slane %v288_v38, 4  ;;  %v293_v55 = vrot.slane %v291_v44, 5 }
  0x25   : > { %6123 = vmatprep.subr.bf16.mxu0 %v6645_v30  ;;  %v2187_v56 = vshrl.u32 %v5313_v39, 16  ;;  %v299_v57 = vrot.slane %v297_v48, 5  ;;  %v303_v58 = vrot.slane %v301_v49, 4  ;;  %v309_v59 = vrot.slane %v307_v50, 5  ;;  %v6653_v48 = vld [vmem:[%s8685_s1 + $0x158] sm:$0xff]  }
  0x26   : > { %v2165_v17 = vrot.slane %v2163_v11, 4  ;;  %6127 = vmatprep.mubr.bf16.mxu0 %v5371_v13  ;;  %v2190_v60 = vshll.u32 %v5313_v39, 16  ;;  %v294_v0 = vor.u32 %v293_v55, %v290_v47  ;;  %v2196_v2 = vshll.u32 %v6979_v45, 16  ;;  %v223_v11 = vld [vmem:[%s6894_s10 + $0x2c] sm:$0x1] }
  0x27   : > { %5932 = vmatpush3.bf16.msra.mxu1 %v6644_v25  ;;  %v281_v25 = vrot.slane %v280_v15, 4  ;;  %v2189_v1 = vrot.slane %v2187_v56, 4  ;;  %v304_v7 = vor.u32 %v303_v58, %v299_v57  ;;  %v2200_v10 = vshrl.u32 %v6979_v45, 16 }
  0x28   : > { %6124 = vmatpush3.bf16.msra.mxu0 %v6645_v30  ;;  %5933 = vmatprep.subr.bf16.mxu1 %v6646_v36  ;;  %v2169_v29 = vor.u32 %v2168_v18, %v2165_v17  ;;  %v2174_v30 = vrot.slane %v2172_v19, 5  ;;  %v2192_v9 = vrot.slane %v2190_v60, 5  ;;  %v295_v12 = vrot.slane %v294_v0, 4  ;;  %v6660_v60 = vld [vmem:[%s8685_s1 + $0x20] sm:$0xff]  }
  0x29   : > { %6125 = vmatprep.subr.bf16.mxu0 %v6647_v51  ;;  %v286_v34 = vsel %vm6926_vm2, %v281_v25, %v285_v16  ;;  %v2198_v13 = vrot.slane %v2196_v2, 5  ;;  %v312_v15 = vshrl.u32 %v178_v52, 16  ;;  %v5316_v16 = vld [vmem:[%s6894_s10 + $0x30] sm:$0xf]  ;;  %v305_v17 = vrot.slane %v304_v7, 4 }
  0x2a   : > { %v5132_v40 = vcombine.low %v276_v22, %v286_v34  ;;  %v2170_v42 = vrot.slane %v2169_v29, 4  ;;  %v2179_v43 = vor.u32 %v2178_v31, %v2174_v30  ;;  %v2193_v18 = vor.u32 %v2192_v9, %v2189_v1  ;;  %v6657_v34 = vld [vmem:[%s8685_s1 + $0x18] sm:$0xff]  }
  0x2b   : > { %5934 = vmatpush3.bf16.msra.mxu1 %v6646_v36  ;;  %v6975_v36 = vrot.slane %v2917_v27, 4  ;;  %v2202_v19 = vrot.slane %v2200_v10, 4  ;;  %v315_v20 = vshll.u32 %v178_v52, 16  ;;  %v300_v21 = vsel %vm6926_vm2, %v295_v12, %v299_v57  ;;  %v224_v2 = vld [vmem:[%s6894_s10 + $0x38] sm:$0x1] }
  0x2c   : > { %6126 = vmatpush3.bf16.msra.mxu0 %v6647_v51  ;;  %5967 = vmatprep.subr.bf16.mxu1 %v6648_v3  ;;  %v6985_v51 = vld [vmem:[%s6894_s10 + $0x2c] sm:$0x1]  ;;  %v2175_v53 = vsel %vm6926_vm2, %v2170_v42, %v2174_v30  ;;  %v2180_v54 = vrot.slane %v2179_v43, 4  ;;  %v314_v25 = vrot.slane %v312_v15, 4  ;;  %v321_v26 = vshll.u32 %v179_v5, 16 }
  0x2d   : > { %6159 = vmatprep.subr.bf16.mxu0 %v6951_v4  ;;  %v2206_v14 = vshll.u32 %v6985_v51, 16  ;;  %v310_v28 = vsel %vm6926_vm2, %v305_v17, %v309_v59  ;;  %v2194_v29 = vrot.slane %v2193_v18, 4  ;;  %v2203_v30 = vor.u32 %v2202_v19, %v2198_v13  ;;  %v181_v59 = vld [vmem:[%s6894_s10 + $0x34] sm:$0xf]  ;;  %v5319_v9 = vld [vmem:[%s6894_s10 + $0x3c] sm:$0xf] }
  0x2e   : > { %5936 = vmatmul.mubr.bf16.vlgmr.msra.gmra.mrb[0].mxu1 %v5132_v40  ;;  %v2185_v61 = vsel %vm6926_vm2, %v2180_v54, %v2184_v35  ;;  %v317_v31 = vrot.slane %v315_v20, 5  ;;  %v5133_v35 = vcombine.low %v300_v21, %v310_v28  ;;  %v323_v38 = vrot.slane %v321_v26, 5  ;;  %v180_v54 = vld [vmem:[%s6894_s10 + $0x30] sm:$0xf]  ;;  %v7044_v19 = vld [vmem:[%s6894_s10 + $0x40] sm:$0xf] }
  0x2f   : > { %5968 = vmatpush3.bf16.msra.mxu1 %v6648_v3  ;;  %v6654_v3 = vld [vmem:[%s8685_s1 + $0x10] sm:$0xff]   ;;  %v5372_v6 = vcombine.low %v2175_v53, %v2185_v61  ;;  %v2208_v22 = vrot.slane %v2206_v14, 5  ;;  %v325_v39 = vshrl.u32 %v179_v5, 16  ;;  %v331_v40 = vshll.u32 %v223_v11, 16  ;;  %v6662_v14 = vld [vmem:[%s8685_s1 + $0x28] sm:$0xff]   ;;  %v6655_v20 = vld [vmem:[%s8685_s1 + $0x160] sm:$0xff]  }
  0x30   : > { %5969 = vmatprep.subr.bf16.mxu1 %v6651_v46  ;;  %v2199_v42 = vsel %vm6926_vm2, %v2194_v29, %v2198_v13  ;;  %v2204_v43 = vrot.slane %v2203_v30, 4  ;;  %v318_v44 = vor.u32 %v317_v31, %v314_v25  ;;  %v2211_v47 = vshrl.u32 %v5316_v16, 16  ;;  %5939 = vmatprep.mubr.bf16.mxu1 %v5133_v35  ;;  %v7052_v28 = vld [vmem:[%s6894_s10 + $0x44] sm:$0x1]  ;;  %v6664_v35 = vld [vmem:[%s8685_s1 + $0x30] sm:$0xff]  }
  0x31   : > { %6128 = vmatmul.mubr.bf16.vlgmr.msra.gmra.mrb[0].mxu0 %v5372_v6  ;;  %v327_v49 = vrot.slane %v325_v39, 4  ;;  %v333_v50 = vrot.slane %v331_v40, 5  ;;  %v2214_v52 = vshll.u32 %v5316_v16, 16  ;;  %v2220_v53 = vshll.u32 %v7010_v33, 16 }
  0x32   : > { %6160 = vmatpush3.bf16.msra.mxu0 %v6951_v4  ;;  %v6652_v4 = vld [vmem:[%s8685_s1 + $0x150] sm:$0xff]   ;;  %v2209_v55 = vsel %vm6926_vm2, %v2204_v43, %v2208_v22  ;;  %v319_v56 = vrot.slane %v318_v44, 4  ;;  %v2213_v57 = vrot.slane %v2211_v47, 4  ;;  %v2224_v58 = vshrl.u32 %v7010_v33, 16 }
  0x33   : > { %5970 = vmatpush3.bf16.msra.mxu1 %v6651_v46  ;;  %6161 = vmatprep.subr.bf16.mxu0 %v6650_v63  ;;  %v7021_v46 = vld [vmem:[%s6894_s10 + $0x38] sm:$0x1]  ;;  %v5373_v61 = vcombine.low %v2199_v42, %v2209_v55  ;;  %v2216_v0 = vrot.slane %v2214_v52, 5  ;;  %v2222_v1 = vrot.slane %v2220_v53, 5  ;;  %v336_v7 = vshrl.u32 %v180_v54, 16 }
  0x34   : > { %5971 = vmatprep.subr.bf16.mxu1 %v6654_v3  ;;  %v324_v5 = vsel %vm6926_vm2, %v319_v56, %v323_v38  ;;  %v2230_v6 = vshll.u32 %v7021_v46, 16  ;;  %v339_v12 = vshll.u32 %v180_v54, 16  ;;  %v345_v13 = vshll.u32 %v181_v59, 16  ;;  %v183_v55 = vld [vmem:[%s6894_s10 + $0x40] sm:$0xf] }
  0x35   : > { %6131 = vmatprep.mubr.bf16.mxu0 %v5373_v61  ;;  %v2217_v11 = vor.u32 %v2216_v0, %v2213_v57  ;;  %v338_v17 = vrot.slane %v336_v7, 4  ;;  %v349_v18 = vshrl.u32 %v181_v59, 16  ;;  %v2235_v40 = vshrl.u32 %v5319_v9, 16 }
  0x36   : > { %6162 = vmatpush3.bf16.msra.mxu0 %v6650_v63  ;;  %v328_v63 = vor.u32 %v327_v49, %v323_v38  ;;  %v2232_v16 = vrot.slane %v2230_v6, 5  ;;  %v341_v25 = vrot.slane %v339_v12, 5  ;;  %v347_v26 = vrot.slane %v345_v13, 5 }
  0x37   : > { %5972 = vmatpush3.bf16.msra.mxu1 %v6654_v3  ;;  %6163 = vmatprep.subr.bf16.mxu0 %v6652_v4  ;;  %v2226_v3 = vrot.slane %v2224_v58, 4  ;;  %v2218_v22 = vrot.slane %v2217_v11, 4  ;;  %v351_v31 = vrot.slane %v349_v18, 4  ;;  %v2238_v42 = vshll.u32 %v5319_v9, 16  ;;  %v5322_v9 = vld [vmem:[%s6894_s10 + $0x48] sm:$0xf] }
  0x38   : > { %5973 = vmatprep.subr.bf16.mxu1 %v6657_v34  ;;  %v329_v10 = vrot.slane %v328_v63, 4  ;;  %v342_v39 = vor.u32 %v341_v25, %v338_v17  ;;  %v2244_v49 = vshll.u32 %v7044_v19, 16  ;;  %v2237_v53 = vrot.slane %v2235_v40, 4  ;;  %v225_v63 = vld [vmem:[%s6894_s10 + $0x44] sm:$0x1] }
  0x39   : > { %v2227_v15 = vor.u32 %v2226_v3, %v2222_v1  ;;  %v2223_v38 = vsel %vm6926_vm2, %v2218_v22, %v2222_v1  ;;  %v352_v44 = vor.u32 %v351_v31, %v347_v26  ;;  %v2240_v54 = vrot.slane %v2238_v42, 5  ;;  %v7085_v22 = vld [vmem:[%s6894_s10 + $0x50] sm:$0x1]  ;;  %v6659_v31 = vld [vmem:[%s8685_s1 + $0x178] sm:$0xff]  }
  0x3a   : > { %6164 = vmatpush3.bf16.msra.mxu0 %v6652_v4  ;;  %v334_v21 = vsel %vm6926_vm2, %v329_v10, %v333_v50  ;;  %v355_v4 = vshll.u32 %v224_v2, 16  ;;  %v343_v52 = vrot.slane %v342_v39, 4  ;;  %v2246_v57 = vrot.slane %v2244_v49, 5  ;;  %v6666_v2 = vld [vmem:[%s8685_s1 + $0x38] sm:$0xff]  }
  0x3b   : > { %5974 = vmatpush3.bf16.msra.mxu1 %v6657_v34  ;;  %6165 = vmatprep.subr.bf16.mxu0 %v6653_v48  ;;  %v5134_v29 = vcombine.low %v324_v5, %v334_v21  ;;  %v2228_v30 = vrot.slane %v2227_v15, 4  ;;  %v182_v34 = vld [vmem:[%s6894_s10 + $0x3c] sm:$0xf]  ;;  %v353_v56 = vrot.slane %v352_v44, 4  ;;  %v2248_v58 = vshrl.u32 %v7044_v19, 16  ;;  %v6658_v15 = vld [vmem:[%s8685_s1 + $0x170] sm:$0xff]  }
  0x3c   : > { %5975 = vmatprep.subr.bf16.mxu1 %v6660_v60  ;;  %v357_v47 = vrot.slane %v355_v4, 5  ;;  %v2254_v59 = vshll.u32 %v7052_v28, 16  ;;  %v2241_v61 = vor.u32 %v2240_v54, %v2237_v53  ;;  %v360_v0 = vshrl.u32 %v182_v34, 16  ;;  %v7096_v4 = vld [vmem:[%s8685_s1 + $0x80] sm:$0xff]   ;;  %v185_v53 = vld [vmem:[%s6894_s10 + $0x4c] sm:$0xf] }
  0x3d   : > { %5940 = vmatmul.mubr.bf16.gmra.mrb[4].mxu1 %v5134_v29  ;;  %v2233_v43 = vsel %vm6926_vm2, %v2228_v30, %v2232_v16  ;;  %v363_v1 = vshll.u32 %v182_v34, 16  ;;  %v2250_v3 = vrot.slane %v2248_v58, 4  ;;  %v369_v7 = vshll.u32 %v183_v55, 16  ;;  %v184_v30 = vld [vmem:[%s6894_s10 + $0x48] sm:$0xf] }
  0x3e   : > { %6166 = vmatpush3.bf16.msra.mxu0 %v6653_v48  ;;  %v5374_v50 = vcombine.low %v2223_v38, %v2233_v43  ;;  %v6656_v48 = vld [vmem:[%s8685_s1 + $0x168] sm:$0xff]   ;;  %v358_v5 = vsel %vm6926_vm2, %v353_v56, %v357_v47  ;;  %v2256_v6 = vrot.slane %v2254_v59, 5  ;;  %v2242_v11 = vrot.slane %v2241_v61, 4  ;;  %v226_v54 = vld [vmem:[%s6894_s10 + $0x50] sm:$0x1] }
  0x3f   : > { %5976 = vmatpush3.bf16.msra.mxu1 %v6660_v60  ;;  %6167 = vmatprep.subr.bf16.mxu0 %v6655_v20  ;;  %v348_v60 = vsel %vm6926_vm2, %v343_v52, %v347_v26  ;;  %v362_v12 = vrot.slane %v360_v0, 4  ;;  %v365_v13 = vrot.slane %v363_v1, 5  ;;  %v2251_v16 = vor.u32 %v2250_v3, %v2246_v57  ;;  %v5325_v58 = vld [vmem:[%s6894_s10 + $0x54] sm:$0xf]  ;;  %v7110_v0 = vld [vmem:[%s6894_s10 + $0x58] sm:$0xf] }
  0x40   : > { %5977 = vmatprep.subr.bf16.mxu1 %v6662_v14  ;;  %6132 = vmatmul.mubr.bf16.gmra.mrb[4].mxu0 %v5374_v50  ;;  %v5135_v10 = vcombine.low %v348_v60, %v358_v5  ;;  %v371_v17 = vrot.slane %v369_v7, 5  ;;  %v373_v18 = vshrl.u32 %v183_v55, 16  ;;  %v379_v21 = vshll.u32 %v225_v63, 16 }
  0x41   : > { %v366_v25 = vor.u32 %v365_v13, %v362_v12  ;;  %v2259_v26 = vshrl.u32 %v5322_v9, 16  ;;  %v2262_v29 = vshll.u32 %v5322_v9, 16  ;;  %v2252_v34 = vrot.slane %v2251_v16, 4 }
  0x42   : > { %6168 = vmatpush3.bf16.msra.mxu0 %v6655_v20  ;;  %5943 = vmatprep.mubr.bf16.mxu1 %v5135_v10  ;;  %v2247_v20 = vsel %vm6926_vm2, %v2242_v11, %v2246_v57  ;;  %v381_v38 = vrot.slane %v379_v21, 5  ;;  %v2278_v52 = vshll.u32 %v7085_v22, 16  ;;  %v384_v61 = vshrl.u32 %v184_v30, 16 }
  0x43   : > { %5978 = vmatpush3.bf16.msra.mxu1 %v6662_v14  ;;  %v7079_v14 = vld [vmem:[%s6894_s10 + $0x4c] sm:$0xf]  ;;  %6169 = vmatprep.subr.bf16.mxu0 %v6656_v48  ;;  %v367_v40 = vrot.slane %v366_v25, 4  ;;  %v2261_v42 = vrot.slane %v2259_v26, 4  ;;  %v2264_v43 = vrot.slane %v2262_v29, 5  ;;  %v2257_v47 = vsel %vm6926_vm2, %v2252_v34, %v2256_v6  ;;  %v7115_v6 = vld [vmem:[%s8685_s1 + $0x180] sm:$0xff]  }
  0x44   : > { %5979 = vmatprep.subr.bf16.mxu1 %v6664_v35  ;;  %v2268_v39 = vshll.u32 %v7079_v14, 16  ;;  %v2272_v44 = vshrl.u32 %v7079_v14, 16  ;;  %v5375_v55 = vcombine.low %v2247_v20, %v2257_v47  ;;  %v2280_v60 = vrot.slane %v2278_v52, 5  ;;  %v7122_v20 = vld [vmem:[%s6894_s10 + $0x5c] sm:$0x1] }
  0x45   : > { %v2265_v56 = vor.u32 %v2264_v43, %v2261_v42  ;;  %v387_v63 = vshll.u32 %v184_v30, 16  ;;  %v397_v3 = vshrl.u32 %v185_v53, 16  ;;  %v386_v9 = vrot.slane %v384_v61, 4  ;;  %v187_v43 = vld [vmem:[%s6894_s10 + $0x58] sm:$0xf] }
  0x46   : > { %6170 = vmatpush3.bf16.msra.mxu0 %v6656_v48  ;;  %v2270_v50 = vrot.slane %v2268_v39, 5  ;;  %v372_v48 = vsel %vm6926_vm2, %v367_v40, %v371_v17  ;;  %v2274_v57 = vrot.slane %v2272_v44, 4  ;;  %6135 = vmatprep.mubr.bf16.mxu0 %v5375_v55  ;;  %v403_v11 = vshll.u32 %v226_v54, 16  ;;  %v5328_v52 = vld [vmem:[%s6894_s10 + $0x60] sm:$0xf] }
  0x47   : > { %5980 = vmatpush3.bf16.msra.mxu1 %v6664_v35  ;;  %v375_v35 = vrot.slane %v373_v18, 4  ;;  %6171 = vmatprep.subr.bf16.mxu0 %v6658_v15  ;;  %v2266_v1 = vrot.slane %v2265_v56, 4  ;;  %v389_v10 = vrot.slane %v387_v63, 5  ;;  %v399_v18 = vrot.slane %v397_v3, 4 }
  0x48   : > { %5981 = vmatprep.subr.bf16.mxu1 %v6666_v2  ;;  %v2275_v5 = vor.u32 %v2274_v57, %v2270_v50  ;;  %v405_v21 = vrot.slane %v403_v11, 5  ;;  %v2283_v25 = vshrl.u32 %v5325_v58, 16  ;;  %v2286_v29 = vshll.u32 %v5325_v58, 16 }
  0x49   : > { %v376_v49 = vor.u32 %v375_v35, %v371_v17  ;;  %v2271_v13 = vsel %vm6926_vm2, %v2266_v1, %v2270_v50  ;;  %v390_v17 = vor.u32 %v389_v10, %v386_v9  ;;  %v2292_v30 = vshll.u32 %v7110_v0, 16  ;;  %v186_v35 = vld [vmem:[%s6894_s10 + $0x54] sm:$0xf]  ;;  %v227_v50 = vld [vmem:[%s6894_s10 + $0x5c] sm:$0x1] }
  0x4a   : > { %6172 = vmatpush3.bf16.msra.mxu0 %v6658_v15  ;;  %v2276_v15 = vrot.slane %v2275_v5, 4  ;;  %v2296_v34 = vshrl.u32 %v7110_v0, 16  ;;  %v2285_v42 = vrot.slane %v2283_v25, 4  ;;  %v408_v55 = vshrl.u32 %v186_v35, 16  ;;  %v7150_v25 = vld [vmem:[%s6894_s10 + $0x60] sm:$0xf] }
  0x4b   : > { %5982 = vmatpush3.bf16.msra.mxu1 %v6666_v2  ;;  %v377_v59 = vrot.slane %v376_v49, 4  ;;  %v393_v2 = vshll.u32 %v185_v53, 16  ;;  %6173 = vmatprep.subr.bf16.mxu0 %v6659_v31  ;;  %v391_v39 = vrot.slane %v390_v17, 4  ;;  %v2294_v44 = vrot.slane %v2292_v30, 5  ;;  %v7146_v17 = vld [vmem:[%s6894_s10 + $0x68] sm:$0x1] }
  0x4c   : > { %6015 = vmatprep.subr.bf16.mxu1 %v7096_v4  ;;  %v2281_v26 = vsel %vm6926_vm2, %v2276_v15, %v2280_v60  ;;  %v2298_v47 = vrot.slane %v2296_v34, 4  ;;  %v2302_v49 = vshll.u32 %v7122_v20, 16  ;;  %v7137_v60 = vld [vmem:[%s6894_s10 + $0x64] sm:$0xf]  ;;  %v410_v63 = vrot.slane %v408_v55, 4 }
  0x4d   : > { %v382_v7 = vsel %vm6926_vm2, %v377_v59, %v381_v38  ;;  %v395_v16 = vrot.slane %v393_v2, 5  ;;  %v5376_v38 = vcombine.low %v2271_v13, %v2281_v26  ;;  %v417_v59 = vshll.u32 %v187_v43, 16 }
  0x4e   : > { %v5136_v12 = vcombine.low %v372_v48, %v382_v7  ;;  %6174 = vmatpush3.bf16.msra.mxu0 %v6659_v31  ;;  %v2288_v31 = vrot.slane %v2286_v29, 5  ;;  %v411_v48 = vshll.u32 %v186_v35, 16  ;;  %v2299_v57 = vor.u32 %v2298_v47, %v2294_v44  ;;  %v7153_v35 = vld [vmem:[%s6894_s10 + $0x64] sm:$0xf] }
  0x4f   : > { %6207 = vmatprep.subr.bf16.mxu0 %v7115_v6  ;;  %v400_v40 = vor.u32 %v399_v18, %v395_v16  ;;  %6136 = vmatmul.mubr.bf16.gmra.mrb[8].mxu0 %v5376_v38  ;;  %v396_v53 = vsel %vm6926_vm2, %v391_v39, %v395_v16  ;;  %v2304_v58 = vrot.slane %v2302_v49, 5  ;;  %v421_v5 = vshrl.u32 %v187_v43, 16  ;;  %v228_v43 = vld [vmem:[%s6894_s10 + $0x68] sm:$0x1] }
  0x50   : > { %5944 = vmatmul.mubr.bf16.gmra.mrb[8].mxu1 %v5136_v12  ;;  %v2289_v56 = vor.u32 %v2288_v31, %v2285_v42  ;;  %v413_v1 = vrot.slane %v411_v48, 5  ;;  %v2300_v7 = vrot.slane %v2299_v57, 4  ;;  %v419_v9 = vrot.slane %v417_v59, 5 }
  0x51   : > { %v401_v54 = vrot.slane %v400_v40, 4  ;;  %v423_v11 = vrot.slane %v421_v5, 4  ;;  %v427_v12 = vshll.u32 %v227_v50, 16  ;;  %v2307_v13 = vshrl.u32 %v5328_v52, 16  ;;  %v5395_v50 = vld [vmem:[%s6894_s10 + $0xc] sm:$0xe] }
  0x52   : > { %v2290_v3 = vrot.slane %v2289_v56, 4  ;;  %v414_v10 = vor.u32 %v413_v1, %v410_v63  ;;  %v2305_v16 = vsel %vm6926_vm2, %v2300_v7, %v2304_v58  ;;  %v2310_v18 = vshll.u32 %v5328_v52, 16  ;;  %v7168_v5 = vld [vmem:[%s6894_s10 + $0x6c] sm:$0xf] }
  0x53   : > { %v406_v61 = vsel %vm6926_vm2, %v401_v54, %v405_v21  ;;  %v2316_v21 = vshll.u32 %v7137_v60, 16  ;;  %v424_v30 = vor.u32 %v423_v11, %v419_v9  ;;  %v429_v34 = vrot.slane %v427_v12, 5 }
  0x54   : > { %v5137_v2 = vcombine.low %v396_v53, %v406_v61  ;;  %v2295_v15 = vsel %vm6926_vm2, %v2290_v3, %v2294_v44  ;;  %v415_v29 = vrot.slane %v414_v10, 4  ;;  %v2309_v38 = vrot.slane %v2307_v13, 4 }
  0x55   : > { %v5377_v26 = vcombine.low %v2295_v15, %v2305_v16  ;;  %v2312_v39 = vrot.slane %v2310_v18, 5  ;;  %v2318_v40 = vrot.slane %v2316_v21, 5  ;;  %v2320_v42 = vshrl.u32 %v7137_v60, 16  ;;  %v7180_v21 = vld [vmem:[%s6894_s10 + $0x70] sm:$0xf] }
  0x56   : > { %5947 = vmatprep.mubr.bf16.mxu1 %v5137_v2  ;;  %v420_v31 = vsel %vm6926_vm2, %v415_v29, %v419_v9  ;;  %v425_v44 = vrot.slane %v424_v30, 4  ;;  %v2326_v47 = vshll.u32 %v7146_v17, 16  ;;  %v432_v49 = vshrl.u32 %v7150_v25, 16  ;;  %v6750_v9 = vld [vmem:[%s6894_s10 + $0xb4] sm:$0xff]  }
  0x57   : > { %6139 = vmatprep.mubr.bf16.mxu0 %v5377_v26  ;;  %v2313_v52 = vor.u32 %v2312_v39, %v2309_v38  ;;  %v2322_v53 = vrot.slane %v2320_v42, 4  ;;  %v435_v54 = vshll.u32 %v7150_v25, 16  ;;  %v441_v55 = vshll.u32 %v7153_v35, 16 }
  0x58   : > { %v430_v48 = vsel %vm6926_vm2, %v425_v44, %v429_v34  ;;  %v2328_v56 = vrot.slane %v2326_v47, 5  ;;  %v434_v57 = vrot.slane %v432_v49, 4  ;;  %v445_v58 = vshrl.u32 %v7153_v35, 16  ;;  %v7191_v47 = vld [vmem:[%s6894_s10 + $0x78] sm:$0xf] }
  0x59   : > { %v5138_v59 = vcombine.low %v420_v31, %v430_v48  ;;  %v2314_v61 = vrot.slane %v2313_v52, 4  ;;  %v2323_v63 = vor.u32 %v2322_v53, %v2318_v40  ;;  %v437_v1 = vrot.slane %v435_v54, 5  ;;  %v7202_v54 = vld [vmem:[%s6894_s10 + $0x7c] sm:$0xf] }
  0x5a   : > { %v443_v2 = vrot.slane %v441_v55, 5  ;;  %v447_v3 = vrot.slane %v445_v58, 4  ;;  %v451_v7 = vshll.u32 %v228_v43, 16  ;;  %v5411_v10 = vrot.slane %v5395_v50, 9  ;;  %v230_v58 = vld [vmem:[%s6894_s10 + $0x80] sm:$0x1] }
  0x5b   : > { %5948 = vmatmul.mubr.bf16.gmra.mrb[12].mxu1 %v5138_v59  ;;  %v2319_v11 = vsel %vm6926_vm2, %v2314_v61, %v2318_v40  ;;  %v2324_v12 = vrot.slane %v2323_v63, 4  ;;  %v438_v13 = vor.u32 %v437_v1, %v434_v57  ;;  %v2910_v15 = vrot.slane %v6907_v23, 5  ;;  %v229_v40 = vld [vmem:[%s6894_s10 + $0x74] sm:$0x1]  ;;  %v5396_v23 = vld [vmem:[%s6894_s10 + $0x18] sm:$0xe] }
  0x5c   : > { %v448_v16 = vor.u32 %v447_v3, %v443_v2  ;;  %v453_v18 = vrot.slane %v451_v7, 5  ;;  %v456_v26 = vshrl.u32 %v7168_v5, 16  ;;  %v459_v29 = vshll.u32 %v7168_v5, 16 }
  0x5d   : > { %v2329_v30 = vsel %vm6926_vm2, %v2324_v12, %v2328_v56  ;;  %v439_v34 = vrot.slane %v438_v13, 4  ;;  %v2911_v38 = vsel %vm7172_vm5, %v5411_v10, %v2910_v15  ;;  %v2912_v39 = vrot.slane %v2910_v15, 4  ;;  %v5397_v13 = vld [vmem:[%s6894_s10 + $0x24] sm:$0xe] }
  0x5e   : > { %v5378_v42 = vcombine.low %v2319_v11, %v2329_v30  ;;  %v449_v43 = vrot.slane %v448_v16, 4  ;;  %v458_v31 = vrot.slane %v456_v26, 4  ;;  %v461_v44 = vrot.slane %v459_v29, 5  ;;  %v7224_v16 = vld [vmem:[%s6894_s10 + $0x84] sm:$0xf]  ;;  %v6663_v29 = vld [vmem:[%s8685_s1 + $0x188] sm:$0xff]  }
  0x5f   : > { %v444_v49 = vsel %vm6926_vm2, %v439_v34, %v443_v2  ;;  %v2914_v50 = vsel %vm7172_vm5, %v2912_v39, %v2913_v41  ;;  %v465_v52 = vshll.u32 %v7180_v21, 16  ;;  %v469_v53 = vshrl.u32 %v7180_v21, 16 }
  0x60   : > { %6140 = vmatmul.mubr.bf16.gmra.mrb[12].mxu0 %v5378_v42  ;;  %v454_v55 = vsel %vm6926_vm2, %v449_v43, %v453_v18  ;;  %v5443_v48 = vcombine.low %v2911_v38, %v2914_v50  ;;  %v462_v56 = vor.u32 %v461_v44, %v458_v31  ;;  %v475_v57 = vshll.u32 %v229_v40, 16  ;;  %v7232_v40 = vld [vmem:[%s6894_s10 + $0x88] sm:$0xf]  ;;  %v231_v31 = vld [vmem:[%s6894_s10 + $0x8c] sm:$0x1] }
  0x61   : > { %v5139_v59 = vcombine.low %v444_v49, %v454_v55  ;;  %v467_v24 = vrot.slane %v465_v52, 5  ;;  %v471_v61 = vrot.slane %v469_v53, 4  ;;  %v5412_v63 = vrot.slane %v5396_v23, 9 }
  0x62   : > { %6175 = vmatprep.mubr.bf16.mxu0 %v5443_v48  ;;  %v463_v41 = vrot.slane %v462_v56, 4  ;;  %v477_v1 = vrot.slane %v475_v57, 5  ;;  %v2921_v2 = vsel %vm7172_vm5, %v6975_v36, %v2920_v32  ;;  %v480_v3 = vshrl.u32 %v7191_v47, 16 }
  0x63   : > { %5951 = vmatprep.mubr.bf16.mxu1 %v5139_v59  ;;  %v472_v7 = vor.u32 %v471_v61, %v467_v24  ;;  %v2918_v10 = vsel %vm7172_vm5, %v5412_v63, %v2917_v27  ;;  %v483_v11 = vshll.u32 %v7191_v47, 16  ;;  %v489_v12 = vshll.u32 %v7202_v54, 16 }
  0x64   : > { %v468_v8 = vsel %vm6926_vm2, %v463_v41, %v467_v24  ;;  %v5444_v15 = vcombine.low %v2918_v10, %v2921_v2  ;;  %v482_v32 = vrot.slane %v480_v3, 4  ;;  %v493_v36 = vshrl.u32 %v7202_v54, 16  ;;  %v7253_v2 = vld [vmem:[%s6894_s10 + $0x90] sm:$0xf]  ;;  %v7256_v3 = vld [vmem:[%s6894_s10 + $0x94] sm:$0xf] }
  0x65   : > { %v473_v62 = vrot.slane %v472_v7, 4  ;;  %v485_v18 = vrot.slane %v483_v11, 5  ;;  %v491_v26 = vrot.slane %v489_v12, 5  ;;  %v499_v27 = vshll.u32 %v230_v58, 16 }
  0x66   : > { %v495_v30 = vrot.slane %v493_v36, 4  ;;  %v5413_v34 = vrot.slane %v5397_v13, 9  ;;  %v2924_v38 = vrot.slane %v6979_v45, 5  ;;  %v2927_v39 = vrot.slane %v6985_v51, 5  ;;  %v5398_v45 = vld [vmem:[%s6894_s10 + $0x30] sm:$0xe] }
  0x67   : > { %v478_v23 = vsel %vm6926_vm2, %v473_v62, %v477_v1  ;;  %v486_v42 = vor.u32 %v485_v18, %v482_v32  ;;  %v501_v43 = vrot.slane %v499_v27, 5  ;;  %v504_v44 = vshrl.u32 %v7224_v16, 16  ;;  %v232_v62 = vld [vmem:[%s6894_s10 + $0x98] sm:$0x1] }
  0x68   : > { %v5140_v49 = vcombine.low %v468_v8, %v478_v23  ;;  %6176 = vmatmul.mubr.bf16.vlgmr.msra.gmra.mrb[0].mxu0 %v5444_v15  ;;  %v496_v50 = vor.u32 %v495_v30, %v491_v26  ;;  %v2925_v52 = vsel %vm7172_vm5, %v5413_v34, %v2924_v38  ;;  %v2926_v53 = vrot.slane %v2924_v38, 4  ;;  %v6667_v30 = vld [vmem:[%s8685_s1 + $0x198] sm:$0xff]  }
  0x69   : > { %6208 = vmatpush3.bf16.msra.mxu0 %v7115_v6  ;;  %v487_v51 = vrot.slane %v486_v42, 4  ;;  %v506_v55 = vrot.slane %v504_v44, 4  ;;  %v507_v48 = vshll.u32 %v7224_v16, 16  ;;  %v513_v56 = vshll.u32 %v7232_v40, 16  ;;  %v6665_v6 = vld [vmem:[%s8685_s1 + $0x190] sm:$0xff]  }
  0x6a   : > { %5952 = vmatmul.mubr.bf16.gmra.mrb[16].mxu1 %v5140_v49  ;;  %v497_v57 = vrot.slane %v496_v50, 4  ;;  %v2928_v58 = vsel %vm7172_vm5, %v2926_v53, %v2927_v39  ;;  %v517_v59 = vshrl.u32 %v7232_v40, 16  ;;  %v523_v24 = vshll.u32 %v231_v31, 16  ;;  %6209 = vmatprep.subr.bf16.mxu0 %v6663_v29  ;;  %v5399_v38 = vld [vmem:[%s6894_s10 + $0x3c] sm:$0xe] }
  0x6b   : > { %v492_v61 = vsel %vm6926_vm2, %v487_v51, %v491_v26  ;;  %v5445_v63 = vcombine.low %v2925_v52, %v2928_v58  ;;  %v509_v41 = vrot.slane %v507_v48, 5  ;;  %v515_v1 = vrot.slane %v513_v56, 5  ;;  %v7274_v31 = vld [vmem:[%s6894_s10 + $0x9c] sm:$0xf]  ;;  %v7283_v48 = vld [vmem:[%s6894_s10 + $0xa0] sm:$0xf] }
  0x6c   : > { %v502_v7 = vsel %vm6926_vm2, %v497_v57, %v501_v43  ;;  %v519_v10 = vrot.slane %v517_v59, 4  ;;  %v525_v11 = vrot.slane %v523_v24, 5  ;;  %v5414_v12 = vrot.slane %v5398_v45, 9  ;;  %v6671_v56 = vld [vmem:[%s8685_s1 + $0x1a0] sm:$0xff]  }
  0x6d   : > { %v5141_v13 = vcombine.low %v492_v61, %v502_v7  ;;  %6179 = vmatprep.mubr.bf16.mxu0 %v5445_v63  ;;  %v510_v8 = vor.u32 %v509_v41, %v506_v55  ;;  %v2931_v15 = vrot.slane %v7010_v33, 5  ;;  %v2934_v32 = vrot.slane %v7021_v46, 5  ;;  %6210 = vmatpush3.bf16.msra.mxu0 %v6663_v29  ;;  %v233_v61 = vld [vmem:[%s6894_s10 + $0xa4] sm:$0x1] }
  0x6e   : > { %v520_v36 = vor.u32 %v519_v10, %v515_v1  ;;  %v528_v18 = vshrl.u32 %v7253_v2, 16  ;;  %v531_v26 = vshll.u32 %v7253_v2, 16  ;;  %v537_v27 = vshll.u32 %v7256_v3, 16  ;;  %6211 = vmatprep.subr.bf16.mxu0 %v6665_v6 }
  0x6f   : > { %5955 = vmatprep.mubr.bf16.mxu1 %v5141_v13  ;;  %v511_v34 = vrot.slane %v510_v8, 4  ;;  %v2932_v33 = vsel %vm7172_vm5, %v5414_v12, %v2931_v15  ;;  %v2933_v46 = vrot.slane %v2931_v15, 4  ;;  %v541_v29 = vshrl.u32 %v7256_v3, 16  ;;  %v5400_v15 = vld [vmem:[%s6894_s10 + $0x48] sm:$0xe] }
  0x70   : > { %v521_v39 = vrot.slane %v520_v36, 4  ;;  %v530_v23 = vrot.slane %v528_v18, 4  ;;  %v533_v42 = vrot.slane %v531_v26, 5  ;;  %v539_v43 = vrot.slane %v537_v27, 5  ;;  %v7308_v27 = vld [vmem:[%s6894_s10 + $0xa8] sm:$0xf] }
  0x71   : > { %v516_v44 = vsel %vm6926_vm2, %v511_v34, %v515_v1  ;;  %v2935_v49 = vsel %vm7172_vm5, %v2933_v46, %v2934_v32  ;;  %v543_v50 = vrot.slane %v541_v29, 4  ;;  %v547_v52 = vshll.u32 %v232_v62, 16  ;;  %6212 = vmatpush3.bf16.msra.mxu0 %v6665_v6  ;;  %v6675_v32 = vld [vmem:[%s8685_s1 + $0x1a8] sm:$0xff]  }
  0x72   : > { %v526_v53 = vsel %vm6926_vm2, %v521_v39, %v525_v11  ;;  %v5446_v45 = vcombine.low %v2932_v33, %v2935_v49  ;;  %v534_v51 = vor.u32 %v533_v42, %v530_v23  ;;  %v5415_v55 = vrot.slane %v5399_v38, 9  ;;  %6213 = vmatprep.subr.bf16.mxu0 %v6667_v30  ;;  %v7311_v29 = vld [vmem:[%s6894_s10 + $0xac] sm:$0xf] }
  0x73   : > { %v5142_v57 = vcombine.low %v516_v44, %v526_v53  ;;  %v544_v58 = vor.u32 %v543_v50, %v539_v43  ;;  %v549_v59 = vrot.slane %v547_v52, 5  ;;  %v2938_v24 = vrot.slane %v7044_v19, 5  ;;  %v5401_v53 = vld [vmem:[%s6894_s10 + $0x54] sm:$0xe] }
  0x74   : > { %6180 = vmatmul.mubr.bf16.gmra.mrb[4].mxu0 %v5446_v45  ;;  %v535_v6 = vrot.slane %v534_v51, 4  ;;  %v2941_v63 = vrot.slane %v7052_v28, 5  ;;  %v552_v41 = vshrl.u32 %v7274_v31, 16  ;;  %v555_v1 = vshll.u32 %v7274_v31, 16  ;;  %v6679_v45 = vld [vmem:[%s8685_s1 + $0x1b0] sm:$0xff]  }
  0x75   : > { %5956 = vmatmul.mubr.bf16.gmra.mrb[20].mxu1 %v5142_v57  ;;  %v545_v7 = vrot.slane %v544_v58, 4  ;;  %v2939_v10 = vsel %vm7172_vm5, %v5415_v55, %v2938_v24  ;;  %v2940_v11 = vrot.slane %v2938_v24, 4  ;;  %v561_v12 = vshll.u32 %v7283_v48, 16  ;;  %6214 = vmatpush3.bf16.msra.mxu0 %v6667_v30 }
  0x76   : > { %v540_v19 = vsel %vm6926_vm2, %v535_v6, %v539_v43  ;;  %v554_v13 = vrot.slane %v552_v41, 4  ;;  %v557_v28 = vrot.slane %v555_v1, 5  ;;  %v565_v8 = vshrl.u32 %v7283_v48, 16  ;;  %6215 = vmatprep.subr.bf16.mxu0 %v6671_v56  ;;  %v234_v43 = vld [vmem:[%s6894_s10 + $0xb0] sm:$0x1] }
  0x77   : > { %v550_v36 = vsel %vm6926_vm2, %v545_v7, %v549_v59  ;;  %v2942_v62 = vsel %vm7172_vm5, %v2940_v11, %v2941_v63  ;;  %v563_v18 = vrot.slane %v561_v12, 5  ;;  %v571_v26 = vshll.u32 %v233_v61, 16  ;;  %v7331_v41 = vld [vmem:[%s6894_s10 + $0xb4] sm:$0xf]  ;;  %v7336_v12 = vld [vmem:[%s6894_s10 + $0xb8] sm:$0xf] }
  0x78   : > { %v5143_v30 = vcombine.low %v540_v19, %v550_v36  ;;  %v5447_v34 = vcombine.low %v2939_v10, %v2942_v62  ;;  %v558_v33 = vor.u32 %v557_v28, %v554_v13  ;;  %v567_v46 = vrot.slane %v565_v8, 4  ;;  %v235_v19 = vld [vmem:[%s6894_s10 + $0xbc] sm:$0x1] }
  0x79   : > { %v573_v38 = vrot.slane %v571_v26, 5  ;;  %v5416_v39 = vrot.slane %v5400_v15, 9  ;;  %v2945_v23 = vrot.slane %v7079_v14, 5  ;;  %v2948_v42 = vrot.slane %v7085_v22, 5  ;;  %6216 = vmatpush3.bf16.msra.mxu0 %v6671_v56  ;;  %v6683_v13 = vld [vmem:[%s8685_s1 + $0x1b8] sm:$0xff]  }
  0x7a   : > { %5959 = vmatprep.mubr.bf16.mxu1 %v5143_v30  ;;  %6183 = vmatprep.mubr.bf16.mxu0 %v5447_v34  ;;  %v559_v44 = vrot.slane %v558_v33, 4  ;;  %v568_v49 = vor.u32 %v567_v46, %v563_v18  ;;  %v576_v50 = vshrl.u32 %v7308_v27, 16  ;;  %v579_v52 = vshll.u32 %v7308_v27, 16  ;;  %v5402_v30 = vld [vmem:[%s6894_s10 + $0x60] sm:$0xe] }
  0x7b   : > { %v2946_v14 = vsel %vm7172_vm5, %v5416_v39, %v2945_v23  ;;  %v2947_v22 = vrot.slane %v2945_v23, 4  ;;  %v585_v51 = vshll.u32 %v7311_v29, 16  ;;  %v589_v55 = vshrl.u32 %v7311_v29, 16  ;;  %6217 = vmatprep.subr.bf16.mxu0 %v6675_v32  ;;  %v5332_v39 = vld [vmem:[%s6894_s10 + $0x70] sm:$0xf] }
  0x7c   : > { %v564_v56 = vsel %vm6926_vm2, %v559_v44, %v563_v18  ;;  %v569_v57 = vrot.slane %v568_v49, 4  ;;  %v578_v58 = vrot.slane %v576_v50, 4  ;;  %v581_v59 = vrot.slane %v579_v52, 5  ;;  %v7358_v44 = vld [vmem:[%s8685_s1 + $0x1c0] sm:$0xff]  }
  0x7d   : > { %v2949_v24 = vsel %vm7172_vm5, %v2947_v22, %v2948_v42  ;;  %v587_v61 = vrot.slane %v585_v51, 5  ;;  %v591_v6 = vrot.slane %v589_v55, 4  ;;  %v595_v63 = vshll.u32 %v234_v43, 16  ;;  %6218 = vmatpush3.bf16.msra.mxu0 %v6675_v32  ;;  %v5403_v43 = vld [vmem:[%s6894_s10 + $0x6c] sm:$0xe] }
  0x7e   : > { %v574_v1 = vsel %vm6926_vm2, %v569_v57, %v573_v38  ;;  %v5448_v7 = vcombine.low %v2946_v14, %v2949_v24  ;;  %v582_v10 = vor.u32 %v581_v59, %v578_v58  ;;  %v5417_v11 = vrot.slane %v5401_v53, 9  ;;  %6219 = vmatprep.subr.bf16.mxu0 %v6679_v45  ;;  %v5333_v55 = vld [vmem:[%s6894_s10 + $0x74] sm:$0x1]  ;;  %v5404_v24 = vld [vmem:[%s6894_s10 + $0x78] sm:$0xe] }
  0x7f   : > { %v5144_v28 = vcombine.low %v564_v56, %v574_v1  ;;  %v592_v8 = vor.u32 %v591_v6, %v587_v61  ;;  %v597_v15 = vrot.slane %v595_v63, 5  ;;  %v2952_v32 = vrot.slane %v7110_v0, 5 }
  0x80   : > { %6184 = vmatmul.mubr.bf16.gmra.mrb[8].mxu0 %v5448_v7  ;;  %v583_v36 = vrot.slane %v582_v10, 4  ;;  %v2955_v62 = vrot.slane %v7122_v20, 5  ;;  %v600_v18 = vshrl.u32 %v7331_v41, 16  ;;  %v603_v26 = vshll.u32 %v7331_v41, 16 }
  0x81   : > { %5960 = vmatmul.mubr.bf16.gmra.mrb[24].mxu1 %v5144_v28  ;;  %v593_v34 = vrot.slane %v592_v8, 4  ;;  %v2953_v33 = vsel %vm7172_vm5, %v5417_v11, %v2952_v32  ;;  %v2954_v46 = vrot.slane %v2952_v32, 4  ;;  %v609_v38 = vshll.u32 %v7336_v12, 16  ;;  %6220 = vmatpush3.bf16.msra.mxu0 %v6679_v45  ;;  %v7371_v11 = vld [vmem:[%s6894_s10 + $0x7c] sm:$0xf] }
  0x82   : > { %v588_v0 = vsel %vm6926_vm2, %v583_v36, %v587_v61  ;;  %v602_v20 = vrot.slane %v600_v18, 4  ;;  %v605_v23 = vrot.slane %v603_v26, 5  ;;  %v613_v42 = vshrl.u32 %v7336_v12, 16  ;;  %6221 = vmatprep.subr.bf16.mxu0 %v6683_v13  ;;  %v6752_v36 = vld [vmem:[%s6894_s10] sm:$0xf] }
  0x83   : > { %v598_v49 = vsel %vm6926_vm2, %v593_v34, %v597_v15  ;;  %v2956_v50 = vsel %vm7172_vm5, %v2954_v46, %v2955_v62  ;;  %v611_v52 = vrot.slane %v609_v38, 5  ;;  %v619_v53 = vshll.u32 %v235_v19, 16  ;;  %v5338_v15 = vld [vmem:[%s6894_s10 + $0x88] sm:$0xf]  ;;  %v7386_v62 = vld [vmem:[%s6894_s10 + $0x4] sm:$0xf] }
  0x84   : > { %v5145_v45 = vcombine.low %v588_v0, %v598_v49  ;;  %v5449_v14 = vcombine.low %v2953_v33, %v2956_v50  ;;  %v606_v22 = vor.u32 %v605_v23, %v602_v20  ;;  %v615_v51 = vrot.slane %v613_v42, 4  ;;  %v5339_v26 = vld [vmem:[%s6894_s10 + $0x8c] sm:$0x1]  ;;  %v5342_v23 = vld [vmem:[%s6894_s10 + $0x98] sm:$0x1] }
  0x85   : > { %v621_v56 = vrot.slane %v619_v53, 5  ;;  %v5418_v57 = vrot.slane %v5402_v30, 9  ;;  %v2959_v58 = vrot.slane %v7137_v60, 5  ;;  %v2962_v59 = vrot.slane %v7146_v17, 5  ;;  %6222 = vmatpush3.bf16.msra.mxu0 %v6683_v13  ;;  %v7374_v17 = vld [vmem:[%s6894_s10 + $0x80] sm:$0x1] }
  0x86   : > { %5963 = vmatprep.mubr.bf16.mxu1 %v5145_v45  ;;  %6187 = vmatprep.mubr.bf16.mxu0 %v5449_v14  ;;  %v607_v61 = vrot.slane %v606_v22, 4  ;;  %v616_v6 = vor.u32 %v615_v51, %v611_v52  ;;  %v5419_v63 = vrot.slane %v5403_v43, 9  ;;  %v2966_v1 = vrot.slane %v5332_v39, 5  ;;  %v5405_v30 = vld [vmem:[%s6894_s10 + $0x84] sm:$0xe] }
  0x87   : > { %v2960_v7 = vsel %vm7172_vm5, %v5418_v57, %v2959_v58  ;;  %v2961_v10 = vrot.slane %v2959_v58, 4  ;;  %v2969_v60 = vrot.slane %v5333_v55, 5  ;;  %6255 = vmatprep.subr.bf16.mxu0 %v7358_v44  ;;  %v5155_v18 = vcombine.low %v6752_v36, %v7386_v62  ;;  %v5341_v39 = vld [vmem:[%s6894_s10 + $0x94] sm:$0xf]  ;;  %v5406_v42 = vld [vmem:[%s6894_s10 + $0x90] sm:$0xe] }
  0x88   : > { %v612_v19 = vsel %vm6926_vm2, %v607_v61, %v611_v52  ;;  %v617_v13 = vrot.slane %v616_v6, 4  ;;  %v2967_v28 = vsel %vm7172_vm5, %v5419_v63, %v2966_v1  ;;  %v2968_v8 = vrot.slane %v2966_v1, 4  ;;  %v5407_v50 = vld [vmem:[%s6894_s10 + $0x9c] sm:$0xe]  ;;  %v5344_v14 = vld [vmem:[%s6894_s10 + $0xa0] sm:$0xf] }
  0x89   : > { %v2963_v32 = vsel %vm7172_vm5, %v2961_v10, %v2962_v59  ;;  %v5420_v38 = vrot.slane %v5404_v24, 9  ;;  %v2973_v43 = vrot.slane %v7371_v11, 5  ;;  %v2976_v49 = vrot.slane %v7374_v17, 5  ;;  %v5345_v22 = vld [vmem:[%s6894_s10 + $0xa4] sm:$0x1] }
  0x8a   : > { %v622_v34 = vsel %vm6926_vm2, %v617_v13, %v621_v56  ;;  %v5450_v33 = vcombine.low %v2960_v7, %v2963_v32  ;;  %v2970_v46 = vsel %vm7172_vm5, %v2968_v8, %v2969_v60  ;;  %v5421_v52 = vrot.slane %v5405_v30, 9  ;;  %v5347_v59 = vld [vmem:[%s6894_s10 + $0xac] sm:$0xf]  ;;  %v7410_v61 = vld [vmem:[%s6894_s10 + $0x10] sm:$0xf] }
  0x8b   : > { %v5146_v0 = vcombine.low %v612_v19, %v622_v34  ;;  %v5451_v20 = vcombine.low %v2967_v28, %v2970_v46  ;;  %v2980_v53 = vrot.slane %v5338_v15, 5  ;;  %v2983_v45 = vrot.slane %v5339_v26, 5  ;;  %v6754_v24 = vld [vmem:[%s6894_s10 + $0xc] sm:$0xf]  ;;  %v6756_v8 = vld [vmem:[%s6894_s10 + $0x18] sm:$0xf] }
  0x8c   : > { %6188 = vmatmul.mubr.bf16.gmra.mrb[12].mxu0 %v5450_v33  ;;  %v2974_v51 = vsel %vm7172_vm5, %v5420_v38, %v2973_v43  ;;  %v2975_v55 = vrot.slane %v2973_v43, 4  ;;  %v2987_v58 = vrot.slane %v5341_v39, 5  ;;  %v5156_v6 = vcombine.low %v6754_v24, %v7410_v61  ;;  %v6674_v19 = vld [vmem:[%s8685_s1 + $0x88] sm:$0xff]   ;;  %v7422_v15 = vld [vmem:[%s6894_s10 + $0x1c] sm:$0xf] }
  0x8d   : > { %5964 = vmatmul.mubr.bf16.gmra.mrb[28].mxu1 %v5146_v0  ;;  %6191 = vmatprep.mubr.bf16.mxu0 %v5451_v20  ;;  %v2981_v56 = vsel %vm7172_vm5, %v5421_v52, %v2980_v53  ;;  %v2982_v57 = vrot.slane %v2980_v53, 4  ;;  %v5422_v1 = vrot.slane %v5406_v42, 9  ;;  %v2990_v7 = vrot.slane %v5342_v23, 5  ;;  %v5348_v30 = vld [vmem:[%s6894_s10 + $0xb0] sm:$0x1] }
  0x8e   : > { %5983 = vmatprep.mubr.bf16.mxu1 %v5155_v18  ;;  %v2977_v63 = vsel %vm7172_vm5, %v2975_v55, %v2976_v49  ;;  %v2989_v13 = vrot.slane %v2987_v58, 4  ;;  %v5423_v28 = vrot.slane %v5407_v50, 9  ;;  %v5157_v32 = vcombine.low %v6756_v8, %v7422_v15  ;;  %v5408_v34 = vld [vmem:[%s6894_s10 + $0xa8] sm:$0xe]  ;;  %v5350_v33 = vld [vmem:[%s6894_s10 + $0xb8] sm:$0xf] }
  0x8f   : > { %v5452_v10 = vcombine.low %v2974_v51, %v2977_v63  ;;  %v2984_v60 = vsel %vm7172_vm5, %v2982_v57, %v2983_v45  ;;  %v2994_v18 = vrot.slane %v5344_v14, 5  ;;  %v2997_v26 = vrot.slane %v5345_v22, 5  ;;  %v5351_v20 = vld [vmem:[%s6894_s10 + $0xbc] sm:$0x1]  ;;  %v5409_v23 = vld [vmem:[%s6894_s10 + $0xb4] sm:$0xe] }
  0x90   : > { %v5453_v36 = vcombine.low %v2981_v56, %v2984_v60  ;;  %v3001_v38 = vrot.slane %v5347_v59, 5  ;;  %v2988_v39 = vsel %vm7172_vm5, %v5422_v1, %v2987_v58  ;;  %v2991_v0 = vsel %vm7172_vm5, %v2989_v13, %v2990_v7  ;;  %v6678_v50 = vld [vmem:[%s8685_s1 + $0x90] sm:$0xff]   ;;  %v5353_v53 = vld [vmem:[%s6894_s10 + $0xc4] sm:$0xf]  ;;  %v7445_v51 = vld [vmem:[%s6894_s10 + $0x28] sm:$0xf] }
  0x91   : > { %v2996_v46 = vrot.slane %v2994_v18, 4  ;;  %v2995_v42 = vsel %vm7172_vm5, %v5423_v28, %v2994_v18  ;;  %v3008_v49 = vrot.slane %v5350_v33, 5  ;;  %v5424_v52 = vrot.slane %v5408_v34, 9  ;;  %v6758_v22 = vld [vmem:[%s6894_s10 + $0x24] sm:$0xf]  ;;  %v6682_v1 = vld [vmem:[%s8685_s1 + $0x98] sm:$0xff]  }
  0x92   : > { %v5454_v45 = vcombine.low %v2988_v39, %v2991_v0  ;;  %v3003_v14 = vrot.slane %v3001_v38, 4  ;;  %v5158_v55 = vcombine.low %v6758_v22, %v7445_v51  ;;  %v6760_v57 = vld [vmem:[%s6894_s10 + $0x30] sm:$0xf]  ;;  %v7450_v58 = vld [vmem:[%s6894_s10 + $0x34] sm:$0xf]  ;;  %v5425_v24 = vrot.slane %v5409_v23, 9 }
  0x93   : > { %v2998_v43 = vsel %vm7172_vm5, %v2996_v46, %v2997_v26  ;;  %v5159_v59 = vcombine.low %v6760_v57, %v7450_v58  ;;  %v3011_v63 = vrot.slane %v5351_v20, 5  ;;  %v5410_v7 = vld [vmem:[%s6894_s10 + $0xc0] sm:$0xe]  ;;  %v3002_v60 = vsel %vm7172_vm5, %v5424_v52, %v3001_v38  ;;  %v5354_v8 = vld [vmem:[%s6894_s10 + $0xc8] sm:$0x1]  ;;  %v6685_v22 = vld [vmem:[%s6894_s10 + $0x18] sm:$0xff]  }
  0x94   : > { %6192 = vmatmul.mubr.bf16.gmra.mrb[16].mxu0 %v5452_v10  ;;  %v5455_v56 = vcombine.low %v2995_v42, %v2998_v43  ;;  %v3015_v10 = vrot.slane %v5353_v53, 5  ;;  %v3009_v13 = vsel %vm7172_vm5, %v5425_v24, %v3008_v49  ;;  %v5426_v18 = vrot.slane %v5410_v7, 9  ;;  %v6762_v26 = vld [vmem:[%s6894_s10 + $0x3c] sm:$0xf]  ;;  %v6764_v39 = vld [vmem:[%s6894_s10 + $0x48] sm:$0xf] }
  0x95   : > { %5984 = vmatmul.mubr.bf16.vlgmr.msra.gmra.mrb[0].mxu1 %v5156_v6  ;;  %6195 = vmatprep.mubr.bf16.mxu0 %v5453_v36  ;;  %v3010_v6 = vrot.slane %v3008_v49, 4  ;;  %v3018_v38 = vrot.slane %v5354_v8, 5  ;;  %v7476_v0 = vld [vmem:[%s6894_s10 + $0x4c] sm:$0xf]  ;;  %v6699_v49 = vld [vmem:[%s8685_s1 + $0xb0] sm:$0xff]   ;;  %v2368_v52 = vshrl.u32 %v7371_v11, 16 }
  0x96   : > { %6016 = vmatpush3.bf16.msra.mxu1 %v7096_v4  ;;  %5987 = vmatprep.mubr.bf16.mxu1 %v5157_v32  ;;  %v3004_v4 = vrot.slane %v5348_v30, 5  ;;  %v6687_v32 = vld [vmem:[%s8685_s1 + $0xa0] sm:$0xff]   ;;  %v3017_v46 = vrot.slane %v3015_v10, 4  ;;  %v5161_v20 = vcombine.low %v6764_v39, %v7476_v0  ;;  %v6693_v23 = vld [vmem:[%s8685_s1 + $0xa8] sm:$0xff]   ;;  %v3016_v42 = vsel %vm7172_vm5, %v5426_v18, %v3015_v10  ;;  %v6691_v18 = vld [vmem:[%s6894_s10 + $0x30] sm:$0xff]  }
  0x97   : > { %6017 = vmatprep.subr.bf16.mxu1 %v6674_v19  ;;  %v3012_v28 = vsel %vm7172_vm5, %v3010_v6, %v3011_v63  ;;  %v7471_v30 = vld [vmem:[%s6894_s10 + $0x40] sm:$0xf]  ;;  %v7504_v57 = vrot.slane %v2368_v52, 4  ;;  %v6688_v6 = vld [vmem:[%s6894_s10 + $0x24] sm:$0xff]   ;;  %v1278_v7 = vrot.slane %v7410_v61, 5  ;;  %v2374_v8 = vshll.u32 %v7374_v17, 16 }
  0x98   : > { %v5160_v34 = vcombine.low %v6762_v26, %v7471_v30  ;;  %v5457_v33 = vcombine.low %v3009_v13, %v3012_v28  ;;  %v3019_v43 = vsel %vm7172_vm5, %v3017_v46, %v3018_v38  ;;  %v1218_v63 = vld [vmem:[%s6894_s10] sm:$0xe]  ;;  %v1219_v10 = vld [vmem:[%s6894_s10 + $0xc] sm:$0xe]  ;;  %v1285_v13 = vrot.slane %v7422_v15, 5 }
  0x99   : > { %v5458_v53 = vcombine.low %v3016_v42, %v3019_v43  ;;  %v1221_v61 = vld [vmem:[%s6894_s10 + $0x24] sm:$0xe]  ;;  %v5166_v15 = vcombine.low %v7224_v16, %v7232_v40  ;;  %v5167_v26 = vcombine.low %v7253_v2, %v7256_v3  ;;  %v5179_v17 = vrot.slane %v1218_v63, 9  ;;  %v6770_v38 = vld [vmem:[%s6894_s10 + $0x20] sm:$0x1]  ;;  %v6700_v2 = vld [vmem:[%s6894_s10 + $0x54] sm:$0xff]  }
  0x9a   : > { %6018 = vmatpush3.bf16.msra.mxu1 %v6674_v19  ;;  %v3005_v19 = vsel %vm7172_vm5, %v3003_v14, %v3004_v4  ;;  %v7493_v14 = vld [vmem:[%s6894_s10 + $0x58] sm:$0xf]  ;;  %v1287_v46 = vrot.slane %v1285_v13, 4  ;;  %v1288_v39 = vrot.slane %v6770_v38, 5  ;;  %v6771_v43 = vld [vmem:[%s6894_s10 + $0x2c] sm:$0x1] }
  0x9b   : > { %6019 = vmatprep.subr.bf16.mxu1 %v6678_v50  ;;  %v5456_v36 = vcombine.low %v3002_v60, %v3005_v19  ;;  %v7519_v60 = vld [vmem:[%s8685_s1 + $0xc0] sm:$0xff]   ;;  %v1220_v19 = vld [vmem:[%s6894_s10 + $0x18] sm:$0xe]  ;;  %v6774_v38 = vld [vmem:[%s6894_s10 + $0x50] sm:$0x1]  ;;  %v1320_v16 = vrot.slane %v7493_v14, 5 }
  0x9c   : > { %6196 = vmatmul.mubr.bf16.gmra.mrb[20].mxu0 %v5454_v45  ;;  %v6766_v45 = vld [vmem:[%s6894_s10 + $0x54] sm:$0xf]  ;;  %v7642_v40 = vld [vmem:[%s6894_s10 + $0x64] sm:$0xf] }
  0x9d   : > { %5988 = vmatmul.mubr.bf16.gmra.mrb[4].mxu1 %v5158_v55  ;;  %6199 = vmatprep.mubr.bf16.mxu0 %v5455_v56  ;;  %v5162_v4 = vcombine.low %v6766_v45, %v7493_v14  ;;  %v5163_v55 = vcombine.low %v7150_v25, %v7153_v35  ;;  %v6705_v56 = vld [vmem:[%s8685_s1 + $0xb8] sm:$0xff]   ;;  %v6769_v25 = vld [vmem:[%s6894_s10 + $0x14] sm:$0x1]  ;;  %v6703_v3 = vld [vmem:[%s6894_s10 + $0x60] sm:$0xff]  }
  0x9e   : > { %5991 = vmatprep.mubr.bf16.mxu1 %v5159_v59  ;;  %6020 = vmatpush3.bf16.msra.mxu1 %v6678_v50  ;;  %v2364_v50 = vshll.u32 %v7371_v11, 16  ;;  %v7507_v59 = vld [vmem:[%s6894_s10 + $0x8] sm:$0x1]  ;;  %v1281_v35 = vrot.slane %v6769_v25, 5 }
  0x9f   : > { %6021 = vmatprep.subr.bf16.mxu1 %v6682_v1  ;;  %v1274_v24 = vrot.slane %v7507_v59, 5 }
  0xa0   : > { %v7502_v11 = vrot.slane %v2364_v50, 5 }
  0xa2   : > { %6022 = vmatpush3.bf16.msra.mxu1 %v6682_v1  ;;  %v1271_v1 = vrot.slane %v7386_v62, 5  ;;  %v5164_v62 = vcombine.low %v7168_v5, %v7180_v21  ;;  %v5180_v21 = vrot.slane %v1219_v10, 9  ;;  %v5539_v10 = vld [vmem:[%s6894_s10 + $0x18] sm:$0xf] }
  0xa3   : > { %6023 = vmatprep.subr.bf16.mxu1 %v6687_v32 }
  0xa4   : > { %6200 = vmatmul.mubr.bf16.gmra.mrb[24].mxu0 %v5456_v36  ;;  %v5165_v36 = vcombine.low %v7191_v47, %v7202_v54  ;;  %v1273_v5 = vrot.slane %v1271_v1, 4  ;;  %v6695_v47 = vld [vmem:[%s8685_s1 + $0x1c8] sm:$0xff]   ;;  %v5181_v54 = vrot.slane %v1220_v19, 9  ;;  %v7562_v59 = vsel %vm7172_vm5, %v5179_v17, %v1271_v1  ;;  %v5540_v19 = vld [vmem:[%s6894_s10 + $0x1c] sm:$0xf] }
  0xa5   : > { %5992 = vmatmul.mubr.bf16.gmra.mrb[8].mxu1 %v5160_v34  ;;  %6203 = vmatprep.mubr.bf16.mxu0 %v5457_v33  ;;  %v1299_v34 = vrot.slane %v7450_v58, 5  ;;  %v1280_v33 = vrot.slane %v1278_v7, 4  ;;  %v5182_v58 = vrot.slane %v1221_v61, 9  ;;  %v1313_v1 = vrot.slane %v7476_v0, 5  ;;  %v6697_v0 = vld [vmem:[%s6894_s10 + $0x48] sm:$0xff]  }
  0xa6   : > { %5995 = vmatprep.mubr.bf16.mxu1 %v5161_v20  ;;  %6024 = vmatpush3.bf16.msra.mxu1 %v6687_v32  ;;  %v1292_v32 = vrot.slane %v7445_v51, 5  ;;  %v1222_v51 = vld [vmem:[%s6894_s10 + $0x30] sm:$0xe]  ;;  %v5168_v20 = vcombine.low %v7274_v31, %v7283_v48  ;;  %v7570_v25 = vsel %vm7172_vm5, %v1273_v5, %v1274_v24  ;;  %v7578_v63 = vsel %vm7172_vm5, %v5181_v54, %v1285_v13  ;;  %v1224_v13 = vld [vmem:[%s6894_s10 + $0x48] sm:$0xe] }
  0xa7   : > { %6025 = vmatprep.subr.bf16.mxu1 %v6693_v23  ;;  %v5183_v50 = vrot.slane %v1222_v51, 9  ;;  %v1301_v52 = vrot.slane %v1299_v34, 4  ;;  %v3778_v5 = vshrl.u32 %v5539_v10, 16  ;;  %v3791_v51 = vshrl.u32 %v5540_v19, 16  ;;  %v6706_v48 = vld [vmem:[%s6894_s10 + $0x6c] sm:$0xff]  }
  0xa8   : > { %v1294_v42 = vrot.slane %v1292_v32, 4  ;;  %v7590_v24 = vsel %vm7172_vm5, %v5182_v58, %v1292_v32  ;;  %v6773_v32 = vld [vmem:[%s6894_s10 + $0x44] sm:$0x1]  ;;  %v5185_v54 = vrot.slane %v1224_v13, 9  ;;  %v5543_v13 = vld [vmem:[%s6894_s10 + $0x28] sm:$0xf] }
  0xa9   : > { %v7600_v61 = vsel %vm7172_vm5, %v5183_v50, %v1299_v34  ;;  %v1309_v17 = vrot.slane %v6773_v32, 5  ;;  %v5541_v50 = vld [vmem:[%s6894_s10 + $0x20] sm:$0x1]  ;;  %v1226_v32 = vld [vmem:[%s6894_s10 + $0x60] sm:$0xe] }
  0xaa   : > { %6026 = vmatpush3.bf16.msra.mxu1 %v6693_v23  ;;  %v5169_v23 = vcombine.low %v7308_v27, %v7311_v29 }
  0xab   : > { %6027 = vmatprep.subr.bf16.mxu1 %v6699_v49 }
  0xac   : > { %6204 = vmatmul.mubr.bf16.gmra.mrb[28].mxu0 %v5458_v53  ;;  %v6772_v53 = vld [vmem:[%s6894_s10 + $0x38] sm:$0x1] }
  0xad   : > { %5996 = vmatmul.mubr.bf16.gmra.mrb[12].mxu1 %v5162_v4  ;;  %6223 = vmatprep.mubr.bf16.mxu0 %v6685_v22  ;;  %v1302_v45 = vrot.slane %v6772_v53, 5  ;;  %v1223_v4 = vld [vmem:[%s6894_s10 + $0x3c] sm:$0xe]  ;;  %v1306_v22 = vrot.slane %v7471_v30, 5  ;;  %v7566_v30 = vsel %vm7172_vm5, %v5180_v21, %v1278_v7  ;;  %v3781_v21 = vshll.u32 %v5539_v10, 16  ;;  %v6711_v53 = vld [vmem:[%s8685_s1 + $0x1e0] sm:$0xff]  }
  0xae   : > { %5999 = vmatprep.mubr.bf16.mxu1 %v5163_v55  ;;  %6028 = vmatpush3.bf16.msra.mxu1 %v6699_v49  ;;  %v1295_v49 = vrot.slane %v6771_v43, 5  ;;  %v7553_v55 = vrot.slane %v2374_v8, 5  ;;  %v6694_v7 = vld [vmem:[%s6894_s10 + $0x3c] sm:$0xff]   ;;  %v7586_v8 = vsel %vm7172_vm5, %v1287_v46, %v1288_v39  ;;  %v1315_v46 = vrot.slane %v1313_v1, 4  ;;  %v5545_v43 = vld [vmem:[%s6894_s10 + $0x30] sm:$0xf] }
  0xaf   : > { %6029 = vmatprep.subr.bf16.mxu1 %v6705_v56  ;;  %v1316_v39 = vrot.slane %v6774_v38, 5  ;;  %v3780_v10 = vrot.slane %v3778_v5, 4 }
  0xb0   : > { %8706 = vst [vmem:[#allocation2_spill] sm:$0xff] %v7553_v55 }
  0xb2   : > { %6030 = vmatpush3.bf16.msra.mxu1 %v6705_v56  ;;  %v6701_v56 = vld [vmem:[%s8685_s1 + $0x1d0] sm:$0xff]  }
  0xb3   : > { %6063 = vmatprep.subr.bf16.mxu1 %v7519_v60 }
  0xb4   : > { %6224 = vmatmul.mubr.bf16.vlgmr.msra.gmra.mrb[0].mxu0 %v6688_v6  ;;  %v7574_v6 = vsel %vm7172_vm5, %v1280_v33, %v1281_v35  ;;  %v7594_v35 = vsel %vm7172_vm5, %v1294_v42, %v1295_v49  ;;  %v3787_v33 = vshll.u32 %v5540_v19, 16  ;;  %v3783_v19 = vrot.slane %v3781_v21, 5  ;;  %v1227_v21 = vld [vmem:[%s6894_s10 + $0x6c] sm:$0xe] }
  0xb5   : > { %6000 = vmatmul.mubr.bf16.gmra.mrb[16].mxu1 %v5164_v62  ;;  %6256 = vmatpush3.bf16.msra.mxu0 %v7358_v44  ;;  %v5184_v62 = vrot.slane %v1223_v4, 9  ;;  %v5188_v58 = vrot.slane %v1227_v21, 9 }
  0xb6   : > { %6003 = vmatprep.mubr.bf16.mxu1 %v5165_v36  ;;  %6227 = vmatprep.mubr.bf16.mxu0 %v6691_v18  ;;  %v7604_v36 = vsel %vm7172_vm5, %v1301_v52, %v1302_v45  ;;  %v1308_v18 = vrot.slane %v1306_v22, 4  ;;  %v5542_v52 = vld [vmem:[%s6894_s10 + $0x24] sm:$0xf]  ;;  %v3815_v45 = vshrl.u32 %v5543_v13, 16 }
  0xb7   : > { %6257 = vmatprep.subr.bf16.mxu0 %v6695_v47  ;;  %v7621_v49 = vsel %vm7172_vm5, %v5184_v62, %v1306_v22  ;;  %v7638_v22 = vld [vmem:[%s6894_s10 + $0x54] sm:$0xe]  ;;  %v3793_v62 = vrot.slane %v3791_v51, 4  ;;  %v3802_v38 = vshrl.u32 %v5542_v52, 16  ;;  %v3805_v28 = vshll.u32 %v5542_v52, 16 }
  0xb8   : > { %v7635_v4 = vsel %vm7172_vm5, %v1308_v18, %v1309_v17  ;;  %v3797_v17 = vshll.u32 %v5541_v50, 16  ;;  %v5186_v5 = vrot.slane %v7638_v22, 9  ;;  %v6715_v50 = vld [vmem:[%s8685_s1 + $0x1e8] sm:$0xff]   ;;  %v1322_v52 = vrot.slane %v1320_v16, 4 }
  0xb9   : > { %6258 = vmatpush3.bf16.msra.mxu0 %v6695_v47  ;;  %v6707_v47 = vld [vmem:[%s8685_s1 + $0x1d8] sm:$0xff]   ;;  %v3784_v22 = vor.u32 %v3783_v19, %v3780_v10  ;;  %v3804_v34 = vrot.slane %v3802_v38, 4  ;;  %v3807_v44 = vrot.slane %v3805_v28, 5  ;;  %v6779_v10 = vld [vmem:[%s6894_s10 + $0x74] sm:$0x1]  ;;  %v3817_v28 = vrot.slane %v3815_v45, 4 }
  0xba   : > { %6259 = vmatprep.subr.bf16.mxu0 %v6701_v56  ;;  %v7676_v42 = vrot.slane %v3797_v17, 5  ;;  %v1337_v19 = vrot.slane %v6779_v10, 5  ;;  %v3826_v38 = vshrl.u32 %v5545_v43, 16  ;;  %v7701_v27 = vsel %vm7172_vm5, %v5186_v5, %v1320_v16 }
  0xbb   : > { %v3785_v21 = vrot.slane %v3784_v22, 4 }
  0xbc   : > { %6228 = vmatmul.mubr.bf16.gmra.mrb[4].mxu0 %v6694_v7  ;;  %v7648_v7 = vrot.slane %v3787_v33, 5  ;;  %v6777_v33 = vld [vmem:[%s6894_s10 + $0x70] sm:$0xf] }
  0xbd   : > { %6004 = vmatmul.mubr.bf16.gmra.mrb[20].mxu1 %v5166_v15  ;;  %6231 = vmatprep.mubr.bf16.mxu0 %v6697_v0  ;;  %v1327_v15 = vrot.slane %v7642_v40, 5  ;;  %v6776_v0 = vld [vmem:[%s6894_s10 + $0x5c] sm:$0x1]  ;;  %v1334_v51 = vrot.slane %v6777_v33, 5 }
  0xbe   : > { %6007 = vmatprep.mubr.bf16.mxu1 %v5167_v26  ;;  %6260 = vmatpush3.bf16.msra.mxu0 %v6701_v56  ;;  %v1323_v18 = vrot.slane %v6776_v0, 5  ;;  %v7657_v26 = vsel %vm7172_vm5, %v5185_v54, %v1313_v1  ;;  %v7661_v56 = vsel %vm7172_vm5, %v1315_v46, %v1316_v39  ;;  %v6778_v1 = vld [vmem:[%s6894_s10 + $0x68] sm:$0x1]  ;;  %v3811_v0 = vshll.u32 %v5543_v13, 16  ;;  %v6723_v40 = vld [vmem:[%s8685_s1 + $0x1f8] sm:$0xff]  }
  0xbf   : > { %6261 = vmatprep.subr.bf16.mxu0 %v6707_v47  ;;  %v1330_v54 = vrot.slane %v6778_v1, 5  ;;  %v5187_v46 = vrot.slane %v1226_v32, 9  ;;  %v1329_v39 = vrot.slane %v1327_v15, 4  ;;  %v3794_v33 = vor.u32 %v3793_v62, %v7648_v7  ;;  %v5546_v1 = vld [vmem:[%s6894_s10 + $0x34] sm:$0xf] }
  0xc0   : > { %v1336_v32 = vrot.slane %v1334_v51, 4  ;;  %v5544_v62 = vld [vmem:[%s6894_s10 + $0x2c] sm:$0x1]  ;;  %v7688_v17 = vrot.slane %v3811_v0, 5  ;;  %v3835_v13 = vshll.u32 %v5546_v1, 16  ;;  %v3839_v31 = vshrl.u32 %v5546_v1, 16 }
  0xc1   : > { %v3795_v10 = vrot.slane %v3794_v33, 4  ;;  %v7705_v29 = vsel %vm7172_vm5, %v1322_v52, %v1323_v18  ;;  %v7712_v45 = vsel %vm7172_vm5, %v5187_v46, %v1327_v15  ;;  %v7716_v14 = vsel %vm7172_vm5, %v1329_v39, %v1330_v54  ;;  %v1228_v18 = vld [vmem:[%s6894_s10 + $0x78] sm:$0xe] }
  0xc2   : > { %6262 = vmatpush3.bf16.msra.mxu0 %v6707_v47  ;;  %v7720_v16 = vsel %vm7172_vm5, %v5188_v58, %v1334_v51  ;;  %v7730_v15 = vsel %vm7172_vm5, %v1336_v32, %v1337_v19  ;;  %v3818_v5 = vor.u32 %v3817_v28, %v7688_v17  ;;  %v3828_v52 = vrot.slane %v3826_v38, 4  ;;  %v5548_v58 = vld [vmem:[%s6894_s10 + $0x3c] sm:$0xf]  ;;  %v5549_v51 = vld [vmem:[%s6894_s10 + $0x40] sm:$0xf] }
  0xc3   : > { %6263 = vmatprep.subr.bf16.mxu0 %v6711_v53  ;;  %v3790_v0 = vsel %vm6926_vm2, %v3785_v21, %v7648_v7  ;;  %v3800_v46 = vsel %vm6926_vm2, %v3795_v10, %v7676_v42  ;;  %v7741_v39 = vrot.slane %v3835_v13, 5  ;;  %v3841_v22 = vrot.slane %v3839_v31, 4  ;;  %v6781_v19 = vld [vmem:[%s6894_s10 + $0x80] sm:$0x1]  ;;  %v7900_v47 = vld [vmem:[%s6894_s10 + $0x68] sm:$0x1] }
  0xc4   : > { %6232 = vmatmul.mubr.bf16.gmra.mrb[8].mxu0 %v6700_v2  ;;  %v3829_v2 = vshll.u32 %v5545_v43, 16  ;;  %v3821_v43 = vshll.u32 %v5544_v62, 16  ;;  %v5189_v32 = vrot.slane %v1228_v18, 9  ;;  %v1229_v62 = vld [vmem:[%s6894_s10 + $0x84] sm:$0xe]  ;;  %v3850_v28 = vshrl.u32 %v5548_v58, 16 }
  0xc5   : > { %6008 = vmatmul.mubr.bf16.gmra.mrb[24].mxu1 %v5168_v20  ;;  %6235 = vmatprep.mubr.bf16.mxu0 %v6703_v3  ;;  %v6719_v20 = vld [vmem:[%s8685_s1 + $0x1f0] sm:$0xff]   ;;  %v6780_v3 = vld [vmem:[%s6894_s10 + $0x7c] sm:$0xf]  ;;  %v3853_v7 = vshll.u32 %v5548_v58, 16  ;;  %v3859_v38 = vshll.u32 %v5549_v51, 16  ;;  %v8707_v42 = vcombine.low %v7331_v41, %v7336_v12  ;;  %v7752_v13 = vrot.slane %v3818_v5, 4 }
  0xc6   : > { %6011 = vmatprep.mubr.bf16.mxu1 %v5169_v23  ;;  %6264 = vmatpush3.bf16.msra.mxu0 %v6711_v53  ;;  %v3808_v23 = vor.u32 %v3807_v44, %v3804_v34  ;;  %v6708_v53 = vld [vmem:[%s6894_s10 + $0x78] sm:$0xff]   ;;  %v1341_v44 = vrot.slane %v6780_v3, 5  ;;  %v3831_v54 = vrot.slane %v3829_v2, 5  ;;  %v7745_v1 = vrot.slane %v3821_v43, 5  ;;  %v7757_v21 = vld [vmem:[%s8685_s1 + $0x200] sm:$0xff]   ;;  %8715 = vst [vmem:[#allocation5_spill] sm:$0xff] %v7900_v47 }
  0xc7   : > { %6265 = vmatprep.subr.bf16.mxu0 %v6715_v50  ;;  %v5547_v34 = vld [vmem:[%s6894_s10 + $0x38] sm:$0x1]  ;;  %v3863_v2 = vshrl.u32 %v5549_v51, 16  ;;  %v6710_v43 = vld [vmem:[%s6894_s10 + $0x84] sm:$0xff]   ;;  %v3842_v12 = vor.u32 %v3841_v22, %v7741_v39  ;;  %v3855_v58 = vrot.slane %v3853_v7, 5  ;;  %v7779_v51 = vrot.slane %v3859_v38, 5 }
  0xc8   : > { %v7743_v33 = vrot.slane %v3808_v23, 4  ;;  %v1343_v10 = vrot.slane %v1341_v44, 4  ;;  %v3832_v31 = vor.u32 %v3831_v54, %v3828_v52  ;;  %v8708_v23 = vcombine.low %v7562_v59, %v7570_v25  ;;  %v6782_v18 = vld [vmem:[%s6894_s10 + $0x88] sm:$0xf]  ;;  %v5550_v5 = vld [vmem:[%s6894_s10 + $0x44] sm:$0x1] }
  0xc9   : > { %v1348_v3 = vrot.slane %v6782_v18, 5  ;;  %v7770_v59 = vcombine.low %v3790_v0, %v3800_v46  ;;  %v5551_v52 = vld [vmem:[%s6894_s10 + $0x48] sm:$0xf]  ;;  %v3852_v54 = vrot.slane %v3850_v28, 4  ;;  %v3865_v22 = vrot.slane %v3863_v2, 4 }
  0xca   : > { %6266 = vmatpush3.bf16.msra.mxu0 %v6715_v50  ;;  %v1344_v50 = vrot.slane %v6781_v19, 5  ;;  %v6712_v19 = vld [vmem:[%s6894_s10 + $0x90] sm:$0xff]   ;;  %v3814_v0 = vsel %vm6926_vm2, %v7743_v33, %v7688_v17  ;;  %v3833_v46 = vrot.slane %v3832_v31, 4  ;;  %v3824_v28 = vsel %vm6926_vm2, %v7752_v13, %v7745_v1  ;;  %v7801_v33 = vld [vmem:[%s6894_s10 + $0x58] sm:$0xf]  ;;  %v6713_v31 = vld [vmem:[%s8685_s1 + $0xc8] sm:$0xff]  }
  0xcb   : > { %6267 = vmatprep.subr.bf16.mxu0 %v6719_v20  ;;  %v3843_v38 = vrot.slane %v3842_v12, 4  ;;  %v1350_v2 = vrot.slane %v1348_v3, 4  ;;  %v5554_v17 = vld [vmem:[%s6894_s10 + $0x54] sm:$0xf]  ;;  %v3869_v1 = vshll.u32 %v5550_v5, 16  ;;  %v3874_v13 = vshrl.u32 %v5551_v52, 16 }
  0xcc   : > { %6236 = vmatmul.mubr.bf16.gmra.mrb[12].mxu0 %v6706_v48  ;;  %v3845_v48 = vshll.u32 %v5547_v34, 16  ;;  %v7797_v7 = vsel %vm7172_vm5, %v1343_v10, %v1344_v50  ;;  %v3877_v50 = vshll.u32 %v5551_v52, 16  ;;  %v3856_v10 = vor.u32 %v3855_v58, %v3852_v54  ;;  %v6714_v54 = vld [vmem:[%s6894_s10 + $0x9c] sm:$0xff]   ;;  %v6788_v41 = vld [vmem:[%s6894_s10 + $0xac] sm:$0xf] }
  0xcd   : > { %6012 = vmatmul.mubr.bf16.gmra.mrb[28].mxu1 %v8707_v42  ;;  %6239 = vmatprep.mubr.bf16.mxu0 %v6708_v53  ;;  %v5190_v53 = vrot.slane %v1229_v62, 9  ;;  %v6783_v42 = vld [vmem:[%s6894_s10 + $0x8c] sm:$0x1]  ;;  %v3907_v5 = vshll.u32 %v7801_v33, 16  ;;  %v8710_v52 = vcombine.low %v7578_v63, %v7586_v8  ;;  %v7837_v63 = vld [vmem:[%s6894_s10 + $0x50] sm:$0x1] }
  0xce   : > { %6031 = vmatprep.mubr.bf16.mxu1 %v8708_v23  ;;  %6268 = vmatpush3.bf16.msra.mxu0 %v6719_v20  ;;  %v7776_v20 = vsel %vm7172_vm5, %v5189_v32, %v1341_v44  ;;  %v3847_v62 = vrot.slane %v3845_v48, 5  ;;  %v1351_v23 = vrot.slane %v6783_v42, 5  ;;  %v1230_v44 = vld [vmem:[%s6894_s10 + $0x90] sm:$0xe]  ;;  %v7789_v32 = vld [vmem:[%s6894_s10 + $0x4c] sm:$0xf]  ;;  %v3866_v48 = vor.u32 %v3865_v22, %v7779_v51 }
  0xcf   : > { %6269 = vmatprep.subr.bf16.mxu0 %v6723_v40  ;;  %v3883_v12 = vshll.u32 %v7789_v32, 16  ;;  %v3887_v18 = vshrl.u32 %v7789_v32, 16  ;;  %v8709_v42 = vcombine.low %v7566_v30, %v7574_v6  ;;  %v6717_v30 = vld [vmem:[%s8685_s1 + $0xd0] sm:$0xff]   ;;  %v3838_v6 = vsel %vm6926_vm2, %v3833_v46, %v7741_v39  ;;  %v6716_v8 = vld [vmem:[%s6894_s10 + $0xa8] sm:$0xff]   ;;  %v7844_v39 = vld [vmem:[%s6894_s10 + $0x5c] sm:$0x1] }
  0xd0   : > { %v3848_v58 = vsel %vm6926_vm2, %v3843_v38, %v3847_v62  ;;  %v5191_v22 = vrot.slane %v1230_v44, 9  ;;  %v3879_v25 = vrot.slane %v3877_v50, 5  ;;  %8711 = vst [vmem:[#allocation3_spill] sm:$0xff] %v7844_v39  ;;  %v3857_v46 = vrot.slane %v3856_v10, 4 }
  0xd1   : > { %v3867_v62 = vrot.slane %v3866_v48, 4  ;;  %v7846_v38 = vrot.slane %v3883_v12, 5  ;;  %v7848_v34 = vrot.slane %v3907_v5, 5  ;;  %v7853_v50 = vcombine.low %v3814_v0, %v3824_v28  ;;  %v5557_v28 = vld [vmem:[%s6894_s10 + $0x60] sm:$0xf] }
  0xd2   : > { %6270 = vmatpush3.bf16.msra.mxu0 %v6723_v40  ;;  %v7809_v40 = vsel %vm7172_vm5, %v5190_v53, %v1348_v3  ;;  %v3898_v53 = vshrl.u32 %v5554_v17, 16  ;;  %v3901_v3 = vshll.u32 %v5554_v17, 16  ;;  %v6784_v17 = vld [vmem:[%s6894_s10 + $0x94] sm:$0xf]  ;;  %v7857_v48 = vcombine.low %v3838_v6, %v3848_v58 }
  0xd3   : > { %6303 = vmatprep.subr.bf16.mxu0 %v7757_v21  ;;  %v3893_v0 = vshll.u32 %v7837_v63, 16  ;;  %v3862_v6 = vsel %vm6926_vm2, %v3857_v46, %v7779_v51  ;;  %v8714_v46 = vcombine.low %v7600_v61, %v7604_v36 }
  0xd4   : > { %6240 = vmatmul.mubr.bf16.gmra.mrb[16].mxu0 %v6710_v43  ;;  %v3911_v43 = vshrl.u32 %v7801_v33, 16  ;;  %v3900_v44 = vrot.slane %v3898_v53, 4  ;;  %v6785_v53 = vld [vmem:[%s6894_s10 + $0x98] sm:$0x1] }
  0xd5   : > { %6032 = vmatmul.mubr.bf16.vlgmr.msra.gmra.mrb[0].mxu1 %v8709_v42  ;;  %6243 = vmatprep.mubr.bf16.mxu0 %v6712_v19  ;;  %v7840_v19 = vrot.slane %v3869_v1, 5  ;;  %v1355_v42 = vrot.slane %v6784_v17, 5  ;;  %v6786_v17 = vld [vmem:[%s6894_s10 + $0xa0] sm:$0xf]  ;;  %v3895_v36 = vrot.slane %v3893_v0, 5 }
  0xd6   : > { %6064 = vmatpush3.bf16.msra.mxu1 %v7519_v60  ;;  %6035 = vmatprep.mubr.bf16.mxu1 %v8710_v52  ;;  %v7834_v60 = vsel %vm7172_vm5, %v1350_v2, %v1351_v23  ;;  %v3876_v52 = vrot.slane %v3874_v13, 4  ;;  %v3889_v23 = vrot.slane %v3887_v18, 4  ;;  %v3903_v2 = vrot.slane %v3901_v3, 5  ;;  %v6721_v13 = vld [vmem:[%s8685_s1 + $0xd8] sm:$0xff]  }
  0xd7   : > { %6065 = vmatprep.subr.bf16.mxu1 %v6713_v31  ;;  %v3913_v1 = vrot.slane %v3911_v43, 4  ;;  %v1231_v18 = vld [vmem:[%s6894_s10 + $0x9c] sm:$0xe]  ;;  %v1358_v3 = vrot.slane %v6785_v53, 5  ;;  %v7870_v43 = vld [vmem:[%s6894_s10 + $0x64] sm:$0xf] }
  0xd8   : > { %v3880_v5 = vor.u32 %v3879_v25, %v3876_v52  ;;  %8712 = vst [vmem:[#allocation4_spill] sm:$0xff] %v7870_v43  ;;  %v3890_v58 = vor.u32 %v3889_v23, %v7846_v38  ;;  %v1362_v12 = vrot.slane %v6786_v17, 5  ;;  %v8713_v25 = vcombine.low %v7590_v24, %v7594_v35  ;;  %v6718_v23 = vld [vmem:[%s6894_s10 + $0xb4] sm:$0xff]   ;;  %v6724_v24 = vld [vmem:[%s8685_s1 + $0xe0] sm:$0xff]   ;;  %v5560_v17 = vld [vmem:[%s6894_s10 + $0x6c] sm:$0xf] }
  0xd9   : > { %v1357_v52 = vrot.slane %v1355_v42, 4  ;;  %v3904_v53 = vor.u32 %v3903_v2, %v3900_v44  ;;  %v3914_v51 = vor.u32 %v3913_v1, %v7848_v34  ;;  %v3922_v35 = vshrl.u32 %v5557_v28, 16  ;;  %v6787_v2 = vld [vmem:[%s6894_s10 + $0xa4] sm:$0x1] }
  0xda   : > { %6066 = vmatpush3.bf16.msra.mxu1 %v6713_v31  ;;  %v7864_v31 = vsel %vm7172_vm5, %v5191_v22, %v1355_v42  ;;  %v3917_v22 = vshll.u32 %v7844_v39, 16  ;;  %v3935_v42 = vshrl.u32 %v7870_v43, 16  ;;  %v3881_v61 = vrot.slane %v3880_v5, 4  ;;  %v8039_v39 = vld [vmem:[%s6894_s10 + $0x98] sm:$0x1] }
  0xdb   : > { %6067 = vmatprep.subr.bf16.mxu1 %v6717_v30  ;;  %v5192_v44 = vrot.slane %v1231_v18, 9  ;;  %v1365_v1 = vrot.slane %v6787_v2, 5  ;;  %v3905_v5 = vrot.slane %v3904_v53, 4  ;;  %v3915_v18 = vrot.slane %v3914_v51, 4  ;;  %8728 = vst [vmem:[#allocation14_spill] sm:$0xff] %v8039_v39 }
  0xdc   : > { %6244 = vmatmul.mubr.bf16.gmra.mrb[20].mxu0 %v6714_v54  ;;  %v3872_v54 = vsel %vm6926_vm2, %v3867_v62, %v7840_v19  ;;  %v3931_v19 = vshll.u32 %v7870_v43, 16  ;;  %v6720_v62 = vld [vmem:[%s6894_s10 + $0xc0] sm:$0xff]   ;;  %v3919_v10 = vrot.slane %v3917_v22, 5  ;;  %v7906_v43 = vsel %vm7172_vm5, %v1357_v52, %v1358_v3 }
  0xdd   : > { %6036 = vmatmul.mubr.bf16.gmra.mrb[4].mxu1 %v8713_v25  ;;  %6247 = vmatprep.mubr.bf16.mxu0 %v6716_v8  ;;  %v3925_v8 = vshll.u32 %v5557_v28, 16  ;;  %v3891_v25 = vrot.slane %v3890_v58, 4  ;;  %v1369_v28 = vrot.slane %v6788_v41, 5  ;;  %v7902_v55 = vcombine.low %v3862_v6, %v3872_v54  ;;  %v6726_v41 = vld [vmem:[%s8685_s1 + $0xe8] sm:$0xff]  }
  0xde   : > { %6039 = vmatprep.mubr.bf16.mxu1 %v8714_v46  ;;  %6068 = vmatpush3.bf16.msra.mxu1 %v6717_v30  ;;  %v1232_v30 = vld [vmem:[%s6894_s10 + $0xa8] sm:$0xe]  ;;  %v1364_v46 = vrot.slane %v1362_v12, 4  ;;  %v3924_v0 = vrot.slane %v3922_v35, 4  ;;  %v7908_v58 = vrot.slane %v3931_v19, 5  ;;  %v3937_v22 = vrot.slane %v3935_v42, 4 }
  0xdf   : > { %6069 = vmatprep.subr.bf16.mxu1 %v6721_v13  ;;  %v3927_v2 = vrot.slane %v3925_v8, 5  ;;  %v3886_v3 = vsel %vm6926_vm2, %v3881_v61, %v7846_v38  ;;  %v7918_v6 = vsel %vm7172_vm5, %v5192_v44, %v1362_v12  ;;  %v3946_v54 = vshrl.u32 %v5560_v17, 16  ;;  %v6789_v38 = vld [vmem:[%s6894_s10 + $0xb0] sm:$0x1]  ;;  %v1233_v19 = vld [vmem:[%s6894_s10 + $0xb4] sm:$0xe] }
  0xe0   : > { %v3949_v52 = vshll.u32 %v5560_v17, 16  ;;  %v3896_v53 = vsel %vm6926_vm2, %v3891_v25, %v3895_v36  ;;  %v7927_v51 = vsel %vm7172_vm5, %v1364_v46, %v1365_v1  ;;  %v5193_v35 = vrot.slane %v1232_v30, 9  ;;  %v7949_v30 = vld [vmem:[%s6894_s10 + $0x74] sm:$0x1]  ;;  %v6790_v25 = vld [vmem:[%s6894_s10 + $0xb8] sm:$0xf] }
  0xe1   : > { %v1372_v8 = vrot.slane %v6789_v38, 5  ;;  %v8717_v12 = vcombine.low %v7621_v49, %v7635_v4  ;;  %v3910_v42 = vsel %vm6926_vm2, %v3905_v5, %v7848_v34  ;;  %v3920_v61 = vsel %vm6926_vm2, %v3915_v18, %v3919_v10  ;;  %v6722_v4 = vld [vmem:[%s6894_s10 + $0xcc] sm:$0xff]   ;;  %8719 = vst [vmem:[#allocation7_spill] sm:$0xff] %v7949_v30  ;;  %v5566_v38 = vld [vmem:[%s6894_s10 + $0x84] sm:$0xf] }
  0xe2   : > { %6070 = vmatpush3.bf16.msra.mxu1 %v6721_v13  ;;  %v7921_v13 = vld [vmem:[%s6894_s10 + $0x70] sm:$0xf]  ;;  %v1371_v36 = vrot.slane %v1369_v28, 4  ;;  %v3941_v44 = vshll.u32 %v7900_v47, 16  ;;  %v8718_v49 = vcombine.low %v7657_v26, %v7661_v56  ;;  %v3938_v1 = vor.u32 %v3937_v22, %v7908_v58  ;;  %v7966_v22 = vld [vmem:[%s6894_s10 + $0x7c] sm:$0xf] }
  0xe3   : > { %6071 = vmatprep.subr.bf16.mxu1 %v6724_v24  ;;  %8716 = vst [vmem:[#allocation6_spill] sm:$0xff] %v7921_v13  ;;  %v3955_v34 = vshll.u32 %v7921_v13, 16  ;;  %v3959_v10 = vshrl.u32 %v7921_v13, 16  ;;  %v5194_v17 = vrot.slane %v1233_v19, 9  ;;  %v1376_v46 = vrot.slane %v6790_v25, 5  ;;  %8720 = vst [vmem:[#allocation8_spill] sm:$0xff] %v7966_v22 }
  0xe4   : > { %6248 = vmatmul.mubr.bf16.gmra.mrb[24].mxu0 %v6718_v23  ;;  %v6728_v23 = vld [vmem:[%s8685_s1 + $0xf0] sm:$0xff]   ;;  %v3948_v26 = vrot.slane %v3946_v54, 4  ;;  %v3951_v56 = vrot.slane %v3949_v52, 5  ;;  %v7957_v18 = vcombine.low %v3886_v3, %v3896_v53  ;;  %v7969_v19 = vcombine.low %v3910_v42, %v3920_v61  ;;  %v6791_v3 = vld [vmem:[%s6894_s10 + $0xbc] sm:$0x1] }
  0xe5   : > { %6040 = vmatmul.mubr.bf16.gmra.mrb[8].mxu1 %v8717_v12  ;;  %6251 = vmatprep.mubr.bf16.mxu0 %v6720_v62  ;;  %v3928_v62 = vor.u32 %v3927_v2, %v3924_v0  ;;  %v7963_v2 = vsel %vm7172_vm5, %v5193_v35, %v1369_v28  ;;  %v7973_v54 = vsel %vm7172_vm5, %v1371_v36, %v1372_v8  ;;  %v7975_v52 = vrot.slane %v3941_v44, 5  ;;  %v6730_v12 = vld [vmem:[%s8685_s1 + $0xf8] sm:$0xff]   ;;  %v7982_v28 = vld [vmem:[%s6894_s10 + $0x88] sm:$0xf] }
  0xe6   : > { %6043 = vmatprep.mubr.bf16.mxu1 %v8718_v49  ;;  %6072 = vmatpush3.bf16.msra.mxu1 %v6724_v24  ;;  %v5563_v24 = vld [vmem:[%s6894_s10 + $0x78] sm:$0xf]  ;;  %v1379_v53 = vrot.slane %v6791_v3, 5  ;;  %8721 = vst [vmem:[#allocation9_spill] sm:$0xff] %v7982_v28  ;;  %v7986_v42 = vrot.slane %v3938_v1, 4  ;;  %v7988_v61 = vrot.slane %v3955_v34, 5  ;;  %v7992_v36 = vsel %vm7172_vm5, %v5194_v17, %v1376_v46 }
  0xe7   : > { %6073 = vmatprep.subr.bf16.mxu1 %v6726_v41  ;;  %v7984_v35 = vrot.slane %v3928_v62, 4  ;;  %v3961_v8 = vrot.slane %v3959_v10, 4  ;;  %v1378_v44 = vrot.slane %v1376_v46, 4  ;;  %v3952_v49 = vor.u32 %v3951_v56, %v3948_v26  ;;  %v5569_v3 = vld [vmem:[%s6894_s10 + $0x90] sm:$0xf] }
  0xe8   : > { %v3965_v25 = vshll.u32 %v7949_v30, 16  ;;  %v3973_v0 = vshll.u32 %v5563_v24, 16  ;;  %v3979_v62 = vshll.u32 %v7966_v22, 16  ;;  %v3983_v1 = vshrl.u32 %v7966_v22, 16  ;;  %v7999_v34 = vld [vmem:[%s6894_s10 + $0x94] sm:$0xf] }
  0xe9   : > { %8722 = vst [vmem:[#allocation10_spill] sm:$0xff] %v7999_v34  ;;  %v8723_v10 = vcombine.low %v7701_v27, %v7705_v29  ;;  %v3994_v17 = vshrl.u32 %v5566_v38, 16  ;;  %v3997_v46 = vshll.u32 %v5566_v38, 16  ;;  %v4007_v26 = vshrl.u32 %v7982_v28, 16  ;;  %v5572_v38 = vld [vmem:[%s6894_s10 + $0x9c] sm:$0xf] }
  0xea   : > { %6074 = vmatpush3.bf16.msra.mxu1 %v6726_v41  ;;  %v3970_v41 = vshrl.u32 %v5563_v24, 16  ;;  %v8724_v56 = vcombine.low %v7712_v45, %v7716_v14  ;;  %v3962_v29 = vor.u32 %v3961_v8, %v7988_v61  ;;  %v4021_v24 = vshll.u32 %v5569_v3, 16  ;;  %v8021_v45 = vld [vmem:[%s6894_s10 + $0x80] sm:$0x1] }
  0xeb   : > { %6075 = vmatprep.subr.bf16.mxu1 %v6728_v23  ;;  %v8018_v5 = vrot.slane %v3965_v25, 5  ;;  %8725 = vst [vmem:[#allocation11_spill] sm:$0xff] %v8021_v45  ;;  %v4027_v14 = vshll.u32 %v7999_v34, 16  ;;  %v3975_v27 = vrot.slane %v3973_v0, 5  ;;  %v3985_v8 = vrot.slane %v3983_v1, 4 }
  0xec   : > { %6252 = vmatmul.mubr.bf16.gmra.mrb[28].mxu0 %v6722_v4  ;;  %v4003_v4 = vshll.u32 %v7982_v28, 16  ;;  %v8025_v28 = vrot.slane %v3979_v62, 5  ;;  %v8031_v22 = vld [vmem:[%s6894_s10 + $0xa0] sm:$0xf]  ;;  %v3996_v25 = vrot.slane %v3994_v17, 4  ;;  %v3999_v30 = vrot.slane %v3997_v46, 5 }
  0xed   : > { %6044 = vmatmul.mubr.bf16.gmra.mrb[12].mxu1 %v8723_v10  ;;  %6271 = vmatprep.mubr.bf16.mxu0 %v7770_v59  ;;  %v4018_v59 = vshrl.u32 %v5569_v3, 16  ;;  %v8016_v10 = vrot.slane %v3952_v49, 4  ;;  %v8028_v3 = vld [vmem:[%s6894_s10 + $0x8c] sm:$0x1]  ;;  %8727 = vst [vmem:[#allocation13_spill] sm:$0xff] %v8031_v22  ;;  %v4009_v47 = vrot.slane %v4007_v26, 4  ;;  %v8048_v62 = vsel %vm7172_vm5, %v1378_v44, %v1379_v53 }
  0xee   : > { %6047 = vmatprep.mubr.bf16.mxu1 %v8724_v56  ;;  %6076 = vmatpush3.bf16.msra.mxu1 %v6728_v23  ;;  %v4031_v23 = vshrl.u32 %v7999_v34, 16  ;;  %v3972_v56 = vrot.slane %v3970_v41, 4  ;;  %8726 = vst [vmem:[#allocation12_spill] sm:$0xff] %v8028_v3  ;;  %v6727_v49 = vld [vmem:[%s8685_s1 + $0x208] sm:$0xff]   ;;  %v8036_v13 = vrot.slane %v4003_v4, 5  ;;  %v4023_v34 = vrot.slane %v4021_v24, 5 }
  0xef   : > { %6077 = vmatprep.subr.bf16.mxu1 %v6730_v12  ;;  %v5575_v41 = vld [vmem:[%s6894_s10 + $0xa8] sm:$0xf]  ;;  %v4020_v1 = vrot.slane %v4018_v59, 4  ;;  %v8053_v17 = vld [vmem:[%s8685_s1 + $0x100] sm:$0xff]   ;;  %v8056_v46 = vrot.slane %v4027_v14, 5  ;;  %v4042_v26 = vshrl.u32 %v5572_v38, 16  ;;  %v8730_v24 = vcombine.low %v7720_v16, %v7730_v15 }
  0xf0   : > { %8729 = vst [vmem:[#allocation15_spill] sm:$0xff] %v8053_v17  ;;  %v4033_v4 = vrot.slane %v4031_v23, 4  ;;  %v4045_v0 = vshll.u32 %v5572_v38, 16  ;;  %v8059_v53 = vrot.slane %v3962_v29, 4  ;;  %v4051_v44 = vshll.u32 %v8031_v22, 16  ;;  %v6729_v16 = vld [vmem:[%s8685_s1 + $0x210] sm:$0xff]  }
  0xf1   : > { %v4055_v59 = vshrl.u32 %v8031_v22, 16  ;;  %v3976_v14 = vor.u32 %v3975_v27, %v3972_v56  ;;  %v3986_v38 = vor.u32 %v3985_v8, %v8025_v28  ;;  %v4000_v23 = vor.u32 %v3999_v30, %v3996_v25  ;;  %v8071_v29 = vld [vmem:[%s6894_s10 + $0xac] sm:$0xf]  ;;  %v8084_v25 = vld [vmem:[%s6894_s10 + $0xa4] sm:$0x1] }
  0xf2   : > { %6078 = vmatpush3.bf16.msra.mxu1 %v6730_v12  ;;  %v3989_v12 = vshll.u32 %v8021_v45, 16  ;;  %8731 = vst [vmem:[#allocation16_spill] sm:$0xff] %v8071_v29  ;;  %v4010_v15 = vor.u32 %v4009_v47, %v8036_v13  ;;  %v4066_v27 = vshrl.u32 %v5575_v41, 16  ;;  %v4069_v30 = vshll.u32 %v5575_v41, 16 }
  0xf3   : > { %6351 = vmatprep.subr.bf16.mxu1 %v8053_v17  ;;  %v8732_v17 = vcombine.low %v7776_v20, %v7797_v7  ;;  %v4024_v56 = vor.u32 %v4023_v34, %v4020_v1  ;;  %v4034_v8 = vor.u32 %v4033_v4, %v8056_v46  ;;  %v4044_v20 = vrot.slane %v4042_v26, 4 }
  0xf4   : > { %6272 = vmatmul.mubr.bf16.vlgmr.msra.gmra.mrb[0].mxu0 %v7853_v50  ;;  %v4013_v50 = vshll.u32 %v8028_v3, 16  ;;  %v4047_v7 = vrot.slane %v4045_v0, 5  ;;  %v4079_v22 = vshrl.u32 %v8071_v29, 16  ;;  %v3977_v47 = vrot.slane %v3976_v14, 4  ;;  %v6731_v0 = vld [vmem:[%s8685_s1 + $0x218] sm:$0xff]  }
  0xf5   : > { %6048 = vmatmul.mubr.bf16.gmra.mrb[16].mxu1 %v8730_v24  ;;  %6304 = vmatpush3.bf16.msra.mxu0 %v7757_v21  ;;  %v4037_v21 = vshll.u32 %v8039_v39, 16  ;;  %v4075_v24 = vshll.u32 %v8071_v29, 16  ;;  %v3987_v39 = vrot.slane %v3986_v38, 4  ;;  %v3991_v3 = vrot.slane %v3989_v12, 5 }
  0xf6   : > { %6051 = vmatprep.mubr.bf16.mxu1 %v8732_v17  ;;  %6275 = vmatprep.mubr.bf16.mxu0 %v7857_v48  ;;  %v8086_v17 = vrot.slane %v4051_v44, 5  ;;  %v4057_v48 = vrot.slane %v4055_v59, 4  ;;  %v4015_v41 = vrot.slane %v4013_v50, 5  ;;  %v4001_v34 = vrot.slane %v4000_v23, 4 }
  0xf7   : > { %6305 = vmatprep.subr.bf16.mxu0 %v6727_v49  ;;  %v4011_v1 = vrot.slane %v4010_v15, 4  ;;  %v4068_v4 = vrot.slane %v4066_v27, 4  ;;  %v4071_v45 = vrot.slane %v4069_v30, 5  ;;  %v4025_v26 = vrot.slane %v4024_v56, 4  ;;  %v8152_v27 = vld [vmem:[%s6894_s10 + $0xbc] sm:$0x1] }
  0xf8   : > { %v4039_v44 = vrot.slane %v4037_v21, 5  ;;  %v4048_v59 = vor.u32 %v4047_v7, %v4044_v20  ;;  %v4061_v29 = vshll.u32 %v8084_v25, 16  ;;  %v4058_v12 = vor.u32 %v4057_v48, %v8086_v17  ;;  %v8119_v21 = vld [vmem:[%s6894_s10 + $0xb0] sm:$0x1] }
  0xf9   : > { %6306 = vmatpush3.bf16.msra.mxu0 %v6727_v49  ;;  %v4035_v49 = vrot.slane %v4034_v8, 4  ;;  %v8096_v14 = vrot.slane %v4075_v24, 5  ;;  %v4081_v38 = vrot.slane %v4079_v22, 4  ;;  %v8733_v23 = vor.u32 %v7504_v57, %v7502_v11 }
  0xfa   : > { %6307 = vmatprep.subr.bf16.mxu0 %v6729_v16  ;;  %v8734_v15 = vcombine.low %v7809_v40, %v7834_v60  ;;  %v3968_v22 = vsel %vm6926_vm2, %v8059_v53, %v8018_v5  ;;  %v3982_v57 = vsel %vm6926_vm2, %v3977_v47, %v8025_v28  ;;  %v8735_v40 = vcombine.low %v7864_v31, %v7906_v43  ;;  %v6734_v31 = vld [vmem:[%s8685_s1 + $0x220] sm:$0xff]  }
  0xfb   : > { %v8101_v50 = vrot.slane %v8733_v23, 4  ;;  %v3992_v60 = vsel %vm6926_vm2, %v3987_v39, %v3991_v3  ;;  %v4072_v5 = vor.u32 %v4071_v45, %v4068_v4  ;;  %v4016_v28 = vsel %vm6926_vm2, %v4011_v1, %v4015_v41  ;;  %v5631_v41 = vld [vmem:[%s6894_s10 + $0x48] sm:$0xe] }
  0xfc   : > { %6276 = vmatmul.mubr.bf16.gmra.mrb[4].mxu0 %v7902_v55  ;;  %v3958_v55 = vsel %vm6926_vm2, %v8016_v10, %v7988_v61  ;;  %v5578_v61 = vld [vmem:[%s6894_s10 + $0xb4] sm:$0xf]  ;;  %v8131_v10 = vld [vmem:[%s6894_s10 + $0xb8] sm:$0xf]  ;;  %v4030_v39 = vsel %vm6926_vm2, %v4025_v26, %v8056_v46  ;;  %v8141_v43 = vrot.slane %v4048_v59, 4  ;;  %v8143_v3 = vrot.slane %v4061_v29, 5 }
  0xfd   : > { %6052 = vmatmul.mubr.bf16.gmra.mrb[20].mxu1 %v8734_v15  ;;  %6279 = vmatprep.mubr.bf16.mxu0 %v7957_v18  ;;  %v4006_v18 = vsel %vm6926_vm2, %v4001_v34, %v8036_v13  ;;  %v4040_v13 = vsel %vm6926_vm2, %v4035_v49, %v4039_v44  ;;  %v8147_v45 = vrot.slane %v4058_v12, 4  ;;  %v4082_v53 = vor.u32 %v4081_v38, %v8096_v14  ;;  %v5632_v26 = vld [vmem:[%s6894_s10 + $0x54] sm:$0xe] }
  0xfe   : > { %6055 = vmatprep.mubr.bf16.mxu1 %v8735_v40  ;;  %6308 = vmatpush3.bf16.msra.mxu0 %v6729_v16  ;;  %v4085_v16 = vshll.u32 %v8119_v21, 16  ;;  %v8736_v46 = vsel %vm6926_vm2, %v7986_v42, %v7975_v52  ;;  %v8737_v29 = vsel %vm6926_vm2, %v7984_v35, %v7908_v58  ;;  %v4090_v56 = vshrl.u32 %v5578_v61, 16 }
  0xff   : > { %6309 = vmatprep.subr.bf16.mxu0 %v6731_v0  ;;  %v5609_v30 = vcombine.low %v8737_v29, %v8736_v46  ;;  %v4093_v8 = vshll.u32 %v5578_v61, 16  ;;  %v4099_v20 = vshll.u32 %v8131_v10, 16  ;;  %v5225_v7 = vcombine.low %v7963_v2, %v7973_v54  ;;  %v6737_v2 = vld [vmem:[%s8685_s1 + $0x228] sm:$0xff]   ;;  %v5581_v54 = vld [vmem:[%s6894_s10 + $0xc0] sm:$0xf]  ;;  %v8741_v29 = vld [vmem:[#allocation5_spill] sm:$0xff] }
 0x100   : > { %v5226_v48 = vcombine.low %v7992_v36, %v8048_v62  ;;  %v5610_v24 = vcombine.low %v3958_v55, %v3968_v22  ;;  %v8169_v52 = vrot.slane %v4072_v5, 4  ;;  %v5611_v42 = vcombine.low %v3982_v57, %v3992_v60 }
 0x101   : > { %v8171_v58 = vcombine.low %v4006_v18, %v4016_v28  ;;  %v8173_v35 = vcombine.low %v4030_v39, %v4040_v13  ;;  %v4054_v47 = vsel %vm6926_vm2, %v8141_v43, %v8086_v17  ;;  %v4064_v34 = vsel %vm6926_vm2, %v8147_v45, %v8143_v3  ;;  %v5634_v28 = vld [vmem:[%s6894_s10 + $0x6c] sm:$0xe] }
 0x102   : > { %6310 = vmatpush3.bf16.msra.mxu0 %v6731_v0  ;;  %v8189_v1 = vrot.slane %v4082_v53, 4  ;;  %v8191_v4 = vrot.slane %v4085_v16, 5  ;;  %v4103_v0 = vshrl.u32 %v8131_v10, 16  ;;  %v8738_v44 = vcombine.low %v7918_v6, %v7927_v51  ;;  %v6740_v6 = vld [vmem:[%s8685_s1 + $0x230] sm:$0xff]   ;;  %v8213_v51 = vld [vmem:[%s6894_s10 + $0xc4] sm:$0xf] }
 0x103   : > { %6311 = vmatprep.subr.bf16.mxu0 %v6734_v31  ;;  %v8198_v59 = vrot.slane %v4090_v56, 4  ;;  %v8202_v49 = vrot.slane %v4099_v20, 5  ;;  %v4109_v12 = vshll.u32 %v8152_v27, 16  ;;  %v4078_v38 = vsel %vm6926_vm2, %v8169_v52, %v8096_v14  ;;  %v5633_v14 = vld [vmem:[%s6894_s10 + $0x60] sm:$0xe]  ;;  %v8739_v39 = vld [vmem:[#allocation3_spill] sm:$0xff] }
 0x104   : > { %6280 = vmatmul.mubr.bf16.gmra.mrb[8].mxu0 %v7969_v19  ;;  %v8200_v19 = vrot.slane %v4093_v8, 5  ;;  %v4114_v23 = vshrl.u32 %v5581_v54, 16  ;;  %v5647_v15 = vrot.slane %v5631_v41, 9  ;;  %v4577_v55 = vrot.slane %v7789_v32, 5  ;;  %v6732_v13 = vld [vmem:[%s6894_s10 + $0xc] sm:$0xff]   ;;  %v6743_v56 = vld [vmem:[%s8685_s1 + $0x238] sm:$0xff]  }
 0x105   : > { %6056 = vmatmul.mubr.bf16.gmra.mrb[24].mxu1 %v8738_v44  ;;  %6283 = vmatprep.mubr.bf16.mxu0 %v5609_v30  ;;  %v4117_v22 = vshll.u32 %v5581_v54, 16  ;;  %v4580_v57 = vrot.slane %v7837_v63, 5  ;;  %v5648_v40 = vrot.slane %v5632_v26, 9  ;;  %v4584_v60 = vrot.slane %v7801_v33, 5  ;;  %v8740_v16 = vld [vmem:[#allocation4_spill] sm:$0xff]  ;;  %v8742_v52 = vld [vmem:[#allocation6_spill] sm:$0xff] }
 0x106   : > { %6059 = vmatprep.mubr.bf16.mxu1 %v5225_v7  ;;  %6312 = vmatpush3.bf16.msra.mxu0 %v6734_v31  ;;  %v4088_v18 = vsel %vm6926_vm2, %v8189_v1, %v8191_v4  ;;  %v8223_v5 = vrot.slane %v4103_v0, 4  ;;  %v8227_v61 = vsel %vm7172_vm5, %v5647_v15, %v4577_v55  ;;  %v4579_v32 = vrot.slane %v4577_v55, 4  ;;  %v8743_v4 = vld [vmem:[#allocation7_spill] sm:$0xff] }
 0x107   : > { %6313 = vmatprep.subr.bf16.mxu0 %v6737_v2  ;;  %v4123_v31 = vshll.u32 %v8213_v51, 16  ;;  %v8233_v63 = vsel %vm7172_vm5, %v5648_v40, %v4584_v60  ;;  %v4586_v33 = vrot.slane %v4584_v60, 4  ;;  %v4587_v3 = vrot.slane %v8739_v39, 5  ;;  %v8264_v26 = vld [vmem:[%s6894_s10 + $0xc8] sm:$0x1]  ;;  %v6733_v40 = vld [vmem:[%s6894_s10 + $0x18] sm:$0xff]  }
 0x108   : > { %v8239_v45 = vsel %vm7172_vm5, %v4579_v32, %v4580_v57  ;;  %v5649_v53 = vrot.slane %v5633_v14, 9  ;;  %v4591_v46 = vrot.slane %v8740_v16, 5  ;;  %v4594_v30 = vrot.slane %v8741_v29, 5  ;;  %v6735_v39 = vld [vmem:[%s6894_s10 + $0x24] sm:$0xff]  }
 0x109   : > { %v5679_v8 = vcombine.low %v8227_v61, %v8239_v45  ;;  %v8250_v20 = vsel %vm7172_vm5, %v4586_v33, %v4587_v3  ;;  %v5650_v7 = vrot.slane %v5634_v28, 9  ;;  %v4601_v0 = vrot.slane %v8743_v4, 5  ;;  %v8745_v28 = vld [vmem:[#allocation11_spill] sm:$0xff]  ;;  %v5340_v61 = vld [vmem:[%s6894_s10 + $0x90] sm:$0xf] }
 0x10a   : > { %6314 = vmatpush3.bf16.msra.mxu0 %v6737_v2  ;;  %v4598_v2 = vrot.slane %v8742_v52, 5  ;;  %v5680_v54 = vcombine.low %v8233_v63, %v8250_v20  ;;  %v8257_v41 = vsel %vm7172_vm5, %v5649_v53, %v4591_v46  ;;  %v4593_v1 = vrot.slane %v4591_v46, 4  ;;  %v8746_v53 = vld [vmem:[#allocation2_spill] sm:$0xff]  ;;  %v6749_v45 = vld [vmem:[%s6894_s10 + $0xa8] sm:$0xff]  }
 0x10b   : > { %6315 = vmatprep.subr.bf16.mxu0 %v6740_v6  ;;  %v8266_v44 = vrot.slane %v4114_v23, 4  ;;  %v8279_v36 = vcombine.low %v4054_v47, %v4064_v34  ;;  %v4096_v62 = vor.u32 %v8200_v19, %v8198_v59  ;;  %v5635_v23 = vld [vmem:[%s6894_s10 + $0x78] sm:$0xe]  ;;  %v8291_v57 = vrot.slane %v4109_v12, 5  ;;  %v5584_v12 = vld [vmem:[%s6894_s10 + $0xcc] sm:$0xf] }
 0x10c   : > { %6284 = vmatmul.mubr.bf16.gmra.mrb[12].mxu0 %v5610_v24  ;;  %v8268_v24 = vrot.slane %v4117_v22, 5  ;;  %v8272_v15 = vsel %vm7172_vm5, %v5650_v7, %v4598_v2  ;;  %v4600_v55 = vrot.slane %v4598_v2, 4  ;;  %v8289_v22 = vcombine.low %v4078_v38, %v4088_v18  ;;  %v5334_v47 = vld [vmem:[%s6894_s10 + $0x78] sm:$0xf]  ;;  %v8744_v18 = vld [vmem:[#allocation8_spill] sm:$0xff] }
 0x10d   : > { %6060 = vmatmul.mubr.bf16.gmra.mrb[28].mxu1 %v5226_v48  ;;  %6287 = vmatprep.mubr.bf16.mxu0 %v5611_v42  ;;  %v4127_v48 = vshrl.u32 %v8213_v51, 16  ;;  %v8286_v42 = vsel %vm7172_vm5, %v4593_v1, %v4594_v30  ;;  %v4106_v34 = vor.u32 %v8223_v5, %v8202_v49  ;;  %v8302_v59 = vrot.slane %v4123_v31, 5  ;;  %v8316_v31 = vld [vmem:[%s6894_s10 + $0xd0] sm:$0xf]  ;;  %v8747_v1 = vld [vmem:[#allocation9_spill] sm:$0xff] }
 0x10e   : > { %6079 = vmatprep.mubr.bf16.mxu1 %v6732_v13  ;;  %6316 = vmatpush3.bf16.msra.mxu0 %v6740_v6  ;;  %v5681_v17 = vcombine.low %v8257_v41, %v8286_v42  ;;  %v8297_v43 = vsel %vm7172_vm5, %v4600_v55, %v4601_v0  ;;  %v4133_v19 = vshll.u32 %v8264_v26, 16  ;;  %v5636_v6 = vld [vmem:[%s6894_s10 + $0x84] sm:$0xe]  ;;  %v4120_v60 = vor.u32 %v8268_v24, %v8266_v44  ;;  %v8748_v24 = vld [vmem:[#allocation12_spill] sm:$0xff]  ;;  %v6813_v63 = vld [vmem:[%s6894_s10 + $0x8c] sm:$0x1] }
 0x10f   : > { %6317 = vmatprep.subr.bf16.mxu0 %v6743_v56  ;;  %v5682_v38 = vcombine.low %v8272_v15, %v8297_v43  ;;  %v5651_v14 = vrot.slane %v5635_v23, 9  ;;  %v4605_v32 = vrot.slane %v8744_v18, 5  ;;  %v4608_v33 = vrot.slane %v8745_v28, 5 }
 0x110   : > { %v4129_v5 = vrot.slane %v4127_v48, 4  ;;  %v2355_v3 = vshrl.u32 %v5334_v47, 16  ;;  %v2358_v13 = vshll.u32 %v5334_v47, 16  ;;  %v2377_v16 = vsel %vm6926_vm2, %v8101_v50, %v8746_v53 }
 0x111   : > { %v4138_v46 = vshrl.u32 %v5584_v12, 16  ;;  %v8324_v29 = vsel %vm7172_vm5, %v5651_v14, %v4605_v32  ;;  %v4607_v30 = vrot.slane %v4605_v32, 4  ;;  %v5652_v7 = vrot.slane %v5636_v6, 9  ;;  %v6793_v6 = vld [vmem:[%s8685_s1 + $0x108] sm:$0xff]  }
 0x112   : > { %6318 = vmatpush3.bf16.msra.mxu0 %v6743_v56  ;;  %v4141_v52 = vshll.u32 %v5584_v12, 16  ;;  %v2357_v2 = vrot.slane %v2355_v3, 4  ;;  %v2360_v56 = vrot.slane %v2358_v13, 5  ;;  %v4612_v4 = vrot.slane %v8747_v1, 5  ;;  %v5637_v12 = vld [vmem:[%s6894_s10 + $0x90] sm:$0xe] }
 0x113   : > { %v4147_v50 = vshll.u32 %v8316_v31, 16  ;;  %v4151_v0 = vshrl.u32 %v8316_v31, 16  ;;  %v8333_v44 = vsel %vm7172_vm5, %v4607_v30, %v4608_v33  ;;  %v4615_v55 = vrot.slane %v8748_v24, 5  ;;  %v6736_v3 = vld [vmem:[%s6894_s10 + $0x30] sm:$0xff]  }
 0x114   : > { %6288 = vmatmul.mubr.bf16.gmra.mrb[16].mxu0 %v8171_v58  ;;  %v8749_v58 = vld [vmem:[#allocation15_spill] sm:$0xff]  ;;  %v4130_v48 = vor.u32 %v4129_v5, %v8302_v59  ;;  %v2361_v23 = vor.u32 %v2360_v56, %v2357_v2  ;;  %v4614_v47 = vrot.slane %v4612_v4, 4  ;;  %v4107_v14 = vrot.slane %v4106_v34, 4  ;;  %v8354_v13 = vld [vmem:[%s6894_s10 + $0xd4] sm:$0x1]  ;;  %v8750_v2 = vld [vmem:[#allocation10_spill] sm:$0xff] }
 0x115   : > { %6080 = vmatmul.mubr.bf16.vlgmr.msra.gmra.mrb[0].mxu1 %v6733_v40  ;;  %6291 = vmatprep.mubr.bf16.mxu0 %v8173_v35  ;;  %v5683_v35 = vcombine.low %v8324_v29, %v8333_v44  ;;  %v4097_v40 = vrot.slane %v4096_v62, 4  ;;  %v4135_v18 = vrot.slane %v4133_v19, 5  ;;  %v8346_v32 = vsel %vm7172_vm5, %v5652_v7, %v4612_v4  ;;  %v6738_v19 = vld [vmem:[%s6894_s10 + $0x3c] sm:$0xff]   ;;  %v6794_v1 = vld [vmem:[%s8685_s1 + $0x110] sm:$0xff]  }
 0x116   : > { %6359 = vmatpush3.bf16.msra.mxu1 %v8749_v58  ;;  %6083 = vmatprep.mubr.bf16.mxu1 %v6735_v39  ;;  %v4140_v28 = vrot.slane %v4138_v46, 4  ;;  %v4143_v33 = vrot.slane %v4141_v52, 5  ;;  %v2362_v39 = vrot.slane %v2361_v23, 4  ;;  %v8350_v5 = vsel %vm7172_vm5, %v4614_v47, %v4615_v55  ;;  %v6795_v47 = vld [vmem:[%s6894_s10 + $0x1c] sm:$0xf] }
 0x117   : > { %6352 = vmatprep.subr.bf16.mxu1 %v6793_v6  ;;  %v8356_v53 = vrot.slane %v4147_v50, 5  ;;  %v4153_v30 = vrot.slane %v4151_v0, 4  ;;  %v5684_v62 = vcombine.low %v8346_v32, %v8350_v5  ;;  %v5653_v34 = vrot.slane %v5637_v12, 9 }
 0x118   : > { %v4121_v7 = vrot.slane %v4120_v60, 4  ;;  %v4131_v46 = vrot.slane %v4130_v48, 4  ;;  %v2367_v52 = vsel %vm6926_vm2, %v2362_v39, %v7502_v11  ;;  %v4619_v56 = vrot.slane %v8750_v2, 5  ;;  %v8751_v11 = vld [vmem:[#allocation14_spill] sm:$0xff]  ;;  %v6739_v39 = vld [vmem:[%s6894_s10 + $0x48] sm:$0xff]  }
 0x119   : > { %v4102_v4 = vsel %vm6926_vm2, %v4097_v40, %v8202_v49  ;;  %v4112_v60 = vsel %vm6926_vm2, %v4107_v14, %v8291_v57  ;;  %v8374_v50 = vcombine.low %v2367_v52, %v2377_v16  ;;  %v4622_v0 = vrot.slane %v8751_v11, 5  ;;  %v5627_v57 = vld [vmem:[%s6894_s10 + $0x18] sm:$0xe]  ;;  %v5638_v16 = vld [vmem:[%s6894_s10 + $0x9c] sm:$0xe] }
 0x11a   : > { %6360 = vmatpush3.bf16.msra.mxu1 %v6793_v6  ;;  %v4144_v24 = vor.u32 %v4143_v33, %v4140_v28  ;;  %v4157_v55 = vshll.u32 %v8354_v13, 16  ;;  %v8381_v58 = vsel %vm7172_vm5, %v5653_v34, %v4619_v56  ;;  %v4621_v48 = vrot.slane %v4619_v56, 4  ;;  %v6796_v40 = vld [vmem:[%s8685_s1 + $0x118] sm:$0xff]   ;;  %v6797_v2 = vld [vmem:[%s6894_s10 + $0x20] sm:$0x1] }
 0x11b   : > { %6353 = vmatprep.subr.bf16.mxu1 %v6794_v1  ;;  %v4154_v49 = vor.u32 %v4153_v30, %v8356_v53  ;;  %v4136_v23 = vsel %vm6926_vm2, %v4131_v46, %v4135_v18  ;;  %v4549_v12 = vrot.slane %v6795_v47, 5  ;;  %v5616_v6 = vcombine.low %v4102_v4, %v4112_v60  ;;  %v8752_v34 = vld [vmem:[#allocation13_spill] sm:$0xff]  ;;  %v5639_v11 = vld [vmem:[%s6894_s10 + $0xa8] sm:$0xe] }
 0x11c   : > { %6292 = vmatmul.mubr.bf16.gmra.mrb[20].mxu0 %v8279_v36  ;;  %v4126_v36 = vsel %vm6926_vm2, %v4121_v7, %v8302_v59  ;;  %v4145_v14 = vrot.slane %v4144_v24, 4  ;;  %v4159_v28 = vrot.slane %v4157_v55, 5  ;;  %v5643_v18 = vrot.slane %v5627_v57, 9  ;;  %v6741_v46 = vld [vmem:[%s6894_s10 + $0x54] sm:$0xff]   ;;  %v5628_v55 = vld [vmem:[%s6894_s10 + $0x24] sm:$0xe] }
 0x11d   : > { %6084 = vmatmul.mubr.bf16.gmra.mrb[4].mxu1 %v6736_v3  ;;  %6295 = vmatprep.mubr.bf16.mxu0 %v8289_v22  ;;  %v8395_v22 = vsel %vm7172_vm5, %v4621_v48, %v4622_v0  ;;  %v5654_v33 = vrot.slane %v5638_v16, 9  ;;  %v5617_v3 = vcombine.low %v4126_v36, %v4136_v23  ;;  %v4155_v30 = vrot.slane %v4154_v49, 4  ;;  %v6799_v48 = vld [vmem:[%s6894_s10 + $0x28] sm:$0xf]  ;;  %v6800_v36 = vld [vmem:[%s6894_s10 + $0x34] sm:$0xf] }
 0x11e   : > { %6087 = vmatprep.mubr.bf16.mxu1 %v6738_v19  ;;  %6361 = vmatpush3.bf16.msra.mxu1 %v6794_v1  ;;  %v5685_v59 = vcombine.low %v8381_v58, %v8395_v22  ;;  %v4626_v19 = vrot.slane %v8752_v34, 5  ;;  %v4629_v7 = vrot.slane %v8084_v25, 5  ;;  %v4551_v52 = vrot.slane %v4549_v12, 4  ;;  %v6798_v1 = vld [vmem:[%s8685_s1 + $0x120] sm:$0xff]  }
 0x11f   : > { %6354 = vmatprep.subr.bf16.mxu1 %v6796_v40  ;;  %v4552_v56 = vrot.slane %v6797_v2, 5  ;;  %v4550_v25 = vsel %vm7172_vm5, %v5643_v18, %v4549_v12  ;;  %v4150_v0 = vsel %vm6926_vm2, %v4145_v14, %v8356_v53  ;;  %v4160_v24 = vsel %vm6926_vm2, %v4155_v30, %v4159_v28  ;;  %v5629_v12 = vld [vmem:[%s6894_s10 + $0x30] sm:$0xe]  ;;  %v6742_v30 = vld [vmem:[%s6894_s10 + $0x60] sm:$0xff]  }
 0x120   : > { %v8412_v4 = vsel %vm7172_vm5, %v5654_v33, %v4626_v19  ;;  %v4628_v60 = vrot.slane %v4626_v19, 4  ;;  %v4556_v49 = vrot.slane %v6799_v48, 5  ;;  %v4563_v23 = vrot.slane %v6800_v36, 5  ;;  %v6802_v33 = vld [vmem:[%s6894_s10 + $0x2c] sm:$0x1] }
 0x121   : > { %v4553_v16 = vsel %vm7172_vm5, %v4551_v52, %v4552_v56  ;;  %v5655_v47 = vrot.slane %v5639_v11, 9  ;;  %v5618_v28 = vcombine.low %v4150_v0, %v4160_v24  ;;  %v5644_v18 = vrot.slane %v5628_v55, 9  ;;  %v6744_v52 = vld [vmem:[%s6894_s10 + $0x6c] sm:$0xff]   ;;  %v5640_v11 = vld [vmem:[%s6894_s10 + $0xb4] sm:$0xe] }
 0x122   : > { %6362 = vmatpush3.bf16.msra.mxu1 %v6796_v40  ;;  %v8426_v57 = vsel %vm7172_vm5, %v4628_v60, %v4629_v7  ;;  %v8753_v40 = vld [vmem:[#allocation16_spill] sm:$0xff]  ;;  %v5675_v34 = vcombine.low %v4550_v25, %v4553_v16  ;;  %v4558_v19 = vrot.slane %v4556_v49, 4  ;;  %v5645_v2 = vrot.slane %v5629_v12, 9  ;;  %v5630_v0 = vld [vmem:[%s6894_s10 + $0x3c] sm:$0xe] }
 0x123   : > { %6355 = vmatprep.subr.bf16.mxu1 %v6798_v1  ;;  %v5686_v53 = vcombine.low %v8412_v4, %v8426_v57  ;;  %v4633_v14 = vrot.slane %v8753_v40, 5  ;;  %v4565_v56 = vrot.slane %v4563_v23, 4  ;;  %v6804_v24 = vld [vmem:[%s6894_s10 + $0x40] sm:$0xf]  ;;  %v4557_v48 = vsel %vm7172_vm5, %v5644_v18, %v4556_v49  ;;  %v6806_v18 = vld [vmem:[%s6894_s10 + $0x44] sm:$0x1] }
 0x124   : > { %6296 = vmatmul.mubr.bf16.gmra.mrb[24].mxu0 %v5616_v6  ;;  %v6801_v6 = vld [vmem:[%s8685_s1 + $0x128] sm:$0xff]   ;;  %v4570_v55 = vrot.slane %v6804_v24, 5  ;;  %v4640_v12 = vrot.slane %v8131_v10, 5  ;;  %v4564_v49 = vsel %vm7172_vm5, %v5645_v2, %v4563_v23  ;;  %v6807_v10 = vld [vmem:[%s8685_s1 + $0x138] sm:$0xff]   ;;  %v5641_v23 = vld [vmem:[%s6894_s10 + $0xc0] sm:$0xe] }
 0x125   : > { %6088 = vmatmul.mubr.bf16.gmra.mrb[8].mxu1 %v6739_v39  ;;  %6299 = vmatprep.mubr.bf16.mxu0 %v5617_v3  ;;  %v4559_v39 = vrot.slane %v6802_v33, 5  ;;  %v4636_v3 = vrot.slane %v8119_v21, 5  ;;  %v8443_v7 = vsel %vm7172_vm5, %v5655_v47, %v4633_v14  ;;  %v6805_v21 = vld [vmem:[%s8685_s1 + $0x130] sm:$0xff]   ;;  %v5656_v47 = vrot.slane %v5640_v11, 9 }
 0x126   : > { %6091 = vmatprep.mubr.bf16.mxu1 %v6741_v46  ;;  %6363 = vmatpush3.bf16.msra.mxu1 %v6798_v1  ;;  %v4635_v46 = vrot.slane %v4633_v14, 4  ;;  %v6803_v1 = vld [vmem:[%s6894_s10 + $0x38] sm:$0x1]  ;;  %v5646_v14 = vrot.slane %v5630_v0, 9  ;;  %v4573_v33 = vrot.slane %v6806_v18, 5  ;;  %v4647_v11 = vrot.slane %v8213_v51, 5 }
 0x127   : > { %6356 = vmatprep.subr.bf16.mxu1 %v6801_v6  ;;  %v4566_v60 = vrot.slane %v6803_v1, 5  ;;  %v4560_v36 = vsel %vm7172_vm5, %v4558_v19, %v4559_v39  ;;  %v4642_v39 = vrot.slane %v4640_v12, 4  ;;  %v5331_v19 = vld [vmem:[%s6894_s10 + $0x6c] sm:$0xf]  ;;  %v6747_v18 = vld [vmem:[%s6894_s10 + $0x90] sm:$0xff]   ;;  %v2398_v20 = vshll.u32 %v6813_v63, 16 }
 0x128   : > { %v8455_v25 = vsel %vm7172_vm5, %v4635_v46, %v4636_v3  ;;  %v5676_v3 = vcombine.low %v4557_v48, %v4560_v36  ;;  %v4571_v1 = vsel %vm7172_vm5, %v5646_v14, %v4570_v55  ;;  %v2331_v0 = vshrl.u32 %v5331_v19, 16  ;;  %v5642_v51 = vld [vmem:[%s6894_s10 + $0xcc] sm:$0xe] }
 0x129   : > { %v5687_v16 = vcombine.low %v8443_v7, %v8455_v25  ;;  %v4567_v40 = vsel %vm7172_vm5, %v4565_v56, %v4566_v60  ;;  %v5657_v56 = vrot.slane %v5641_v23, 9  ;;  %v2334_v24 = vshll.u32 %v5331_v19, 16 }
 0x12a   : > { %6364 = vmatpush3.bf16.msra.mxu1 %v6801_v6  ;;  %v4643_v6 = vrot.slane %v8152_v27, 5  ;;  %v8475_v27 = vsel %vm7172_vm5, %v5656_v47, %v4640_v12  ;;  %v4650_v36 = vrot.slane %v8264_v26, 5  ;;  %v4649_v12 = vrot.slane %v4647_v11, 4 }
 0x12b   : > { %6357 = vmatprep.subr.bf16.mxu1 %v6805_v21  ;;  %v2336_v26 = vrot.slane %v2334_v24, 5  ;;  %v4657_v23 = vrot.slane %v8354_v13, 5 }
 0x12c   : > { %6300 = vmatmul.mubr.bf16.gmra.mrb[28].mxu0 %v5618_v28  ;;  %v4572_v28 = vrot.slane %v4570_v55, 4  ;;  %v8482_v46 = vsel %vm7172_vm5, %v4642_v39, %v4643_v6  ;;  %v8496_v55 = vsel %vm7172_vm5, %v5657_v56, %v4647_v11  ;;  %v4654_v39 = vrot.slane %v8316_v31, 5  ;;  %v6809_v56 = vld [vmem:[%s6894_s10 + $0x74] sm:$0x1] }
 0x12d   : > { %6092 = vmatmul.mubr.bf16.gmra.mrb[12].mxu1 %v6742_v30  ;;  %6319 = vmatprep.mubr.bf16.mxu0 %v5675_v34  ;;  %v6745_v30 = vld [vmem:[%s6894_s10 + $0x78] sm:$0xff]   ;;  %v5677_v34 = vcombine.low %v4564_v49, %v4567_v40  ;;  %v5688_v2 = vcombine.low %v8475_v27, %v8482_v46  ;;  %v8501_v49 = vsel %vm7172_vm5, %v4649_v12, %v4650_v36  ;;  %v2333_v40 = vrot.slane %v2331_v0, 4  ;;  %v6810_v0 = vld [vmem:[%s6894_s10 + $0x88] sm:$0xf] }
 0x12e   : > { %6095 = vmatprep.mubr.bf16.mxu1 %v6744_v52  ;;  %6365 = vmatpush3.bf16.msra.mxu1 %v6805_v21  ;;  %v6746_v52 = vld [vmem:[%s6894_s10 + $0x84] sm:$0xff]   ;;  %v4574_v60 = vsel %vm7172_vm5, %v4572_v28, %v4573_v33  ;;  %v6808_v21 = vld [vmem:[%s6894_s10 + $0x70] sm:$0xf]  ;;  %v5689_v28 = vcombine.low %v8496_v55, %v8501_v49  ;;  %v4656_v19 = vrot.slane %v4654_v39, 4  ;;  %v2388_v24 = vshll.u32 %v6810_v0, 16 }
 0x12f   : > { %6358 = vmatprep.subr.bf16.mxu1 %v6807_v10  ;;  %v2340_v48 = vshll.u32 %v6808_v21, 16  ;;  %v2344_v47 = vshrl.u32 %v6808_v21, 16  ;;  %v5678_v6 = vcombine.low %v4571_v1, %v4574_v60  ;;  %v2350_v1 = vshll.u32 %v6809_v56, 16 }
 0x130   : > { %v8523_v11 = vsel %vm7172_vm5, %v4656_v19, %v4657_v23  ;;  %v2392_v21 = vshrl.u32 %v6810_v0, 16  ;;  %v6812_v19 = vld [vmem:[%s6894_s10 + $0xa0] sm:$0xf] }
 0x131   : > { %v8503_v14 = vrot.slane %v2340_v48, 5  ;;  %v2346_v33 = vrot.slane %v2344_v47, 4  ;;  %v2440_v56 = vshrl.u32 %v6812_v19, 16 }
 0x132   : > { %6366 = vmatpush3.bf16.msra.mxu1 %v6807_v10  ;;  %v5658_v10 = vrot.slane %v5642_v51, 9 }
 0x133   : > { %v2347_v31 = vor.u32 %v2346_v33, %v8503_v14  ;;  %v2406_v33 = vshll.u32 %v5340_v61, 16 }
 0x134   : > { %6320 = vmatmul.mubr.bf16.vlgmr.msra.gmra.mrb[0].mxu0 %v5676_v3  ;;  %v6748_v3 = vld [vmem:[%s6894_s10 + $0x9c] sm:$0xff]  }
 0x135   : > { %6096 = vmatmul.mubr.bf16.gmra.mrb[16].mxu1 %v6745_v30  ;;  %6323 = vmatprep.mubr.bf16.mxu0 %v5677_v34  ;;  %v5337_v30 = vld [vmem:[%s6894_s10 + $0x84] sm:$0xf]  ;;  %v8514_v34 = vsel %vm7172_vm5, %v5658_v10, %v4654_v39  ;;  %v2348_v47 = vrot.slane %v2347_v31, 4  ;;  %v6811_v10 = vld [vmem:[%s6894_s10 + $0x94] sm:$0xf]  ;;  %v2408_v0 = vrot.slane %v2406_v33, 5 }
 0x136   : > { %6099 = vmatprep.mubr.bf16.mxu1 %v6746_v52  ;;  %v2337_v52 = vor.u32 %v2336_v26, %v2333_v40  ;;  %v2379_v13 = vshrl.u32 %v5337_v30, 16  ;;  %v2382_v60 = vshll.u32 %v5337_v30, 16  ;;  %v5690_v48 = vcombine.low %v8514_v34, %v8523_v11 }
 0x137   : > { %v8532_v40 = vrot.slane %v2388_v24, 5  ;;  %v2394_v26 = vrot.slane %v2392_v21, 4  ;;  %v2412_v39 = vshll.u32 %v6811_v10, 16  ;;  %v2416_v23 = vshrl.u32 %v6811_v10, 16  ;;  %v6815_v10 = vld [vmem:[%s6894_s10 + $0xa4] sm:$0x1] }
 0x138   : > { %v2338_v36 = vrot.slane %v2337_v52, 4  ;;  %v2381_v12 = vrot.slane %v2379_v13, 4  ;;  %v2384_v51 = vrot.slane %v2382_v60, 5  ;;  %v2436_v52 = vshll.u32 %v6812_v19, 16  ;;  %v6816_v19 = vld [vmem:[%s6894_s10 + $0xac] sm:$0xf] }
 0x139   : > { %v2395_v13 = vor.u32 %v2394_v26, %v8532_v40  ;;  %v8549_v41 = vrot.slane %v2412_v39, 5  ;;  %v2418_v42 = vrot.slane %v2416_v23, 4  ;;  %v2442_v21 = vrot.slane %v2440_v56, 4  ;;  %v5349_v23 = vld [vmem:[%s6894_s10 + $0xb4] sm:$0xf] }
 0x13a   : > { %v2446_v39 = vshll.u32 %v6815_v10, 16  ;;  %v2464_v15 = vshrl.u32 %v6816_v19, 16  ;;  %v2478_v63 = vshll.u32 %v5349_v23, 16 }
 0x13b   : > { %v2419_v26 = vor.u32 %v2418_v42, %v8549_v41 }
 0x13c   : > { %6324 = vmatmul.mubr.bf16.gmra.mrb[4].mxu0 %v5678_v6  ;;  %v5343_v6 = vld [vmem:[%s6894_s10 + $0x9c] sm:$0xf] }
 0x13d   : > { %6100 = vmatmul.mubr.bf16.gmra.mrb[20].mxu1 %v6747_v18  ;;  %6327 = vmatprep.mubr.bf16.mxu0 %v5679_v8  ;;  %v2352_v8 = vrot.slane %v2350_v1, 5  ;;  %v2403_v18 = vshrl.u32 %v5340_v61, 16  ;;  %v2430_v30 = vshll.u32 %v5343_v6, 16  ;;  %v2343_v1 = vsel %vm6926_vm2, %v2338_v36, %v8503_v14  ;;  %v6751_v61 = vld [vmem:[%s6894_s10 + $0xc0] sm:$0xff]  }
 0x13e   : > { %6103 = vmatprep.mubr.bf16.mxu1 %v6748_v3  ;;  %v2427_v3 = vshrl.u32 %v5343_v6, 16  ;;  %v8551_v14 = vrot.slane %v2436_v52, 5  ;;  %v2460_v52 = vshll.u32 %v6816_v19, 16 }
 0x13f   : > { %v2353_v31 = vsel %vm6926_vm2, %v2348_v47, %v2352_v8  ;;  %v2405_v60 = vrot.slane %v2403_v18, 4  ;;  %v2432_v24 = vrot.slane %v2430_v30, 5  ;;  %v2400_v8 = vrot.slane %v2398_v20, 5  ;;  %v6817_v20 = vld [vmem:[%s6894_s10 + $0xb8] sm:$0xf] }
 0x140   : > { %v2396_v47 = vrot.slane %v2395_v13, 4  ;;  %v2443_v33 = vor.u32 %v2442_v21, %v8551_v14  ;;  %v2484_v29 = vshll.u32 %v6817_v20, 16  ;;  %v2488_v44 = vshrl.u32 %v6817_v20, 16 }
 0x142   : > { %v2444_v13 = vrot.slane %v2443_v33, 4 }
 0x144   : > { %6328 = vmatmul.mubr.bf16.gmra.mrb[8].mxu0 %v5680_v54  ;;  %v2385_v54 = vor.u32 %v2384_v51, %v2381_v12  ;;  %v2409_v12 = vor.u32 %v2408_v0, %v2405_v60  ;;  %v6814_v51 = vld [vmem:[%s6894_s10 + $0x98] sm:$0x1]  ;;  %v2448_v60 = vrot.slane %v2446_v39, 5 }
 0x145   : > { %6104 = vmatmul.mubr.bf16.gmra.mrb[24].mxu1 %v6749_v45  ;;  %6331 = vmatprep.mubr.bf16.mxu0 %v5681_v17  ;;  %v2429_v17 = vrot.slane %v2427_v3, 4  ;;  %v5379_v45 = vcombine.low %v2343_v1, %v2353_v31  ;;  %v2422_v6 = vshll.u32 %v6814_v51, 16  ;;  %v2475_v31 = vshrl.u32 %v5349_v23, 16 }
 0x146   : > { %6107 = vmatprep.mubr.bf16.mxu1 %v6750_v9  ;;  %v2386_v36 = vrot.slane %v2385_v54, 4  ;;  %v5346_v9 = vld [vmem:[%s6894_s10 + $0xa8] sm:$0xf]  ;;  %v2410_v56 = vrot.slane %v2409_v12, 4  ;;  %v2449_v32 = vsel %vm6926_vm2, %v2444_v13, %v2448_v60 }
 0x147   : > { %v2433_v18 = vor.u32 %v2432_v24, %v2429_v17  ;;  %v2451_v3 = vshrl.u32 %v5346_v9, 16  ;;  %v2454_v30 = vshll.u32 %v5346_v9, 16  ;;  %v2424_v1 = vrot.slane %v2422_v6, 5 }
 0x148   : > { %v2391_v43 = vsel %vm6926_vm2, %v2386_v36, %v8532_v40  ;;  %v2462_v17 = vrot.slane %v2460_v52, 5  ;;  %v2466_v24 = vrot.slane %v2464_v15, 4  ;;  %v2477_v21 = vrot.slane %v2475_v31, 4  ;;  %v5352_v36 = vld [vmem:[%s6894_s10 + $0xc0] sm:$0xf] }
 0x149   : > { %v2434_v54 = vrot.slane %v2433_v18, 4  ;;  %v2453_v0 = vrot.slane %v2451_v3, 4  ;;  %v2456_v42 = vrot.slane %v2454_v30, 5  ;;  %v2499_v9 = vshrl.u32 %v5352_v36, 16  ;;  %v6819_v18 = vld [vmem:[%s6894_s10 + $0xc4] sm:$0xf] }
 0x14a   : > { %v2508_v33 = vshll.u32 %v6819_v18, 16 }
 0x14b   : > { %v2439_v51 = vsel %vm6926_vm2, %v2434_v54, %v8551_v14  ;;  %v2457_v5 = vor.u32 %v2456_v42, %v2453_v0  ;;  %v2512_v14 = vshrl.u32 %v6819_v18, 16  ;;  %v2501_v19 = vrot.slane %v2499_v9, 4 }
 0x14c   : > { %6332 = vmatmul.mubr.bf16.gmra.mrb[12].mxu0 %v5682_v38  ;;  %v2401_v38 = vsel %vm6926_vm2, %v2396_v47, %v2400_v8  ;;  %v2490_v8 = vrot.slane %v2488_v44, 4  ;;  %v2415_v47 = vsel %vm6926_vm2, %v2410_v56, %v8549_v41  ;;  %v6818_v41 = vld [vmem:[%s6894_s10 + $0xb0] sm:$0x1]  ;;  %v5383_v58 = vcombine.low %v2439_v51, %v2449_v32  ;;  %v6821_v44 = vld [vmem:[%s6894_s10 + $0xc8] sm:$0x1] }
 0x14d   : > { %6108 = vmatmul.mubr.bf16.gmra.mrb[28].mxu1 %v6751_v61  ;;  %6335 = vmatprep.mubr.bf16.mxu0 %v5683_v35  ;;  %v2420_v35 = vrot.slane %v2419_v26, 4  ;;  %v5381_v40 = vcombine.low %v2391_v43, %v2401_v38  ;;  %v2480_v61 = vrot.slane %v2478_v63, 5  ;;  %v2470_v6 = vshll.u32 %v6818_v41, 16 }
 0x14e   : > { %6143 = vmatprep.mubr.bf16.mxu1 %v5379_v45  ;;  %v2486_v45 = vrot.slane %v2484_v29, 5  ;;  %v2502_v26 = vshll.u32 %v5352_v36, 16  ;;  %v2458_v22 = vrot.slane %v2457_v5, 4  ;;  %v2510_v15 = vrot.slane %v2508_v33, 5 }
 0x14f   : > { %v2425_v12 = vsel %vm6926_vm2, %v2420_v35, %v2424_v1  ;;  %v2481_v10 = vor.u32 %v2480_v61, %v2477_v21  ;;  %v2472_v30 = vrot.slane %v2470_v6, 5  ;;  %v2514_v43 = vrot.slane %v2512_v14, 4 }
 0x150   : > { %v2491_v39 = vor.u32 %v2490_v8, %v2486_v45  ;;  %v5382_v3 = vcombine.low %v2415_v47, %v2425_v12  ;;  %v2504_v52 = vrot.slane %v2502_v26, 5  ;;  %v2463_v31 = vsel %vm6926_vm2, %v2458_v22, %v2462_v17  ;;  %v8625_v47 = vld [vmem:[%s8686_s2] ss:$0 sm:$0xff] }
 0x151   : > { %v2482_v38 = vrot.slane %v2481_v10, 4  ;;  %v2515_v29 = vor.u32 %v2514_v43, %v2510_v15  ;;  %v2518_v35 = vshll.u32 %v6821_v44, 16 }
 0x152   : > { %v2492_v56 = vrot.slane %v2491_v39, 4  ;;  %v2505_v20 = vor.u32 %v2504_v52, %v2501_v19 }
 0x153   : > { %v2487_v4 = vsel %vm6926_vm2, %v2482_v38, %v2486_v45  ;;  %v2520_v54 = vrot.slane %v2518_v35, 5 }
 0x154   : > { %6336 = vmatmul.mubr.bf16.gmra.mrb[16].mxu0 %v5684_v62  ;;  %v2467_v62 = vor.u32 %v2466_v24, %v2462_v17  ;;  %v2506_v25 = vrot.slane %v2505_v20, 4 }
 0x155   : > { %6144 = vmatmul.mubr.bf16.vlgmr.msra.gmra.mrb[16].mxu1 %v8374_v50  ;;  %6339 = vmatprep.mubr.bf16.mxu0 %v5685_v59  ;;  %v6820_v50 = vld [vmem:[%s6894_s10 + $0xbc] sm:$0x1] }
 0x156   : > { %6147 = vmatprep.mubr.bf16.mxu1 %v5381_v40  ;;  %v2494_v23 = vshll.u32 %v6820_v50, 16  ;;  %v2468_v59 = vrot.slane %v2467_v62, 4  ;;  %v2511_v13 = vsel %vm6926_vm2, %v2506_v25, %v2510_v15 }
 0x158   : > { %v2496_v1 = vrot.slane %v2494_v23, 5  ;;  %v2473_v63 = vsel %vm6926_vm2, %v2468_v59, %v2472_v30 }
 0x15a   : > { %v2497_v57 = vsel %vm6926_vm2, %v2492_v56, %v2496_v1 }
 0x15b   : > { %v5385_v7 = vcombine.low %v2487_v4, %v2497_v57 }
 0x15c   : > { %6340 = vmatmul.mubr.bf16.gmra.mrb[20].mxu0 %v5686_v53  ;;  %v5384_v53 = vcombine.low %v2463_v31, %v2473_v63 }
 0x15d   : > { %6148 = vmatmul.mubr.bf16.gmra.mrb[20].mxu1 %v5382_v3  ;;  %6343 = vmatprep.mubr.bf16.mxu0 %v5687_v16  ;;  %v2516_v16 = vrot.slane %v2515_v29, 4 }
 0x15e   : > { %6151 = vmatprep.mubr.bf16.mxu1 %v5383_v58 }
 0x15f   : > { %v2521_v60 = vsel %vm6926_vm2, %v2516_v16, %v2520_v54 }
 0x160   : > { %v5386_v0 = vcombine.low %v2511_v13, %v2521_v60 }
 0x164   : > { %6344 = vmatmul.mubr.bf16.gmra.mrb[24].mxu0 %v5688_v2 }
 0x165   : > { %6152 = vmatmul.mubr.bf16.gmra.mrb[24].mxu1 %v5384_v53  ;;  %6347 = vmatprep.mubr.bf16.mxu0 %v5689_v28 }
 0x166   : > { %6155 = vmatprep.mubr.bf16.mxu1 %v5385_v7 }
 0x16c   : > { %6348 = vmatmul.mubr.bf16.gmra.mrb[28].mxu0 %v5690_v48 }
 0x16d   : > { %6156 = vmatmul.mubr.bf16.gmra.mrb[28].mxu1 %v5386_v0 }
 0x1e8   : > { %v6081_v27 = vpop.f32.mrb[0].mxu1 }
 0x1e9   : > { %v1931_v46 = vpop.f32.mrb[1].mxu1 }
 0x1ea   : > { %v6082_v2 = vpop.f32.mrb[2].mxu1 }
 0x1eb   : > { %v1934_v42 = vpop.f32.mrb[3].mxu1 }
 0x1f0   : > { %v6085_v17 = vpop.f32.mrb[4].mxu1 }
 0x1f1   : > { %v1947_v55 = vpop.f32.mrb[5].mxu1 }
 0x1f2   : > { %v6086_v49 = vpop.f32.mrb[6].mxu1 }
 0x1f3   : > { %v1950_v28 = vpop.f32.mrb[7].mxu1 }
 0x1f8   : > { %v6089_v24 = vpop.f32.mrb[8].mxu1 }
 0x1f9   : > { %v1963_v40 = vpop.f32.mrb[9].mxu1 }
 0x1fa   : > { %v6090_v21 = vpop.f32.mrb[10].mxu1 }
 0x1fb   : > { %v1966_v37 = vpop.f32.mrb[11].mxu1 }
 0x200   : > { %v6093_v61 = vpop.f32.mrb[12].mxu1 }
 0x201   : > { %v1979_v45 = vpop.f32.mrb[13].mxu1 }
 0x202   : > { %v6094_v8 = vpop.f32.mrb[14].mxu1 }
 0x203   : > { %v1982_v36 = vpop.f32.mrb[15].mxu1 }
 0x207   : > { %v6321_v34 = vpop.f32.mrb[0].mxu0 }
 0x208   : > { %v6367_v11 = vadd.f32 %v6321_v34, %v6081_v27  ;;  %v4822_v48 = vpop.f32.mrb[1].mxu0 }
 0x209   : > { %v6368_v12 = vadd.f32 %v4822_v48, %v1931_v46  ;;  %v6322_v51 = vpop.f32.mrb[2].mxu0 }
 0x20a   : > { %v6369_v32 = vadd.f32 %v6322_v51, %v6082_v2  ;;  %v4825_v5 = vpop.f32.mrb[3].mxu0  ;;  %v4990_v41 = vadd.f32 %v6367_v11, %v8625_v47 }
 0x20b   : > { %v6370_v62 = vadd.f32 %v4825_v5, %v1934_v42  ;;  %v4988_v9 = vadd.f32 %v6368_v12, %v8625_v47 }
 0x20c   : > { %v4991_v6 = vadd.f32 %v6369_v32, %v8625_v47 }
 0x20d   : > { %v4989_v26 = vadd.f32 %v6370_v62, %v8625_v47 }
 0x20e   : > { %v5021_v18 = vpack.c.bf16 %v4991_v6, %v4990_v41 }
 0x20f   : > { %v5020_v33 = vpack.c.bf16 %v4989_v26, %v4988_v9  ;;  %v6325_v14 = vpop.f32.mrb[4].mxu0 }
 0x210   : > { %5037 = vst [vmem:[%s8634_s11 + $0x8] sm:$0xff] %v5021_v18  ;;  %v6371_v10 = vadd.f32 %v6325_v14, %v6085_v17  ;;  %v4838_v39 = vpop.f32.mrb[5].mxu0 }
 0x211   : > { %5036 = vst [vmem:[%s8634_s11] sm:$0xff] %v5020_v33  ;;  %v6372_v50 = vadd.f32 %v4838_v39, %v1947_v55  ;;  %v6326_v23 = vpop.f32.mrb[6].mxu0 }
 0x212   : > { %v6373_v3 = vadd.f32 %v6326_v23, %v6086_v49  ;;  %v4841_v58 = vpop.f32.mrb[7].mxu0  ;;  %v4994_v59 = vadd.f32 %v6371_v10, %v8625_v47 }
 0x213   : > { %v6374_v22 = vadd.f32 %v4841_v58, %v1950_v28  ;;  %v4992_v19 = vadd.f32 %v6372_v50, %v8625_v47 }
 0x214   : > { %v4995_v30 = vadd.f32 %v6373_v3, %v8625_v47 }
 0x215   : > { %v4993_v52 = vadd.f32 %v6374_v22, %v8625_v47 }
 0x216   : > { %v5023_v15 = vpack.c.bf16 %v4995_v30, %v4994_v59 }
 0x217   : > { %v5022_v43 = vpack.c.bf16 %v4993_v52, %v4992_v19  ;;  %v6329_v38 = vpop.f32.mrb[8].mxu0 }
 0x218   : > { %5039 = vst [vmem:[%s8634_s11 + $0x18] sm:$0xff] %v5023_v15  ;;  %v6375_v56 = vadd.f32 %v6329_v38, %v6089_v24  ;;  %v4854_v1 = vpop.f32.mrb[9].mxu0 }
 0x219   : > { %5038 = vst [vmem:[%s8634_s11 + $0x10] sm:$0xff] %v5022_v43  ;;  %v6376_v31 = vadd.f32 %v4854_v1, %v1963_v40  ;;  %v6330_v63 = vpop.f32.mrb[10].mxu0 }
 0x21a   : > { %v6377_v20 = vadd.f32 %v6330_v63, %v6090_v21  ;;  %v4857_v29 = vpop.f32.mrb[11].mxu0  ;;  %v4998_v35 = vadd.f32 %v6375_v56, %v8625_v47 }
 0x21b   : > { %v6378_v44 = vadd.f32 %v4857_v29, %v1966_v37  ;;  %v4996_v57 = vadd.f32 %v6376_v31, %v8625_v47 }
 0x21c   : > { %v4999_v4 = vadd.f32 %v6377_v20, %v8625_v47 }
 0x21d   : > { %v4997_v53 = vadd.f32 %v6378_v44, %v8625_v47 }
 0x21e   : > { %v5025_v7 = vpack.c.bf16 %v4999_v4, %v4998_v35 }
 0x21f   : > { %v5024_v25 = vpack.c.bf16 %v4997_v53, %v4996_v57  ;;  %v6333_v16 = vpop.f32.mrb[12].mxu0 }
 0x220   : > { %5041 = vst [vmem:[%s8634_s11 + $0x28] sm:$0xff] %v5025_v7  ;;  %v6379_v54 = vadd.f32 %v6333_v16, %v6093_v61  ;;  %v4870_v13 = vpop.f32.mrb[13].mxu0 }
 0x221   : > { %5040 = vst [vmem:[%s8634_s11 + $0x20] sm:$0xff] %v5024_v25  ;;  %v6380_v60 = vadd.f32 %v4870_v13, %v1979_v45  ;;  %v6334_v0 = vpop.f32.mrb[14].mxu0 }
 0x222   : > { %v6381_v27 = vadd.f32 %v6334_v0, %v6094_v8  ;;  %v4873_v46 = vpop.f32.mrb[15].mxu0  ;;  %v5002_v42 = vadd.f32 %v6379_v54, %v8625_v47 }
 0x223   : > { %v6382_v2 = vadd.f32 %v4873_v46, %v1982_v36  ;;  %v5000_v55 = vadd.f32 %v6380_v60, %v8625_v47 }
 0x224   : > { %v5003_v17 = vadd.f32 %v6381_v27, %v8625_v47 }
 0x225   : > { %v5001_v49 = vadd.f32 %v6382_v2, %v8625_v47 }
 0x226   : > { %v5027_v28 = vpack.c.bf16 %v5003_v17, %v5002_v42 }
 0x227   : > { %v5026_v24 = vpack.c.bf16 %v5001_v49, %v5000_v55  ;;  %v6337_v40 = vpop.f32.mrb[16].mxu0 }
 0x228   : > { %5043 = vst [vmem:[%s8634_s11 + $0x38] sm:$0xff] %v5027_v28  ;;  %v6145_v21 = vpop.f32.mrb[16].mxu1  ;;  %v4886_v37 = vpop.f32.mrb[17].mxu0 }
 0x229   : > { %5042 = vst [vmem:[%s8634_s11 + $0x30] sm:$0xff] %v5026_v24  ;;  %v6383_v61 = vadd.f32 %v6337_v40, %v6145_v21  ;;  %v2749_v45 = vpop.f32.mrb[17].mxu1  ;;  %v6338_v8 = vpop.f32.mrb[18].mxu0 }
 0x22a   : > { %v6384_v36 = vadd.f32 %v4886_v37, %v2749_v45  ;;  %v6146_v34 = vpop.f32.mrb[18].mxu1  ;;  %v4889_v11 = vpop.f32.mrb[19].mxu0 }
 0x22b   : > { %v6385_v48 = vadd.f32 %v6338_v8, %v6146_v34  ;;  %v2752_v12 = vpop.f32.mrb[19].mxu1  ;;  %v5006_v32 = vadd.f32 %v6383_v61, %v8625_v47 }
 0x22c   : > { %v6386_v51 = vadd.f32 %v4889_v11, %v2752_v12  ;;  %v5004_v62 = vadd.f32 %v6384_v36, %v8625_v47 }
 0x22d   : > { %v5007_v5 = vadd.f32 %v6385_v48, %v8625_v47 }
 0x22e   : > { %v5005_v41 = vadd.f32 %v6386_v51, %v8625_v47 }
 0x22f   : > { %v5029_v6 = vpack.c.bf16 %v5007_v5, %v5006_v32  ;;  %v6341_v9 = vpop.f32.mrb[20].mxu0 }
 0x230   : > { %v5028_v26 = vpack.c.bf16 %v5005_v41, %v5004_v62  ;;  %v6149_v18 = vpop.f32.mrb[20].mxu1  ;;  %v4902_v33 = vpop.f32.mrb[21].mxu0 }
 0x231   : > { %5045 = vst [vmem:[%s8634_s11 + $0x48] sm:$0xff] %v5029_v6  ;;  %v6387_v14 = vadd.f32 %v6341_v9, %v6149_v18  ;;  %v2765_v10 = vpop.f32.mrb[21].mxu1  ;;  %v6342_v39 = vpop.f32.mrb[22].mxu0 }
 0x232   : > { %5044 = vst [vmem:[%s8634_s11 + $0x40] sm:$0xff] %v5028_v26  ;;  %v6388_v50 = vadd.f32 %v4902_v33, %v2765_v10  ;;  %v6150_v23 = vpop.f32.mrb[22].mxu1  ;;  %v4905_v3 = vpop.f32.mrb[23].mxu0 }
 0x233   : > { %v6389_v58 = vadd.f32 %v6342_v39, %v6150_v23  ;;  %v2768_v22 = vpop.f32.mrb[23].mxu1  ;;  %v5010_v30 = vadd.f32 %v6387_v14, %v8625_v47 }
 0x234   : > { %v6390_v59 = vadd.f32 %v4905_v3, %v2768_v22  ;;  %v5008_v52 = vadd.f32 %v6388_v50, %v8625_v47 }
 0x235   : > { %v5011_v19 = vadd.f32 %v6389_v58, %v8625_v47 }
 0x236   : > { %v5009_v15 = vadd.f32 %v6390_v59, %v8625_v47 }
 0x237   : > { %v5031_v43 = vpack.c.bf16 %v5011_v19, %v5010_v30  ;;  %v6345_v38 = vpop.f32.mrb[24].mxu0 }
 0x238   : > { %v5030_v56 = vpack.c.bf16 %v5009_v15, %v5008_v52  ;;  %v6153_v1 = vpop.f32.mrb[24].mxu1  ;;  %v4918_v31 = vpop.f32.mrb[25].mxu0 }
 0x239   : > { %5047 = vst [vmem:[%s8634_s11 + $0x58] sm:$0xff] %v5031_v43  ;;  %v6391_v63 = vadd.f32 %v6345_v38, %v6153_v1  ;;  %v2781_v20 = vpop.f32.mrb[25].mxu1  ;;  %v6346_v29 = vpop.f32.mrb[26].mxu0 }
 0x23a   : > { %5046 = vst [vmem:[%s8634_s11 + $0x50] sm:$0xff] %v5030_v56  ;;  %v6392_v44 = vadd.f32 %v4918_v31, %v2781_v20  ;;  %v6154_v35 = vpop.f32.mrb[26].mxu1  ;;  %v4921_v4 = vpop.f32.mrb[27].mxu0 }
 0x23b   : > { %v6393_v57 = vadd.f32 %v6346_v29, %v6154_v35  ;;  %v2784_v53 = vpop.f32.mrb[27].mxu1  ;;  %v5014_v25 = vadd.f32 %v6391_v63, %v8625_v47 }
 0x23c   : > { %v6394_v7 = vadd.f32 %v4921_v4, %v2784_v53  ;;  %v5012_v54 = vadd.f32 %v6392_v44, %v8625_v47 }
 0x23d   : > { %v5015_v16 = vadd.f32 %v6393_v57, %v8625_v47 }
 0x23e   : > { %v5013_v13 = vadd.f32 %v6394_v7, %v8625_v47 }
 0x23f   : > { %v5033_v60 = vpack.c.bf16 %v5015_v16, %v5014_v25  ;;  %v6349_v0 = vpop.f32.mrb[28].mxu0 }
 0x240   : > { %v5032_v27 = vpack.c.bf16 %v5013_v13, %v5012_v54  ;;  %v6157_v46 = vpop.f32.mrb[28].mxu1  ;;  %v4934_v2 = vpop.f32.mrb[29].mxu0 }
 0x241   : > { %5049 = vst [vmem:[%s8634_s11 + $0x68] sm:$0xff] %v5033_v60  ;;  %v6395_v42 = vadd.f32 %v6349_v0, %v6157_v46  ;;  %v2797_v17 = vpop.f32.mrb[29].mxu1  ;;  %v6350_v55 = vpop.f32.mrb[30].mxu0 }
 0x242   : > { %5048 = vst [vmem:[%s8634_s11 + $0x60] sm:$0xff] %v5032_v27  ;;  %v6396_v49 = vadd.f32 %v4934_v2, %v2797_v17  ;;  %v6158_v28 = vpop.f32.mrb[30].mxu1  ;;  %v4937_v24 = vpop.f32.mrb[31].mxu0 }
 0x243   : > { %v6397_v40 = vadd.f32 %v6350_v55, %v6158_v28  ;;  %v2800_v21 = vpop.f32.mrb[31].mxu1  ;;  %v5018_v61 = vadd.f32 %v6395_v42, %v8625_v47 }
 0x244   : > { %v6398_v37 = vadd.f32 %v4937_v24, %v2800_v21  ;;  %v5016_v8 = vadd.f32 %v6396_v49, %v8625_v47 }
 0x245   : > { %v5019_v45 = vadd.f32 %v6397_v40, %v8625_v47 }
 0x246   : > { %v5017_v36 = vadd.f32 %v6398_v37, %v8625_v47 }
 0x247   : > { %v5035_v34 = vpack.c.bf16 %v5019_v45, %v5018_v61 }
 0x248   : > { %v5034_v11 = vpack.c.bf16 %v5017_v36, %v5016_v8 }
 0x249   : > { %5051 = vst [vmem:[%s8634_s11 + $0x78] sm:$0xff] %v5035_v34 }
 0x24a   : > { %5050 = vst [vmem:[%s8634_s11 + $0x70] sm:$0xff] %v5034_v11 }
 0x24b PF: > { %s13_s12 = sadd.s32 1, %s6828_s12  }
 0x24c   : > { %p10_p4 = scmp.ge.s32.totalorder %s13_s12, 4  }
 0x24e   :  { %12 = sbr.rel (!%p10_p4) target bundleno = 1 (0x1), region = 72 }

// kernel: upsample_module_fwd.9
= control target key start
LH: loop header
LB: loop body
LE: loop exit
PB: predicated region body
PF: predicated region fallthrough
CT: control target
= control target key end

     0   :  { %s2166_s12 = smov 0   ;;  %s2573_s0 = inlined_call_operand.vmem [shape: bf16[2,4,4,128], index: 0, kind: input, shape index: {}]   ;;  %s2574_s1 = inlined_call_operand.vmem [shape: bf16[9,128,128], index: 1, kind: input, shape index: {}]   ;;  %s2575_s2 = inlined_call_operand.vmem [shape: f32[1,128], index: 2, kind: input, shape index: {}]   ;;  %s2576_s3 = inlined_call_operand.vmem [shape: bf16[2,2,2,128], index: 3, kind: output, shape index: {}]  }
   0x1 LB: > { %s1544_s13 = sadd.s32 4294967295, %s2140_s12   ;;  %p1548_p0 = scmp.ge.s32.totalorder %s2140_s12, 1  ;;  %s2140_s12 = sphi %s2166_s12, %s13_s12  }
   0x2   : > { %p137_p1 = scmp.lt.s32.totalorder %s2140_s12, 3 }
   0x4   : > { %p138_p2 = pnand %p1548_p0, %p137_p1 }
   0x5   : > { %v2062_v0 = vld [vmem:[%s2574_s1 + $0x40] sm:$0xff] (!%p138_p2)   ;;  %v2142_v1 = vmov (!%p138_p2), 0.0   ;;  %v2064_v3 = vld [vmem:[%s2574_s1 + $0x48] sm:$0xff] (!%p138_p2)   ;;  %vm2143_vm0 = vmmov (!%p138_p2), 0   ;;  %p160_p3 = scmp.lt.s32.totalorder (!%p138_p2), %s1544_s13, 1  ;;  %v2066_v5 = vld [vmem:[%s2574_s1 + $0x50] sm:$0xff] (!%p138_p2)   ;;  %v262_v16 = vlaneseq (!%p138_p2) }
   0x6   : > { %141 = sbr.rel (%p138_p2) target bundleno = 389 (0x185), region = 32  ;;  %1870 = vmatprep.subr.bf16.mxu0 (!%p138_p2), %v2142_v1  ;;  %1890 = vmatprep.subr.bf16.mxu1 (!%p138_p2), %v2142_v1  ;;  %v2063_v2 = vld [vmem:[%s2574_s1] sm:$0xff] (!%p138_p2)   ;;  %v2065_v4 = vld [vmem:[%s2574_s1 + $0x8] sm:$0xff] (!%p138_p2)   ;;  %v2067_v6 = vld [vmem:[%s2574_s1 + $0x10] sm:$0xff] (!%p138_p2)   ;;  %vm208_vm1 = vsmask.f32 (!%p138_p2), 256 }
   0x7   : > { %1871 = vmatpush3.bf16.msra.mxu0 (!%p138_p2), %v2062_v0  ;;  %1886 = vmatprep.mubr.msk.bf16.mxu0 (!%p138_p2), %vm2143_vm0, %v2142_v1  ;;  %v2068_v7 = vld [vmem:[%s2574_s1 + $0x58] sm:$0xff] (!%p138_p2)   ;;  %v2070_v9 = vld [vmem:[%s2574_s1 + $0x60] sm:$0xff] (!%p138_p2)   ;;  %v2072_v11 = vld [vmem:[%s2574_s1 + $0x68] sm:$0xff] (!%p138_p2)   ;;  %vm209_vm2 = vsmask.f32 (!%p138_p2), 1284  ;;  %v2246_v28 = vshrl.u32 (!%p138_p2), %v262_v16, 7 }
   0x8   : > { %1891 = vmatpush3.bf16.msra.mxu1 (!%p138_p2), %v2063_v2  ;;  %1872 = vmatprep.subr.bf16.mxu0 (!%p138_p2), %v2142_v1  ;;  %v2069_v8 = vld [vmem:[%s2574_s1 + $0x18] sm:$0xff] (!%p138_p2)   ;;  %v2071_v10 = vld [vmem:[%s2574_s1 + $0x20] sm:$0xff] (!%p138_p2)   ;;  %v2073_v13 = vld [vmem:[%s2574_s1 + $0x28] sm:$0xff] (!%p138_p2)   ;;  %vm211_vm4 = vsmask.f32 (!%p138_p2), 2312 }
   0x9   : > { %1892 = vmatprep.subr.bf16.mxu1 (!%p138_p2), %v2142_v1  ;;  %1906 = vmatprep.mubr.msk.bf16.mxu1 (!%p138_p2), %vm2143_vm0, %v2142_v1  ;;  %vm210_vm3 = vmor (!%p138_p2), %vm208_vm1, %vm209_vm2  ;;  %vm213_vm5 = vsmask.f32 (!%p138_p2), 3340  ;;  %vm215_vm6 = vsmask.f32 (!%p138_p2), 4368  ;;  %vm217_vm8 = vsmask.f32 (!%p138_p2), 5396 }
   0xa   : > { %vm212_vm7 = vmor (!%p138_p2), %vm210_vm3, %vm211_vm4  ;;  %vm219_vm9 = vsmask.f32 (!%p138_p2), 6424  ;;  %vm221_vm10 = vsmask.f32 (!%p138_p2), 7452  ;;  %v2074_v18 = vld [vmem:[%s2574_s1 + $0x70] sm:$0xff] (!%p138_p2)   ;;  %v2076_v34 = vld [vmem:[%s2574_s1 + $0x78] sm:$0xff] (!%p138_p2)  }
   0xb   : > { %1873 = vmatpush3.bf16.msra.mxu0 (!%p138_p2), %v2064_v3  ;;  %vm214_vm11 = vmor (!%p138_p2), %vm212_vm7, %vm213_vm5  ;;  %v2075_v25 = vld [vmem:[%s2574_s1 + $0x30] sm:$0xff] (!%p138_p2)   ;;  %v2144_v26 = vmov (!%p138_p2), 1966171168   ;;  %v2077_v37 = vld [vmem:[%s2574_s1 + $0x38] sm:$0xff] (!%p138_p2)  }
   0xc   : > { %1893 = vmatpush3.bf16.msra.mxu1 (!%p138_p2), %v2065_v4  ;;  %1874 = vmatprep.subr.bf16.mxu0 (!%p138_p2), %v2142_v1  ;;  %vm216_vm12 = vmor (!%p138_p2), %vm214_vm11, %vm215_vm6  ;;  %v260_v27 = vunpack.c.l.s4 (!%p138_p2), %v2144_v26  ;;  %v2078_v42 = vld [vmem:[%s2574_s1 + $0x80] sm:$0xff] (!%p138_p2)   ;;  %v2080_v44 = vld [vmem:[%s2574_s1 + $0x88] sm:$0xff] (!%p138_p2)  }
   0xd   : > { %s2580_s13 = smov (!%p160_p3, %s1544_s13), 1  ;;  %1894 = vmatprep.subr.bf16.mxu1 %v2142_v1  ;;  %vm218_vm13 = vmor %vm216_vm12, %vm217_vm8  ;;  %v2079_v43 = vld [vmem:[%s2574_s1 + $0xc0] sm:$0xff]   ;;  %v2081_v45 = vld [vmem:[%s2574_s1 + $0xc8] sm:$0xff]  }
   0xe   : > { %s1788_s28 = sshll.u32 %s2580_s13, 3  ;;  %vm220_vm14 = vmor %vm218_vm13, %vm219_vm9  ;;  %v261_v30 = vunpack.c.0.s8 %v260_v27  ;;  %v2082_v46 = vld [vmem:[%s2574_s1 + $0x90] sm:$0xff]   ;;  %v2084_v48 = vld [vmem:[%s2574_s1 + $0x98] sm:$0xff]   ;;  %s1551_s18 = sshll.u32 %s2580_s13, 1 }
   0xf   : > { %1875 = vmatpush3.bf16.msra.mxu0 %v2066_v5  ;;  %s2216_s6 = scalar_lea.vmem %s2573_s0, %s1788_s28  ;;  %vm2252_vm15 = vmor %vm220_vm14, %vm221_vm10  ;;  %v2083_v47 = vld [vmem:[%s2574_s1 + $0xd0] sm:$0xff]   ;;  %v2085_v49 = vld [vmem:[%s2574_s1 + $0xd8] sm:$0xff]   ;;  %s168_s21 = scalar_lea.vmem %s2576_s3, %s1551_s18 }
  0x10   : > { %1895 = vmatpush3.bf16.msra.mxu1 %v2067_v6  ;;  %1876 = vmatprep.subr.bf16.mxu0 %v2142_v1  ;;  %v1552_v12 = vld.sshfl [vmem:[%s2216_s6] sm:$0x11 pattern:$0x75316420]  ;;  %v171_v24 = vld [vmem:[%s2216_s6 + $0x2] sm:$0x1]  ;;  %v2267_v36 = vsub.s32 %v261_v30, %v2246_v28 }
  0x11   : > { %1896 = vmatprep.subr.bf16.mxu1 %v2142_v1  ;;  %v1553_v14 = vld.sshfl [vmem:[%s2216_s6 + $0x2] sm:$0x11 pattern:$0x75316420]  ;;  %v199_v15 = vcombine.high %v1552_v12, %v1552_v12  ;;  %v224_v19 = vshrl.u32 %v1552_v12, 16  ;;  %v2088_v52 = vld [vmem:[%s2574_s1 + $0xa8] sm:$0xff]  }
  0x12   : > { %v207_v17 = vcombine.high %v1553_v14, %v1553_v14  ;;  %v233_v21 = vshrl.u32 %v1553_v14, 16  ;;  %v170_v23 = vld [vmem:[%s2216_s6] sm:$0x1]  ;;  %v2089_v55 = vld [vmem:[%s2574_s1 + $0xe8] sm:$0xff]   ;;  %v1615_v56 = vld [vmem:[%s2216_s6 + $0x2] sm:$0x1] }
  0x13   : > { %1877 = vmatpush3.bf16.msra.mxu0 %v2068_v7  ;;  %v229_v20 = vshll.u32 %v199_v15, 16  ;;  %v364_v31 = vcombine.low %v170_v23, %v171_v24  ;;  %v2086_v50 = vld [vmem:[%s2574_s1 + $0xa0] sm:$0xff]   ;;  %v2090_v59 = vld [vmem:[%s2574_s1 + $0xb0] sm:$0xff]   ;;  %v2092_v3 = vld [vmem:[%s2574_s1 + $0xb8] sm:$0xff]  }
  0x14   : > { %1897 = vmatpush3.bf16.msra.mxu1 %v2069_v8  ;;  %1878 = vmatprep.subr.bf16.mxu0 %v2142_v1  ;;  %v238_v22 = vshll.u32 %v207_v17, 16  ;;  %v2087_v51 = vld [vmem:[%s2574_s1 + $0xe0] sm:$0xff]   ;;  %v2091_v61 = vld [vmem:[%s2574_s1 + $0xf0] sm:$0xff]   ;;  %v2093_v5 = vld [vmem:[%s2574_s1 + $0xf8] sm:$0xff]  }
  0x15   : > { %1898 = vmatprep.subr.bf16.mxu1 %v2142_v1  ;;  %v231_v32 = vsel %vm2252_vm15, %v224_v19, %v229_v20  ;;  %v371_v39 = vrot.slane %v364_v31, %v2267_v36  ;;  %v1588_v53 = vld.sshfl [vmem:[%s2216_s6] sm:$0x10 pattern:$0x75316420]  ;;  %v1616_v57 = vld [vmem:[%s2216_s6 + $0x4] sm:$0x1] }
  0x16   : > { %v2260_v33 = vsel %vm2252_vm15, %v233_v21, %v238_v22  ;;  %v2327_v54 = vld.sshfl [vmem:[%s2216_s6 + $0x2] sm:$0x10 pattern:$0x75316420]  ;;  %v632_v60 = vcombine.low %v1615_v56, %v1616_v57  ;;  %v2096_v14 = vld [vmem:[%s2574_s1 + $0x108] sm:$0xff]   ;;  %v2098_v17 = vld [vmem:[%s2574_s1 + $0x110] sm:$0xff]  }
  0x17   : > { %1879 = vmatpush3.bf16.msra.mxu0 %v2070_v9  ;;  %v258_v35 = vcombine.low %v231_v32, %v2260_v33  ;;  %v378_v41 = vrot.slane %v371_v39, %v2267_v36  ;;  %v1606_v58 = vcombine.high %v1588_v53, %v2327_v54  ;;  %v1644_v62 = vld.sshfl [vmem:[%s2216_s6 + $0x4] sm:$0x11 pattern:$0x75316420]  ;;  %v2097_v16 = vld [vmem:[%s2574_s1 + $0x148] sm:$0xff]   ;;  %v2100_v19 = vld [vmem:[%s2574_s1 + $0x118] sm:$0xff]  }
  0x18   : > { %1899 = vmatpush3.bf16.msra.mxu1 %v2071_v10  ;;  %1880 = vmatprep.subr.bf16.mxu0 %v2142_v1  ;;  %v756_v0 = vcombine.high %v1644_v62, %v1644_v62  ;;  %v767_v2 = vshrl.u32 %v1644_v62, 16  ;;  %v639_v4 = vrot.slane %v632_v60, %v2267_v36  ;;  %v2094_v9 = vld [vmem:[%s2574_s1 + $0x100] sm:$0xff]   ;;  %v2101_v20 = vld [vmem:[%s2574_s1 + $0x158] sm:$0xff]   ;;  %v2104_v31 = vld [vmem:[%s2574_s1 + $0x128] sm:$0xff]  }
  0x19   : > { %1900 = vmatprep.subr.bf16.mxu1 %v2142_v1  ;;  %v265_v38 = vrot.slane %v258_v35, %v2267_v36  ;;  %v512_v63 = vrot.slane %v1606_v58, %v2267_v36  ;;  %v2095_v12 = vld [vmem:[%s2574_s1 + $0x140] sm:$0xff]   ;;  %v2105_v32 = vld [vmem:[%s2574_s1 + $0x168] sm:$0xff]   ;;  %v2106_v35 = vld [vmem:[%s2574_s1 + $0x130] sm:$0xff]  }
  0x1a   : > { %v772_v6 = vshll.u32 %v756_v0, 16  ;;  %v646_v10 = vrot.slane %v639_v4, %v2267_v36  ;;  %v1729_v21 = vld.sshfl [vmem:[%s2216_s6 + $0x6] sm:$0x11 pattern:$0x75316420]  ;;  %v2108_v39 = vld [vmem:[%s2574_s1 + $0x138] sm:$0xff]  }
  0x1b   : > { %1881 = vmatpush3.bf16.msra.mxu0 %v2072_v11  ;;  %v272_v40 = vrot.slane %v265_v38, %v2267_v36  ;;  %v519_v7 = vrot.slane %v512_v63, %v2267_v36  ;;  %v1185_v22 = vcombine.high %v1729_v21, %v1729_v21  ;;  %v1196_v23 = vshrl.u32 %v1729_v21, 16  ;;  %v2102_v24 = vld [vmem:[%s2574_s1 + $0x120] sm:$0xff]   ;;  %v2107_v38 = vld [vmem:[%s2574_s1 + $0x170] sm:$0xff]   ;;  %v2120_v53 = vld [vmem:[%s2574_s1 + $0x1a8] sm:$0xff]  }
  0x1c   : > { %1901 = vmatpush3.bf16.msra.mxu1 %v2073_v13  ;;  %1882 = vmatprep.subr.bf16.mxu0 %v2142_v1  ;;  %v774_v8 = vsel %vm2252_vm15, %v767_v2, %v772_v6  ;;  %v2103_v26 = vld [vmem:[%s2574_s1 + $0x160] sm:$0xff]   ;;  %v2121_v56 = vld [vmem:[%s2574_s1 + $0x1e8] sm:$0xff]   ;;  %v2122_v58 = vld [vmem:[%s2574_s1 + $0x1b0] sm:$0xff]  }
  0x1d   : > { %1902 = vmatprep.subr.bf16.mxu1 %v2142_v1  ;;  %v792_v11 = vcombine.low %v2260_v33, %v774_v8  ;;  %v2421_v33 = vld.sshfl [vmem:[%s2216_s6 + $0x4] sm:$0x10 pattern:$0x75316420]  ;;  %v2125_v62 = vld [vmem:[%s2574_s1 + $0x1f8] sm:$0xff]   ;;  %v2127_v2 = vld [vmem:[%s2574_s1 + $0x208] sm:$0xff]  }
  0x1e   : > { %v2126_v0 = vld [vmem:[%s2574_s1 + $0x200] sm:$0xff]   ;;  %v2129_v4 = vld [vmem:[%s2574_s1 + $0x218] sm:$0xff]   ;;  %v2131_v6 = vld [vmem:[%s2574_s1 + $0x228] sm:$0xff]  }
  0x1f   : > { %1883 = vmatpush3.bf16.msra.mxu0 %v2074_v18  ;;  %v2370_v13 = vrot.slane %v792_v11, %v2267_v36  ;;  %v2099_v18 = vld [vmem:[%s2574_s1 + $0x150] sm:$0xff]   ;;  %v2133_v11 = vld [vmem:[%s2574_s1 + $0x238] sm:$0xff]  }
  0x20   : > { %1903 = vmatpush3.bf16.msra.mxu1 %v2075_v25  ;;  %1884 = vmatprep.subr.bf16.mxu0 %v2142_v1  ;;  %v1201_v25 = vshll.u32 %v1185_v22, 16 }
  0x21   : > { %1904 = vmatprep.subr.bf16.mxu1 %v2142_v1  ;;  %v806_v15 = vrot.slane %v2370_v13, %v2267_v36 }
  0x22   : > { %v1203_v27 = vsel %vm2252_vm15, %v1196_v23, %v1201_v25 }
  0x23   : > { %1885 = vmatpush3.bf16.msra.mxu0 %v2076_v34  ;;  %v1221_v30 = vcombine.low %v774_v8, %v1203_v27 }
  0x24   : > { %1905 = vmatpush3.bf16.msra.mxu1 %v2077_v37  ;;  %1910 = vmatprep.subr.bf16.mxu0 %v2142_v1  ;;  %v1691_v37 = vcombine.high %v2327_v54, %v2421_v33  ;;  %v1700_v54 = vld [vmem:[%s2216_s6 + $0x4] sm:$0x1] }
  0x25   : > { %1930 = vmatprep.subr.bf16.mxu1 %v2142_v1  ;;  %v2424_v34 = vrot.slane %v1221_v30, %v2267_v36 }
  0x26   : > { %1887 = vmatmul.mubr.bf16.vlgmr.msra.gmra.mrb[0].mxu0 %v272_v40  ;;  %v941_v40 = vrot.slane %v1691_v37, %v2267_v36 }
  0x27   : > { %1907 = vmatmul.mubr.bf16.vlgmr.msra.gmra.mrb[0].mxu1 %v378_v41  ;;  %1911 = vmatpush3.bf16.msra.mxu0 %v2078_v42  ;;  %v1235_v29 = vrot.slane %v2424_v34, %v2267_v36  ;;  %v2109_v41 = vld [vmem:[%s2574_s1 + $0x178] sm:$0xff]   ;;  %v2110_v42 = vld [vmem:[%s2574_s1 + $0x180] sm:$0xff]  }
  0x28   : > { %1931 = vmatpush3.bf16.msra.mxu1 %v2079_v43  ;;  %1912 = vmatprep.subr.bf16.mxu0 %v2142_v1  ;;  %v948_v43 = vrot.slane %v941_v40, %v2267_v36 }
  0x29   : > { %1932 = vmatprep.subr.bf16.mxu1 %v2142_v1  ;;  %1926 = vmatprep.mubr.msk.bf16.mxu0 %vm2143_vm0, %v2142_v1 }
  0x2a   : > { %1946 = vmatprep.mubr.msk.bf16.mxu1 %vm2143_vm0, %v2142_v1 }
  0x2b   : > { %1913 = vmatpush3.bf16.msra.mxu0 %v2080_v44  ;;  %v2111_v44 = vld [vmem:[%s2574_s1 + $0x1c0] sm:$0xff]  }
  0x2c   : > { %1933 = vmatpush3.bf16.msra.mxu1 %v2081_v45  ;;  %1914 = vmatprep.subr.bf16.mxu0 %v2142_v1  ;;  %v2112_v45 = vld [vmem:[%s2574_s1 + $0x188] sm:$0xff]  }
  0x2d   : > { %1934 = vmatprep.subr.bf16.mxu1 %v2142_v1 }
  0x2f   : > { %1915 = vmatpush3.bf16.msra.mxu0 %v2082_v46  ;;  %v2113_v46 = vld [vmem:[%s2574_s1 + $0x1c8] sm:$0xff]  }
  0x30   : > { %1935 = vmatpush3.bf16.msra.mxu1 %v2083_v47  ;;  %1916 = vmatprep.subr.bf16.mxu0 %v2142_v1  ;;  %v2114_v47 = vld [vmem:[%s2574_s1 + $0x190] sm:$0xff]  }
  0x31   : > { %1936 = vmatprep.subr.bf16.mxu1 %v2142_v1 }
  0x33   : > { %1917 = vmatpush3.bf16.msra.mxu0 %v2084_v48  ;;  %v2115_v48 = vld [vmem:[%s2574_s1 + $0x1d0] sm:$0xff]  }
  0x34   : > { %1937 = vmatpush3.bf16.msra.mxu1 %v2085_v49  ;;  %1918 = vmatprep.subr.bf16.mxu0 %v2142_v1  ;;  %v2116_v49 = vld [vmem:[%s2574_s1 + $0x198] sm:$0xff]  }
  0x35   : > { %1938 = vmatprep.subr.bf16.mxu1 %v2142_v1 }
  0x37   : > { %1919 = vmatpush3.bf16.msra.mxu0 %v2086_v50  ;;  %v2117_v50 = vld [vmem:[%s2574_s1 + $0x1d8] sm:$0xff]  }
  0x38   : > { %1939 = vmatpush3.bf16.msra.mxu1 %v2087_v51  ;;  %1920 = vmatprep.subr.bf16.mxu0 %v2142_v1  ;;  %v2118_v51 = vld [vmem:[%s2574_s1 + $0x1a0] sm:$0xff]  }
  0x39   : > { %1940 = vmatprep.subr.bf16.mxu1 %v2142_v1 }
  0x3b   : > { %1921 = vmatpush3.bf16.msra.mxu0 %v2088_v52  ;;  %v2119_v52 = vld [vmem:[%s2574_s1 + $0x1e0] sm:$0xff]  }
  0x3c   : > { %1941 = vmatpush3.bf16.msra.mxu1 %v2089_v55  ;;  %1922 = vmatprep.subr.bf16.mxu0 %v2142_v1  ;;  %v1701_v55 = vld [vmem:[%s2216_s6 + $0x6] sm:$0x1] }
  0x3d   : > { %1942 = vmatprep.subr.bf16.mxu1 %v2142_v1  ;;  %v1061_v57 = vcombine.low %v1700_v54, %v1701_v55 }
  0x3f   : > { %1923 = vmatpush3.bf16.msra.mxu0 %v2090_v59  ;;  %v2123_v59 = vld [vmem:[%s2574_s1 + $0x1f0] sm:$0xff]   ;;  %v1068_v60 = vrot.slane %v1061_v57, %v2267_v36 }
  0x40   : > { %1943 = vmatpush3.bf16.msra.mxu1 %v2091_v61  ;;  %1924 = vmatprep.subr.bf16.mxu0 %v2142_v1  ;;  %v2124_v61 = vld [vmem:[%s2574_s1 + $0x1b8] sm:$0xff]  }
  0x41   : > { %1944 = vmatprep.subr.bf16.mxu1 %v2142_v1  ;;  %v1075_v63 = vrot.slane %v1068_v60, %v2267_v36 }
  0x43   : > { %1925 = vmatpush3.bf16.msra.mxu0 %v2092_v3  ;;  %v2128_v3 = vld [vmem:[%s2574_s1 + $0x210] sm:$0xff]  }
  0x44   : > { %1945 = vmatpush3.bf16.msra.mxu1 %v2093_v5  ;;  %1950 = vmatprep.subr.bf16.mxu0 %v2142_v1  ;;  %v2130_v5 = vld [vmem:[%s2574_s1 + $0x220] sm:$0xff]  }
  0x45   : > { %1970 = vmatprep.subr.bf16.mxu1 %v2142_v1 }
  0x46   : > { %1927 = vmatmul.mubr.bf16.vlgmr.msra.gmra.mrb[4].mxu0 %v519_v7  ;;  %v1759_v7 = vld.sshfl [vmem:[%s2216_s6 + $0x6] sm:$0x10 pattern:$0x75316420] }
  0x47   : > { %1951 = vmatpush3.bf16.msra.mxu0 %v2094_v9  ;;  %1947 = vmatmul.mubr.bf16.vlgmr.msra.gmra.mrb[4].mxu1 %v646_v10  ;;  %v1776_v8 = vcombine.high %v2421_v33, %v1759_v7  ;;  %v2132_v9 = vld [vmem:[%s2574_s1 + $0x230] sm:$0xff]  }
  0x48   : > { %1971 = vmatpush3.bf16.msra.mxu1 %v2095_v12  ;;  %1952 = vmatprep.subr.bf16.mxu0 %v2142_v1 }
  0x49   : > { %1972 = vmatprep.subr.bf16.mxu1 %v2142_v1  ;;  %1966 = vmatprep.mubr.msk.bf16.mxu0 %vm2143_vm0, %v2142_v1  ;;  %v1370_v10 = vrot.slane %v1776_v8, %v2267_v36 }
  0x4a   : > { %1986 = vmatprep.mubr.msk.bf16.mxu1 %vm2143_vm0, %v2142_v1 }
  0x4b   : > { %1953 = vmatpush3.bf16.msra.mxu0 %v2096_v14  ;;  %v1377_v12 = vrot.slane %v1370_v10, %v2267_v36 }
  0x4c   : > { %1973 = vmatpush3.bf16.msra.mxu1 %v2097_v16  ;;  %1954 = vmatprep.subr.bf16.mxu0 %v2142_v1 }
  0x4d   : > { %1974 = vmatprep.subr.bf16.mxu1 %v2142_v1 }
  0x4f   : > { %1955 = vmatpush3.bf16.msra.mxu0 %v2098_v17 }
  0x50   : > { %1975 = vmatpush3.bf16.msra.mxu1 %v2099_v18  ;;  %1956 = vmatprep.subr.bf16.mxu0 %v2142_v1 }
  0x51   : > { %1976 = vmatprep.subr.bf16.mxu1 %v2142_v1 }
  0x53   : > { %1957 = vmatpush3.bf16.msra.mxu0 %v2100_v19 }
  0x54   : > { %1977 = vmatpush3.bf16.msra.mxu1 %v2101_v20  ;;  %1958 = vmatprep.subr.bf16.mxu0 %v2142_v1 }
  0x55   : > { %1978 = vmatprep.subr.bf16.mxu1 %v2142_v1 }
  0x57   : > { %1959 = vmatpush3.bf16.msra.mxu0 %v2102_v24 }
  0x58   : > { %1979 = vmatpush3.bf16.msra.mxu1 %v2103_v26  ;;  %1960 = vmatprep.subr.bf16.mxu0 %v2142_v1 }
  0x59   : > { %1980 = vmatprep.subr.bf16.mxu1 %v2142_v1 }
  0x5b   : > { %1961 = vmatpush3.bf16.msra.mxu0 %v2104_v31 }
  0x5c   : > { %1981 = vmatpush3.bf16.msra.mxu1 %v2105_v32  ;;  %1962 = vmatprep.subr.bf16.mxu0 %v2142_v1 }
  0x5d   : > { %1982 = vmatprep.subr.bf16.mxu1 %v2142_v1 }
  0x5f   : > { %1963 = vmatpush3.bf16.msra.mxu0 %v2106_v35 }
  0x60   : > { %1983 = vmatpush3.bf16.msra.mxu1 %v2107_v38  ;;  %1964 = vmatprep.subr.bf16.mxu0 %v2142_v1 }
  0x61   : > { %1984 = vmatprep.subr.bf16.mxu1 %v2142_v1 }
  0x63   : > { %1965 = vmatpush3.bf16.msra.mxu0 %v2108_v39 }
  0x64   : > { %1985 = vmatpush3.bf16.msra.mxu1 %v2109_v41  ;;  %1990 = vmatprep.subr.bf16.mxu0 %v2142_v1 }
  0x65   : > { %2010 = vmatprep.subr.bf16.mxu1 %v2142_v1 }
  0x66   : > { %1967 = vmatmul.mubr.bf16.vlgmr.msra.gmra.mrb[8].mxu0 %v806_v15 }
  0x67   : > { %1991 = vmatpush3.bf16.msra.mxu0 %v2110_v42  ;;  %1987 = vmatmul.mubr.bf16.vlgmr.msra.gmra.mrb[8].mxu1 %v948_v43 }
  0x68   : > { %2011 = vmatpush3.bf16.msra.mxu1 %v2111_v44  ;;  %1992 = vmatprep.subr.bf16.mxu0 %v2142_v1 }
  0x69   : > { %2012 = vmatprep.subr.bf16.mxu1 %v2142_v1  ;;  %2006 = vmatprep.mubr.msk.bf16.mxu0 %vm2143_vm0, %v2142_v1 }
  0x6a   : > { %2026 = vmatprep.mubr.msk.bf16.mxu1 %vm2143_vm0, %v2142_v1 }
  0x6b   : > { %1993 = vmatpush3.bf16.msra.mxu0 %v2112_v45 }
  0x6c   : > { %2013 = vmatpush3.bf16.msra.mxu1 %v2113_v46  ;;  %1994 = vmatprep.subr.bf16.mxu0 %v2142_v1 }
  0x6d   : > { %2014 = vmatprep.subr.bf16.mxu1 %v2142_v1 }
  0x6f   : > { %1995 = vmatpush3.bf16.msra.mxu0 %v2114_v47 }
  0x70   : > { %2015 = vmatpush3.bf16.msra.mxu1 %v2115_v48  ;;  %1996 = vmatprep.subr.bf16.mxu0 %v2142_v1 }
  0x71   : > { %2016 = vmatprep.subr.bf16.mxu1 %v2142_v1 }
  0x73   : > { %1997 = vmatpush3.bf16.msra.mxu0 %v2116_v49 }
  0x74   : > { %2017 = vmatpush3.bf16.msra.mxu1 %v2117_v50  ;;  %1998 = vmatprep.subr.bf16.mxu0 %v2142_v1 }
  0x75   : > { %2018 = vmatprep.subr.bf16.mxu1 %v2142_v1 }
  0x77   : > { %1999 = vmatpush3.bf16.msra.mxu0 %v2118_v51 }
  0x78   : > { %2019 = vmatpush3.bf16.msra.mxu1 %v2119_v52  ;;  %2000 = vmatprep.subr.bf16.mxu0 %v2142_v1  ;;  %v2145_v52 = vmov 1983009808  }
  0x79   : > { %2020 = vmatprep.subr.bf16.mxu1 %v2142_v1 }
  0x7b   : > { %2001 = vmatpush3.bf16.msra.mxu0 %v2120_v53  ;;  %v1478_v53 = vunpack.c.l.s4 %v2145_v52 }
  0x7c   : > { %2021 = vmatpush3.bf16.msra.mxu1 %v2121_v56  ;;  %2002 = vmatprep.subr.bf16.mxu0 %v2142_v1  ;;  %v1785_v56 = vld [vmem:[%s2575_s2] ss:$0 sm:$0xff] }
  0x7d   : > { %2022 = vmatprep.subr.bf16.mxu1 %v2142_v1  ;;  %v1479_v54 = vunpack.c.0.s8 %v1478_v53 }
  0x7f   : > { %2003 = vmatpush3.bf16.msra.mxu0 %v2122_v58  ;;  %v1482_v58 = vsub.s32 %v1479_v54, %v2246_v28 }
  0x80   : > { %2023 = vmatpush3.bf16.msra.mxu1 %v2123_v59  ;;  %2004 = vmatprep.subr.bf16.mxu0 %v2142_v1 }
  0x81   : > { %2024 = vmatprep.subr.bf16.mxu1 %v2142_v1 }
  0x83   : > { %2005 = vmatpush3.bf16.msra.mxu0 %v2124_v61 }
  0x84   : > { %2025 = vmatpush3.bf16.msra.mxu1 %v2125_v62  ;;  %2030 = vmatprep.subr.bf16.mxu0 %v2142_v1 }
  0x86   : > { %2007 = vmatmul.mubr.bf16.vlgmr.msra.gmra.mrb[12].mxu0 %v1075_v63 }
  0x87   : > { %2031 = vmatpush3.bf16.msra.mxu0 %v2126_v0  ;;  %2027 = vmatmul.mubr.bf16.vlgmr.msra.gmra.mrb[12].mxu1 %v1235_v29 }
  0x88   : > { %2032 = vmatprep.subr.bf16.mxu0 %v2142_v1  ;;  %2046 = vmatprep.mubr.msk.bf16.mxu0 %vm2143_vm0, %v2142_v1 }
  0x8b   : > { %2033 = vmatpush3.bf16.msra.mxu0 %v2127_v2 }
  0x8c   : > { %2034 = vmatprep.subr.bf16.mxu0 %v2142_v1 }
  0x8f   : > { %2035 = vmatpush3.bf16.msra.mxu0 %v2128_v3 }
  0x90   : > { %2036 = vmatprep.subr.bf16.mxu0 %v2142_v1 }
  0x93   : > { %2037 = vmatpush3.bf16.msra.mxu0 %v2129_v4 }
  0x94   : > { %2038 = vmatprep.subr.bf16.mxu0 %v2142_v1 }
  0x97   : > { %2039 = vmatpush3.bf16.msra.mxu0 %v2130_v5 }
  0x98   : > { %2040 = vmatprep.subr.bf16.mxu0 %v2142_v1 }
  0x9b   : > { %2041 = vmatpush3.bf16.msra.mxu0 %v2131_v6 }
  0x9c   : > { %2042 = vmatprep.subr.bf16.mxu0 %v2142_v1 }
  0x9f   : > { %2043 = vmatpush3.bf16.msra.mxu0 %v2132_v9 }
  0xa0   : > { %2044 = vmatprep.subr.bf16.mxu0 %v2142_v1 }
  0xa3   : > { %2045 = vmatpush3.bf16.msra.mxu0 %v2133_v11 }
  0xa6   : > { %2047 = vmatmul.mubr.bf16.vlgmr.msra.gmra.mrb[16].mxu0 %v1377_v12 }
  0xf9   : > { %v356_v13 = vpop.f32.mrb[0].mxu0 }
  0xfa   : > { %v1888_v14 = vpop.f32.mrb[1].mxu0  ;;  %v462_v15 = vpop.f32.mrb[0].mxu1 }
  0xfb   : > { %v463_v16 = vadd.f32 %v462_v15, %v356_v13  ;;  %v359_v17 = vpop.f32.mrb[2].mxu0  ;;  %v1908_v18 = vpop.f32.mrb[1].mxu1 }
  0xfc   : > { %v1889_v19 = vpop.f32.mrb[3].mxu0  ;;  %v465_v20 = vpop.f32.mrb[2].mxu1 }
  0xfd   : > { %v1909_v21 = vpop.f32.mrb[3].mxu1 }
 0x119   : > { %v603_v22 = vpop.f32.mrb[4].mxu0 }
 0x11a   : > { %v609_v23 = vadd.f32 %v603_v22, %v463_v16  ;;  %v1928_v24 = vpop.f32.mrb[5].mxu0  ;;  %v730_v25 = vpop.f32.mrb[4].mxu1 }
 0x11b   : > { %v606_v26 = vpop.f32.mrb[6].mxu0  ;;  %v1948_v27 = vpop.f32.mrb[5].mxu1 }
 0x11c   : > { %v736_v1 = vadd.f32 %v730_v25, %v609_v23  ;;  %v1929_v30 = vpop.f32.mrb[7].mxu0  ;;  %v733_v36 = vpop.f32.mrb[6].mxu1 }
 0x11d   : > { %v1949_v31 = vpop.f32.mrb[7].mxu1 }
 0x139   : > { %v890_v32 = vpop.f32.mrb[8].mxu0 }
 0x13a   : > { %v896_v33 = vadd.f32 %v890_v32, %v736_v1  ;;  %v1968_v34 = vpop.f32.mrb[9].mxu0  ;;  %v1032_v29 = vpop.f32.mrb[8].mxu1 }
 0x13b   : > { %v893_v35 = vpop.f32.mrb[10].mxu0  ;;  %v1988_v37 = vpop.f32.mrb[9].mxu1 }
 0x13c   : > { %v1038_v38 = vadd.f32 %v1032_v29, %v896_v33  ;;  %v1969_v39 = vpop.f32.mrb[11].mxu0  ;;  %v1035_v40 = vpop.f32.mrb[10].mxu1 }
 0x13d   : > { %v1989_v41 = vpop.f32.mrb[11].mxu1 }
 0x159   : > { %v1159_v42 = vpop.f32.mrb[12].mxu0 }
 0x15a   : > { %v1165_v43 = vadd.f32 %v1159_v42, %v1038_v38  ;;  %v2008_v44 = vpop.f32.mrb[13].mxu0  ;;  %v1319_v45 = vpop.f32.mrb[12].mxu1 }
 0x15b   : > { %v1162_v46 = vpop.f32.mrb[14].mxu0  ;;  %v2028_v47 = vpop.f32.mrb[13].mxu1 }
 0x15c   : > { %v1325_v48 = vadd.f32 %v1319_v45, %v1165_v43  ;;  %v2009_v49 = vpop.f32.mrb[15].mxu0  ;;  %v1322_v50 = vpop.f32.mrb[14].mxu1 }
 0x15d   : > { %v2029_v51 = vpop.f32.mrb[15].mxu1 }
 0x179   : > { %v1461_v55 = vpop.f32.mrb[16].mxu0 }
 0x17a   : > { %v1467_v57 = vadd.f32 %v1461_v55, %v1325_v48  ;;  %v2048_v59 = vpop.f32.mrb[17].mxu0 }
 0x17b   : > { %v1464_v60 = vpop.f32.mrb[18].mxu0 }
 0x17c   : > { %v1475_v61 = vadd.f32 %v1785_v56, %v1467_v57  ;;  %v2049_v62 = vpop.f32.mrb[19].mxu0 }
 0x17e   : > { %v1483_v63 = vrot.slane %v1475_v61, %v1482_v58 }
 0x180   : > { %v1484_v0 = vcombine.high %v1483_v63, %v1483_v63  ;;  %v1487_v2 = vpack.c.bf16 %v1483_v63, %v1483_v63 }
 0x182   : > { %v1488_v3 = vpack.c.bf16 %v1484_v0, %v1484_v0  ;;  %1489 = vst [vmem:[%s168_s21] sm:$0x1] %v1487_v2 }
 0x184   : > { %1490 = vst [vmem:[%s168_s21 + $0x1] sm:$0x1] %v1488_v3 }
 0x185 PF: > { %s13_s12 = sadd.s32 1, %s2140_s12  }
 0x186   : > { %p10_p4 = scmp.ge.s32.totalorder %s13_s12, 4  }
 0x188   :  { %12 = sbr.rel (!%p10_p4) target bundleno = 1 (0x1), region = 72 }

</bundles_post_ra>
